<compile_context>
chip_gen: v7x
topology: tpu7x:2x2x1
jax: 0.10.0
libtpu: 0.0.40
codegen_flags: <defaults>
</compile_context>

<pallas_src>
import math

import jax
import jax.numpy as jnp
from jax import lax
from jax.experimental import pallas as pl
from jax.experimental.pallas import tpu as pltpu

# ---------------- config (small shapes consistent with the module) ----------------
BATCH = 2
SEQ = 32
FEAT_IN = 16          # raw input feature dim consumed by the (stubbed) pretrain model
HIDDEN = 32           # hidden_dim (must be divisible by nhead=8)
FEATURE_DIM = 16      # feature_dim
NUM_LAYERS = 2        # num_layers
NUM_HEADS = 8
HEAD_DIM = HIDDEN // NUM_HEADS
FFN = 2 * HIDDEN
OUTPUT_LENGTH = 20
LN_EPS = 1e-5

# rows of the per-layer bias/LayerNorm slab (shape (L, 8, 128))
_R_BQKV, _R_BO, _R_B1, _R_B2, _R_G1, _R_BE1, _R_G2, _R_BE2 = range(8)


# =========================== fused Pallas kernel ===========================

def _layernorm(h, gamma, beta):
    mu = jnp.mean(h, axis=-1, keepdims=True)
    var = jnp.mean((h - mu) ** 2, axis=-1, keepdims=True)
    return (h - mu) * lax.rsqrt(var + LN_EPS) * gamma + beta


def _fused_forward_kernel(x_ref, pre_ref, wattn_ref, wmlp1_ref, wmlp2_ref,
                          vec_ref, outp_ref, o_ref):
    # Everything resident in VMEM; batch stacked on sublanes: x is (B*S, FEAT_IN).
    x = x_ref[...]

    # TODO(synk): `pretrain_model` is an external frozen module whose internals
    # are not given; modeled as a frozen Linear(FEAT_IN -> HIDDEN).
    pre = pre_ref[...]                                   # (FEAT_IN+1, HIDDEN)
    h = (jnp.dot(x, pre[:FEAT_IN, :], preferred_element_type=jnp.float32)
         + pre[FEAT_IN:FEAT_IN + 1, :])                  # (B*S, HIDDEN)

    for l in range(NUM_LAYERS):                          # static unroll
        wa = wattn_ref[l]                                # (D, 4D) = (32, 128)
        wqkv = wa[:, :3 * HIDDEN]                        # (D, 3D)
        wo = wa[:, 3 * HIDDEN:]                          # (D, D)

        vecs = vec_ref[l]                                # (8, 128)
        bqkv = vecs[_R_BQKV:_R_BQKV + 1, :3 * HIDDEN]
        bo = vecs[_R_BO:_R_BO + 1, :HIDDEN]
        b1 = vecs[_R_B1:_R_B1 + 1, :FFN]
        b2 = vecs[_R_B2:_R_B2 + 1, :HIDDEN]
        g1 = vecs[_R_G1:_R_G1 + 1, :HIDDEN]
        be1 = vecs[_R_BE1:_R_BE1 + 1, :HIDDEN]
        g2 = vecs[_R_G2:_R_G2 + 1, :HIDDEN]
        be2 = vecs[_R_BE2:_R_BE2 + 1, :HIDDEN]

        # ---- fused QKV projection: one lane-dense (64,32)@(32,96) matmul ----
        qkv = jnp.dot(h, wqkv, preferred_element_type=jnp.float32) + bqkv   # (B*S, 3D)

        # ---- per-(batch, head) attention core (head_dim=4; tiny dots, not binding) ----
        ctx_rows = []
        for b in range(BATCH):
            qkv_b = qkv[b * SEQ:(b + 1) * SEQ, :]                           # (S, 3D)
            head_ctx = []
            for hh in range(NUM_HEADS):
                o_q = hh * HEAD_DIM
                q_h = qkv_b[:, o_q:o_q + HEAD_DIM]                          # (S, hd)
                k_h = qkv_b[:, HIDDEN + o_q:HIDDEN + o_q + HEAD_DIM]
                v_h = qkv_b[:, 2 * HIDDEN + o_q:2 * HIDDEN + o_q + HEAD_DIM]

                s = lax.dot_general(q_h, k_h, (((1,), (1,)), ((), ())),
                                    preferred_element_type=jnp.float32)     # (S, S)
                s = s - jnp.max(s, axis=-1, keepdims=True)
                p = jnp.exp(s)
                p = p * pl.reciprocal(jnp.sum(p, axis=-1, keepdims=True), approx=True)
                head_ctx.append(jnp.dot(p, v_h,
                                        preferred_element_type=jnp.float32))  # (S, hd)
            ctx_rows.append(jnp.concatenate(head_ctx, axis=-1))             # (S, D)
        ctx = jnp.concatenate(ctx_rows, axis=0)                             # (B*S, D)

        # ---- single output projection (64,32)@(32,32) ----
        attn = jnp.dot(ctx, wo, preferred_element_type=jnp.float32) + bo

        # ---- post-norm residual block 1 ----
        h1 = _layernorm(h + attn, g1, be1)

        # ---- feed-forward (ReLU) ----
        ff = jnp.maximum(
            jnp.dot(h1, wmlp1_ref[l], preferred_element_type=jnp.float32) + b1, 0.0)
        ff = jnp.dot(ff, wmlp2_ref[l], preferred_element_type=jnp.float32) + b2

        # ---- post-norm residual block 2 ----
        h = _layernorm(h1 + ff, g2, be2)

    # ---- output head on the full token slab; output_length slice done in wrapper ----
    op = outp_ref[...]                                   # (HIDDEN+1, FEATURE_DIM)
    o_ref[...] = (jnp.dot(h, op[:HIDDEN, :], preferred_element_type=jnp.float32)
                  + op[HIDDEN:HIDDEN + 1, :])


def downstream_forward(x, kp, output_length=OUTPUT_LENGTH):
    """Fused forward. `kp` is the packed (kernel-layout) parameter dict."""
    B, S, Fin = x.shape
    x2 = x.reshape(B * S, Fin)

    vmem = pl.BlockSpec(memory_space=pltpu.MemorySpace.VMEM)
    out2 = pl.pallas_call(
        _fused_forward_kernel,
        out_shape=jax.ShapeDtypeStruct((B * S, FEATURE_DIM), jnp.float32),
        in_specs=[vmem] * 7,
        out_specs=vmem,
    )(x2, kp["pre"], kp["wattn"], kp["wmlp1"], kp["wmlp2"], kp["vecs"], kp["outp"])

    out = out2.reshape(B, S, FEATURE_DIM)
    if output_length is not None:
        out = out[:, :output_length, :]
    return out


# =========================== parameters ===========================

def init_params(key):
    """Logical (PyTorch-like) parameter layout, used by the pure-JAX reference."""
    ks = jax.random.split(key, 4 + NUM_LAYERS)
    params = {}

    # TODO(synk): frozen pretrain_model stubbed as Linear(FEAT_IN -> HIDDEN).
    params["pre_w"] = 0.02 * jax.random.normal(ks[0], (FEAT_IN, HIDDEN), jnp.float32)
    params["pre_b"] = jnp.zeros((1, HIDDEN), jnp.float32)

    layers = []
    for l in range(NUM_LAYERS):
        lk = jax.random.split(ks[1 + l], 4)
        layers.append({
            "wqkv": 0.02 * jax.random.normal(lk[0], (HIDDEN, 3 * HIDDEN), jnp.float32),
            "bqkv": jnp.zeros((1, 3 * HIDDEN), jnp.float32),
            "wo":   0.02 * jax.random.normal(lk[1], (HIDDEN, HIDDEN), jnp.float32),
            "bo":   jnp.zeros((1, HIDDEN), jnp.float32),
            "w1":   0.02 * jax.random.normal(lk[2], (HIDDEN, FFN), jnp.float32),
            "b1":   jnp.zeros((1, FFN), jnp.float32),
            "w2":   0.02 * jax.random.normal(lk[3], (FFN, HIDDEN), jnp.float32),
            "b2":   jnp.zeros((1, HIDDEN), jnp.float32),
            "g1":   jnp.ones((1, HIDDEN), jnp.float32),
            "be1":  jnp.zeros((1, HIDDEN), jnp.float32),
            "g2":   jnp.ones((1, HIDDEN), jnp.float32),
            "be2":  jnp.zeros((1, HIDDEN), jnp.float32),
        })
    params["layers"] = layers

    params["out_w"] = 0.02 * jax.random.normal(ks[-2], (HIDDEN, FEATURE_DIM), jnp.float32)
    params["out_b"] = jnp.zeros((1, FEATURE_DIM), jnp.float32)
    return params


def pack_params(p):
    """One-time transform to kernel layout:
       * fold 1/sqrt(HEAD_DIM) into the q columns of wqkv/bqkv,
       * concatenate wqkv|wo into a lane-dense (L, D, 4D) slab,
       * stack FFN weights as (L, D, FFN) / (L, FFN, D),
       * pack all per-layer biases + LayerNorm params into ONE (L, 8, 128) slab,
       * pack pre-proj / output-head weight+bias as (FEAT_IN+1, D) / (D+1, F)."""
    scale = 1.0 / math.sqrt(HEAD_DIM)
    col_scale = jnp.concatenate(
        [jnp.full((HIDDEN,), scale, jnp.float32),
         jnp.ones((2 * HIDDEN,), jnp.float32)], axis=0)

    def lane_pad(a, width=128):
        return jnp.pad(a, ((0, 0), (0, width - a.shape[-1])))

    wattn, wmlp1, wmlp2, vecs = [], [], [], []
    for lp in p["layers"]:
        wqkv_s = lp["wqkv"] * col_scale[None, :]
        bqkv_s = lp["bqkv"] * col_scale[None, :]
        wattn.append(jnp.concatenate([wqkv_s, lp["wo"]], axis=1))   # (D, 4D) = (32, 128)
        wmlp1.append(lp["w1"])
        wmlp2.append(lp["w2"])
        vecs.append(jnp.concatenate([
            lane_pad(bqkv_s),        # row 0
            lane_pad(lp["bo"]),      # row 1
            lane_pad(lp["b1"]),      # row 2
            lane_pad(lp["b2"]),      # row 3
            lane_pad(lp["g1"]),      # row 4
            lane_pad(lp["be1"]),     # row 5
            lane_pad(lp["g2"]),      # row 6
            lane_pad(lp["be2"]),     # row 7
        ], axis=0))                  # (8, 128)

    return {
        "pre": jnp.concatenate([p["pre_w"], p["pre_b"]], axis=0),      # (FEAT_IN+1, D)
        "outp": jnp.concatenate([p["out_w"], p["out_b"]], axis=0),     # (D+1, F)
        "wattn": jnp.stack(wattn, axis=0),                              # (L, D, 4D)
        "wmlp1": jnp.stack(wmlp1, axis=0),                              # (L, D, FFN)
        "wmlp2": jnp.stack(wmlp2, axis=0),                              # (L, FFN, D)
        "vecs": jnp.stack(vecs, axis=0),                                # (L, 8, 128)
    }


# =========================== pure-JAX reference ===========================

def _ref_attention(x, lp):
    D = HIDDEN
    qkv = x @ lp["wqkv"] + lp["bqkv"][0]
    q, k, v = qkv[..., :D], qkv[..., D:2 * D], qkv[..., 2 * D:]
    B, S, _ = x.shape
    q = q.reshape(B, S, NUM_HEADS, HEAD_DIM).transpose(0, 2, 1, 3) / math.sqrt(HEAD_DIM)
    k = k.reshape(B, S, NUM_HEADS, HEAD_DIM).transpose(0, 2, 1, 3)
    v = v.reshape(B, S, NUM_HEADS, HEAD_DIM).transpose(0, 2, 1, 3)
    s = jnp.einsum("bhqd,bhkd->bhqk", q, k)
    p = jax.nn.softmax(s, axis=-1)
    ctx = jnp.einsum("bhqk,bhkd->bhqd", p, v).transpose(0, 2, 1, 3).reshape(B, S, D)
    return ctx @ lp["wo"] + lp["bo"][0]


def _ref_ln(h, g, b):
    mu = jnp.mean(h, axis=-1, keepdims=True)
    var = jnp.mean((h - mu) ** 2, axis=-1, keepdims=True)
    return (h - mu) * lax.rsqrt(var + LN_EPS) * g[0] + b[0]


def reference_forward(x, params, output_length=OUTPUT_LENGTH):
    h = x @ params["pre_w"] + params["pre_b"][0]
    for lp in params["layers"]:
        h1 = _ref_ln(h + _ref_attention(h, lp), lp["g1"], lp["be1"])
        ff = jnp.maximum(h1 @ lp["w1"] + lp["b1"][0], 0.0) @ lp["w2"] + lp["b2"][0]
        h = _ref_ln(h1 + ff, lp["g2"], lp["be2"])
    if output_length is not None:
        h = h[:, :output_length, :]
    return h @ params["out_w"] + params["out_b"][0]


# =========================== main ===========================

if __name__ == "__main__":
    key = jax.random.PRNGKey(0)
    pkey, xkey = jax.random.split(key)
    params = init_params(pkey)
    kparams = pack_params(params)   # one-time kernel-layout packing
    x = jax.random.normal(xkey, (BATCH, SEQ, FEAT_IN), jnp.float32)

    out = downstream_forward(x, kparams, output_length=OUTPUT_LENGTH)
    out = jax.block_until_ready(out)
    assert out.shape == (BATCH, OUTPUT_LENGTH, FEATURE_DIM), out.shape

    ref = jax.block_until_ready(reference_forward(x, params, OUTPUT_LENGTH))
    # slightly looser than 1e-4 to cover the EUP approx-reciprocal softmax
    assert jnp.allclose(out, ref, atol=2e-4, rtol=2e-4), float(jnp.max(jnp.abs(out - ref)))

    print("KERNEL_OK")
</pallas_src>

<mosaic_0001>
module attributes {stable_mosaic.version = 11 : i64} {
  func.func @_fused_forward_kernel(%arg0: memref<64x16xf32, #tpu.memory_space<vmem>>, %arg1: memref<17x32xf32, #tpu.memory_space<vmem>>, %arg2: memref<2x32x128xf32, #tpu.memory_space<vmem>>, %arg3: memref<2x32x64xf32, #tpu.memory_space<vmem>>, %arg4: memref<2x64x32xf32, #tpu.memory_space<vmem>>, %arg5: memref<2x8x128xf32, #tpu.memory_space<vmem>>, %arg6: memref<33x16xf32, #tpu.memory_space<vmem>>, %arg7: memref<64x16xf32, #tpu.memory_space<vmem>>) attributes {dimension_semantics = [], scalar_prefetch = 0 : i64, scratch_operands = 0 : i64, tpu.core_type = #tpu.core_type<tc>} {
    %c0 = arith.constant 0 : index
    %c0_0 = arith.constant 0 : index
    %0 = vector.load %arg0[%c0, %c0_0] : memref<64x16xf32, #tpu.memory_space<vmem>>, vector<64x16xf32>
    %c0_1 = arith.constant 0 : index
    %c0_2 = arith.constant 0 : index
    %1 = vector.load %arg1[%c0_1, %c0_2] : memref<17x32xf32, #tpu.memory_space<vmem>>, vector<17x32xf32>
    %2 = vector.extract_strided_slice %1 {offsets = [0, 0], sizes = [16, 32], strides = [1, 1]} : vector<17x32xf32> to vector<16x32xf32>
    %cst = arith.constant dense<0.000000e+00> : vector<64x32xf32>
    %3 = tpu.matmul %0, %2, %cst {dimension_numbers = #tpu.dot_dimension_numbers<[1], [0], [0], [1], [0, 0, 1, 1], [], []>} : vector<64x16xf32>, vector<16x32xf32>, vector<64x32xf32> -> vector<64x32xf32>
    %4 = vector.extract_strided_slice %1 {offsets = [16, 0], sizes = [1, 32], strides = [1, 1]} : vector<17x32xf32> to vector<1x32xf32>
    %5 = vector.broadcast %4 : vector<1x32xf32> to vector<64x32xf32>
    %6 = arith.addf %3, %5 : vector<64x32xf32>
    %c0_3 = arith.constant 0 : index
    %c0_4 = arith.constant 0 : index
    %c0_5 = arith.constant 0 : index
    %7 = vector.load %arg2[%c0_3, %c0_4, %c0_5] : memref<2x32x128xf32, #tpu.memory_space<vmem>>, vector<1x32x128xf32>
    %8 = vector.shape_cast %7 : vector<1x32x128xf32> to vector<32x128xf32>
    %9 = vector.extract_strided_slice %8 {offsets = [0, 0], sizes = [32, 96], strides = [1, 1]} : vector<32x128xf32> to vector<32x96xf32>
    %10 = vector.extract_strided_slice %8 {offsets = [0, 96], sizes = [32, 32], strides = [1, 1]} : vector<32x128xf32> to vector<32x32xf32>
    %c0_6 = arith.constant 0 : index
    %c0_7 = arith.constant 0 : index
    %c0_8 = arith.constant 0 : index
    %11 = vector.load %arg5[%c0_6, %c0_7, %c0_8] : memref<2x8x128xf32, #tpu.memory_space<vmem>>, vector<1x8x128xf32>
    %12 = vector.shape_cast %11 : vector<1x8x128xf32> to vector<8x128xf32>
    %13 = vector.extract_strided_slice %12 {offsets = [0, 0], sizes = [1, 96], strides = [1, 1]} : vector<8x128xf32> to vector<1x96xf32>
    %14 = vector.extract_strided_slice %12 {offsets = [1, 0], sizes = [1, 32], strides = [1, 1]} : vector<8x128xf32> to vector<1x32xf32>
    %15 = vector.extract_strided_slice %12 {offsets = [2, 0], sizes = [1, 64], strides = [1, 1]} : vector<8x128xf32> to vector<1x64xf32>
    %16 = vector.extract_strided_slice %12 {offsets = [3, 0], sizes = [1, 32], strides = [1, 1]} : vector<8x128xf32> to vector<1x32xf32>
    %17 = vector.extract_strided_slice %12 {offsets = [4, 0], sizes = [1, 32], strides = [1, 1]} : vector<8x128xf32> to vector<1x32xf32>
    %18 = vector.extract_strided_slice %12 {offsets = [5, 0], sizes = [1, 32], strides = [1, 1]} : vector<8x128xf32> to vector<1x32xf32>
    %19 = vector.extract_strided_slice %12 {offsets = [6, 0], sizes = [1, 32], strides = [1, 1]} : vector<8x128xf32> to vector<1x32xf32>
    %20 = vector.extract_strided_slice %12 {offsets = [7, 0], sizes = [1, 32], strides = [1, 1]} : vector<8x128xf32> to vector<1x32xf32>
    %cst_9 = arith.constant dense<0.000000e+00> : vector<64x96xf32>
    %21 = tpu.matmul %6, %9, %cst_9 {dimension_numbers = #tpu.dot_dimension_numbers<[1], [0], [0], [1], [0, 0, 1, 1], [], []>} : vector<64x32xf32>, vector<32x96xf32>, vector<64x96xf32> -> vector<64x96xf32>
    %22 = vector.broadcast %13 : vector<1x96xf32> to vector<64x96xf32>
    %23 = arith.addf %21, %22 : vector<64x96xf32>
    %24 = vector.extract_strided_slice %23 {offsets = [0, 0], sizes = [32, 96], strides = [1, 1]} : vector<64x96xf32> to vector<32x96xf32>
    %25 = vector.extract_strided_slice %24 {offsets = [0, 0], sizes = [32, 4], strides = [1, 1]} : vector<32x96xf32> to vector<32x4xf32>
    %26 = vector.extract_strided_slice %24 {offsets = [0, 32], sizes = [32, 4], strides = [1, 1]} : vector<32x96xf32> to vector<32x4xf32>
    %27 = vector.extract_strided_slice %24 {offsets = [0, 64], sizes = [32, 4], strides = [1, 1]} : vector<32x96xf32> to vector<32x4xf32>
    %cst_10 = arith.constant dense<0.000000e+00> : vector<32x32xf32>
    %28 = tpu.matmul %25, %26, %cst_10 {dimension_numbers = #tpu.dot_dimension_numbers<[1], [1], [0], [0], [0, 0, 1, 0], [], []>} : vector<32x4xf32>, vector<32x4xf32>, vector<32x32xf32> -> vector<32x32xf32>
    %cst_11 = arith.constant dense<0xFF800000> : vector<32xf32>
    %29 = vector.multi_reduction <maximumf>, %28, %cst_11 [1] : vector<32x32xf32> to vector<32xf32>
    %30 = vector.shape_cast %29 : vector<32xf32> to vector<32x1xf32>
    %31 = vector.broadcast %30 : vector<32x1xf32> to vector<32x32xf32>
    %32 = arith.subf %28, %31 : vector<32x32xf32>
    %33 = math.exp %32 : vector<32x32xf32>
    %cst_12 = arith.constant dense<0.000000e+00> : vector<32xf32>
    %34 = vector.multi_reduction <add>, %33, %cst_12 [1] : vector<32x32xf32> to vector<32xf32>
    %35 = vector.shape_cast %34 : vector<32xf32> to vector<32x1xf32>
    %36 = tpu.reciprocal %35 {approx = true} : vector<32x1xf32> -> vector<32x1xf32>
    %37 = vector.broadcast %36 : vector<32x1xf32> to vector<32x32xf32>
    %38 = arith.mulf %33, %37 : vector<32x32xf32>
    %cst_13 = arith.constant dense<0.000000e+00> : vector<32x4xf32>
    %39 = tpu.matmul %38, %27, %cst_13 {dimension_numbers = #tpu.dot_dimension_numbers<[1], [0], [0], [1], [0, 0, 1, 1], [], []>} : vector<32x32xf32>, vector<32x4xf32>, vector<32x4xf32> -> vector<32x4xf32>
    %40 = vector.extract_strided_slice %24 {offsets = [0, 4], sizes = [32, 4], strides = [1, 1]} : vector<32x96xf32> to vector<32x4xf32>
    %41 = vector.extract_strided_slice %24 {offsets = [0, 36], sizes = [32, 4], strides = [1, 1]} : vector<32x96xf32> to vector<32x4xf32>
    %42 = vector.extract_strided_slice %24 {offsets = [0, 68], sizes = [32, 4], strides = [1, 1]} : vector<32x96xf32> to vector<32x4xf32>
    %cst_14 = arith.constant dense<0.000000e+00> : vector<32x32xf32>
    %43 = tpu.matmul %40, %41, %cst_14 {dimension_numbers = #tpu.dot_dimension_numbers<[1], [1], [0], [0], [0, 0, 1, 0], [], []>} : vector<32x4xf32>, vector<32x4xf32>, vector<32x32xf32> -> vector<32x32xf32>
    %cst_15 = arith.constant dense<0xFF800000> : vector<32xf32>
    %44 = vector.multi_reduction <maximumf>, %43, %cst_15 [1] : vector<32x32xf32> to vector<32xf32>
    %45 = vector.shape_cast %44 : vector<32xf32> to vector<32x1xf32>
    %46 = vector.broadcast %45 : vector<32x1xf32> to vector<32x32xf32>
    %47 = arith.subf %43, %46 : vector<32x32xf32>
    %48 = math.exp %47 : vector<32x32xf32>
    %cst_16 = arith.constant dense<0.000000e+00> : vector<32xf32>
    %49 = vector.multi_reduction <add>, %48, %cst_16 [1] : vector<32x32xf32> to vector<32xf32>
    %50 = vector.shape_cast %49 : vector<32xf32> to vector<32x1xf32>
    %51 = tpu.reciprocal %50 {approx = true} : vector<32x1xf32> -> vector<32x1xf32>
    %52 = vector.broadcast %51 : vector<32x1xf32> to vector<32x32xf32>
    %53 = arith.mulf %48, %52 : vector<32x32xf32>
    %cst_17 = arith.constant dense<0.000000e+00> : vector<32x4xf32>
    %54 = tpu.matmul %53, %42, %cst_17 {dimension_numbers = #tpu.dot_dimension_numbers<[1], [0], [0], [1], [0, 0, 1, 1], [], []>} : vector<32x32xf32>, vector<32x4xf32>, vector<32x4xf32> -> vector<32x4xf32>
    %55 = vector.extract_strided_slice %24 {offsets = [0, 8], sizes = [32, 4], strides = [1, 1]} : vector<32x96xf32> to vector<32x4xf32>
    %56 = vector.extract_strided_slice %24 {offsets = [0, 40], sizes = [32, 4], strides = [1, 1]} : vector<32x96xf32> to vector<32x4xf32>
    %57 = vector.extract_strided_slice %24 {offsets = [0, 72], sizes = [32, 4], strides = [1, 1]} : vector<32x96xf32> to vector<32x4xf32>
    %cst_18 = arith.constant dense<0.000000e+00> : vector<32x32xf32>
    %58 = tpu.matmul %55, %56, %cst_18 {dimension_numbers = #tpu.dot_dimension_numbers<[1], [1], [0], [0], [0, 0, 1, 0], [], []>} : vector<32x4xf32>, vector<32x4xf32>, vector<32x32xf32> -> vector<32x32xf32>
    %cst_19 = arith.constant dense<0xFF800000> : vector<32xf32>
    %59 = vector.multi_reduction <maximumf>, %58, %cst_19 [1] : vector<32x32xf32> to vector<32xf32>
    %60 = vector.shape_cast %59 : vector<32xf32> to vector<32x1xf32>
    %61 = vector.broadcast %60 : vector<32x1xf32> to vector<32x32xf32>
    %62 = arith.subf %58, %61 : vector<32x32xf32>
    %63 = math.exp %62 : vector<32x32xf32>
    %cst_20 = arith.constant dense<0.000000e+00> : vector<32xf32>
    %64 = vector.multi_reduction <add>, %63, %cst_20 [1] : vector<32x32xf32> to vector<32xf32>
    %65 = vector.shape_cast %64 : vector<32xf32> to vector<32x1xf32>
    %66 = tpu.reciprocal %65 {approx = true} : vector<32x1xf32> -> vector<32x1xf32>
    %67 = vector.broadcast %66 : vector<32x1xf32> to vector<32x32xf32>
    %68 = arith.mulf %63, %67 : vector<32x32xf32>
    %cst_21 = arith.constant dense<0.000000e+00> : vector<32x4xf32>
    %69 = tpu.matmul %68, %57, %cst_21 {dimension_numbers = #tpu.dot_dimension_numbers<[1], [0], [0], [1], [0, 0, 1, 1], [], []>} : vector<32x32xf32>, vector<32x4xf32>, vector<32x4xf32> -> vector<32x4xf32>
    %70 = vector.extract_strided_slice %24 {offsets = [0, 12], sizes = [32, 4], strides = [1, 1]} : vector<32x96xf32> to vector<32x4xf32>
    %71 = vector.extract_strided_slice %24 {offsets = [0, 44], sizes = [32, 4], strides = [1, 1]} : vector<32x96xf32> to vector<32x4xf32>
    %72 = vector.extract_strided_slice %24 {offsets = [0, 76], sizes = [32, 4], strides = [1, 1]} : vector<32x96xf32> to vector<32x4xf32>
    %cst_22 = arith.constant dense<0.000000e+00> : vector<32x32xf32>
    %73 = tpu.matmul %70, %71, %cst_22 {dimension_numbers = #tpu.dot_dimension_numbers<[1], [1], [0], [0], [0, 0, 1, 0], [], []>} : vector<32x4xf32>, vector<32x4xf32>, vector<32x32xf32> -> vector<32x32xf32>
    %cst_23 = arith.constant dense<0xFF800000> : vector<32xf32>
    %74 = vector.multi_reduction <maximumf>, %73, %cst_23 [1] : vector<32x32xf32> to vector<32xf32>
    %75 = vector.shape_cast %74 : vector<32xf32> to vector<32x1xf32>
    %76 = vector.broadcast %75 : vector<32x1xf32> to vector<32x32xf32>
    %77 = arith.subf %73, %76 : vector<32x32xf32>
    %78 = math.exp %77 : vector<32x32xf32>
    %cst_24 = arith.constant dense<0.000000e+00> : vector<32xf32>
    %79 = vector.multi_reduction <add>, %78, %cst_24 [1] : vector<32x32xf32> to vector<32xf32>
    %80 = vector.shape_cast %79 : vector<32xf32> to vector<32x1xf32>
    %81 = tpu.reciprocal %80 {approx = true} : vector<32x1xf32> -> vector<32x1xf32>
    %82 = vector.broadcast %81 : vector<32x1xf32> to vector<32x32xf32>
    %83 = arith.mulf %78, %82 : vector<32x32xf32>
    %cst_25 = arith.constant dense<0.000000e+00> : vector<32x4xf32>
    %84 = tpu.matmul %83, %72, %cst_25 {dimension_numbers = #tpu.dot_dimension_numbers<[1], [0], [0], [1], [0, 0, 1, 1], [], []>} : vector<32x32xf32>, vector<32x4xf32>, vector<32x4xf32> -> vector<32x4xf32>
    %85 = vector.extract_strided_slice %24 {offsets = [0, 16], sizes = [32, 4], strides = [1, 1]} : vector<32x96xf32> to vector<32x4xf32>
    %86 = vector.extract_strided_slice %24 {offsets = [0, 48], sizes = [32, 4], strides = [1, 1]} : vector<32x96xf32> to vector<32x4xf32>
    %87 = vector.extract_strided_slice %24 {offsets = [0, 80], sizes = [32, 4], strides = [1, 1]} : vector<32x96xf32> to vector<32x4xf32>
    %cst_26 = arith.constant dense<0.000000e+00> : vector<32x32xf32>
    %88 = tpu.matmul %85, %86, %cst_26 {dimension_numbers = #tpu.dot_dimension_numbers<[1], [1], [0], [0], [0, 0, 1, 0], [], []>} : vector<32x4xf32>, vector<32x4xf32>, vector<32x32xf32> -> vector<32x32xf32>
    %cst_27 = arith.constant dense<0xFF800000> : vector<32xf32>
    %89 = vector.multi_reduction <maximumf>, %88, %cst_27 [1] : vector<32x32xf32> to vector<32xf32>
    %90 = vector.shape_cast %89 : vector<32xf32> to vector<32x1xf32>
    %91 = vector.broadcast %90 : vector<32x1xf32> to vector<32x32xf32>
    %92 = arith.subf %88, %91 : vector<32x32xf32>
    %93 = math.exp %92 : vector<32x32xf32>
    %cst_28 = arith.constant dense<0.000000e+00> : vector<32xf32>
    %94 = vector.multi_reduction <add>, %93, %cst_28 [1] : vector<32x32xf32> to vector<32xf32>
    %95 = vector.shape_cast %94 : vector<32xf32> to vector<32x1xf32>
    %96 = tpu.reciprocal %95 {approx = true} : vector<32x1xf32> -> vector<32x1xf32>
    %97 = vector.broadcast %96 : vector<32x1xf32> to vector<32x32xf32>
    %98 = arith.mulf %93, %97 : vector<32x32xf32>
    %cst_29 = arith.constant dense<0.000000e+00> : vector<32x4xf32>
    %99 = tpu.matmul %98, %87, %cst_29 {dimension_numbers = #tpu.dot_dimension_numbers<[1], [0], [0], [1], [0, 0, 1, 1], [], []>} : vector<32x32xf32>, vector<32x4xf32>, vector<32x4xf32> -> vector<32x4xf32>
    %100 = vector.extract_strided_slice %24 {offsets = [0, 20], sizes = [32, 4], strides = [1, 1]} : vector<32x96xf32> to vector<32x4xf32>
    %101 = vector.extract_strided_slice %24 {offsets = [0, 52], sizes = [32, 4], strides = [1, 1]} : vector<32x96xf32> to vector<32x4xf32>
    %102 = vector.extract_strided_slice %24 {offsets = [0, 84], sizes = [32, 4], strides = [1, 1]} : vector<32x96xf32> to vector<32x4xf32>
    %cst_30 = arith.constant dense<0.000000e+00> : vector<32x32xf32>
    %103 = tpu.matmul %100, %101, %cst_30 {dimension_numbers = #tpu.dot_dimension_numbers<[1], [1], [0], [0], [0, 0, 1, 0], [], []>} : vector<32x4xf32>, vector<32x4xf32>, vector<32x32xf32> -> vector<32x32xf32>
    %cst_31 = arith.constant dense<0xFF800000> : vector<32xf32>
    %104 = vector.multi_reduction <maximumf>, %103, %cst_31 [1] : vector<32x32xf32> to vector<32xf32>
    %105 = vector.shape_cast %104 : vector<32xf32> to vector<32x1xf32>
    %106 = vector.broadcast %105 : vector<32x1xf32> to vector<32x32xf32>
    %107 = arith.subf %103, %106 : vector<32x32xf32>
    %108 = math.exp %107 : vector<32x32xf32>
    %cst_32 = arith.constant dense<0.000000e+00> : vector<32xf32>
    %109 = vector.multi_reduction <add>, %108, %cst_32 [1] : vector<32x32xf32> to vector<32xf32>
    %110 = vector.shape_cast %109 : vector<32xf32> to vector<32x1xf32>
    %111 = tpu.reciprocal %110 {approx = true} : vector<32x1xf32> -> vector<32x1xf32>
    %112 = vector.broadcast %111 : vector<32x1xf32> to vector<32x32xf32>
    %113 = arith.mulf %108, %112 : vector<32x32xf32>
    %cst_33 = arith.constant dense<0.000000e+00> : vector<32x4xf32>
    %114 = tpu.matmul %113, %102, %cst_33 {dimension_numbers = #tpu.dot_dimension_numbers<[1], [0], [0], [1], [0, 0, 1, 1], [], []>} : vector<32x32xf32>, vector<32x4xf32>, vector<32x4xf32> -> vector<32x4xf32>
    %115 = vector.extract_strided_slice %24 {offsets = [0, 24], sizes = [32, 4], strides = [1, 1]} : vector<32x96xf32> to vector<32x4xf32>
    %116 = vector.extract_strided_slice %24 {offsets = [0, 56], sizes = [32, 4], strides = [1, 1]} : vector<32x96xf32> to vector<32x4xf32>
    %117 = vector.extract_strided_slice %24 {offsets = [0, 88], sizes = [32, 4], strides = [1, 1]} : vector<32x96xf32> to vector<32x4xf32>
    %cst_34 = arith.constant dense<0.000000e+00> : vector<32x32xf32>
    %118 = tpu.matmul %115, %116, %cst_34 {dimension_numbers = #tpu.dot_dimension_numbers<[1], [1], [0], [0], [0, 0, 1, 0], [], []>} : vector<32x4xf32>, vector<32x4xf32>, vector<32x32xf32> -> vector<32x32xf32>
    %cst_35 = arith.constant dense<0xFF800000> : vector<32xf32>
    %119 = vector.multi_reduction <maximumf>, %118, %cst_35 [1] : vector<32x32xf32> to vector<32xf32>
    %120 = vector.shape_cast %119 : vector<32xf32> to vector<32x1xf32>
    %121 = vector.broadcast %120 : vector<32x1xf32> to vector<32x32xf32>
    %122 = arith.subf %118, %121 : vector<32x32xf32>
    %123 = math.exp %122 : vector<32x32xf32>
    %cst_36 = arith.constant dense<0.000000e+00> : vector<32xf32>
    %124 = vector.multi_reduction <add>, %123, %cst_36 [1] : vector<32x32xf32> to vector<32xf32>
    %125 = vector.shape_cast %124 : vector<32xf32> to vector<32x1xf32>
    %126 = tpu.reciprocal %125 {approx = true} : vector<32x1xf32> -> vector<32x1xf32>
    %127 = vector.broadcast %126 : vector<32x1xf32> to vector<32x32xf32>
    %128 = arith.mulf %123, %127 : vector<32x32xf32>
    %cst_37 = arith.constant dense<0.000000e+00> : vector<32x4xf32>
    %129 = tpu.matmul %128, %117, %cst_37 {dimension_numbers = #tpu.dot_dimension_numbers<[1], [0], [0], [1], [0, 0, 1, 1], [], []>} : vector<32x32xf32>, vector<32x4xf32>, vector<32x4xf32> -> vector<32x4xf32>
    %130 = vector.extract_strided_slice %24 {offsets = [0, 28], sizes = [32, 4], strides = [1, 1]} : vector<32x96xf32> to vector<32x4xf32>
    %131 = vector.extract_strided_slice %24 {offsets = [0, 60], sizes = [32, 4], strides = [1, 1]} : vector<32x96xf32> to vector<32x4xf32>
    %132 = vector.extract_strided_slice %24 {offsets = [0, 92], sizes = [32, 4], strides = [1, 1]} : vector<32x96xf32> to vector<32x4xf32>
    %cst_38 = arith.constant dense<0.000000e+00> : vector<32x32xf32>
    %133 = tpu.matmul %130, %131, %cst_38 {dimension_numbers = #tpu.dot_dimension_numbers<[1], [1], [0], [0], [0, 0, 1, 0], [], []>} : vector<32x4xf32>, vector<32x4xf32>, vector<32x32xf32> -> vector<32x32xf32>
    %cst_39 = arith.constant dense<0xFF800000> : vector<32xf32>
    %134 = vector.multi_reduction <maximumf>, %133, %cst_39 [1] : vector<32x32xf32> to vector<32xf32>
    %135 = vector.shape_cast %134 : vector<32xf32> to vector<32x1xf32>
    %136 = vector.broadcast %135 : vector<32x1xf32> to vector<32x32xf32>
    %137 = arith.subf %133, %136 : vector<32x32xf32>
    %138 = math.exp %137 : vector<32x32xf32>
    %cst_40 = arith.constant dense<0.000000e+00> : vector<32xf32>
    %139 = vector.multi_reduction <add>, %138, %cst_40 [1] : vector<32x32xf32> to vector<32xf32>
    %140 = vector.shape_cast %139 : vector<32xf32> to vector<32x1xf32>
    %141 = tpu.reciprocal %140 {approx = true} : vector<32x1xf32> -> vector<32x1xf32>
    %142 = vector.broadcast %141 : vector<32x1xf32> to vector<32x32xf32>
    %143 = arith.mulf %138, %142 : vector<32x32xf32>
    %cst_41 = arith.constant dense<0.000000e+00> : vector<32x4xf32>
    %144 = tpu.matmul %143, %132, %cst_41 {dimension_numbers = #tpu.dot_dimension_numbers<[1], [0], [0], [1], [0, 0, 1, 1], [], []>} : vector<32x32xf32>, vector<32x4xf32>, vector<32x4xf32> -> vector<32x4xf32>
    %145 = tpu.concatenate %39, %54, %69, %84, %99, %114, %129, %144 in 1 : vector<32x4xf32>, vector<32x4xf32>, vector<32x4xf32>, vector<32x4xf32>, vector<32x4xf32>, vector<32x4xf32>, vector<32x4xf32>, vector<32x4xf32> -> vector<32x32xf32>
    %146 = vector.extract_strided_slice %23 {offsets = [32, 0], sizes = [32, 96], strides = [1, 1]} : vector<64x96xf32> to vector<32x96xf32>
    %147 = vector.extract_strided_slice %146 {offsets = [0, 0], sizes = [32, 4], strides = [1, 1]} : vector<32x96xf32> to vector<32x4xf32>
    %148 = vector.extract_strided_slice %146 {offsets = [0, 32], sizes = [32, 4], strides = [1, 1]} : vector<32x96xf32> to vector<32x4xf32>
    %149 = vector.extract_strided_slice %146 {offsets = [0, 64], sizes = [32, 4], strides = [1, 1]} : vector<32x96xf32> to vector<32x4xf32>
    %cst_42 = arith.constant dense<0.000000e+00> : vector<32x32xf32>
    %150 = tpu.matmul %147, %148, %cst_42 {dimension_numbers = #tpu.dot_dimension_numbers<[1], [1], [0], [0], [0, 0, 1, 0], [], []>} : vector<32x4xf32>, vector<32x4xf32>, vector<32x32xf32> -> vector<32x32xf32>
    %cst_43 = arith.constant dense<0xFF800000> : vector<32xf32>
    %151 = vector.multi_reduction <maximumf>, %150, %cst_43 [1] : vector<32x32xf32> to vector<32xf32>
    %152 = vector.shape_cast %151 : vector<32xf32> to vector<32x1xf32>
    %153 = vector.broadcast %152 : vector<32x1xf32> to vector<32x32xf32>
    %154 = arith.subf %150, %153 : vector<32x32xf32>
    %155 = math.exp %154 : vector<32x32xf32>
    %cst_44 = arith.constant dense<0.000000e+00> : vector<32xf32>
    %156 = vector.multi_reduction <add>, %155, %cst_44 [1] : vector<32x32xf32> to vector<32xf32>
    %157 = vector.shape_cast %156 : vector<32xf32> to vector<32x1xf32>
    %158 = tpu.reciprocal %157 {approx = true} : vector<32x1xf32> -> vector<32x1xf32>
    %159 = vector.broadcast %158 : vector<32x1xf32> to vector<32x32xf32>
    %160 = arith.mulf %155, %159 : vector<32x32xf32>
    %cst_45 = arith.constant dense<0.000000e+00> : vector<32x4xf32>
    %161 = tpu.matmul %160, %149, %cst_45 {dimension_numbers = #tpu.dot_dimension_numbers<[1], [0], [0], [1], [0, 0, 1, 1], [], []>} : vector<32x32xf32>, vector<32x4xf32>, vector<32x4xf32> -> vector<32x4xf32>
    %162 = vector.extract_strided_slice %146 {offsets = [0, 4], sizes = [32, 4], strides = [1, 1]} : vector<32x96xf32> to vector<32x4xf32>
    %163 = vector.extract_strided_slice %146 {offsets = [0, 36], sizes = [32, 4], strides = [1, 1]} : vector<32x96xf32> to vector<32x4xf32>
    %164 = vector.extract_strided_slice %146 {offsets = [0, 68], sizes = [32, 4], strides = [1, 1]} : vector<32x96xf32> to vector<32x4xf32>
    %cst_46 = arith.constant dense<0.000000e+00> : vector<32x32xf32>
    %165 = tpu.matmul %162, %163, %cst_46 {dimension_numbers = #tpu.dot_dimension_numbers<[1], [1], [0], [0], [0, 0, 1, 0], [], []>} : vector<32x4xf32>, vector<32x4xf32>, vector<32x32xf32> -> vector<32x32xf32>
    %cst_47 = arith.constant dense<0xFF800000> : vector<32xf32>
    %166 = vector.multi_reduction <maximumf>, %165, %cst_47 [1] : vector<32x32xf32> to vector<32xf32>
    %167 = vector.shape_cast %166 : vector<32xf32> to vector<32x1xf32>
    %168 = vector.broadcast %167 : vector<32x1xf32> to vector<32x32xf32>
    %169 = arith.subf %165, %168 : vector<32x32xf32>
    %170 = math.exp %169 : vector<32x32xf32>
    %cst_48 = arith.constant dense<0.000000e+00> : vector<32xf32>
    %171 = vector.multi_reduction <add>, %170, %cst_48 [1] : vector<32x32xf32> to vector<32xf32>
    %172 = vector.shape_cast %171 : vector<32xf32> to vector<32x1xf32>
    %173 = tpu.reciprocal %172 {approx = true} : vector<32x1xf32> -> vector<32x1xf32>
    %174 = vector.broadcast %173 : vector<32x1xf32> to vector<32x32xf32>
    %175 = arith.mulf %170, %174 : vector<32x32xf32>
    %cst_49 = arith.constant dense<0.000000e+00> : vector<32x4xf32>
    %176 = tpu.matmul %175, %164, %cst_49 {dimension_numbers = #tpu.dot_dimension_numbers<[1], [0], [0], [1], [0, 0, 1, 1], [], []>} : vector<32x32xf32>, vector<32x4xf32>, vector<32x4xf32> -> vector<32x4xf32>
    %177 = vector.extract_strided_slice %146 {offsets = [0, 8], sizes = [32, 4], strides = [1, 1]} : vector<32x96xf32> to vector<32x4xf32>
    %178 = vector.extract_strided_slice %146 {offsets = [0, 40], sizes = [32, 4], strides = [1, 1]} : vector<32x96xf32> to vector<32x4xf32>
    %179 = vector.extract_strided_slice %146 {offsets = [0, 72], sizes = [32, 4], strides = [1, 1]} : vector<32x96xf32> to vector<32x4xf32>
    %cst_50 = arith.constant dense<0.000000e+00> : vector<32x32xf32>
    %180 = tpu.matmul %177, %178, %cst_50 {dimension_numbers = #tpu.dot_dimension_numbers<[1], [1], [0], [0], [0, 0, 1, 0], [], []>} : vector<32x4xf32>, vector<32x4xf32>, vector<32x32xf32> -> vector<32x32xf32>
    %cst_51 = arith.constant dense<0xFF800000> : vector<32xf32>
    %181 = vector.multi_reduction <maximumf>, %180, %cst_51 [1] : vector<32x32xf32> to vector<32xf32>
    %182 = vector.shape_cast %181 : vector<32xf32> to vector<32x1xf32>
    %183 = vector.broadcast %182 : vector<32x1xf32> to vector<32x32xf32>
    %184 = arith.subf %180, %183 : vector<32x32xf32>
    %185 = math.exp %184 : vector<32x32xf32>
    %cst_52 = arith.constant dense<0.000000e+00> : vector<32xf32>
    %186 = vector.multi_reduction <add>, %185, %cst_52 [1] : vector<32x32xf32> to vector<32xf32>
    %187 = vector.shape_cast %186 : vector<32xf32> to vector<32x1xf32>
    %188 = tpu.reciprocal %187 {approx = true} : vector<32x1xf32> -> vector<32x1xf32>
    %189 = vector.broadcast %188 : vector<32x1xf32> to vector<32x32xf32>
    %190 = arith.mulf %185, %189 : vector<32x32xf32>
    %cst_53 = arith.constant dense<0.000000e+00> : vector<32x4xf32>
    %191 = tpu.matmul %190, %179, %cst_53 {dimension_numbers = #tpu.dot_dimension_numbers<[1], [0], [0], [1], [0, 0, 1, 1], [], []>} : vector<32x32xf32>, vector<32x4xf32>, vector<32x4xf32> -> vector<32x4xf32>
    %192 = vector.extract_strided_slice %146 {offsets = [0, 12], sizes = [32, 4], strides = [1, 1]} : vector<32x96xf32> to vector<32x4xf32>
    %193 = vector.extract_strided_slice %146 {offsets = [0, 44], sizes = [32, 4], strides = [1, 1]} : vector<32x96xf32> to vector<32x4xf32>
    %194 = vector.extract_strided_slice %146 {offsets = [0, 76], sizes = [32, 4], strides = [1, 1]} : vector<32x96xf32> to vector<32x4xf32>
    %cst_54 = arith.constant dense<0.000000e+00> : vector<32x32xf32>
    %195 = tpu.matmul %192, %193, %cst_54 {dimension_numbers = #tpu.dot_dimension_numbers<[1], [1], [0], [0], [0, 0, 1, 0], [], []>} : vector<32x4xf32>, vector<32x4xf32>, vector<32x32xf32> -> vector<32x32xf32>
    %cst_55 = arith.constant dense<0xFF800000> : vector<32xf32>
    %196 = vector.multi_reduction <maximumf>, %195, %cst_55 [1] : vector<32x32xf32> to vector<32xf32>
    %197 = vector.shape_cast %196 : vector<32xf32> to vector<32x1xf32>
    %198 = vector.broadcast %197 : vector<32x1xf32> to vector<32x32xf32>
    %199 = arith.subf %195, %198 : vector<32x32xf32>
    %200 = math.exp %199 : vector<32x32xf32>
    %cst_56 = arith.constant dense<0.000000e+00> : vector<32xf32>
    %201 = vector.multi_reduction <add>, %200, %cst_56 [1] : vector<32x32xf32> to vector<32xf32>
    %202 = vector.shape_cast %201 : vector<32xf32> to vector<32x1xf32>
    %203 = tpu.reciprocal %202 {approx = true} : vector<32x1xf32> -> vector<32x1xf32>
    %204 = vector.broadcast %203 : vector<32x1xf32> to vector<32x32xf32>
    %205 = arith.mulf %200, %204 : vector<32x32xf32>
    %cst_57 = arith.constant dense<0.000000e+00> : vector<32x4xf32>
    %206 = tpu.matmul %205, %194, %cst_57 {dimension_numbers = #tpu.dot_dimension_numbers<[1], [0], [0], [1], [0, 0, 1, 1], [], []>} : vector<32x32xf32>, vector<32x4xf32>, vector<32x4xf32> -> vector<32x4xf32>
    %207 = vector.extract_strided_slice %146 {offsets = [0, 16], sizes = [32, 4], strides = [1, 1]} : vector<32x96xf32> to vector<32x4xf32>
    %208 = vector.extract_strided_slice %146 {offsets = [0, 48], sizes = [32, 4], strides = [1, 1]} : vector<32x96xf32> to vector<32x4xf32>
    %209 = vector.extract_strided_slice %146 {offsets = [0, 80], sizes = [32, 4], strides = [1, 1]} : vector<32x96xf32> to vector<32x4xf32>
    %cst_58 = arith.constant dense<0.000000e+00> : vector<32x32xf32>
    %210 = tpu.matmul %207, %208, %cst_58 {dimension_numbers = #tpu.dot_dimension_numbers<[1], [1], [0], [0], [0, 0, 1, 0], [], []>} : vector<32x4xf32>, vector<32x4xf32>, vector<32x32xf32> -> vector<32x32xf32>
    %cst_59 = arith.constant dense<0xFF800000> : vector<32xf32>
    %211 = vector.multi_reduction <maximumf>, %210, %cst_59 [1] : vector<32x32xf32> to vector<32xf32>
    %212 = vector.shape_cast %211 : vector<32xf32> to vector<32x1xf32>
    %213 = vector.broadcast %212 : vector<32x1xf32> to vector<32x32xf32>
    %214 = arith.subf %210, %213 : vector<32x32xf32>
    %215 = math.exp %214 : vector<32x32xf32>
    %cst_60 = arith.constant dense<0.000000e+00> : vector<32xf32>
    %216 = vector.multi_reduction <add>, %215, %cst_60 [1] : vector<32x32xf32> to vector<32xf32>
    %217 = vector.shape_cast %216 : vector<32xf32> to vector<32x1xf32>
    %218 = tpu.reciprocal %217 {approx = true} : vector<32x1xf32> -> vector<32x1xf32>
    %219 = vector.broadcast %218 : vector<32x1xf32> to vector<32x32xf32>
    %220 = arith.mulf %215, %219 : vector<32x32xf32>
    %cst_61 = arith.constant dense<0.000000e+00> : vector<32x4xf32>
    %221 = tpu.matmul %220, %209, %cst_61 {dimension_numbers = #tpu.dot_dimension_numbers<[1], [0], [0], [1], [0, 0, 1, 1], [], []>} : vector<32x32xf32>, vector<32x4xf32>, vector<32x4xf32> -> vector<32x4xf32>
    %222 = vector.extract_strided_slice %146 {offsets = [0, 20], sizes = [32, 4], strides = [1, 1]} : vector<32x96xf32> to vector<32x4xf32>
    %223 = vector.extract_strided_slice %146 {offsets = [0, 52], sizes = [32, 4], strides = [1, 1]} : vector<32x96xf32> to vector<32x4xf32>
    %224 = vector.extract_strided_slice %146 {offsets = [0, 84], sizes = [32, 4], strides = [1, 1]} : vector<32x96xf32> to vector<32x4xf32>
    %cst_62 = arith.constant dense<0.000000e+00> : vector<32x32xf32>
    %225 = tpu.matmul %222, %223, %cst_62 {dimension_numbers = #tpu.dot_dimension_numbers<[1], [1], [0], [0], [0, 0, 1, 0], [], []>} : vector<32x4xf32>, vector<32x4xf32>, vector<32x32xf32> -> vector<32x32xf32>
    %cst_63 = arith.constant dense<0xFF800000> : vector<32xf32>
    %226 = vector.multi_reduction <maximumf>, %225, %cst_63 [1] : vector<32x32xf32> to vector<32xf32>
    %227 = vector.shape_cast %226 : vector<32xf32> to vector<32x1xf32>
    %228 = vector.broadcast %227 : vector<32x1xf32> to vector<32x32xf32>
    %229 = arith.subf %225, %228 : vector<32x32xf32>
    %230 = math.exp %229 : vector<32x32xf32>
    %cst_64 = arith.constant dense<0.000000e+00> : vector<32xf32>
    %231 = vector.multi_reduction <add>, %230, %cst_64 [1] : vector<32x32xf32> to vector<32xf32>
    %232 = vector.shape_cast %231 : vector<32xf32> to vector<32x1xf32>
    %233 = tpu.reciprocal %232 {approx = true} : vector<32x1xf32> -> vector<32x1xf32>
    %234 = vector.broadcast %233 : vector<32x1xf32> to vector<32x32xf32>
    %235 = arith.mulf %230, %234 : vector<32x32xf32>
    %cst_65 = arith.constant dense<0.000000e+00> : vector<32x4xf32>
    %236 = tpu.matmul %235, %224, %cst_65 {dimension_numbers = #tpu.dot_dimension_numbers<[1], [0], [0], [1], [0, 0, 1, 1], [], []>} : vector<32x32xf32>, vector<32x4xf32>, vector<32x4xf32> -> vector<32x4xf32>
    %237 = vector.extract_strided_slice %146 {offsets = [0, 24], sizes = [32, 4], strides = [1, 1]} : vector<32x96xf32> to vector<32x4xf32>
    %238 = vector.extract_strided_slice %146 {offsets = [0, 56], sizes = [32, 4], strides = [1, 1]} : vector<32x96xf32> to vector<32x4xf32>
    %239 = vector.extract_strided_slice %146 {offsets = [0, 88], sizes = [32, 4], strides = [1, 1]} : vector<32x96xf32> to vector<32x4xf32>
    %cst_66 = arith.constant dense<0.000000e+00> : vector<32x32xf32>
    %240 = tpu.matmul %237, %238, %cst_66 {dimension_numbers = #tpu.dot_dimension_numbers<[1], [1], [0], [0], [0, 0, 1, 0], [], []>} : vector<32x4xf32>, vector<32x4xf32>, vector<32x32xf32> -> vector<32x32xf32>
    %cst_67 = arith.constant dense<0xFF800000> : vector<32xf32>
    %241 = vector.multi_reduction <maximumf>, %240, %cst_67 [1] : vector<32x32xf32> to vector<32xf32>
    %242 = vector.shape_cast %241 : vector<32xf32> to vector<32x1xf32>
    %243 = vector.broadcast %242 : vector<32x1xf32> to vector<32x32xf32>
    %244 = arith.subf %240, %243 : vector<32x32xf32>
    %245 = math.exp %244 : vector<32x32xf32>
    %cst_68 = arith.constant dense<0.000000e+00> : vector<32xf32>
    %246 = vector.multi_reduction <add>, %245, %cst_68 [1] : vector<32x32xf32> to vector<32xf32>
    %247 = vector.shape_cast %246 : vector<32xf32> to vector<32x1xf32>
    %248 = tpu.reciprocal %247 {approx = true} : vector<32x1xf32> -> vector<32x1xf32>
    %249 = vector.broadcast %248 : vector<32x1xf32> to vector<32x32xf32>
    %250 = arith.mulf %245, %249 : vector<32x32xf32>
    %cst_69 = arith.constant dense<0.000000e+00> : vector<32x4xf32>
    %251 = tpu.matmul %250, %239, %cst_69 {dimension_numbers = #tpu.dot_dimension_numbers<[1], [0], [0], [1], [0, 0, 1, 1], [], []>} : vector<32x32xf32>, vector<32x4xf32>, vector<32x4xf32> -> vector<32x4xf32>
    %252 = vector.extract_strided_slice %146 {offsets = [0, 28], sizes = [32, 4], strides = [1, 1]} : vector<32x96xf32> to vector<32x4xf32>
    %253 = vector.extract_strided_slice %146 {offsets = [0, 60], sizes = [32, 4], strides = [1, 1]} : vector<32x96xf32> to vector<32x4xf32>
    %254 = vector.extract_strided_slice %146 {offsets = [0, 92], sizes = [32, 4], strides = [1, 1]} : vector<32x96xf32> to vector<32x4xf32>
    %cst_70 = arith.constant dense<0.000000e+00> : vector<32x32xf32>
    %255 = tpu.matmul %252, %253, %cst_70 {dimension_numbers = #tpu.dot_dimension_numbers<[1], [1], [0], [0], [0, 0, 1, 0], [], []>} : vector<32x4xf32>, vector<32x4xf32>, vector<32x32xf32> -> vector<32x32xf32>
    %cst_71 = arith.constant dense<0xFF800000> : vector<32xf32>
    %256 = vector.multi_reduction <maximumf>, %255, %cst_71 [1] : vector<32x32xf32> to vector<32xf32>
    %257 = vector.shape_cast %256 : vector<32xf32> to vector<32x1xf32>
    %258 = vector.broadcast %257 : vector<32x1xf32> to vector<32x32xf32>
    %259 = arith.subf %255, %258 : vector<32x32xf32>
    %260 = math.exp %259 : vector<32x32xf32>
    %cst_72 = arith.constant dense<0.000000e+00> : vector<32xf32>
    %261 = vector.multi_reduction <add>, %260, %cst_72 [1] : vector<32x32xf32> to vector<32xf32>
    %262 = vector.shape_cast %261 : vector<32xf32> to vector<32x1xf32>
    %263 = tpu.reciprocal %262 {approx = true} : vector<32x1xf32> -> vector<32x1xf32>
    %264 = vector.broadcast %263 : vector<32x1xf32> to vector<32x32xf32>
    %265 = arith.mulf %260, %264 : vector<32x32xf32>
    %cst_73 = arith.constant dense<0.000000e+00> : vector<32x4xf32>
    %266 = tpu.matmul %265, %254, %cst_73 {dimension_numbers = #tpu.dot_dimension_numbers<[1], [0], [0], [1], [0, 0, 1, 1], [], []>} : vector<32x32xf32>, vector<32x4xf32>, vector<32x4xf32> -> vector<32x4xf32>
    %267 = tpu.concatenate %161, %176, %191, %206, %221, %236, %251, %266 in 1 : vector<32x4xf32>, vector<32x4xf32>, vector<32x4xf32>, vector<32x4xf32>, vector<32x4xf32>, vector<32x4xf32>, vector<32x4xf32>, vector<32x4xf32> -> vector<32x32xf32>
    %268 = tpu.concatenate %145, %267 in 0 : vector<32x32xf32>, vector<32x32xf32> -> vector<64x32xf32>
    %cst_74 = arith.constant dense<0.000000e+00> : vector<64x32xf32>
    %269 = tpu.matmul %268, %10, %cst_74 {dimension_numbers = #tpu.dot_dimension_numbers<[1], [0], [0], [1], [0, 0, 1, 1], [], []>} : vector<64x32xf32>, vector<32x32xf32>, vector<64x32xf32> -> vector<64x32xf32>
    %270 = vector.broadcast %14 : vector<1x32xf32> to vector<64x32xf32>
    %271 = arith.addf %269, %270 : vector<64x32xf32>
    %272 = arith.addf %6, %271 : vector<64x32xf32>
    %cst_75 = arith.constant dense<0.000000e+00> : vector<64xf32>
    %273 = vector.multi_reduction <add>, %272, %cst_75 [1] : vector<64x32xf32> to vector<64xf32>
    %274 = vector.shape_cast %273 : vector<64xf32> to vector<64x1xf32>
    %cst_76 = arith.constant 3.200000e+01 : f32
    %275 = vector.broadcast %cst_76 : f32 to vector<64x1xf32>
    %276 = arith.divf %274, %275 : vector<64x1xf32>
    %277 = vector.broadcast %276 : vector<64x1xf32> to vector<64x32xf32>
    %278 = arith.subf %272, %277 : vector<64x32xf32>
    %279 = arith.mulf %278, %278 : vector<64x32xf32>
    %cst_77 = arith.constant dense<0.000000e+00> : vector<64xf32>
    %280 = vector.multi_reduction <add>, %279, %cst_77 [1] : vector<64x32xf32> to vector<64xf32>
    %281 = vector.shape_cast %280 : vector<64xf32> to vector<64x1xf32>
    %cst_78 = arith.constant 3.200000e+01 : f32
    %282 = vector.broadcast %cst_78 : f32 to vector<64x1xf32>
    %283 = arith.divf %281, %282 : vector<64x1xf32>
    %284 = vector.broadcast %276 : vector<64x1xf32> to vector<64x32xf32>
    %285 = arith.subf %272, %284 : vector<64x32xf32>
    %cst_79 = arith.constant 9.99999974E-6 : f32
    %286 = vector.broadcast %cst_79 : f32 to vector<64x1xf32>
    %287 = arith.addf %283, %286 : vector<64x1xf32>
    %288 = math.rsqrt %287 : vector<64x1xf32>
    %289 = vector.broadcast %288 : vector<64x1xf32> to vector<64x32xf32>
    %290 = arith.mulf %285, %289 : vector<64x32xf32>
    %291 = vector.broadcast %17 : vector<1x32xf32> to vector<64x32xf32>
    %292 = arith.mulf %290, %291 : vector<64x32xf32>
    %293 = vector.broadcast %18 : vector<1x32xf32> to vector<64x32xf32>
    %294 = arith.addf %292, %293 : vector<64x32xf32>
    %c0_80 = arith.constant 0 : index
    %c0_81 = arith.constant 0 : index
    %c0_82 = arith.constant 0 : index
    %295 = vector.load %arg3[%c0_80, %c0_81, %c0_82] : memref<2x32x64xf32, #tpu.memory_space<vmem>>, vector<1x32x64xf32>
    %296 = vector.shape_cast %295 : vector<1x32x64xf32> to vector<32x64xf32>
    %cst_83 = arith.constant dense<0.000000e+00> : vector<64x64xf32>
    %297 = tpu.matmul %294, %296, %cst_83 {dimension_numbers = #tpu.dot_dimension_numbers<[1], [0], [0], [1], [0, 0, 1, 1], [], []>} : vector<64x32xf32>, vector<32x64xf32>, vector<64x64xf32> -> vector<64x64xf32>
    %298 = vector.broadcast %15 : vector<1x64xf32> to vector<64x64xf32>
    %299 = arith.addf %297, %298 : vector<64x64xf32>
    %cst_84 = arith.constant 0.000000e+00 : f32
    %300 = vector.broadcast %cst_84 : f32 to vector<64x64xf32>
    %301 = arith.maximumf %299, %300 : vector<64x64xf32>
    %c0_85 = arith.constant 0 : index
    %c0_86 = arith.constant 0 : index
    %c0_87 = arith.constant 0 : index
    %302 = vector.load %arg4[%c0_85, %c0_86, %c0_87] : memref<2x64x32xf32, #tpu.memory_space<vmem>>, vector<1x64x32xf32>
    %303 = vector.shape_cast %302 : vector<1x64x32xf32> to vector<64x32xf32>
    %cst_88 = arith.constant dense<0.000000e+00> : vector<64x32xf32>
    %304 = tpu.matmul %301, %303, %cst_88 {dimension_numbers = #tpu.dot_dimension_numbers<[1], [0], [0], [1], [0, 0, 1, 1], [], []>} : vector<64x64xf32>, vector<64x32xf32>, vector<64x32xf32> -> vector<64x32xf32>
    %305 = vector.broadcast %16 : vector<1x32xf32> to vector<64x32xf32>
    %306 = arith.addf %304, %305 : vector<64x32xf32>
    %307 = arith.addf %294, %306 : vector<64x32xf32>
    %cst_89 = arith.constant dense<0.000000e+00> : vector<64xf32>
    %308 = vector.multi_reduction <add>, %307, %cst_89 [1] : vector<64x32xf32> to vector<64xf32>
    %309 = vector.shape_cast %308 : vector<64xf32> to vector<64x1xf32>
    %cst_90 = arith.constant 3.200000e+01 : f32
    %310 = vector.broadcast %cst_90 : f32 to vector<64x1xf32>
    %311 = arith.divf %309, %310 : vector<64x1xf32>
    %312 = vector.broadcast %311 : vector<64x1xf32> to vector<64x32xf32>
    %313 = arith.subf %307, %312 : vector<64x32xf32>
    %314 = arith.mulf %313, %313 : vector<64x32xf32>
    %cst_91 = arith.constant dense<0.000000e+00> : vector<64xf32>
    %315 = vector.multi_reduction <add>, %314, %cst_91 [1] : vector<64x32xf32> to vector<64xf32>
    %316 = vector.shape_cast %315 : vector<64xf32> to vector<64x1xf32>
    %cst_92 = arith.constant 3.200000e+01 : f32
    %317 = vector.broadcast %cst_92 : f32 to vector<64x1xf32>
    %318 = arith.divf %316, %317 : vector<64x1xf32>
    %319 = vector.broadcast %311 : vector<64x1xf32> to vector<64x32xf32>
    %320 = arith.subf %307, %319 : vector<64x32xf32>
    %cst_93 = arith.constant 9.99999974E-6 : f32
    %321 = vector.broadcast %cst_93 : f32 to vector<64x1xf32>
    %322 = arith.addf %318, %321 : vector<64x1xf32>
    %323 = math.rsqrt %322 : vector<64x1xf32>
    %324 = vector.broadcast %323 : vector<64x1xf32> to vector<64x32xf32>
    %325 = arith.mulf %320, %324 : vector<64x32xf32>
    %326 = vector.broadcast %19 : vector<1x32xf32> to vector<64x32xf32>
    %327 = arith.mulf %325, %326 : vector<64x32xf32>
    %328 = vector.broadcast %20 : vector<1x32xf32> to vector<64x32xf32>
    %329 = arith.addf %327, %328 : vector<64x32xf32>
    %c1 = arith.constant 1 : index
    %c0_94 = arith.constant 0 : index
    %c0_95 = arith.constant 0 : index
    %330 = vector.load %arg2[%c1, %c0_94, %c0_95] : memref<2x32x128xf32, #tpu.memory_space<vmem>>, vector<1x32x128xf32>
    %331 = vector.shape_cast %330 : vector<1x32x128xf32> to vector<32x128xf32>
    %332 = vector.extract_strided_slice %331 {offsets = [0, 0], sizes = [32, 96], strides = [1, 1]} : vector<32x128xf32> to vector<32x96xf32>
    %333 = vector.extract_strided_slice %331 {offsets = [0, 96], sizes = [32, 32], strides = [1, 1]} : vector<32x128xf32> to vector<32x32xf32>
    %c1_96 = arith.constant 1 : index
    %c0_97 = arith.constant 0 : index
    %c0_98 = arith.constant 0 : index
    %334 = vector.load %arg5[%c1_96, %c0_97, %c0_98] : memref<2x8x128xf32, #tpu.memory_space<vmem>>, vector<1x8x128xf32>
    %335 = vector.shape_cast %334 : vector<1x8x128xf32> to vector<8x128xf32>
    %336 = vector.extract_strided_slice %335 {offsets = [0, 0], sizes = [1, 96], strides = [1, 1]} : vector<8x128xf32> to vector<1x96xf32>
    %337 = vector.extract_strided_slice %335 {offsets = [1, 0], sizes = [1, 32], strides = [1, 1]} : vector<8x128xf32> to vector<1x32xf32>
    %338 = vector.extract_strided_slice %335 {offsets = [2, 0], sizes = [1, 64], strides = [1, 1]} : vector<8x128xf32> to vector<1x64xf32>
    %339 = vector.extract_strided_slice %335 {offsets = [3, 0], sizes = [1, 32], strides = [1, 1]} : vector<8x128xf32> to vector<1x32xf32>
    %340 = vector.extract_strided_slice %335 {offsets = [4, 0], sizes = [1, 32], strides = [1, 1]} : vector<8x128xf32> to vector<1x32xf32>
    %341 = vector.extract_strided_slice %335 {offsets = [5, 0], sizes = [1, 32], strides = [1, 1]} : vector<8x128xf32> to vector<1x32xf32>
    %342 = vector.extract_strided_slice %335 {offsets = [6, 0], sizes = [1, 32], strides = [1, 1]} : vector<8x128xf32> to vector<1x32xf32>
    %343 = vector.extract_strided_slice %335 {offsets = [7, 0], sizes = [1, 32], strides = [1, 1]} : vector<8x128xf32> to vector<1x32xf32>
    %cst_99 = arith.constant dense<0.000000e+00> : vector<64x96xf32>
    %344 = tpu.matmul %329, %332, %cst_99 {dimension_numbers = #tpu.dot_dimension_numbers<[1], [0], [0], [1], [0, 0, 1, 1], [], []>} : vector<64x32xf32>, vector<32x96xf32>, vector<64x96xf32> -> vector<64x96xf32>
    %345 = vector.broadcast %336 : vector<1x96xf32> to vector<64x96xf32>
    %346 = arith.addf %344, %345 : vector<64x96xf32>
    %347 = vector.extract_strided_slice %346 {offsets = [0, 0], sizes = [32, 96], strides = [1, 1]} : vector<64x96xf32> to vector<32x96xf32>
    %348 = vector.extract_strided_slice %347 {offsets = [0, 0], sizes = [32, 4], strides = [1, 1]} : vector<32x96xf32> to vector<32x4xf32>
    %349 = vector.extract_strided_slice %347 {offsets = [0, 32], sizes = [32, 4], strides = [1, 1]} : vector<32x96xf32> to vector<32x4xf32>
    %350 = vector.extract_strided_slice %347 {offsets = [0, 64], sizes = [32, 4], strides = [1, 1]} : vector<32x96xf32> to vector<32x4xf32>
    %cst_100 = arith.constant dense<0.000000e+00> : vector<32x32xf32>
    %351 = tpu.matmul %348, %349, %cst_100 {dimension_numbers = #tpu.dot_dimension_numbers<[1], [1], [0], [0], [0, 0, 1, 0], [], []>} : vector<32x4xf32>, vector<32x4xf32>, vector<32x32xf32> -> vector<32x32xf32>
    %cst_101 = arith.constant dense<0xFF800000> : vector<32xf32>
    %352 = vector.multi_reduction <maximumf>, %351, %cst_101 [1] : vector<32x32xf32> to vector<32xf32>
    %353 = vector.shape_cast %352 : vector<32xf32> to vector<32x1xf32>
    %354 = vector.broadcast %353 : vector<32x1xf32> to vector<32x32xf32>
    %355 = arith.subf %351, %354 : vector<32x32xf32>
    %356 = math.exp %355 : vector<32x32xf32>
    %cst_102 = arith.constant dense<0.000000e+00> : vector<32xf32>
    %357 = vector.multi_reduction <add>, %356, %cst_102 [1] : vector<32x32xf32> to vector<32xf32>
    %358 = vector.shape_cast %357 : vector<32xf32> to vector<32x1xf32>
    %359 = tpu.reciprocal %358 {approx = true} : vector<32x1xf32> -> vector<32x1xf32>
    %360 = vector.broadcast %359 : vector<32x1xf32> to vector<32x32xf32>
    %361 = arith.mulf %356, %360 : vector<32x32xf32>
    %cst_103 = arith.constant dense<0.000000e+00> : vector<32x4xf32>
    %362 = tpu.matmul %361, %350, %cst_103 {dimension_numbers = #tpu.dot_dimension_numbers<[1], [0], [0], [1], [0, 0, 1, 1], [], []>} : vector<32x32xf32>, vector<32x4xf32>, vector<32x4xf32> -> vector<32x4xf32>
    %363 = vector.extract_strided_slice %347 {offsets = [0, 4], sizes = [32, 4], strides = [1, 1]} : vector<32x96xf32> to vector<32x4xf32>
    %364 = vector.extract_strided_slice %347 {offsets = [0, 36], sizes = [32, 4], strides = [1, 1]} : vector<32x96xf32> to vector<32x4xf32>
    %365 = vector.extract_strided_slice %347 {offsets = [0, 68], sizes = [32, 4], strides = [1, 1]} : vector<32x96xf32> to vector<32x4xf32>
    %cst_104 = arith.constant dense<0.000000e+00> : vector<32x32xf32>
    %366 = tpu.matmul %363, %364, %cst_104 {dimension_numbers = #tpu.dot_dimension_numbers<[1], [1], [0], [0], [0, 0, 1, 0], [], []>} : vector<32x4xf32>, vector<32x4xf32>, vector<32x32xf32> -> vector<32x32xf32>
    %cst_105 = arith.constant dense<0xFF800000> : vector<32xf32>
    %367 = vector.multi_reduction <maximumf>, %366, %cst_105 [1] : vector<32x32xf32> to vector<32xf32>
    %368 = vector.shape_cast %367 : vector<32xf32> to vector<32x1xf32>
    %369 = vector.broadcast %368 : vector<32x1xf32> to vector<32x32xf32>
    %370 = arith.subf %366, %369 : vector<32x32xf32>
    %371 = math.exp %370 : vector<32x32xf32>
    %cst_106 = arith.constant dense<0.000000e+00> : vector<32xf32>
    %372 = vector.multi_reduction <add>, %371, %cst_106 [1] : vector<32x32xf32> to vector<32xf32>
    %373 = vector.shape_cast %372 : vector<32xf32> to vector<32x1xf32>
    %374 = tpu.reciprocal %373 {approx = true} : vector<32x1xf32> -> vector<32x1xf32>
    %375 = vector.broadcast %374 : vector<32x1xf32> to vector<32x32xf32>
    %376 = arith.mulf %371, %375 : vector<32x32xf32>
    %cst_107 = arith.constant dense<0.000000e+00> : vector<32x4xf32>
    %377 = tpu.matmul %376, %365, %cst_107 {dimension_numbers = #tpu.dot_dimension_numbers<[1], [0], [0], [1], [0, 0, 1, 1], [], []>} : vector<32x32xf32>, vector<32x4xf32>, vector<32x4xf32> -> vector<32x4xf32>
    %378 = vector.extract_strided_slice %347 {offsets = [0, 8], sizes = [32, 4], strides = [1, 1]} : vector<32x96xf32> to vector<32x4xf32>
    %379 = vector.extract_strided_slice %347 {offsets = [0, 40], sizes = [32, 4], strides = [1, 1]} : vector<32x96xf32> to vector<32x4xf32>
    %380 = vector.extract_strided_slice %347 {offsets = [0, 72], sizes = [32, 4], strides = [1, 1]} : vector<32x96xf32> to vector<32x4xf32>
    %cst_108 = arith.constant dense<0.000000e+00> : vector<32x32xf32>
    %381 = tpu.matmul %378, %379, %cst_108 {dimension_numbers = #tpu.dot_dimension_numbers<[1], [1], [0], [0], [0, 0, 1, 0], [], []>} : vector<32x4xf32>, vector<32x4xf32>, vector<32x32xf32> -> vector<32x32xf32>
    %cst_109 = arith.constant dense<0xFF800000> : vector<32xf32>
    %382 = vector.multi_reduction <maximumf>, %381, %cst_109 [1] : vector<32x32xf32> to vector<32xf32>
    %383 = vector.shape_cast %382 : vector<32xf32> to vector<32x1xf32>
    %384 = vector.broadcast %383 : vector<32x1xf32> to vector<32x32xf32>
    %385 = arith.subf %381, %384 : vector<32x32xf32>
    %386 = math.exp %385 : vector<32x32xf32>
    %cst_110 = arith.constant dense<0.000000e+00> : vector<32xf32>
    %387 = vector.multi_reduction <add>, %386, %cst_110 [1] : vector<32x32xf32> to vector<32xf32>
    %388 = vector.shape_cast %387 : vector<32xf32> to vector<32x1xf32>
    %389 = tpu.reciprocal %388 {approx = true} : vector<32x1xf32> -> vector<32x1xf32>
    %390 = vector.broadcast %389 : vector<32x1xf32> to vector<32x32xf32>
    %391 = arith.mulf %386, %390 : vector<32x32xf32>
    %cst_111 = arith.constant dense<0.000000e+00> : vector<32x4xf32>
    %392 = tpu.matmul %391, %380, %cst_111 {dimension_numbers = #tpu.dot_dimension_numbers<[1], [0], [0], [1], [0, 0, 1, 1], [], []>} : vector<32x32xf32>, vector<32x4xf32>, vector<32x4xf32> -> vector<32x4xf32>
    %393 = vector.extract_strided_slice %347 {offsets = [0, 12], sizes = [32, 4], strides = [1, 1]} : vector<32x96xf32> to vector<32x4xf32>
    %394 = vector.extract_strided_slice %347 {offsets = [0, 44], sizes = [32, 4], strides = [1, 1]} : vector<32x96xf32> to vector<32x4xf32>
    %395 = vector.extract_strided_slice %347 {offsets = [0, 76], sizes = [32, 4], strides = [1, 1]} : vector<32x96xf32> to vector<32x4xf32>
    %cst_112 = arith.constant dense<0.000000e+00> : vector<32x32xf32>
    %396 = tpu.matmul %393, %394, %cst_112 {dimension_numbers = #tpu.dot_dimension_numbers<[1], [1], [0], [0], [0, 0, 1, 0], [], []>} : vector<32x4xf32>, vector<32x4xf32>, vector<32x32xf32> -> vector<32x32xf32>
    %cst_113 = arith.constant dense<0xFF800000> : vector<32xf32>
    %397 = vector.multi_reduction <maximumf>, %396, %cst_113 [1] : vector<32x32xf32> to vector<32xf32>
    %398 = vector.shape_cast %397 : vector<32xf32> to vector<32x1xf32>
    %399 = vector.broadcast %398 : vector<32x1xf32> to vector<32x32xf32>
    %400 = arith.subf %396, %399 : vector<32x32xf32>
    %401 = math.exp %400 : vector<32x32xf32>
    %cst_114 = arith.constant dense<0.000000e+00> : vector<32xf32>
    %402 = vector.multi_reduction <add>, %401, %cst_114 [1] : vector<32x32xf32> to vector<32xf32>
    %403 = vector.shape_cast %402 : vector<32xf32> to vector<32x1xf32>
    %404 = tpu.reciprocal %403 {approx = true} : vector<32x1xf32> -> vector<32x1xf32>
    %405 = vector.broadcast %404 : vector<32x1xf32> to vector<32x32xf32>
    %406 = arith.mulf %401, %405 : vector<32x32xf32>
    %cst_115 = arith.constant dense<0.000000e+00> : vector<32x4xf32>
    %407 = tpu.matmul %406, %395, %cst_115 {dimension_numbers = #tpu.dot_dimension_numbers<[1], [0], [0], [1], [0, 0, 1, 1], [], []>} : vector<32x32xf32>, vector<32x4xf32>, vector<32x4xf32> -> vector<32x4xf32>
    %408 = vector.extract_strided_slice %347 {offsets = [0, 16], sizes = [32, 4], strides = [1, 1]} : vector<32x96xf32> to vector<32x4xf32>
    %409 = vector.extract_strided_slice %347 {offsets = [0, 48], sizes = [32, 4], strides = [1, 1]} : vector<32x96xf32> to vector<32x4xf32>
    %410 = vector.extract_strided_slice %347 {offsets = [0, 80], sizes = [32, 4], strides = [1, 1]} : vector<32x96xf32> to vector<32x4xf32>
    %cst_116 = arith.constant dense<0.000000e+00> : vector<32x32xf32>
    %411 = tpu.matmul %408, %409, %cst_116 {dimension_numbers = #tpu.dot_dimension_numbers<[1], [1], [0], [0], [0, 0, 1, 0], [], []>} : vector<32x4xf32>, vector<32x4xf32>, vector<32x32xf32> -> vector<32x32xf32>
    %cst_117 = arith.constant dense<0xFF800000> : vector<32xf32>
    %412 = vector.multi_reduction <maximumf>, %411, %cst_117 [1] : vector<32x32xf32> to vector<32xf32>
    %413 = vector.shape_cast %412 : vector<32xf32> to vector<32x1xf32>
    %414 = vector.broadcast %413 : vector<32x1xf32> to vector<32x32xf32>
    %415 = arith.subf %411, %414 : vector<32x32xf32>
    %416 = math.exp %415 : vector<32x32xf32>
    %cst_118 = arith.constant dense<0.000000e+00> : vector<32xf32>
    %417 = vector.multi_reduction <add>, %416, %cst_118 [1] : vector<32x32xf32> to vector<32xf32>
    %418 = vector.shape_cast %417 : vector<32xf32> to vector<32x1xf32>
    %419 = tpu.reciprocal %418 {approx = true} : vector<32x1xf32> -> vector<32x1xf32>
    %420 = vector.broadcast %419 : vector<32x1xf32> to vector<32x32xf32>
    %421 = arith.mulf %416, %420 : vector<32x32xf32>
    %cst_119 = arith.constant dense<0.000000e+00> : vector<32x4xf32>
    %422 = tpu.matmul %421, %410, %cst_119 {dimension_numbers = #tpu.dot_dimension_numbers<[1], [0], [0], [1], [0, 0, 1, 1], [], []>} : vector<32x32xf32>, vector<32x4xf32>, vector<32x4xf32> -> vector<32x4xf32>
    %423 = vector.extract_strided_slice %347 {offsets = [0, 20], sizes = [32, 4], strides = [1, 1]} : vector<32x96xf32> to vector<32x4xf32>
    %424 = vector.extract_strided_slice %347 {offsets = [0, 52], sizes = [32, 4], strides = [1, 1]} : vector<32x96xf32> to vector<32x4xf32>
    %425 = vector.extract_strided_slice %347 {offsets = [0, 84], sizes = [32, 4], strides = [1, 1]} : vector<32x96xf32> to vector<32x4xf32>
    %cst_120 = arith.constant dense<0.000000e+00> : vector<32x32xf32>
    %426 = tpu.matmul %423, %424, %cst_120 {dimension_numbers = #tpu.dot_dimension_numbers<[1], [1], [0], [0], [0, 0, 1, 0], [], []>} : vector<32x4xf32>, vector<32x4xf32>, vector<32x32xf32> -> vector<32x32xf32>
    %cst_121 = arith.constant dense<0xFF800000> : vector<32xf32>
    %427 = vector.multi_reduction <maximumf>, %426, %cst_121 [1] : vector<32x32xf32> to vector<32xf32>
    %428 = vector.shape_cast %427 : vector<32xf32> to vector<32x1xf32>
    %429 = vector.broadcast %428 : vector<32x1xf32> to vector<32x32xf32>
    %430 = arith.subf %426, %429 : vector<32x32xf32>
    %431 = math.exp %430 : vector<32x32xf32>
    %cst_122 = arith.constant dense<0.000000e+00> : vector<32xf32>
    %432 = vector.multi_reduction <add>, %431, %cst_122 [1] : vector<32x32xf32> to vector<32xf32>
    %433 = vector.shape_cast %432 : vector<32xf32> to vector<32x1xf32>
    %434 = tpu.reciprocal %433 {approx = true} : vector<32x1xf32> -> vector<32x1xf32>
    %435 = vector.broadcast %434 : vector<32x1xf32> to vector<32x32xf32>
    %436 = arith.mulf %431, %435 : vector<32x32xf32>
    %cst_123 = arith.constant dense<0.000000e+00> : vector<32x4xf32>
    %437 = tpu.matmul %436, %425, %cst_123 {dimension_numbers = #tpu.dot_dimension_numbers<[1], [0], [0], [1], [0, 0, 1, 1], [], []>} : vector<32x32xf32>, vector<32x4xf32>, vector<32x4xf32> -> vector<32x4xf32>
    %438 = vector.extract_strided_slice %347 {offsets = [0, 24], sizes = [32, 4], strides = [1, 1]} : vector<32x96xf32> to vector<32x4xf32>
    %439 = vector.extract_strided_slice %347 {offsets = [0, 56], sizes = [32, 4], strides = [1, 1]} : vector<32x96xf32> to vector<32x4xf32>
    %440 = vector.extract_strided_slice %347 {offsets = [0, 88], sizes = [32, 4], strides = [1, 1]} : vector<32x96xf32> to vector<32x4xf32>
    %cst_124 = arith.constant dense<0.000000e+00> : vector<32x32xf32>
    %441 = tpu.matmul %438, %439, %cst_124 {dimension_numbers = #tpu.dot_dimension_numbers<[1], [1], [0], [0], [0, 0, 1, 0], [], []>} : vector<32x4xf32>, vector<32x4xf32>, vector<32x32xf32> -> vector<32x32xf32>
    %cst_125 = arith.constant dense<0xFF800000> : vector<32xf32>
    %442 = vector.multi_reduction <maximumf>, %441, %cst_125 [1] : vector<32x32xf32> to vector<32xf32>
    %443 = vector.shape_cast %442 : vector<32xf32> to vector<32x1xf32>
    %444 = vector.broadcast %443 : vector<32x1xf32> to vector<32x32xf32>
    %445 = arith.subf %441, %444 : vector<32x32xf32>
    %446 = math.exp %445 : vector<32x32xf32>
    %cst_126 = arith.constant dense<0.000000e+00> : vector<32xf32>
    %447 = vector.multi_reduction <add>, %446, %cst_126 [1] : vector<32x32xf32> to vector<32xf32>
    %448 = vector.shape_cast %447 : vector<32xf32> to vector<32x1xf32>
    %449 = tpu.reciprocal %448 {approx = true} : vector<32x1xf32> -> vector<32x1xf32>
    %450 = vector.broadcast %449 : vector<32x1xf32> to vector<32x32xf32>
    %451 = arith.mulf %446, %450 : vector<32x32xf32>
    %cst_127 = arith.constant dense<0.000000e+00> : vector<32x4xf32>
    %452 = tpu.matmul %451, %440, %cst_127 {dimension_numbers = #tpu.dot_dimension_numbers<[1], [0], [0], [1], [0, 0, 1, 1], [], []>} : vector<32x32xf32>, vector<32x4xf32>, vector<32x4xf32> -> vector<32x4xf32>
    %453 = vector.extract_strided_slice %347 {offsets = [0, 28], sizes = [32, 4], strides = [1, 1]} : vector<32x96xf32> to vector<32x4xf32>
    %454 = vector.extract_strided_slice %347 {offsets = [0, 60], sizes = [32, 4], strides = [1, 1]} : vector<32x96xf32> to vector<32x4xf32>
    %455 = vector.extract_strided_slice %347 {offsets = [0, 92], sizes = [32, 4], strides = [1, 1]} : vector<32x96xf32> to vector<32x4xf32>
    %cst_128 = arith.constant dense<0.000000e+00> : vector<32x32xf32>
    %456 = tpu.matmul %453, %454, %cst_128 {dimension_numbers = #tpu.dot_dimension_numbers<[1], [1], [0], [0], [0, 0, 1, 0], [], []>} : vector<32x4xf32>, vector<32x4xf32>, vector<32x32xf32> -> vector<32x32xf32>
    %cst_129 = arith.constant dense<0xFF800000> : vector<32xf32>
    %457 = vector.multi_reduction <maximumf>, %456, %cst_129 [1] : vector<32x32xf32> to vector<32xf32>
    %458 = vector.shape_cast %457 : vector<32xf32> to vector<32x1xf32>
    %459 = vector.broadcast %458 : vector<32x1xf32> to vector<32x32xf32>
    %460 = arith.subf %456, %459 : vector<32x32xf32>
    %461 = math.exp %460 : vector<32x32xf32>
    %cst_130 = arith.constant dense<0.000000e+00> : vector<32xf32>
    %462 = vector.multi_reduction <add>, %461, %cst_130 [1] : vector<32x32xf32> to vector<32xf32>
    %463 = vector.shape_cast %462 : vector<32xf32> to vector<32x1xf32>
    %464 = tpu.reciprocal %463 {approx = true} : vector<32x1xf32> -> vector<32x1xf32>
    %465 = vector.broadcast %464 : vector<32x1xf32> to vector<32x32xf32>
    %466 = arith.mulf %461, %465 : vector<32x32xf32>
    %cst_131 = arith.constant dense<0.000000e+00> : vector<32x4xf32>
    %467 = tpu.matmul %466, %455, %cst_131 {dimension_numbers = #tpu.dot_dimension_numbers<[1], [0], [0], [1], [0, 0, 1, 1], [], []>} : vector<32x32xf32>, vector<32x4xf32>, vector<32x4xf32> -> vector<32x4xf32>
    %468 = tpu.concatenate %362, %377, %392, %407, %422, %437, %452, %467 in 1 : vector<32x4xf32>, vector<32x4xf32>, vector<32x4xf32>, vector<32x4xf32>, vector<32x4xf32>, vector<32x4xf32>, vector<32x4xf32>, vector<32x4xf32> -> vector<32x32xf32>
    %469 = vector.extract_strided_slice %346 {offsets = [32, 0], sizes = [32, 96], strides = [1, 1]} : vector<64x96xf32> to vector<32x96xf32>
    %470 = vector.extract_strided_slice %469 {offsets = [0, 0], sizes = [32, 4], strides = [1, 1]} : vector<32x96xf32> to vector<32x4xf32>
    %471 = vector.extract_strided_slice %469 {offsets = [0, 32], sizes = [32, 4], strides = [1, 1]} : vector<32x96xf32> to vector<32x4xf32>
    %472 = vector.extract_strided_slice %469 {offsets = [0, 64], sizes = [32, 4], strides = [1, 1]} : vector<32x96xf32> to vector<32x4xf32>
    %cst_132 = arith.constant dense<0.000000e+00> : vector<32x32xf32>
    %473 = tpu.matmul %470, %471, %cst_132 {dimension_numbers = #tpu.dot_dimension_numbers<[1], [1], [0], [0], [0, 0, 1, 0], [], []>} : vector<32x4xf32>, vector<32x4xf32>, vector<32x32xf32> -> vector<32x32xf32>
    %cst_133 = arith.constant dense<0xFF800000> : vector<32xf32>
    %474 = vector.multi_reduction <maximumf>, %473, %cst_133 [1] : vector<32x32xf32> to vector<32xf32>
    %475 = vector.shape_cast %474 : vector<32xf32> to vector<32x1xf32>
    %476 = vector.broadcast %475 : vector<32x1xf32> to vector<32x32xf32>
    %477 = arith.subf %473, %476 : vector<32x32xf32>
    %478 = math.exp %477 : vector<32x32xf32>
    %cst_134 = arith.constant dense<0.000000e+00> : vector<32xf32>
    %479 = vector.multi_reduction <add>, %478, %cst_134 [1] : vector<32x32xf32> to vector<32xf32>
    %480 = vector.shape_cast %479 : vector<32xf32> to vector<32x1xf32>
    %481 = tpu.reciprocal %480 {approx = true} : vector<32x1xf32> -> vector<32x1xf32>
    %482 = vector.broadcast %481 : vector<32x1xf32> to vector<32x32xf32>
    %483 = arith.mulf %478, %482 : vector<32x32xf32>
    %cst_135 = arith.constant dense<0.000000e+00> : vector<32x4xf32>
    %484 = tpu.matmul %483, %472, %cst_135 {dimension_numbers = #tpu.dot_dimension_numbers<[1], [0], [0], [1], [0, 0, 1, 1], [], []>} : vector<32x32xf32>, vector<32x4xf32>, vector<32x4xf32> -> vector<32x4xf32>
    %485 = vector.extract_strided_slice %469 {offsets = [0, 4], sizes = [32, 4], strides = [1, 1]} : vector<32x96xf32> to vector<32x4xf32>
    %486 = vector.extract_strided_slice %469 {offsets = [0, 36], sizes = [32, 4], strides = [1, 1]} : vector<32x96xf32> to vector<32x4xf32>
    %487 = vector.extract_strided_slice %469 {offsets = [0, 68], sizes = [32, 4], strides = [1, 1]} : vector<32x96xf32> to vector<32x4xf32>
    %cst_136 = arith.constant dense<0.000000e+00> : vector<32x32xf32>
    %488 = tpu.matmul %485, %486, %cst_136 {dimension_numbers = #tpu.dot_dimension_numbers<[1], [1], [0], [0], [0, 0, 1, 0], [], []>} : vector<32x4xf32>, vector<32x4xf32>, vector<32x32xf32> -> vector<32x32xf32>
    %cst_137 = arith.constant dense<0xFF800000> : vector<32xf32>
    %489 = vector.multi_reduction <maximumf>, %488, %cst_137 [1] : vector<32x32xf32> to vector<32xf32>
    %490 = vector.shape_cast %489 : vector<32xf32> to vector<32x1xf32>
    %491 = vector.broadcast %490 : vector<32x1xf32> to vector<32x32xf32>
    %492 = arith.subf %488, %491 : vector<32x32xf32>
    %493 = math.exp %492 : vector<32x32xf32>
    %cst_138 = arith.constant dense<0.000000e+00> : vector<32xf32>
    %494 = vector.multi_reduction <add>, %493, %cst_138 [1] : vector<32x32xf32> to vector<32xf32>
    %495 = vector.shape_cast %494 : vector<32xf32> to vector<32x1xf32>
    %496 = tpu.reciprocal %495 {approx = true} : vector<32x1xf32> -> vector<32x1xf32>
    %497 = vector.broadcast %496 : vector<32x1xf32> to vector<32x32xf32>
    %498 = arith.mulf %493, %497 : vector<32x32xf32>
    %cst_139 = arith.constant dense<0.000000e+00> : vector<32x4xf32>
    %499 = tpu.matmul %498, %487, %cst_139 {dimension_numbers = #tpu.dot_dimension_numbers<[1], [0], [0], [1], [0, 0, 1, 1], [], []>} : vector<32x32xf32>, vector<32x4xf32>, vector<32x4xf32> -> vector<32x4xf32>
    %500 = vector.extract_strided_slice %469 {offsets = [0, 8], sizes = [32, 4], strides = [1, 1]} : vector<32x96xf32> to vector<32x4xf32>
    %501 = vector.extract_strided_slice %469 {offsets = [0, 40], sizes = [32, 4], strides = [1, 1]} : vector<32x96xf32> to vector<32x4xf32>
    %502 = vector.extract_strided_slice %469 {offsets = [0, 72], sizes = [32, 4], strides = [1, 1]} : vector<32x96xf32> to vector<32x4xf32>
    %cst_140 = arith.constant dense<0.000000e+00> : vector<32x32xf32>
    %503 = tpu.matmul %500, %501, %cst_140 {dimension_numbers = #tpu.dot_dimension_numbers<[1], [1], [0], [0], [0, 0, 1, 0], [], []>} : vector<32x4xf32>, vector<32x4xf32>, vector<32x32xf32> -> vector<32x32xf32>
    %cst_141 = arith.constant dense<0xFF800000> : vector<32xf32>
    %504 = vector.multi_reduction <maximumf>, %503, %cst_141 [1] : vector<32x32xf32> to vector<32xf32>
    %505 = vector.shape_cast %504 : vector<32xf32> to vector<32x1xf32>
    %506 = vector.broadcast %505 : vector<32x1xf32> to vector<32x32xf32>
    %507 = arith.subf %503, %506 : vector<32x32xf32>
    %508 = math.exp %507 : vector<32x32xf32>
    %cst_142 = arith.constant dense<0.000000e+00> : vector<32xf32>
    %509 = vector.multi_reduction <add>, %508, %cst_142 [1] : vector<32x32xf32> to vector<32xf32>
    %510 = vector.shape_cast %509 : vector<32xf32> to vector<32x1xf32>
    %511 = tpu.reciprocal %510 {approx = true} : vector<32x1xf32> -> vector<32x1xf32>
    %512 = vector.broadcast %511 : vector<32x1xf32> to vector<32x32xf32>
    %513 = arith.mulf %508, %512 : vector<32x32xf32>
    %cst_143 = arith.constant dense<0.000000e+00> : vector<32x4xf32>
    %514 = tpu.matmul %513, %502, %cst_143 {dimension_numbers = #tpu.dot_dimension_numbers<[1], [0], [0], [1], [0, 0, 1, 1], [], []>} : vector<32x32xf32>, vector<32x4xf32>, vector<32x4xf32> -> vector<32x4xf32>
    %515 = vector.extract_strided_slice %469 {offsets = [0, 12], sizes = [32, 4], strides = [1, 1]} : vector<32x96xf32> to vector<32x4xf32>
    %516 = vector.extract_strided_slice %469 {offsets = [0, 44], sizes = [32, 4], strides = [1, 1]} : vector<32x96xf32> to vector<32x4xf32>
    %517 = vector.extract_strided_slice %469 {offsets = [0, 76], sizes = [32, 4], strides = [1, 1]} : vector<32x96xf32> to vector<32x4xf32>
    %cst_144 = arith.constant dense<0.000000e+00> : vector<32x32xf32>
    %518 = tpu.matmul %515, %516, %cst_144 {dimension_numbers = #tpu.dot_dimension_numbers<[1], [1], [0], [0], [0, 0, 1, 0], [], []>} : vector<32x4xf32>, vector<32x4xf32>, vector<32x32xf32> -> vector<32x32xf32>
    %cst_145 = arith.constant dense<0xFF800000> : vector<32xf32>
    %519 = vector.multi_reduction <maximumf>, %518, %cst_145 [1] : vector<32x32xf32> to vector<32xf32>
    %520 = vector.shape_cast %519 : vector<32xf32> to vector<32x1xf32>
    %521 = vector.broadcast %520 : vector<32x1xf32> to vector<32x32xf32>
    %522 = arith.subf %518, %521 : vector<32x32xf32>
    %523 = math.exp %522 : vector<32x32xf32>
    %cst_146 = arith.constant dense<0.000000e+00> : vector<32xf32>
    %524 = vector.multi_reduction <add>, %523, %cst_146 [1] : vector<32x32xf32> to vector<32xf32>
    %525 = vector.shape_cast %524 : vector<32xf32> to vector<32x1xf32>
    %526 = tpu.reciprocal %525 {approx = true} : vector<32x1xf32> -> vector<32x1xf32>
    %527 = vector.broadcast %526 : vector<32x1xf32> to vector<32x32xf32>
    %528 = arith.mulf %523, %527 : vector<32x32xf32>
    %cst_147 = arith.constant dense<0.000000e+00> : vector<32x4xf32>
    %529 = tpu.matmul %528, %517, %cst_147 {dimension_numbers = #tpu.dot_dimension_numbers<[1], [0], [0], [1], [0, 0, 1, 1], [], []>} : vector<32x32xf32>, vector<32x4xf32>, vector<32x4xf32> -> vector<32x4xf32>
    %530 = vector.extract_strided_slice %469 {offsets = [0, 16], sizes = [32, 4], strides = [1, 1]} : vector<32x96xf32> to vector<32x4xf32>
    %531 = vector.extract_strided_slice %469 {offsets = [0, 48], sizes = [32, 4], strides = [1, 1]} : vector<32x96xf32> to vector<32x4xf32>
    %532 = vector.extract_strided_slice %469 {offsets = [0, 80], sizes = [32, 4], strides = [1, 1]} : vector<32x96xf32> to vector<32x4xf32>
    %cst_148 = arith.constant dense<0.000000e+00> : vector<32x32xf32>
    %533 = tpu.matmul %530, %531, %cst_148 {dimension_numbers = #tpu.dot_dimension_numbers<[1], [1], [0], [0], [0, 0, 1, 0], [], []>} : vector<32x4xf32>, vector<32x4xf32>, vector<32x32xf32> -> vector<32x32xf32>
    %cst_149 = arith.constant dense<0xFF800000> : vector<32xf32>
    %534 = vector.multi_reduction <maximumf>, %533, %cst_149 [1] : vector<32x32xf32> to vector<32xf32>
    %535 = vector.shape_cast %534 : vector<32xf32> to vector<32x1xf32>
    %536 = vector.broadcast %535 : vector<32x1xf32> to vector<32x32xf32>
    %537 = arith.subf %533, %536 : vector<32x32xf32>
    %538 = math.exp %537 : vector<32x32xf32>
    %cst_150 = arith.constant dense<0.000000e+00> : vector<32xf32>
    %539 = vector.multi_reduction <add>, %538, %cst_150 [1] : vector<32x32xf32> to vector<32xf32>
    %540 = vector.shape_cast %539 : vector<32xf32> to vector<32x1xf32>
    %541 = tpu.reciprocal %540 {approx = true} : vector<32x1xf32> -> vector<32x1xf32>
    %542 = vector.broadcast %541 : vector<32x1xf32> to vector<32x32xf32>
    %543 = arith.mulf %538, %542 : vector<32x32xf32>
    %cst_151 = arith.constant dense<0.000000e+00> : vector<32x4xf32>
    %544 = tpu.matmul %543, %532, %cst_151 {dimension_numbers = #tpu.dot_dimension_numbers<[1], [0], [0], [1], [0, 0, 1, 1], [], []>} : vector<32x32xf32>, vector<32x4xf32>, vector<32x4xf32> -> vector<32x4xf32>
    %545 = vector.extract_strided_slice %469 {offsets = [0, 20], sizes = [32, 4], strides = [1, 1]} : vector<32x96xf32> to vector<32x4xf32>
    %546 = vector.extract_strided_slice %469 {offsets = [0, 52], sizes = [32, 4], strides = [1, 1]} : vector<32x96xf32> to vector<32x4xf32>
    %547 = vector.extract_strided_slice %469 {offsets = [0, 84], sizes = [32, 4], strides = [1, 1]} : vector<32x96xf32> to vector<32x4xf32>
    %cst_152 = arith.constant dense<0.000000e+00> : vector<32x32xf32>
    %548 = tpu.matmul %545, %546, %cst_152 {dimension_numbers = #tpu.dot_dimension_numbers<[1], [1], [0], [0], [0, 0, 1, 0], [], []>} : vector<32x4xf32>, vector<32x4xf32>, vector<32x32xf32> -> vector<32x32xf32>
    %cst_153 = arith.constant dense<0xFF800000> : vector<32xf32>
    %549 = vector.multi_reduction <maximumf>, %548, %cst_153 [1] : vector<32x32xf32> to vector<32xf32>
    %550 = vector.shape_cast %549 : vector<32xf32> to vector<32x1xf32>
    %551 = vector.broadcast %550 : vector<32x1xf32> to vector<32x32xf32>
    %552 = arith.subf %548, %551 : vector<32x32xf32>
    %553 = math.exp %552 : vector<32x32xf32>
    %cst_154 = arith.constant dense<0.000000e+00> : vector<32xf32>
    %554 = vector.multi_reduction <add>, %553, %cst_154 [1] : vector<32x32xf32> to vector<32xf32>
    %555 = vector.shape_cast %554 : vector<32xf32> to vector<32x1xf32>
    %556 = tpu.reciprocal %555 {approx = true} : vector<32x1xf32> -> vector<32x1xf32>
    %557 = vector.broadcast %556 : vector<32x1xf32> to vector<32x32xf32>
    %558 = arith.mulf %553, %557 : vector<32x32xf32>
    %cst_155 = arith.constant dense<0.000000e+00> : vector<32x4xf32>
    %559 = tpu.matmul %558, %547, %cst_155 {dimension_numbers = #tpu.dot_dimension_numbers<[1], [0], [0], [1], [0, 0, 1, 1], [], []>} : vector<32x32xf32>, vector<32x4xf32>, vector<32x4xf32> -> vector<32x4xf32>
    %560 = vector.extract_strided_slice %469 {offsets = [0, 24], sizes = [32, 4], strides = [1, 1]} : vector<32x96xf32> to vector<32x4xf32>
    %561 = vector.extract_strided_slice %469 {offsets = [0, 56], sizes = [32, 4], strides = [1, 1]} : vector<32x96xf32> to vector<32x4xf32>
    %562 = vector.extract_strided_slice %469 {offsets = [0, 88], sizes = [32, 4], strides = [1, 1]} : vector<32x96xf32> to vector<32x4xf32>
    %cst_156 = arith.constant dense<0.000000e+00> : vector<32x32xf32>
    %563 = tpu.matmul %560, %561, %cst_156 {dimension_numbers = #tpu.dot_dimension_numbers<[1], [1], [0], [0], [0, 0, 1, 0], [], []>} : vector<32x4xf32>, vector<32x4xf32>, vector<32x32xf32> -> vector<32x32xf32>
    %cst_157 = arith.constant dense<0xFF800000> : vector<32xf32>
    %564 = vector.multi_reduction <maximumf>, %563, %cst_157 [1] : vector<32x32xf32> to vector<32xf32>
    %565 = vector.shape_cast %564 : vector<32xf32> to vector<32x1xf32>
    %566 = vector.broadcast %565 : vector<32x1xf32> to vector<32x32xf32>
    %567 = arith.subf %563, %566 : vector<32x32xf32>
    %568 = math.exp %567 : vector<32x32xf32>
    %cst_158 = arith.constant dense<0.000000e+00> : vector<32xf32>
    %569 = vector.multi_reduction <add>, %568, %cst_158 [1] : vector<32x32xf32> to vector<32xf32>
    %570 = vector.shape_cast %569 : vector<32xf32> to vector<32x1xf32>
    %571 = tpu.reciprocal %570 {approx = true} : vector<32x1xf32> -> vector<32x1xf32>
    %572 = vector.broadcast %571 : vector<32x1xf32> to vector<32x32xf32>
    %573 = arith.mulf %568, %572 : vector<32x32xf32>
    %cst_159 = arith.constant dense<0.000000e+00> : vector<32x4xf32>
    %574 = tpu.matmul %573, %562, %cst_159 {dimension_numbers = #tpu.dot_dimension_numbers<[1], [0], [0], [1], [0, 0, 1, 1], [], []>} : vector<32x32xf32>, vector<32x4xf32>, vector<32x4xf32> -> vector<32x4xf32>
    %575 = vector.extract_strided_slice %469 {offsets = [0, 28], sizes = [32, 4], strides = [1, 1]} : vector<32x96xf32> to vector<32x4xf32>
    %576 = vector.extract_strided_slice %469 {offsets = [0, 60], sizes = [32, 4], strides = [1, 1]} : vector<32x96xf32> to vector<32x4xf32>
    %577 = vector.extract_strided_slice %469 {offsets = [0, 92], sizes = [32, 4], strides = [1, 1]} : vector<32x96xf32> to vector<32x4xf32>
    %cst_160 = arith.constant dense<0.000000e+00> : vector<32x32xf32>
    %578 = tpu.matmul %575, %576, %cst_160 {dimension_numbers = #tpu.dot_dimension_numbers<[1], [1], [0], [0], [0, 0, 1, 0], [], []>} : vector<32x4xf32>, vector<32x4xf32>, vector<32x32xf32> -> vector<32x32xf32>
    %cst_161 = arith.constant dense<0xFF800000> : vector<32xf32>
    %579 = vector.multi_reduction <maximumf>, %578, %cst_161 [1] : vector<32x32xf32> to vector<32xf32>
    %580 = vector.shape_cast %579 : vector<32xf32> to vector<32x1xf32>
    %581 = vector.broadcast %580 : vector<32x1xf32> to vector<32x32xf32>
    %582 = arith.subf %578, %581 : vector<32x32xf32>
    %583 = math.exp %582 : vector<32x32xf32>
    %cst_162 = arith.constant dense<0.000000e+00> : vector<32xf32>
    %584 = vector.multi_reduction <add>, %583, %cst_162 [1] : vector<32x32xf32> to vector<32xf32>
    %585 = vector.shape_cast %584 : vector<32xf32> to vector<32x1xf32>
    %586 = tpu.reciprocal %585 {approx = true} : vector<32x1xf32> -> vector<32x1xf32>
    %587 = vector.broadcast %586 : vector<32x1xf32> to vector<32x32xf32>
    %588 = arith.mulf %583, %587 : vector<32x32xf32>
    %cst_163 = arith.constant dense<0.000000e+00> : vector<32x4xf32>
    %589 = tpu.matmul %588, %577, %cst_163 {dimension_numbers = #tpu.dot_dimension_numbers<[1], [0], [0], [1], [0, 0, 1, 1], [], []>} : vector<32x32xf32>, vector<32x4xf32>, vector<32x4xf32> -> vector<32x4xf32>
    %590 = tpu.concatenate %484, %499, %514, %529, %544, %559, %574, %589 in 1 : vector<32x4xf32>, vector<32x4xf32>, vector<32x4xf32>, vector<32x4xf32>, vector<32x4xf32>, vector<32x4xf32>, vector<32x4xf32>, vector<32x4xf32> -> vector<32x32xf32>
    %591 = tpu.concatenate %468, %590 in 0 : vector<32x32xf32>, vector<32x32xf32> -> vector<64x32xf32>
    %cst_164 = arith.constant dense<0.000000e+00> : vector<64x32xf32>
    %592 = tpu.matmul %591, %333, %cst_164 {dimension_numbers = #tpu.dot_dimension_numbers<[1], [0], [0], [1], [0, 0, 1, 1], [], []>} : vector<64x32xf32>, vector<32x32xf32>, vector<64x32xf32> -> vector<64x32xf32>
    %593 = vector.broadcast %337 : vector<1x32xf32> to vector<64x32xf32>
    %594 = arith.addf %592, %593 : vector<64x32xf32>
    %595 = arith.addf %329, %594 : vector<64x32xf32>
    %cst_165 = arith.constant dense<0.000000e+00> : vector<64xf32>
    %596 = vector.multi_reduction <add>, %595, %cst_165 [1] : vector<64x32xf32> to vector<64xf32>
    %597 = vector.shape_cast %596 : vector<64xf32> to vector<64x1xf32>
    %cst_166 = arith.constant 3.200000e+01 : f32
    %598 = vector.broadcast %cst_166 : f32 to vector<64x1xf32>
    %599 = arith.divf %597, %598 : vector<64x1xf32>
    %600 = vector.broadcast %599 : vector<64x1xf32> to vector<64x32xf32>
    %601 = arith.subf %595, %600 : vector<64x32xf32>
    %602 = arith.mulf %601, %601 : vector<64x32xf32>
    %cst_167 = arith.constant dense<0.000000e+00> : vector<64xf32>
    %603 = vector.multi_reduction <add>, %602, %cst_167 [1] : vector<64x32xf32> to vector<64xf32>
    %604 = vector.shape_cast %603 : vector<64xf32> to vector<64x1xf32>
    %cst_168 = arith.constant 3.200000e+01 : f32
    %605 = vector.broadcast %cst_168 : f32 to vector<64x1xf32>
    %606 = arith.divf %604, %605 : vector<64x1xf32>
    %607 = vector.broadcast %599 : vector<64x1xf32> to vector<64x32xf32>
    %608 = arith.subf %595, %607 : vector<64x32xf32>
    %cst_169 = arith.constant 9.99999974E-6 : f32
    %609 = vector.broadcast %cst_169 : f32 to vector<64x1xf32>
    %610 = arith.addf %606, %609 : vector<64x1xf32>
    %611 = math.rsqrt %610 : vector<64x1xf32>
    %612 = vector.broadcast %611 : vector<64x1xf32> to vector<64x32xf32>
    %613 = arith.mulf %608, %612 : vector<64x32xf32>
    %614 = vector.broadcast %340 : vector<1x32xf32> to vector<64x32xf32>
    %615 = arith.mulf %613, %614 : vector<64x32xf32>
    %616 = vector.broadcast %341 : vector<1x32xf32> to vector<64x32xf32>
    %617 = arith.addf %615, %616 : vector<64x32xf32>
    %c1_170 = arith.constant 1 : index
    %c0_171 = arith.constant 0 : index
    %c0_172 = arith.constant 0 : index
    %618 = vector.load %arg3[%c1_170, %c0_171, %c0_172] : memref<2x32x64xf32, #tpu.memory_space<vmem>>, vector<1x32x64xf32>
    %619 = vector.shape_cast %618 : vector<1x32x64xf32> to vector<32x64xf32>
    %cst_173 = arith.constant dense<0.000000e+00> : vector<64x64xf32>
    %620 = tpu.matmul %617, %619, %cst_173 {dimension_numbers = #tpu.dot_dimension_numbers<[1], [0], [0], [1], [0, 0, 1, 1], [], []>} : vector<64x32xf32>, vector<32x64xf32>, vector<64x64xf32> -> vector<64x64xf32>
    %621 = vector.broadcast %338 : vector<1x64xf32> to vector<64x64xf32>
    %622 = arith.addf %620, %621 : vector<64x64xf32>
    %cst_174 = arith.constant 0.000000e+00 : f32
    %623 = vector.broadcast %cst_174 : f32 to vector<64x64xf32>
    %624 = arith.maximumf %622, %623 : vector<64x64xf32>
    %c1_175 = arith.constant 1 : index
    %c0_176 = arith.constant 0 : index
    %c0_177 = arith.constant 0 : index
    %625 = vector.load %arg4[%c1_175, %c0_176, %c0_177] : memref<2x64x32xf32, #tpu.memory_space<vmem>>, vector<1x64x32xf32>
    %626 = vector.shape_cast %625 : vector<1x64x32xf32> to vector<64x32xf32>
    %cst_178 = arith.constant dense<0.000000e+00> : vector<64x32xf32>
    %627 = tpu.matmul %624, %626, %cst_178 {dimension_numbers = #tpu.dot_dimension_numbers<[1], [0], [0], [1], [0, 0, 1, 1], [], []>} : vector<64x64xf32>, vector<64x32xf32>, vector<64x32xf32> -> vector<64x32xf32>
    %628 = vector.broadcast %339 : vector<1x32xf32> to vector<64x32xf32>
    %629 = arith.addf %627, %628 : vector<64x32xf32>
    %630 = arith.addf %617, %629 : vector<64x32xf32>
    %cst_179 = arith.constant dense<0.000000e+00> : vector<64xf32>
    %631 = vector.multi_reduction <add>, %630, %cst_179 [1] : vector<64x32xf32> to vector<64xf32>
    %632 = vector.shape_cast %631 : vector<64xf32> to vector<64x1xf32>
    %cst_180 = arith.constant 3.200000e+01 : f32
    %633 = vector.broadcast %cst_180 : f32 to vector<64x1xf32>
    %634 = arith.divf %632, %633 : vector<64x1xf32>
    %635 = vector.broadcast %634 : vector<64x1xf32> to vector<64x32xf32>
    %636 = arith.subf %630, %635 : vector<64x32xf32>
    %637 = arith.mulf %636, %636 : vector<64x32xf32>
    %cst_181 = arith.constant dense<0.000000e+00> : vector<64xf32>
    %638 = vector.multi_reduction <add>, %637, %cst_181 [1] : vector<64x32xf32> to vector<64xf32>
    %639 = vector.shape_cast %638 : vector<64xf32> to vector<64x1xf32>
    %cst_182 = arith.constant 3.200000e+01 : f32
    %640 = vector.broadcast %cst_182 : f32 to vector<64x1xf32>
    %641 = arith.divf %639, %640 : vector<64x1xf32>
    %642 = vector.broadcast %634 : vector<64x1xf32> to vector<64x32xf32>
    %643 = arith.subf %630, %642 : vector<64x32xf32>
    %cst_183 = arith.constant 9.99999974E-6 : f32
    %644 = vector.broadcast %cst_183 : f32 to vector<64x1xf32>
    %645 = arith.addf %641, %644 : vector<64x1xf32>
    %646 = math.rsqrt %645 : vector<64x1xf32>
    %647 = vector.broadcast %646 : vector<64x1xf32> to vector<64x32xf32>
    %648 = arith.mulf %643, %647 : vector<64x32xf32>
    %649 = vector.broadcast %342 : vector<1x32xf32> to vector<64x32xf32>
    %650 = arith.mulf %648, %649 : vector<64x32xf32>
    %651 = vector.broadcast %343 : vector<1x32xf32> to vector<64x32xf32>
    %652 = arith.addf %650, %651 : vector<64x32xf32>
    %c0_184 = arith.constant 0 : index
    %c0_185 = arith.constant 0 : index
    %653 = vector.load %arg6[%c0_184, %c0_185] : memref<33x16xf32, #tpu.memory_space<vmem>>, vector<33x16xf32>
    %654 = vector.extract_strided_slice %653 {offsets = [0, 0], sizes = [32, 16], strides = [1, 1]} : vector<33x16xf32> to vector<32x16xf32>
    %cst_186 = arith.constant dense<0.000000e+00> : vector<64x16xf32>
    %655 = tpu.matmul %652, %654, %cst_186 {dimension_numbers = #tpu.dot_dimension_numbers<[1], [0], [0], [1], [0, 0, 1, 1], [], []>} : vector<64x32xf32>, vector<32x16xf32>, vector<64x16xf32> -> vector<64x16xf32>
    %656 = vector.extract_strided_slice %653 {offsets = [32, 0], sizes = [1, 16], strides = [1, 1]} : vector<33x16xf32> to vector<1x16xf32>
    %657 = vector.broadcast %656 : vector<1x16xf32> to vector<64x16xf32>
    %658 = arith.addf %655, %657 : vector<64x16xf32>
    %c0_187 = arith.constant 0 : index
    %c0_188 = arith.constant 0 : index
    %659 = vector.load %arg7[%c0_187, %c0_188] : memref<64x16xf32, #tpu.memory_space<vmem>>, vector<64x16xf32>
    tpu.vector_store %arg7[%c0_187, %c0_188], %658 {strides = array<i32>} : memref<64x16xf32, #tpu.memory_space<vmem>>, vector<64x16xf32>,
    return
  }
}

</mosaic_0001>

<bundles_post_ra>
// kernel: tpu_custom_call.1
= control target key start
LH: loop header
LB: loop body
LE: loop exit
PB: predicated region body
PF: predicated region fallthrough
CT: control target
= control target key end

     0   :  { %vm41_vm0 = vcmask 130048   ;;  %vm180_vm1 = vcmask 261120   ;;  %v176_v28 = vlaneseq  ;;  %vm322_vm2 = vcmask 31744   ;;  %s15439_s9 = smov 96   ;;  %s15440_s10 = smov 124   ;;  %s18482_s1 = inlined_call_operand.vmem [shape: f32[17,32], index: 1, kind: input, shape index: {}]   ;;  %s18483_s0 = inlined_call_operand.vmem [shape: f32[64,16], index: 0, kind: input, shape index: {}]   ;;  %s18484_s2 = inlined_call_operand.vmem [shape: f32[2,32,128], index: 2, kind: input, shape index: {}]   ;;  %s18485_s5 = inlined_call_operand.vmem [shape: f32[2,8,128], index: 5, kind: input, shape index: {}]   ;;  %s18486_s3 = inlined_call_operand.vmem [shape: f32[2,32,64], index: 3, kind: input, shape index: {}]   ;;  %s18487_s4 = inlined_call_operand.vmem [shape: f32[2,64,32], index: 4, kind: input, shape index: {}]   ;;  %s18488_s6 = inlined_call_operand.vmem [shape: f32[33,16], index: 6, kind: input, shape index: {}]   ;;  %s18489_s7 = inlined_call_operand.vmem [shape: f32[64,16], index: 7, kind: output, shape index: {}]  }
   0x1   :  { %v34_v0 = vld [vmem:[%s18482_s1] sm:$0xff]  ;;  %v35_v1 = vld [vmem:[%s18482_s1 + $0x8] sm:$0xff]  ;;  %v28_v9 = vld [vmem:[%s18483_s0 + $0x10] sm:$0xff]  ;;  %s15441_s11 = smov 64   ;;  %s15442_s12 = smov 60   ;;  %vm2583_vm4 = vcmask 64512  }
   0x2   :  { %v13437_v2 = vpack.c.bf16 %v35_v1, %v34_v0  ;;  %v26_v3 = vld [vmem:[%s18483_s0] sm:$0xff]  ;;  %v15527_v5 = vld [vmem:[%s18484_s2 + $0x8] sm:$0xff]  ;;  %v29_v10 = vld [vmem:[%s18483_s0 + $0x18] sm:$0xff]  ;;  %v15594_v29 = vshrl.u32 %v176_v28, 7  ;;  %s15443_s13 = smov 88   ;;  %s15444_s14 = smov 120  }
   0x3   :  { %12333 = vmatprep.mubr.msk.f32.mxu0 %vm41_vm0, %v26_v3  ;;  %v15522_v4 = vld [vmem:[%s18484_s2] sm:$0xff]  ;;  %v27_v8 = vld [vmem:[%s18483_s0 + $0x8] sm:$0xff]  ;;  %v15548_v11 = vld [vmem:[%s18484_s2 + $0x10] sm:$0xff]  ;;  %s15445_s15 = smov 56   ;;  %s15446_s16 = smov 84   ;;  %vm2588_vm5 = vcmask 97280  }
   0x4   :  { %13438 = vmatprep.subr.bf16.mxu0 %v13437_v2  ;;  %v13441_v7 = vpack.c.bf16 %v15527_v5, %v15522_v4  ;;  %v15553_v12 = vld [vmem:[%s18484_s2 + $0x18] sm:$0xff]  ;;  %v30_v15 = vld [vmem:[%s18483_s0 + $0x20] sm:$0xff]  ;;  %v31_v16 = vld [vmem:[%s18483_s0 + $0x28] sm:$0xff]  ;;  %18556 = vst [vmem:[#allocation6_spill] sm:$0xff] %v15594_v29  ;;  %v18490_v30 = vsub.s32 0, %v15594_v29  ;;  %s15447_s17 = smov 116  }
   0x5   :  { %13440 = vmatpush3.bf16.msra.mxu0 %v13437_v2  ;;  %v13445_v13 = vpack.c.bf16 %v15553_v12, %v15548_v11  ;;  %v11208_v17 = vld [vmem:[%s18482_s1 + $0x10] ss:$0 sm:$0xff]  ;;  %v33_v27 = vld [vmem:[%s18483_s0 + $0x38] sm:$0xff]  ;;  %v175_v31 = vld [vmem:[%s18485_s5] sm:$0xff]  ;;  %s18525_s18 = smov 52   ;;  %s18523_s19 = smov 80  }
   0x6   :  { %13442 = vmatprep.subr.bf16.mxu1 %v13441_v7  ;;  %v32_v26 = vld [vmem:[%s18483_s0 + $0x30] sm:$0xff]  ;;  %v15602_v32 = vrot.slane %v175_v31, %v18490_v30  ;;  %s15438_s0 = smov 92   ;;  %vm15662_vm3 = vmpackc.low %vm322_vm2, %vm322_vm2  ;;  %s18521_s20 = smov 112   ;;  %vm2597_vm6 = vcmask 162816   ;;  %vm2602_vm7 = vcmask 195584   ;;  %vm2607_vm8 = vcmask 228352  }
   0x7   :  { %13444 = vmatpush3.bf16.msra.mxu1 %v13441_v7  ;;  %s18519_s21 = smov 48   ;;  %s18517_s22 = smov 76   ;;  %vm5351_vm9 = vcmask 523264  }
   0x8   :  { %12334 = vmatmul.mubr.msk.f32.vlgmr.msra.gmra.mrb[0].mxu0 %vm41_vm0, %v27_v8  ;;  %13446 = vmatprep.subr.bf16.mxu1 %v13445_v13  ;;  %s18515_s23 = smov 108   ;;  %s18513_s24 = smov 44  }
   0x9   :  { %12336 = vmatprep.mubr.msk.f32.mxu0 %vm41_vm0, %v28_v9  ;;  %s18509_s25 = smov 72   ;;  %s18507_s26 = smov 104  }
   0xa   :  { %s18501_s1 = smov 40   ;;  %s18499_s27 = smov 68  }
   0xb   :  { %13448 = vmatpush3.bf16.msra.mxu1 %v13445_v13  ;;  %s18505_s28 = smov 100   ;;  %s18503_s29 = smov 36  }
   0xc   :  { %12337 = vmatmul.mubr.msk.f32.gmra.mrb[2].mxu0 %vm41_vm0, %v29_v10  ;;  %s18511_s30 = smov 32   ;;  %s15462_s8 = smov 4  }
   0xd   :  { %12339 = vmatprep.mubr.msk.f32.mxu0 %vm41_vm0, %v30_v15 }
  0x10   :  { %12340 = vmatmul.mubr.msk.f32.gmra.mrb[4].mxu0 %vm41_vm0, %v31_v16 }
  0x11   :  { %12342 = vmatprep.mubr.msk.f32.mxu0 %vm41_vm0, %v32_v26 }
  0x14   :  { %12343 = vmatmul.mubr.msk.f32.gmra.mrb[6].mxu0 %vm41_vm0, %v33_v27 }
  0xdb   :  { %v12335_v18 = vpop.f32.mrb[0].mxu0 }
  0xdc   :  { %v132_v19 = vpop.f32.mrb[1].mxu0  ;;  %v15572_v21 = vadd.f32 %v12335_v18, %v11208_v17 }
  0xdd   :  { %v15570_v20 = vadd.f32 %v11208_v17, %v132_v19 }
  0xde   :  { %18553 = vst [vmem:[#allocation3_spill] sm:$0xff] %v15572_v21 }
  0xdf   :  { %18552 = vst [vmem:[#allocation2_spill] sm:$0xff] %v15570_v20  ;;  %v12338_v22 = vpop.f32.mrb[2].mxu0  ;;  %12353 = vmatprep.mubr.msk.f32.mxu1 %vm180_vm1, %v15570_v20 }
  0xe0   :  { %v15576_v23 = vadd.f32 %v12338_v22, %v11208_v17  ;;  %v142_v24 = vpop.f32.mrb[3].mxu0  ;;  %12354 = vmatmul.mubr.msk.f32.vlgmr.msra.gmra.mrb[0].mxu1 %vm180_vm1, %v15572_v21 }
  0xe1   :  { %v15580_v25 = vadd.f32 %v11208_v17, %v142_v24 }
  0xe2   :  { %18554 = vst [vmem:[#allocation4_spill] sm:$0xff] %v15576_v23 }
  0xe3   :  { %18555 = vst [vmem:[#allocation5_spill] sm:$0xff] %v15580_v25  ;;  %12356 = vmatprep.mubr.msk.f32.mxu1 %vm180_vm1, %v15580_v25  ;;  %v12341_v43 = vpop.f32.mrb[4].mxu0 }
  0xe4   :  { %12357 = vmatmul.mubr.msk.f32.gmra.mrb[2].mxu1 %vm180_vm1, %v15576_v23  ;;  %v15644_v44 = vadd.f32 %v12341_v43, %v11208_v17  ;;  %v152_v45 = vpop.f32.mrb[5].mxu0 }
  0xe5   :  { %v15646_v46 = vadd.f32 %v11208_v17, %v152_v45 }
  0xe6   :  { %18557 = vst [vmem:[#allocation7_spill] sm:$0xff] %v15644_v44 }
  0xe7   :  { %18558 = vst [vmem:[#allocation8_spill] sm:$0xff] %v15646_v46  ;;  %12359 = vmatprep.mubr.msk.f32.mxu1 %vm180_vm1, %v15646_v46  ;;  %v12344_v47 = vpop.f32.mrb[6].mxu0 }
  0xe8   :  { %12360 = vmatmul.mubr.msk.f32.gmra.mrb[4].mxu1 %vm180_vm1, %v15644_v44  ;;  %v15652_v48 = vadd.f32 %v12344_v47, %v11208_v17  ;;  %v162_v49 = vpop.f32.mrb[7].mxu0 }
  0xe9   :  { %v15654_v50 = vadd.f32 %v11208_v17, %v162_v49 }
  0xea   :  { %18559 = vst [vmem:[#allocation9_spill] sm:$0xff] %v15652_v48 }
  0xeb   :  { %18560 = vst [vmem:[#allocation10_spill] sm:$0xff] %v15654_v50  ;;  %12362 = vmatprep.mubr.msk.f32.mxu1 %vm180_vm1, %v15654_v50 }
  0xec   :  { %12363 = vmatmul.mubr.msk.f32.gmra.mrb[6].mxu1 %vm180_vm1, %v15652_v48 }
 0x1b3   :  { %v12355_v33 = vpop.f32.mrb[0].mxu1 }
 0x1b4   :  { %v15605_v34 = vadd.f32 %v12355_v33, %v15602_v32  ;;  %v271_v35 = vpop.f32.mrb[1].mxu1 }
 0x1b5   :  { %v15608_v36 = vadd.f32 %v271_v35, %v15602_v32 }
 0x1b7   :  { %v12358_v37 = vpop.f32.mrb[2].mxu1  ;;  %12373 = vmatprep.mubr.msk.f32.mxu0 %vm322_vm2, %v15608_v36  ;;  %v15614_v38 = vpack.i.bf16 %v15605_v34, %v15608_v36 }
 0x1b8   :  { %v15617_v39 = vadd.f32 %v12358_v37, %v15602_v32  ;;  %v281_v40 = vpop.f32.mrb[3].mxu1 }
 0x1b9   :  { %v15620_v41 = vadd.f32 %v281_v40, %v15602_v32  ;;  %14211 = vrot.lane.b32.xlu1 %v15614_v38, %s15438_s0  ;;  %14201 = vrot.lane.b32.xlu0 %v15614_v38, %s15439_s9 }
 0x1bb   :  { %v15628_v42 = vpack.i.bf16 %v15617_v39, %v15620_v41  ;;  %v15711_v49 = vpop.f32.mrb[4].mxu1 }
 0x1bd   :  { %14216 = vrot.lane.b32.xlu1 %v15628_v42, %s15438_s0  ;;  %14206 = vrot.lane.b32.xlu0 %v15628_v42, %s15439_s9 }
 0x1c1   :  { %579 = vrot.lane.b32.xlu1 %v15605_v34, %s15440_s10  ;;  %577 = vrot.lane.b32.xlu0 %v15608_v36, %s15440_s10 }
 0x1c5   :  { %583 = vrot.lane.b32.xlu1 %v15617_v39, %s15440_s10  ;;  %581 = vrot.lane.b32.xlu0 %v15620_v41, %s15440_s10 }
 0x1c9   :  { %14221 = vrot.lane.b32.xlu1 %v15614_v38, %s15441_s11 }
 0x22b   :  { %v14212_v51 = vpop.permute.xlu1 %14211  ;;  %v14202_v52 = vpop.permute.xlu0 %14201 }
 0x22c   :  { %v14204_v53 = vunpack.i.h.bf16 %v14202_v52  ;;  %v14203_v54 = vunpack.i.l.bf16 %v14202_v52  ;;  %v14214_v63 = vunpack.i.h.bf16 %v14212_v51  ;;  %v14213_v0 = vunpack.i.l.bf16 %v14212_v51  ;;  %v15715_v52 = vpop.f32.mrb[5].mxu1 }
 0x22e   :  { %v13449_v56 = vpack.c.bf16 %v14204_v53, %v14203_v54  ;;  %v13469_v2 = vpack.c.bf16 %v14214_v63, %v14213_v0  ;;  %v15717_v53 = vpop.f32.mrb[6].mxu1 }
 0x22f   :  { %v14217_v57 = vpop.permute.xlu1 %14216  ;;  %v14207_v58 = vpop.permute.xlu0 %14206 }
 0x230   :  { %v14209_v59 = vunpack.i.h.bf16 %v14207_v58  ;;  %v14208_v60 = vunpack.i.l.bf16 %v14207_v58  ;;  %13451 = vmatprep.subr.msk.bf16.mxu0 %vm15662_vm3, %v13449_v56  ;;  %v14219_v9 = vunpack.i.h.bf16 %v14217_v57  ;;  %v14218_v10 = vunpack.i.l.bf16 %v14217_v57  ;;  %v15719_v54 = vpop.f32.mrb[7].mxu1 }
 0x231   :  { %13454 = vmatpush3.bf16.xpose.msk.msra.mxu0 %vm15662_vm3, %v13449_v56 }
 0x232   :  { %v13455_v61 = vpack.c.bf16 %v14209_v59, %v14208_v60  ;;  %v13475_v15 = vpack.c.bf16 %v14219_v9, %v14218_v10 }
 0x233   :  { %v580_v62 = vpop.permute.xlu1 %579  ;;  %v578_v16 = vpop.permute.xlu0 %577 }
 0x234   :  { %13457 = vmatprep.subr.msk.bf16.mxu0 %vm15662_vm3, %v13455_v61 }
 0x237   :  { %v584_v1 = vpop.permute.xlu1 %583  ;;  %v582_v17 = vpop.permute.xlu0 %581 }
 0x239   :  { %13460 = vmatpush3.bf16.xpose.msk.msra.mxu0 %vm15662_vm3, %v13455_v61 }
 0x23a   :  { %13471 = vmatprep.subr.msk.bf16.mxu0 %vm15662_vm3, %v13469_v2 }
 0x23b   :  { %v14222_v3 = vpop.permute.xlu1 %14221 }
 0x23c   :  { %v14224_v7 = vunpack.i.h.bf16 %v14222_v3  ;;  %v14223_v8 = vunpack.i.l.bf16 %v14222_v3 }
 0x23e   :  { %v13461_v13 = vpack.c.bf16 %v14224_v7, %v14223_v8 }
 0x240   :  { %12374 = vmatmul.mubr.msk.f32.vlgmr.msra.gmra.mrb[8].mxu0 %vm322_vm2, %v15605_v34  ;;  %13462 = vmatprep.subr.bf16.mxu1 %v13461_v13 }
 0x241   :  { %12376 = vmatprep.mubr.msk.f32.mxu0 %vm322_vm2, %v15620_v41  ;;  %13464 = vmatpush3.bf16.msra.mxu1 %v13461_v13 }
 0x242   :  { %13474 = vmatpush3.bf16.xpose.msk.msra.mxu0 %vm15662_vm3, %v13469_v2 }
 0x243   :  { %13477 = vmatprep.subr.msk.bf16.mxu0 %vm15662_vm3, %v13475_v15 }
 0x244   :  { %12377 = vmatmul.mubr.msk.f32.gmra.mrb[10].mxu0 %vm322_vm2, %v15617_v39 }
 0x245   :  { %12401 = vmatprep.mubr.msk.f32.mxu0 %vm322_vm2, %v578_v16 }
 0x24a   :  { %13480 = vmatpush3.bf16.xpose.msk.msra.mxu0 %vm15662_vm3, %v13475_v15 }
 0x251   :  { %12402 = vmatmul.mubr.msk.f32.vlgmr.msra.gmra.mrb[12].mxu0 %vm322_vm2, %v580_v62 }
 0x252   :  { %12404 = vmatprep.mubr.msk.f32.mxu0 %vm322_vm2, %v582_v17 }
 0x255   :  { %12405 = vmatmul.mubr.msk.f32.gmra.mrb[14].mxu0 %vm322_vm2, %v584_v1 }
 0x313   :  { %v12375_v18 = vpop.f32.mrb[8].mxu0 }
 0x314   :  { %v405_v19 = vpop.f32.mrb[9].mxu0  ;;  %v427_v22 = vsel %vm180_vm1, %v12375_v18, -inf }
 0x315   :  { %428 = vmax.xlane.f32.xlu1 %v427_v22  ;;  %v424_v24 = vsel %vm180_vm1, %v405_v19, -inf }
 0x316   :  { %425 = vmax.xlane.f32.xlu0 %v424_v24 }
 0x317   :  { %v12378_v26 = vpop.f32.mrb[10].mxu0 }
 0x318   :  { %v415_v27 = vpop.f32.mrb[11].mxu0  ;;  %v433_v28 = vsel %vm180_vm1, %v12378_v26, -inf }
 0x319   :  { %v430_v31 = vsel %vm180_vm1, %v415_v27, -inf }
 0x31a   :  { %434 = vmax.xlane.f32.xlu0 %v433_v28 }
 0x31e   :  { %431 = vmax.xlane.f32.xlu0 %v430_v31 }
 0x324   :  { %v12403_v33 = vpop.f32.mrb[12].mxu0 }
 0x325   :  { %v15696_v35 = vpop.f32.mrb[13].mxu0  ;;  %v697_v37 = vsel %vm180_vm1, %v12403_v33, -inf }
 0x326   :  { %698 = vmax.xlane.f32.xlu0 %v697_v37  ;;  %v694_v40 = vsel %vm180_vm1, %v15696_v35, -inf }
 0x327   :  { %695 = vmax.xlane.f32.xlu1 %v694_v40 }
 0x328   :  { %v15701_v43 = vpop.f32.mrb[14].mxu0 }
 0x329   :  { %v15703_v45 = vpop.f32.mrb[15].mxu0  ;;  %v703_v47 = vsel %vm180_vm1, %v15701_v43, -inf }
 0x32a   :  { %704 = vmax.xlane.f32.xlu0 %v703_v47  ;;  %v700_v51 = vsel %vm180_vm1, %v15703_v45, -inf }
 0x338   :  { %14231 = vrot.lane.b32.xlu1 %v15614_v38, %s15442_s12 }
 0x340   :  { %14226 = vrot.lane.b32.xlu0 %v15628_v42, %s15441_s11 }
 0x35c   :  { %701 = vmax.xlane.f32.xlu1 %v700_v51 }
 0x3a2   :  { %v429_v56 = vpop.xlane.xlu1 %428 }
 0x3a3   :  { %v437_v57 = vsub.f32 %v12375_v18, %v429_v56  ;;  %v426_v58 = vpop.xlane.xlu0 %425 }
 0x3a4   :  { %v436_v59 = vsub.f32 %v405_v19, %v426_v58 }
 0x3a5   :  { %v442_v60 = vmul.f32 1.442695, %v437_v57 }
 0x3a6   :  { %v440_v61 = vmul.f32 1.442695, %v436_v59 }
 0x3a7   :  { %14860 = vpow2.f32 %v442_v60  ;;  %v435_v62 = vpop.xlane.xlu0 %434 }
 0x3a8   :  { %14862 = vpow2.f32 %v440_v61  ;;  %v439_v63 = vsub.f32 %v12378_v26, %v435_v62 }
 0x3aa   :  { %v446_v0 = vmul.f32 1.442695, %v439_v63 }
 0x3ab   :  { %v432_v1 = vpop.xlane.xlu0 %431 }
 0x3ac   :  { %14864 = vpow2.f32 %v446_v0  ;;  %v438_v2 = vsub.f32 %v415_v27, %v432_v1 }
 0x3ae   :  { %v444_v3 = vmul.f32 1.442695, %v438_v2 }
 0x3b0   :  { %14866 = vpow2.f32 %v444_v3 }
 0x3b1   :  { %v15721_v7 = vpop.eup %14860 }
 0x3b2   :  { %v15723_v8 = vpop.eup %14862  ;;  %v451_v9 = vsel %vm180_vm1, %v15721_v7, 0.0 }
 0x3b3   :  { %v699_v10 = vpop.xlane.xlu0 %698  ;;  %452 = vadd.xlane.f32.xlu0 %v451_v9  ;;  %v448_v13 = vsel %vm180_vm1, %v15723_v8, 0.0 }
 0x3b4   :  { %v707_v15 = vsub.f32 %v12403_v33, %v699_v10  ;;  %v696_v16 = vpop.xlane.xlu1 %695  ;;  %449 = vadd.xlane.f32.xlu1 %v448_v13 }
 0x3b5   :  { %v706_v58 = vsub.f32 %v15696_v35, %v696_v16 }
 0x3b6   :  { %v15729_v17 = vpop.eup %14864  ;;  %v712_v18 = vmul.f32 1.442695, %v707_v15 }
 0x3b7   :  { %v705_v19 = vpop.xlane.xlu0 %704  ;;  %v457_v22 = vsel %vm180_vm1, %v15729_v17, 0.0  ;;  %v710_v59 = vmul.f32 1.442695, %v706_v58 }
 0x3b8   :  { %14868 = vpow2.f32 %v712_v18  ;;  %458 = vadd.xlane.f32.xlu0 %v457_v22  ;;  %v14232_v24 = vpop.permute.xlu1 %14231  ;;  %v709_v60 = vsub.f32 %v15701_v43, %v705_v19 }
 0x3b9   :  { %v14234_v31 = vunpack.i.h.bf16 %v14232_v24  ;;  %v14233_v33 = vunpack.i.l.bf16 %v14232_v24  ;;  %14870 = vpow2.f32 %v710_v59 }
 0x3ba   :  { %v15733_v26 = vpop.eup %14866  ;;  %v716_v61 = vmul.f32 1.442695, %v709_v60 }
 0x3bb   :  { %v14227_v27 = vpop.permute.xlu0 %14226  ;;  %v454_v28 = vsel %vm180_vm1, %v15733_v26, 0.0  ;;  %v13481_v51 = vpack.c.bf16 %v14234_v31, %v14233_v33 }
 0x3bc   :  { %v14229_v37 = vunpack.i.h.bf16 %v14227_v27  ;;  %v14228_v40 = vunpack.i.l.bf16 %v14227_v27  ;;  %455 = vadd.xlane.f32.xlu1 %v454_v28  ;;  %14872 = vpow2.f32 %v716_v61 }
 0x3be   :  { %v13465_v47 = vpack.c.bf16 %v14229_v37, %v14228_v40 }
 0x3c0   :  { %13466 = vmatprep.subr.bf16.mxu1 %v13465_v47 }
 0x3c1   :  { %13468 = vmatpush3.bf16.msra.mxu1 %v13465_v47 }
 0x3c2   :  { %v15737_v56 = vpop.eup %14868  ;;  %13482 = vmatprep.subr.bf16.mxu1 %v13481_v51 }
 0x3c3   :  { %v721_v57 = vsel %vm180_vm1, %v15737_v56, 0.0  ;;  %v14871_v62 = vpop.eup %14870 }
 0x3c4   :  { %722 = vadd.xlane.f32.xlu0 %v721_v57  ;;  %v718_v63 = vsel %vm180_vm1, %v14871_v62, 0.0 }
 0x3c6   :  { %v15748_v0 = vpop.eup %14872 }
 0x3c7   :  { %v727_v1 = vsel %vm180_vm1, %v15748_v0, 0.0 }
 0x3cd   :  { %14241 = vrot.lane.b32.xlu1 %v15614_v38, %s15443_s13 }
 0x3da   :  { %14236 = vrot.lane.b32.xlu0 %v15628_v42, %s15442_s12 }
 0x3e9   :  { %v702_v35 = vpop.xlane.xlu1 %701 }
 0x3ea   :  { %v708_v43 = vsub.f32 %v15703_v45, %v702_v35 }
 0x3ec   :  { %v714_v2 = vmul.f32 1.442695, %v708_v43 }
 0x3ee   :  { %14874 = vpow2.f32 %v714_v2 }
 0x3f1   :  { %719 = vadd.xlane.f32.xlu1 %v718_v63 }
 0x3f8   :  { %v14875_v3 = vpop.eup %14874 }
 0x3f9   :  { %728 = vadd.xlane.f32.xlu0 %v727_v1  ;;  %v724_v9 = vsel %vm180_vm1, %v14875_v3, 0.0 }
 0x402   :  { %14246 = vrot.lane.b32.xlu1 %v15628_v42, %s15443_s13 }
 0x40f   :  { %847 = vrot.lane.b32.xlu0 %v15608_v36, %s15444_s14 }
 0x413   :  { %851 = vrot.lane.b32.xlu0 %v15620_v41, %s15444_s14 }
 0x426   :  { %725 = vadd.xlane.f32.xlu1 %v724_v9 }
 0x437   :  { %849 = vrot.lane.b32.xlu1 %v15605_v34, %s15444_s14 }
 0x43b   :  { %853 = vrot.lane.b32.xlu1 %v15617_v39, %s15444_s14 }
 0x440   :  { %v453_v10 = vpop.xlane.xlu0 %452 }
 0x441   :  { %14876 = vrcp.f32 %v453_v10  ;;  %v450_v13 = vpop.xlane.xlu1 %449 }
 0x442   :  { %14878 = vrcp.f32 %v450_v13 }
 0x445   :  { %v459_v45 = vpop.xlane.xlu0 %458 }
 0x446   :  { %14880 = vrcp.f32 %v459_v45 }
 0x449   :  { %v456_v15 = vpop.xlane.xlu1 %455 }
 0x44a   :  { %14882 = vrcp.f32 %v456_v15 }
 0x44b   :  { %v14877_v16 = vpop.eup %14876 }
 0x44c   :  { %v14879_v18 = vpop.eup %14878  ;;  %v465_v22 = vmul.f32 %v14877_v16, %v15721_v7 }
 0x44d   :  { %v464_v19 = vmul.f32 %v14879_v18, %v15723_v8  ;;  %v14242_v27 = vpop.permute.xlu1 %14241 }
 0x44e   :  { %v14244_v33 = vunpack.i.h.bf16 %v14242_v27  ;;  %v14243_v47 = vunpack.i.l.bf16 %v14242_v27 }
 0x44f   :  { %12387 = vmatprep.mubr.msk.f32.mxu1 %vm180_vm1, %v464_v19 }
 0x450   :  { %12388 = vmatmul.mubr.msk.f32.vlgmr.msra.gmra.mrb[8].mxu1 %vm180_vm1, %v465_v22  ;;  %v14881_v28 = vpop.eup %14880  ;;  %v13489_v59 = vpack.c.bf16 %v14244_v33, %v14243_v47 }
 0x451   :  { %v723_v24 = vpop.xlane.xlu0 %722  ;;  %13484 = vmatpush3.bf16.msra.mxu1 %v13481_v51  ;;  %v467_v8 = vmul.f32 %v14881_v28, %v15729_v17 }
 0x452   :  { %14884 = vrcp.f32 %v723_v24 }
 0x454   :  { %v14883_v31 = vpop.eup %14882 }
 0x455   :  { %v14237_v37 = vpop.permute.xlu0 %14236  ;;  %v466_v40 = vmul.f32 %v14883_v31, %v15733_v26 }
 0x456   :  { %v14239_v57 = vunpack.i.h.bf16 %v14237_v37  ;;  %v14238_v58 = vunpack.i.l.bf16 %v14237_v37 }
 0x457   :  { %12390 = vmatprep.mubr.msk.f32.mxu1 %vm180_vm1, %v466_v40 }
 0x458   :  { %12391 = vmatmul.mubr.msk.f32.gmra.mrb[10].mxu1 %vm180_vm1, %v467_v8  ;;  %v13485_v7 = vpack.c.bf16 %v14239_v57, %v14238_v58 }
 0x45a   :  { %13486 = vmatprep.subr.bf16.mxu1 %v13485_v7 }
 0x45b   :  { %13488 = vmatpush3.bf16.msra.mxu1 %v13485_v7 }
 0x45c   :  { %13491 = vmatprep.subr.msk.bf16.mxu1 %vm15662_vm3, %v13489_v59  ;;  %v14885_v60 = vpop.eup %14884 }
 0x45d   :  { %v735_v35 = vmul.f32 %v14885_v60, %v15737_v56 }
 0x47e   :  { %v720_v51 = vpop.xlane.xlu1 %719 }
 0x47f   :  { %14886 = vrcp.f32 %v720_v51 }
 0x482   :  { %v14247_v26 = vpop.permute.xlu1 %14246 }
 0x483   :  { %v14249_v63 = vunpack.i.h.bf16 %v14247_v26  ;;  %v14248_v1 = vunpack.i.l.bf16 %v14247_v26 }
 0x485   :  { %v13495_v43 = vpack.c.bf16 %v14249_v63, %v14248_v1 }
 0x486   :  { %v729_v2 = vpop.xlane.xlu0 %728 }
 0x487   :  { %14888 = vrcp.f32 %v729_v2 }
 0x489   :  { %v14887_v61 = vpop.eup %14886 }
 0x48a   :  { %v734_v17 = vmul.f32 %v14887_v61, %v14871_v62  ;;  %v848_v13 = vpop.permute.xlu0 %847 }
 0x48c   :  { %12415 = vmatprep.mubr.msk.f32.mxu1 %vm180_vm1, %v734_v17 }
 0x48d   :  { %12416 = vmatmul.mubr.msk.f32.vlgmr.msra.gmra.mrb[12].mxu1 %vm180_vm1, %v735_v35 }
 0x48e   :  { %13494 = vmatpush3.bf16.xpose.msk.msra.mxu1 %vm15662_vm3, %v13489_v59  ;;  %v852_v16 = vpop.permute.xlu0 %851 }
 0x48f   :  { %13497 = vmatprep.subr.msk.bf16.mxu1 %vm15662_vm3, %v13495_v43 }
 0x491   :  { %v14889_v62 = vpop.eup %14888 }
 0x492   :  { %v737_v45 = vmul.f32 %v14889_v62, %v15748_v0 }
 0x496   :  { %13500 = vmatpush3.bf16.xpose.msk.msra.mxu1 %vm15662_vm3, %v13495_v43 }
 0x4b3   :  { %v726_v9 = vpop.xlane.xlu1 %725 }
 0x4b4   :  { %14890 = vrcp.f32 %v726_v9 }
 0x4b7   :  { %v850_v15 = vpop.permute.xlu1 %849 }
 0x4bb   :  { %v854_v18 = vpop.permute.xlu1 %853 }
 0x4be   :  { %v14891_v56 = vpop.eup %14890 }
 0x4bf   :  { %v736_v10 = vmul.f32 %v14891_v56, %v14875_v3 }
 0x4c1   :  { %12418 = vmatprep.mubr.msk.f32.mxu1 %vm180_vm1, %v736_v10 }
 0x4c2   :  { %12419 = vmatmul.mubr.msk.f32.gmra.mrb[14].mxu1 %vm180_vm1, %v737_v45 }
 0x4c3   :  { %12429 = vmatprep.mubr.msk.f32.mxu1 %vm322_vm2, %v848_v13 }
 0x4c6   :  { %12430 = vmatmul.mubr.msk.f32.vlgmr.msra.gmra.mrb[16].mxu1 %vm322_vm2, %v850_v15 }
 0x4c7   :  { %12432 = vmatprep.mubr.msk.f32.mxu1 %vm322_vm2, %v852_v16 }
 0x4ca   :  { %12433 = vmatmul.mubr.msk.f32.gmra.mrb[18].mxu1 %vm322_vm2, %v854_v18 }
 0x523   :  { %v15790_v19 = vpop.f32.mrb[8].mxu1 }
 0x524   :  { %v15792_v3 = vpop.f32.mrb[9].mxu1 }
 0x52b   :  { %v15794_v0 = vpop.f32.mrb[10].mxu1 }
 0x52c   :  { %v15796_v22 = vpop.f32.mrb[11].mxu1 }
 0x560   :  { %v15798_v24 = vpop.f32.mrb[12].mxu1 }
 0x561   :  { %v15800_v27 = vpop.f32.mrb[13].mxu1 }
 0x595   :  { %v15802_v28 = vpop.f32.mrb[14].mxu1 }
 0x596   :  { %v15804_v31 = vpop.f32.mrb[15].mxu1 }
 0x599   :  { %v12431_v33 = vpop.f32.mrb[16].mxu1 }
 0x59a   :  { %v945_v37 = vpop.f32.mrb[17].mxu1  ;;  %v967_v40 = vsel %vm180_vm1, %v12431_v33, -inf }
 0x59b   :  { %968 = vmax.xlane.f32.xlu1 %v967_v40  ;;  %v964_v47 = vsel %vm180_vm1, %v945_v37, -inf }
 0x59c   :  { %965 = vmax.xlane.f32.xlu0 %v964_v47 }
 0x59d   :  { %v12434_v57 = vpop.f32.mrb[18].mxu1 }
 0x59e   :  { %v955_v58 = vpop.f32.mrb[19].mxu1  ;;  %v973_v7 = vsel %vm180_vm1, %v12434_v57, -inf }
 0x59f   :  { %v970_v8 = vsel %vm180_vm1, %v955_v58, -inf }
 0x5a0   :  { %971 = vmax.xlane.f32.xlu0 %v970_v8 }
 0x5a4   :  { %974 = vmax.xlane.f32.xlu0 %v973_v7 }
 0x5ac   :  { %14251 = vrot.lane.b32.xlu1 %v15614_v38, %s15445_s15 }
 0x5b0   :  { %14261 = vrot.lane.b32.xlu1 %v15614_v38, %s15446_s16 }
 0x628   :  { %v969_v59 = vpop.xlane.xlu1 %968 }
 0x629   :  { %v977_v51 = vsub.f32 %v12431_v33, %v969_v59  ;;  %v966_v26 = vpop.xlane.xlu0 %965 }
 0x62a   :  { %v976_v60 = vsub.f32 %v945_v37, %v966_v26 }
 0x62b   :  { %v982_v61 = vmul.f32 1.442695, %v977_v51 }
 0x62c   :  { %v980_v63 = vmul.f32 1.442695, %v976_v60  ;;  %v14252_v1 = vpop.permute.xlu1 %14251 }
 0x62d   :  { %14892 = vpow2.f32 %v982_v61  ;;  %v14254_v17 = vunpack.i.h.bf16 %v14252_v1  ;;  %v14253_v35 = vunpack.i.l.bf16 %v14252_v1  ;;  %v972_v10 = vpop.xlane.xlu0 %971 }
 0x62e   :  { %14894 = vpow2.f32 %v980_v63  ;;  %v978_v15 = vsub.f32 %v955_v58, %v972_v10 }
 0x62f   :  { %v13501_v43 = vpack.c.bf16 %v14254_v17, %v14253_v35 }
 0x630   :  { %v984_v18 = vmul.f32 1.442695, %v978_v15 }
 0x631   :  { %13502 = vmatprep.subr.bf16.mxu0 %v13501_v43  ;;  %v975_v13 = vpop.xlane.xlu0 %974 }
 0x632   :  { %13504 = vmatpush3.bf16.msra.mxu0 %v13501_v43  ;;  %v979_v45 = vsub.f32 %v12434_v57, %v975_v13  ;;  %v14262_v57 = vpop.permute.xlu1 %14261 }
 0x633   :  { %v14264_v59 = vunpack.i.h.bf16 %v14262_v57  ;;  %v14263_v51 = vunpack.i.l.bf16 %v14262_v57 }
 0x634   :  { %v986_v16 = vmul.f32 1.442695, %v979_v45 }
 0x635   :  { %v13509_v63 = vpack.c.bf16 %v14264_v59, %v14263_v51 }
 0x636   :  { %14896 = vpow2.f32 %v986_v16 }
 0x637   :  { %v14893_v2 = vpop.eup %14892  ;;  %14898 = vpow2.f32 %v984_v18 }
 0x638   :  { %v14895_v9 = vpop.eup %14894  ;;  %v991_v62 = vsel %vm180_vm1, %v14893_v2, 0.0 }
 0x639   :  { %992 = vadd.xlane.f32.xlu0 %v991_v62  ;;  %v988_v56 = vsel %vm180_vm1, %v14895_v9, 0.0 }
 0x63a   :  { %989 = vadd.xlane.f32.xlu1 %v988_v56 }
 0x640   :  { %v14897_v33 = vpop.eup %14896 }
 0x641   :  { %v14899_v37 = vpop.eup %14898  ;;  %v997_v40 = vsel %vm180_vm1, %v14897_v33, 0.0 }
 0x642   :  { %v994_v47 = vsel %vm180_vm1, %v14899_v37, 0.0 }
 0x64b   :  { %14266 = vrot.lane.b32.xlu1 %v15628_v42, %s15446_s16 }
 0x64f   :  { %14256 = vrot.lane.b32.xlu0 %v15628_v42, %s15445_s15 }
 0x66e   :  { %998 = vadd.xlane.f32.xlu0 %v997_v40 }
 0x66f   :  { %995 = vadd.xlane.f32.xlu1 %v994_v47 }
 0x680   :  { %1119 = vrot.lane.b32.xlu1 %v15605_v34, %s15447_s17 }
 0x684   :  { %1123 = vrot.lane.b32.xlu1 %v15617_v39, %s15447_s17  ;;  %1117 = vrot.lane.b32.xlu0 %v15608_v36, %s15447_s17 }
 0x688   :  { %1121 = vrot.lane.b32.xlu0 %v15620_v41, %s15447_s17 }
 0x6c6   :  { %v993_v58 = vpop.xlane.xlu0 %992 }
 0x6c7   :  { %14900 = vrcp.f32 %v993_v58  ;;  %v990_v8 = vpop.xlane.xlu1 %989 }
 0x6c8   :  { %14902 = vrcp.f32 %v990_v8 }
 0x6ca   :  { %v14257_v7 = vpop.permute.xlu0 %14256 }
 0x6cb   :  { %v14259_v26 = vunpack.i.h.bf16 %v14257_v7  ;;  %v14258_v60 = vunpack.i.l.bf16 %v14257_v7  ;;  %v14267_v17 = vpop.permute.xlu1 %14266 }
 0x6cc   :  { %v14269_v56 = vunpack.i.h.bf16 %v14267_v17  ;;  %v14268_v10 = vunpack.i.l.bf16 %v14267_v17 }
 0x6cd   :  { %v13505_v61 = vpack.c.bf16 %v14259_v26, %v14258_v60 }
 0x6ce   :  { %v13515_v13 = vpack.c.bf16 %v14269_v56, %v14268_v10 }
 0x6cf   :  { %13506 = vmatprep.subr.bf16.mxu0 %v13505_v61 }
 0x6d0   :  { %13508 = vmatpush3.bf16.msra.mxu0 %v13505_v61 }
 0x6d1   :  { %v14901_v1 = vpop.eup %14900  ;;  %13511 = vmatprep.subr.msk.bf16.mxu0 %vm15662_vm3, %v13509_v63 }
 0x6d2   :  { %v14903_v35 = vpop.eup %14902  ;;  %v1005_v62 = vmul.f32 %v14901_v1, %v14893_v2 }
 0x6d3   :  { %v1004_v43 = vmul.f32 %v14903_v35, %v14895_v9 }
 0x6d5   :  { %12443 = vmatprep.mubr.msk.f32.mxu0 %vm180_vm1, %v1004_v43 }
 0x6d6   :  { %12444 = vmatmul.mubr.msk.f32.vlgmr.msra.gmra.mrb[16].mxu0 %vm180_vm1, %v1005_v62 }
 0x6d9   :  { %13514 = vmatpush3.bf16.xpose.msk.msra.mxu0 %vm15662_vm3, %v13509_v63 }
 0x6da   :  { %13517 = vmatprep.subr.msk.bf16.mxu0 %vm15662_vm3, %v13515_v13 }
 0x6e1   :  { %13520 = vmatpush3.bf16.xpose.msk.msra.mxu0 %vm15662_vm3, %v13515_v13 }
 0x6fb   :  { %v999_v45 = vpop.xlane.xlu0 %998 }
 0x6fc   :  { %14904 = vrcp.f32 %v999_v45  ;;  %v996_v9 = vpop.xlane.xlu1 %995 }
 0x6fd   :  { %14906 = vrcp.f32 %v996_v9 }
 0x6ff   :  { %v1118_v18 = vpop.permute.xlu0 %1117 }
 0x700   :  { %v1120_v47 = vpop.permute.xlu1 %1119 }
 0x703   :  { %v1122_v57 = vpop.permute.xlu0 %1121 }
 0x704   :  { %v1124_v58 = vpop.permute.xlu1 %1123 }
 0x706   :  { %v14905_v2 = vpop.eup %14904 }
 0x707   :  { %v14907_v15 = vpop.eup %14906  ;;  %v1007_v40 = vmul.f32 %v14905_v2, %v14897_v33 }
 0x708   :  { %v1006_v16 = vmul.f32 %v14907_v15, %v14899_v37 }
 0x70a   :  { %12446 = vmatprep.mubr.msk.f32.mxu0 %vm180_vm1, %v1006_v16 }
 0x70b   :  { %12447 = vmatmul.mubr.msk.f32.gmra.mrb[18].mxu0 %vm180_vm1, %v1007_v40 }
 0x70c   :  { %12457 = vmatprep.mubr.msk.f32.mxu0 %vm322_vm2, %v1118_v18 }
 0x70f   :  { %12458 = vmatmul.mubr.msk.f32.vlgmr.msra.gmra.mrb[20].mxu0 %vm322_vm2, %v1120_v47 }
 0x710   :  { %12460 = vmatprep.mubr.msk.f32.mxu0 %vm322_vm2, %v1122_v57 }
 0x713   :  { %12461 = vmatmul.mubr.msk.f32.gmra.mrb[22].mxu0 %vm322_vm2, %v1124_v58 }
 0x7a9   :  { %v15846_v8 = vpop.f32.mrb[16].mxu0 }
 0x7aa   :  { %v15848_v37 = vpop.f32.mrb[17].mxu0 }
 0x7de   :  { %v15850_v33 = vpop.f32.mrb[18].mxu0 }
 0x7df   :  { %v15852_v7 = vpop.f32.mrb[19].mxu0 }
 0x7e2   :  { %v12459_v59 = vpop.f32.mrb[20].mxu0 }
 0x7e3   :  { %v1215_v51 = vpop.f32.mrb[21].mxu0  ;;  %v1237_v26 = vsel %vm180_vm1, %v12459_v59, -inf }
 0x7e4   :  { %1238 = vmax.xlane.f32.xlu1 %v1237_v26  ;;  %v1234_v60 = vsel %vm180_vm1, %v1215_v51, -inf }
 0x7e5   :  { %1235 = vmax.xlane.f32.xlu0 %v1234_v60 }
 0x7e6   :  { %v12462_v61 = vpop.f32.mrb[22].mxu0 }
 0x7e7   :  { %v1225_v63 = vpop.f32.mrb[23].mxu0  ;;  %v1243_v17 = vsel %vm180_vm1, %v12462_v61, -inf }
 0x7e8   :  { %v1240_v1 = vsel %vm180_vm1, %v1225_v63, -inf }
 0x7e9   :  { %1241 = vmax.xlane.f32.xlu0 %v1240_v1 }
 0x7ed   :  { %1244 = vmax.xlane.f32.xlu0 %v1243_v17 }
 0x7f5   :  { %14271 = vrot.lane.b32.xlu1 %v15614_v38, %s18525_s18 }
 0x7f9   :  { %14281 = vrot.lane.b32.xlu1 %v15614_v38, %s18523_s19 }
 0x871   :  { %v1239_v35 = vpop.xlane.xlu1 %1238 }
 0x872   :  { %v1247_v43 = vsub.f32 %v12459_v59, %v1239_v35  ;;  %v1236_v62 = vpop.xlane.xlu0 %1235 }
 0x873   :  { %v1246_v56 = vsub.f32 %v1215_v51, %v1236_v62 }
 0x874   :  { %v1252_v10 = vmul.f32 1.442695, %v1247_v43 }
 0x875   :  { %v1250_v13 = vmul.f32 1.442695, %v1246_v56  ;;  %v14272_v45 = vpop.permute.xlu1 %14271 }
 0x876   :  { %14908 = vpow2.f32 %v1252_v10  ;;  %v14274_v9 = vunpack.i.h.bf16 %v14272_v45  ;;  %v14273_v2 = vunpack.i.l.bf16 %v14272_v45  ;;  %v1242_v57 = vpop.xlane.xlu0 %1241 }
 0x877   :  { %14910 = vpow2.f32 %v1250_v13  ;;  %v1248_v51 = vsub.f32 %v1225_v63, %v1242_v57 }
 0x878   :  { %v13521_v15 = vpack.c.bf16 %v14274_v9, %v14273_v2 }
 0x879   :  { %v1254_v60 = vmul.f32 1.442695, %v1248_v51 }
 0x87a   :  { %13522 = vmatprep.subr.bf16.mxu1 %v13521_v15  ;;  %v1245_v58 = vpop.xlane.xlu0 %1244 }
 0x87b   :  { %13524 = vmatpush3.bf16.msra.mxu1 %v13521_v15  ;;  %v1249_v59 = vsub.f32 %v12462_v61, %v1245_v58  ;;  %v14282_v61 = vpop.permute.xlu1 %14281 }
 0x87c   :  { %v14284_v10 = vunpack.i.h.bf16 %v14282_v61  ;;  %v14283_v13 = vunpack.i.l.bf16 %v14282_v61 }
 0x87d   :  { %v1256_v26 = vmul.f32 1.442695, %v1249_v59 }
 0x87e   :  { %v13529_v15 = vpack.c.bf16 %v14284_v10, %v14283_v13 }
 0x87f   :  { %14912 = vpow2.f32 %v1256_v26 }
 0x880   :  { %v14909_v16 = vpop.eup %14908  ;;  %14914 = vpow2.f32 %v1254_v60 }
 0x881   :  { %v14911_v18 = vpop.eup %14910  ;;  %v1261_v40 = vsel %vm180_vm1, %v14909_v16, 0.0 }
 0x882   :  { %1262 = vadd.xlane.f32.xlu0 %v1261_v40  ;;  %v1258_v47 = vsel %vm180_vm1, %v14911_v18, 0.0 }
 0x883   :  { %1259 = vadd.xlane.f32.xlu1 %v1258_v47 }
 0x889   :  { %v14913_v1 = vpop.eup %14912 }
 0x88a   :  { %v14915_v17 = vpop.eup %14914  ;;  %v1267_v35 = vsel %vm180_vm1, %v14913_v1, 0.0 }
 0x88b   :  { %v1264_v43 = vsel %vm180_vm1, %v14915_v17, 0.0 }
 0x894   :  { %14286 = vrot.lane.b32.xlu1 %v15628_v42, %s18523_s19 }
 0x898   :  { %14276 = vrot.lane.b32.xlu0 %v15628_v42, %s18525_s18 }
 0x8b7   :  { %1268 = vadd.xlane.f32.xlu0 %v1267_v35 }
 0x8b8   :  { %1265 = vadd.xlane.f32.xlu1 %v1264_v43 }
 0x8c9   :  { %1389 = vrot.lane.b32.xlu1 %v15605_v34, %s18521_s20 }
 0x8cd   :  { %1393 = vrot.lane.b32.xlu1 %v15617_v39, %s18521_s20  ;;  %1387 = vrot.lane.b32.xlu0 %v15608_v36, %s18521_s20 }
 0x8d1   :  { %1391 = vrot.lane.b32.xlu0 %v15620_v41, %s18521_s20 }
 0x90f   :  { %v1263_v63 = vpop.xlane.xlu0 %1262 }
 0x910   :  { %14916 = vrcp.f32 %v1263_v63  ;;  %v1260_v62 = vpop.xlane.xlu1 %1259 }
 0x911   :  { %14918 = vrcp.f32 %v1260_v62 }
 0x913   :  { %v14277_v56 = vpop.permute.xlu0 %14276 }
 0x914   :  { %v14279_v45 = vunpack.i.h.bf16 %v14277_v56  ;;  %v14278_v9 = vunpack.i.l.bf16 %v14277_v56  ;;  %v14287_v47 = vpop.permute.xlu1 %14286 }
 0x915   :  { %v14289_v51 = vunpack.i.h.bf16 %v14287_v47  ;;  %v14288_v26 = vunpack.i.l.bf16 %v14287_v47 }
 0x916   :  { %v13525_v2 = vpack.c.bf16 %v14279_v45, %v14278_v9 }
 0x917   :  { %v13535_v60 = vpack.c.bf16 %v14289_v51, %v14288_v26 }
 0x918   :  { %13526 = vmatprep.subr.bf16.mxu1 %v13525_v2 }
 0x919   :  { %13528 = vmatpush3.bf16.msra.mxu1 %v13525_v2 }
 0x91a   :  { %v14917_v40 = vpop.eup %14916  ;;  %13531 = vmatprep.subr.msk.bf16.mxu1 %vm15662_vm3, %v13529_v15 }
 0x91b   :  { %v14919_v57 = vpop.eup %14918  ;;  %v1275_v59 = vmul.f32 %v14917_v40, %v14909_v16 }
 0x91c   :  { %v1274_v58 = vmul.f32 %v14919_v57, %v14911_v18 }
 0x91e   :  { %12471 = vmatprep.mubr.msk.f32.mxu1 %vm180_vm1, %v1274_v58 }
 0x91f   :  { %12472 = vmatmul.mubr.msk.f32.vlgmr.msra.gmra.mrb[20].mxu1 %vm180_vm1, %v1275_v59 }
 0x922   :  { %13534 = vmatpush3.bf16.xpose.msk.msra.mxu1 %vm15662_vm3, %v13529_v15 }
 0x923   :  { %13537 = vmatprep.subr.msk.bf16.mxu1 %vm15662_vm3, %v13535_v60 }
 0x92a   :  { %13540 = vmatpush3.bf16.xpose.msk.msra.mxu1 %vm15662_vm3, %v13535_v60 }
 0x944   :  { %v1269_v35 = vpop.xlane.xlu0 %1268 }
 0x945   :  { %14920 = vrcp.f32 %v1269_v35  ;;  %v1266_v18 = vpop.xlane.xlu1 %1265 }
 0x946   :  { %14922 = vrcp.f32 %v1266_v18 }
 0x948   :  { %v1388_v63 = vpop.permute.xlu0 %1387 }
 0x949   :  { %v1390_v56 = vpop.permute.xlu1 %1389 }
 0x94c   :  { %v1392_v10 = vpop.permute.xlu0 %1391 }
 0x94d   :  { %v1394_v13 = vpop.permute.xlu1 %1393 }
 0x94f   :  { %v14921_v16 = vpop.eup %14920 }
 0x950   :  { %v14923_v43 = vpop.eup %14922  ;;  %v1277_v62 = vmul.f32 %v14921_v16, %v14913_v1 }
 0x951   :  { %v1276_v61 = vmul.f32 %v14923_v43, %v14915_v17 }
 0x953   :  { %12474 = vmatprep.mubr.msk.f32.mxu1 %vm180_vm1, %v1276_v61 }
 0x954   :  { %12475 = vmatmul.mubr.msk.f32.gmra.mrb[22].mxu1 %vm180_vm1, %v1277_v62 }
 0x955   :  { %12485 = vmatprep.mubr.msk.f32.mxu1 %vm322_vm2, %v1388_v63 }
 0x958   :  { %12486 = vmatmul.mubr.msk.f32.vlgmr.msra.gmra.mrb[24].mxu1 %vm322_vm2, %v1390_v56 }
 0x959   :  { %12488 = vmatprep.mubr.msk.f32.mxu1 %vm322_vm2, %v1392_v10 }
 0x95c   :  { %12489 = vmatmul.mubr.msk.f32.gmra.mrb[26].mxu1 %vm322_vm2, %v1394_v13 }
 0x9f2   :  { %v15894_v45 = vpop.f32.mrb[20].mxu1 }
 0x9f3   :  { %v15896_v17 = vpop.f32.mrb[21].mxu1 }
 0xa27   :  { %v15898_v1 = vpop.f32.mrb[22].mxu1 }
 0xa28   :  { %v15900_v9 = vpop.f32.mrb[23].mxu1 }
 0xa2b   :  { %v12487_v2 = vpop.f32.mrb[24].mxu1 }
 0xa2c   :  { %v1485_v15 = vpop.f32.mrb[25].mxu1  ;;  %v1507_v40 = vsel %vm180_vm1, %v12487_v2, -inf }
 0xa2d   :  { %1508 = vmax.xlane.f32.xlu1 %v1507_v40  ;;  %v1504_v47 = vsel %vm180_vm1, %v1485_v15, -inf }
 0xa2e   :  { %1505 = vmax.xlane.f32.xlu0 %v1504_v47 }
 0xa2f   :  { %v12490_v57 = vpop.f32.mrb[26].mxu1 }
 0xa30   :  { %v1495_v58 = vpop.f32.mrb[27].mxu1  ;;  %v1513_v51 = vsel %vm180_vm1, %v12490_v57, -inf }
 0xa31   :  { %v1510_v59 = vsel %vm180_vm1, %v1495_v58, -inf }
 0xa32   :  { %1511 = vmax.xlane.f32.xlu0 %v1510_v59 }
 0xa36   :  { %1514 = vmax.xlane.f32.xlu0 %v1513_v51 }
 0xa3e   :  { %14291 = vrot.lane.b32.xlu1 %v15614_v38, %s18519_s21 }
 0xa42   :  { %14301 = vrot.lane.b32.xlu1 %v15614_v38, %s18517_s22 }
 0xaba   :  { %v1509_v26 = vpop.xlane.xlu1 %1508 }
 0xabb   :  { %v1517_v60 = vsub.f32 %v12487_v2, %v1509_v26  ;;  %v1506_v35 = vpop.xlane.xlu0 %1505 }
 0xabc   :  { %v1516_v18 = vsub.f32 %v1485_v15, %v1506_v35 }
 0xabd   :  { %v1522_v16 = vmul.f32 1.442695, %v1517_v60 }
 0xabe   :  { %v1520_v43 = vmul.f32 1.442695, %v1516_v18  ;;  %v14292_v61 = vpop.permute.xlu1 %14291 }
 0xabf   :  { %14924 = vpow2.f32 %v1522_v16  ;;  %v14294_v63 = vunpack.i.h.bf16 %v14292_v61  ;;  %v14293_v62 = vunpack.i.l.bf16 %v14292_v61  ;;  %v1512_v2 = vpop.xlane.xlu0 %1511 }
 0xac0   :  { %14926 = vpow2.f32 %v1520_v43  ;;  %v1518_v51 = vsub.f32 %v1495_v58, %v1512_v2 }
 0xac1   :  { %v13541_v56 = vpack.c.bf16 %v14294_v63, %v14293_v62 }
 0xac2   :  { %v1524_v60 = vmul.f32 1.442695, %v1518_v51 }
 0xac3   :  { %13542 = vmatprep.subr.bf16.mxu0 %v13541_v56  ;;  %v1515_v15 = vpop.xlane.xlu0 %1514 }
 0xac4   :  { %13544 = vmatpush3.bf16.msra.mxu0 %v13541_v56  ;;  %v1519_v59 = vsub.f32 %v12490_v57, %v1515_v15  ;;  %v14302_v57 = vpop.permute.xlu1 %14301 }
 0xac5   :  { %v14304_v62 = vunpack.i.h.bf16 %v14302_v57  ;;  %v14303_v56 = vunpack.i.l.bf16 %v14302_v57 }
 0xac6   :  { %v1526_v26 = vmul.f32 1.442695, %v1519_v59 }
 0xac7   :  { %v13549_v15 = vpack.c.bf16 %v14304_v62, %v14303_v56 }
 0xac8   :  { %14928 = vpow2.f32 %v1526_v26 }
 0xac9   :  { %v14925_v10 = vpop.eup %14924  ;;  %14930 = vpow2.f32 %v1524_v60 }
 0xaca   :  { %v14927_v13 = vpop.eup %14926  ;;  %v1531_v40 = vsel %vm180_vm1, %v14925_v10, 0.0 }
 0xacb   :  { %1532 = vadd.xlane.f32.xlu0 %v1531_v40  ;;  %v1528_v47 = vsel %vm180_vm1, %v14927_v13, 0.0 }
 0xacc   :  { %1529 = vadd.xlane.f32.xlu1 %v1528_v47 }
 0xad2   :  { %v14929_v35 = vpop.eup %14928 }
 0xad3   :  { %v14931_v18 = vpop.eup %14930  ;;  %v1537_v16 = vsel %vm180_vm1, %v14929_v35, 0.0 }
 0xad4   :  { %v1534_v43 = vsel %vm180_vm1, %v14931_v18, 0.0 }
 0xadd   :  { %14306 = vrot.lane.b32.xlu1 %v15628_v42, %s18517_s22 }
 0xae1   :  { %14296 = vrot.lane.b32.xlu0 %v15628_v42, %s18519_s21 }
 0xb00   :  { %1538 = vadd.xlane.f32.xlu0 %v1537_v16 }
 0xb01   :  { %1535 = vadd.xlane.f32.xlu1 %v1534_v43 }
 0xb12   :  { %1659 = vrot.lane.b32.xlu1 %v15605_v34, %s18515_s23 }
 0xb16   :  { %1663 = vrot.lane.b32.xlu1 %v15617_v39, %s18515_s23  ;;  %1657 = vrot.lane.b32.xlu0 %v15608_v36, %s18515_s23 }
 0xb1a   :  { %1661 = vrot.lane.b32.xlu0 %v15620_v41, %s18515_s23 }
 0xb58   :  { %v1533_v58 = vpop.xlane.xlu0 %1532 }
 0xb59   :  { %14932 = vrcp.f32 %v1533_v58  ;;  %v1530_v61 = vpop.xlane.xlu1 %1529 }
 0xb5a   :  { %14934 = vrcp.f32 %v1530_v61 }
 0xb5c   :  { %v14297_v63 = vpop.permute.xlu0 %14296 }
 0xb5d   :  { %v14299_v40 = vunpack.i.h.bf16 %v14297_v63  ;;  %v14298_v47 = vunpack.i.l.bf16 %v14297_v63  ;;  %v14307_v51 = vpop.permute.xlu1 %14306 }
 0xb5e   :  { %v14309_v43 = vunpack.i.h.bf16 %v14307_v51  ;;  %v14308_v58 = vunpack.i.l.bf16 %v14307_v51 }
 0xb5f   :  { %v13545_v2 = vpack.c.bf16 %v14299_v40, %v14298_v47 }
 0xb60   :  { %v13555_v57 = vpack.c.bf16 %v14309_v43, %v14308_v58 }
 0xb61   :  { %13546 = vmatprep.subr.bf16.mxu0 %v13545_v2 }
 0xb62   :  { %13548 = vmatpush3.bf16.msra.mxu0 %v13545_v2 }
 0xb63   :  { %v14933_v59 = vpop.eup %14932  ;;  %13551 = vmatprep.subr.msk.bf16.mxu0 %vm15662_vm3, %v13549_v15 }
 0xb64   :  { %v14935_v26 = vpop.eup %14934  ;;  %v1545_v16 = vmul.f32 %v14933_v59, %v14925_v10 }
 0xb65   :  { %v1544_v60 = vmul.f32 %v14935_v26, %v14927_v13 }
 0xb67   :  { %12499 = vmatprep.mubr.msk.f32.mxu0 %vm180_vm1, %v1544_v60 }
 0xb68   :  { %12500 = vmatmul.mubr.msk.f32.vlgmr.msra.gmra.mrb[24].mxu0 %vm180_vm1, %v1545_v16 }
 0xb6b   :  { %13554 = vmatpush3.bf16.xpose.msk.msra.mxu0 %vm15662_vm3, %v13549_v15 }
 0xb6c   :  { %13557 = vmatprep.subr.msk.bf16.mxu0 %vm15662_vm3, %v13555_v57 }
 0xb73   :  { %13560 = vmatpush3.bf16.xpose.msk.msra.mxu0 %vm15662_vm3, %v13555_v57 }
 0xb8d   :  { %v1539_v61 = vpop.xlane.xlu0 %1538 }
 0xb8e   :  { %14936 = vrcp.f32 %v1539_v61  ;;  %v1536_v13 = vpop.xlane.xlu1 %1535 }
 0xb8f   :  { %14938 = vrcp.f32 %v1536_v13 }
 0xb91   :  { %v1658_v56 = vpop.permute.xlu0 %1657 }
 0xb92   :  { %v1660_v47 = vpop.permute.xlu1 %1659 }
 0xb95   :  { %v1662_v2 = vpop.permute.xlu0 %1661 }
 0xb96   :  { %v1664_v15 = vpop.permute.xlu1 %1663 }
 0xb98   :  { %v14937_v10 = vpop.eup %14936 }
 0xb99   :  { %v14939_v63 = vpop.eup %14938  ;;  %v1547_v40 = vmul.f32 %v14937_v10, %v14929_v35 }
 0xb9a   :  { %v1546_v62 = vmul.f32 %v14939_v63, %v14931_v18 }
 0xb9c   :  { %12502 = vmatprep.mubr.msk.f32.mxu0 %vm180_vm1, %v1546_v62 }
 0xb9d   :  { %12503 = vmatmul.mubr.msk.f32.gmra.mrb[26].mxu0 %vm180_vm1, %v1547_v40 }
 0xb9e   :  { %12513 = vmatprep.mubr.msk.f32.mxu0 %vm322_vm2, %v1658_v56 }
 0xba1   :  { %12514 = vmatmul.mubr.msk.f32.vlgmr.msra.gmra.mrb[28].mxu0 %vm322_vm2, %v1660_v47 }
 0xba2   :  { %12516 = vmatprep.mubr.msk.f32.mxu0 %vm322_vm2, %v1662_v2 }
 0xba5   :  { %12517 = vmatmul.mubr.msk.f32.gmra.mrb[30].mxu0 %vm322_vm2, %v1664_v15 }
 0xc3b   :  { %v15942_v59 = vpop.f32.mrb[24].mxu0 }
 0xc3c   :  { %v15944_v18 = vpop.f32.mrb[25].mxu0 }
 0xc70   :  { %v15946_v35 = vpop.f32.mrb[26].mxu0 }
 0xc71   :  { %v15948_v51 = vpop.f32.mrb[27].mxu0 }
 0xc74   :  { %v12515_v26 = vpop.f32.mrb[28].mxu0 }
 0xc75   :  { %v1755_v60 = vpop.f32.mrb[29].mxu0  ;;  %v1777_v16 = vsel %vm180_vm1, %v12515_v26, -inf }
 0xc76   :  { %1778 = vmax.xlane.f32.xlu1 %v1777_v16  ;;  %v1774_v43 = vsel %vm180_vm1, %v1755_v60, -inf }
 0xc77   :  { %1775 = vmax.xlane.f32.xlu0 %v1774_v43 }
 0xc78   :  { %v12518_v58 = vpop.f32.mrb[30].mxu0 }
 0xc79   :  { %v1765_v57 = vpop.f32.mrb[31].mxu0  ;;  %v1783_v13 = vsel %vm180_vm1, %v12518_v58, -inf }
 0xc7a   :  { %v1780_v61 = vsel %vm180_vm1, %v1765_v57, -inf }
 0xc7b   :  { %1781 = vmax.xlane.f32.xlu0 %v1780_v61 }
 0xc7f   :  { %1784 = vmax.xlane.f32.xlu0 %v1783_v13 }
 0xc87   :  { %14311 = vrot.lane.b32.xlu1 %v15614_v38, %s18513_s24 }
 0xc8b   :  { %14321 = vrot.lane.b32.xlu1 %v15614_v38, %s18509_s25 }
 0xd03   :  { %v1779_v10 = vpop.xlane.xlu1 %1778 }
 0xd04   :  { %v1787_v63 = vsub.f32 %v12515_v26, %v1779_v10  ;;  %v1776_v62 = vpop.xlane.xlu0 %1775 }
 0xd05   :  { %v1786_v56 = vsub.f32 %v1755_v60, %v1776_v62 }
 0xd06   :  { %v1792_v40 = vmul.f32 1.442695, %v1787_v63 }
 0xd07   :  { %v1790_v47 = vmul.f32 1.442695, %v1786_v56  ;;  %v14312_v2 = vpop.permute.xlu1 %14311 }
 0xd08   :  { %14940 = vpow2.f32 %v1792_v40  ;;  %v14314_v15 = vunpack.i.h.bf16 %v14312_v2  ;;  %v14313_v16 = vunpack.i.l.bf16 %v14312_v2  ;;  %v1782_v26 = vpop.xlane.xlu0 %1781 }
 0xd09   :  { %14942 = vpow2.f32 %v1790_v47  ;;  %v1788_v63 = vsub.f32 %v1765_v57, %v1782_v26 }
 0xd0a   :  { %v13561_v43 = vpack.c.bf16 %v14314_v15, %v14313_v16 }
 0xd0b   :  { %v1794_v56 = vmul.f32 1.442695, %v1788_v63 }
 0xd0c   :  { %13562 = vmatprep.subr.bf16.mxu1 %v13561_v43  ;;  %v1785_v60 = vpop.xlane.xlu0 %1784 }
 0xd0d   :  { %13564 = vmatpush3.bf16.msra.mxu1 %v13561_v43  ;;  %v1789_v10 = vsub.f32 %v12518_v58, %v1785_v60  ;;  %v14322_v58 = vpop.permute.xlu1 %14321 }
 0xd0e   :  { %v14324_v16 = vunpack.i.h.bf16 %v14322_v58  ;;  %v14323_v43 = vunpack.i.l.bf16 %v14322_v58 }
 0xd0f   :  { %v1796_v62 = vmul.f32 1.442695, %v1789_v10 }
 0xd10   :  { %v13569_v63 = vpack.c.bf16 %v14324_v16, %v14323_v43 }
 0xd11   :  { %14944 = vpow2.f32 %v1796_v62 }
 0xd12   :  { %v14941_v61 = vpop.eup %14940  ;;  %14946 = vpow2.f32 %v1794_v56 }
 0xd13   :  { %v14943_v13 = vpop.eup %14942  ;;  %v1801_v30 = vsel %vm180_vm1, %v14941_v61, 0.0 }
 0xd14   :  { %1802 = vadd.xlane.f32.xlu0 %v1801_v30  ;;  %v1798_v14 = vsel %vm180_vm1, %v14943_v13, 0.0 }
 0xd15   :  { %1799 = vadd.xlane.f32.xlu1 %v1798_v14 }
 0xd1b   :  { %v14945_v40 = vpop.eup %14944 }
 0xd1c   :  { %v14947_v47 = vpop.eup %14946  ;;  %v1807_v30 = vsel %vm180_vm1, %v14945_v40, 0.0 }
 0xd1d   :  { %v1804_v14 = vsel %vm180_vm1, %v14947_v47, 0.0 }
 0xd26   :  { %14326 = vrot.lane.b32.xlu1 %v15628_v42, %s18509_s25 }
 0xd2a   :  { %14316 = vrot.lane.b32.xlu0 %v15628_v42, %s18513_s24 }
 0xd49   :  { %1808 = vadd.xlane.f32.xlu0 %v1807_v30 }
 0xd4a   :  { %1805 = vadd.xlane.f32.xlu1 %v1804_v14 }
 0xd5b   :  { %1929 = vrot.lane.b32.xlu1 %v15605_v34, %s18507_s26 }
 0xd5f   :  { %1933 = vrot.lane.b32.xlu1 %v15617_v39, %s18507_s26  ;;  %1927 = vrot.lane.b32.xlu0 %v15608_v36, %s18507_s26 }
 0xd63   :  { %1931 = vrot.lane.b32.xlu0 %v15620_v41, %s18507_s26 }
 0xda1   :  { %v1803_v57 = vpop.xlane.xlu0 %1802 }
 0xda2   :  { %14948 = vrcp.f32 %v1803_v57  ;;  %v1800_v2 = vpop.xlane.xlu1 %1799 }
 0xda3   :  { %14950 = vrcp.f32 %v1800_v2 }
 0xda5   :  { %v14317_v15 = vpop.permute.xlu0 %14316 }
 0xda6   :  { %v14319_v26 = vunpack.i.h.bf16 %v14317_v15  ;;  %v14318_v60 = vunpack.i.l.bf16 %v14317_v15  ;;  %v14327_v56 = vpop.permute.xlu1 %14326 }
 0xda7   :  { %v14329_v57 = vunpack.i.h.bf16 %v14327_v56  ;;  %v14328_v48 = vunpack.i.l.bf16 %v14327_v56 }
 0xda8   :  { %v13565_v10 = vpack.c.bf16 %v14319_v26, %v14318_v60 }
 0xda9   :  { %v13575_v58 = vpack.c.bf16 %v14329_v57, %v14328_v48 }
 0xdaa   :  { %13566 = vmatprep.subr.bf16.mxu1 %v13565_v10 }
 0xdab   :  { %13568 = vmatpush3.bf16.msra.mxu1 %v13565_v10 }
 0xdac   :  { %v14949_v62 = vpop.eup %14948  ;;  %13571 = vmatprep.subr.msk.bf16.mxu1 %vm15662_vm3, %v13569_v63 }
 0xdad   :  { %v14951_v30 = vpop.eup %14950  ;;  %v1815_v6 = vmul.f32 %v14949_v62, %v14941_v61 }
 0xdae   :  { %v1814_v14 = vmul.f32 %v14951_v30, %v14943_v13 }
 0xdb0   :  { %12527 = vmatprep.mubr.msk.f32.mxu1 %vm180_vm1, %v1814_v14 }
 0xdb1   :  { %12528 = vmatmul.mubr.msk.f32.vlgmr.msra.gmra.mrb[28].mxu1 %vm180_vm1, %v1815_v6 }
 0xdb4   :  { %13574 = vmatpush3.bf16.xpose.msk.msra.mxu1 %vm15662_vm3, %v13569_v63 }
 0xdb5   :  { %13577 = vmatprep.subr.msk.bf16.mxu1 %vm15662_vm3, %v13575_v58 }
 0xdbc   :  { %13580 = vmatpush3.bf16.xpose.msk.msra.mxu1 %vm15662_vm3, %v13575_v58 }
 0xdd6   :  { %v1809_v2 = vpop.xlane.xlu0 %1808 }
 0xdd7   :  { %14952 = vrcp.f32 %v1809_v2  ;;  %v1806_v13 = vpop.xlane.xlu1 %1805 }
 0xdd8   :  { %14954 = vrcp.f32 %v1806_v13 }
 0xdda   :  { %v1928_v43 = vpop.permute.xlu0 %1927 }
 0xddb   :  { %v1930_v6 = vpop.permute.xlu1 %1929 }
 0xdde   :  { %v1932_v48 = vpop.permute.xlu0 %1931 }
 0xddf   :  { %v1934_v60 = vpop.permute.xlu1 %1933 }
 0xde1   :  { %v14953_v61 = vpop.eup %14952 }
 0xde2   :  { %v14955_v15 = vpop.eup %14954  ;;  %v1817_v26 = vmul.f32 %v14953_v61, %v14945_v40 }
 0xde3   :  { %v1816_v16 = vmul.f32 %v14955_v15, %v14947_v47 }
 0xde5   :  { %12530 = vmatprep.mubr.msk.f32.mxu1 %vm180_vm1, %v1816_v16 }
 0xde6   :  { %12531 = vmatmul.mubr.msk.f32.gmra.mrb[30].mxu1 %vm180_vm1, %v1817_v26 }
 0xde7   :  { %12541 = vmatprep.mubr.msk.f32.mxu1 %vm322_vm2, %v1928_v43 }
 0xdea   :  { %12542 = vmatmul.mubr.msk.f32.vlgmr.msra.gmra.mrb[32].mxu1 %vm322_vm2, %v1930_v6 }
 0xdeb   :  { %12544 = vmatprep.mubr.msk.f32.mxu1 %vm322_vm2, %v1932_v48 }
 0xdee   :  { %12545 = vmatmul.mubr.msk.f32.gmra.mrb[34].mxu1 %vm322_vm2, %v1934_v60 }
 0xe84   :  { %v15990_v10 = vpop.f32.mrb[28].mxu1 }
 0xe85   :  { %v15992_v47 = vpop.f32.mrb[29].mxu1 }
 0xeb9   :  { %v15994_v40 = vpop.f32.mrb[30].mxu1 }
 0xeba   :  { %v15996_v63 = vpop.f32.mrb[31].mxu1 }
 0xebd   :  { %v12543_v62 = vpop.f32.mrb[32].mxu1 }
 0xebe   :  { %v2025_v56 = vpop.f32.mrb[33].mxu1  ;;  %v2047_v30 = vsel %vm180_vm1, %v12543_v62, -inf }
 0xebf   :  { %2048 = vmax.xlane.f32.xlu1 %v2047_v30  ;;  %v2044_v14 = vsel %vm180_vm1, %v2025_v56, -inf }
 0xec0   :  { %2045 = vmax.xlane.f32.xlu0 %v2044_v14 }
 0xec1   :  { %v12546_v57 = vpop.f32.mrb[34].mxu1 }
 0xec2   :  { %v2035_v58 = vpop.f32.mrb[35].mxu1  ;;  %v2053_v13 = vsel %vm180_vm1, %v12546_v57, -inf }
 0xec3   :  { %v2050_v2 = vsel %vm180_vm1, %v2035_v58, -inf }
 0xec4   :  { %2051 = vmax.xlane.f32.xlu0 %v2050_v2 }
 0xec8   :  { %2054 = vmax.xlane.f32.xlu0 %v2053_v13 }
 0xed0   :  { %14331 = vrot.lane.b32.xlu1 %v15614_v38, %s18501_s1 }
 0xed4   :  { %14341 = vrot.lane.b32.xlu1 %v15614_v38, %s18499_s27 }
 0xf4c   :  { %v2049_v61 = vpop.xlane.xlu1 %2048 }
 0xf4d   :  { %v2057_v15 = vsub.f32 %v12543_v62, %v2049_v61  ;;  %v2046_v16 = vpop.xlane.xlu0 %2045 }
 0xf4e   :  { %v2056_v43 = vsub.f32 %v2025_v56, %v2046_v16 }
 0xf4f   :  { %v2062_v26 = vmul.f32 1.442695, %v2057_v15 }
 0xf50   :  { %v2060_v6 = vmul.f32 1.442695, %v2056_v43  ;;  %v14332_v48 = vpop.permute.xlu1 %14331 }
 0xf51   :  { %14956 = vpow2.f32 %v2062_v26  ;;  %v14334_v60 = vunpack.i.h.bf16 %v14332_v48  ;;  %v14333_v30 = vunpack.i.l.bf16 %v14332_v48  ;;  %v2052_v62 = vpop.xlane.xlu0 %2051 }
 0xf52   :  { %14958 = vpow2.f32 %v2060_v6  ;;  %v2058_v15 = vsub.f32 %v2035_v58, %v2052_v62 }
 0xf53   :  { %v13581_v14 = vpack.c.bf16 %v14334_v60, %v14333_v30 }
 0xf54   :  { %v2064_v43 = vmul.f32 1.442695, %v2058_v15 }
 0xf55   :  { %13582 = vmatprep.subr.bf16.mxu0 %v13581_v14  ;;  %v2055_v56 = vpop.xlane.xlu0 %2054 }
 0xf56   :  { %13584 = vmatpush3.bf16.msra.mxu0 %v13581_v14  ;;  %v2059_v61 = vsub.f32 %v12546_v57, %v2055_v56  ;;  %v14342_v57 = vpop.permute.xlu1 %14341 }
 0xf57   :  { %v14344_v30 = vunpack.i.h.bf16 %v14342_v57  ;;  %v14343_v14 = vunpack.i.l.bf16 %v14342_v57 }
 0xf58   :  { %v2066_v16 = vmul.f32 1.442695, %v2059_v61 }
 0xf59   :  { %v13589_v61 = vpack.c.bf16 %v14344_v30, %v14343_v14 }
 0xf5a   :  { %14960 = vpow2.f32 %v2066_v16 }
 0xf5b   :  { %v14957_v2 = vpop.eup %14956  ;;  %14962 = vpow2.f32 %v2064_v43 }
 0xf5c   :  { %v14959_v13 = vpop.eup %14958  ;;  %v2071_v50 = vsel %vm180_vm1, %v14957_v2, 0.0 }
 0xf5d   :  { %2072 = vadd.xlane.f32.xlu0 %v2071_v50  ;;  %v2068_v46 = vsel %vm180_vm1, %v14959_v13, 0.0 }
 0xf5e   :  { %2069 = vadd.xlane.f32.xlu1 %v2068_v46 }
 0xf64   :  { %v14961_v26 = vpop.eup %14960 }
 0xf65   :  { %v14963_v6 = vpop.eup %14962  ;;  %v2077_v50 = vsel %vm180_vm1, %v14961_v26, 0.0 }
 0xf66   :  { %v2074_v46 = vsel %vm180_vm1, %v14963_v6, 0.0 }
 0xf6f   :  { %14346 = vrot.lane.b32.xlu1 %v15628_v42, %s18499_s27 }
 0xf73   :  { %14336 = vrot.lane.b32.xlu0 %v15628_v42, %s18501_s1 }
 0xf92   :  { %2078 = vadd.xlane.f32.xlu0 %v2077_v50 }
 0xf93   :  { %2075 = vadd.xlane.f32.xlu1 %v2074_v46 }
 0xfa4   :  { %2199 = vrot.lane.b32.xlu1 %v15605_v34, %s18505_s28 }
 0xfa8   :  { %2203 = vrot.lane.b32.xlu1 %v15617_v39, %s18505_s28  ;;  %2197 = vrot.lane.b32.xlu0 %v15608_v36, %s18505_s28 }
 0xfac   :  { %2201 = vrot.lane.b32.xlu0 %v15620_v41, %s18505_s28 }
 0xfea   :  { %v2073_v58 = vpop.xlane.xlu0 %2072 }
 0xfeb   :  { %14964 = vrcp.f32 %v2073_v58  ;;  %v2070_v48 = vpop.xlane.xlu1 %2069 }
 0xfec   :  { %14966 = vrcp.f32 %v2070_v48 }
 0xfee   :  { %v14337_v60 = vpop.permute.xlu0 %14336 }
 0xfef   :  { %v14339_v62 = vunpack.i.h.bf16 %v14337_v60  ;;  %v14338_v56 = vunpack.i.l.bf16 %v14337_v60  ;;  %v14347_v15 = vpop.permute.xlu1 %14346 }
 0xff0   :  { %v14349_v43 = vunpack.i.h.bf16 %v14347_v15  ;;  %v14348_v50 = vunpack.i.l.bf16 %v14347_v15 }
 0xff1   :  { %v13585_v34 = vpack.c.bf16 %v14339_v62, %v14338_v56 }
 0xff2   :  { %v13595_v46 = vpack.c.bf16 %v14349_v43, %v14348_v50 }
 0xff3   :  { %13586 = vmatprep.subr.bf16.mxu0 %v13585_v34 }
 0xff4   :  { %13588 = vmatpush3.bf16.msra.mxu0 %v13585_v34 }
 0xff5   :  { %v14965_v39 = vpop.eup %14964  ;;  %13591 = vmatprep.subr.msk.bf16.mxu0 %vm15662_vm3, %v13589_v61 }
 0xff6   :  { %v14967_v36 = vpop.eup %14966  ;;  %v2085_v16 = vmul.f32 %v14965_v39, %v14957_v2 }
 0xff7   :  { %v2084_v41 = vmul.f32 %v14967_v36, %v14959_v13 }
 0xff9   :  { %12555 = vmatprep.mubr.msk.f32.mxu0 %vm180_vm1, %v2084_v41 }
 0xffa   :  { %12556 = vmatmul.mubr.msk.f32.vlgmr.msra.gmra.mrb[32].mxu0 %vm180_vm1, %v2085_v16 }
 0xffd   :  { %13594 = vmatpush3.bf16.xpose.msk.msra.mxu0 %vm15662_vm3, %v13589_v61 }
 0xffe   :  { %13597 = vmatprep.subr.msk.bf16.mxu0 %vm15662_vm3, %v13595_v46 }
0x1005   :  { %13600 = vmatpush3.bf16.xpose.msk.msra.mxu0 %vm15662_vm3, %v13595_v46 }
0x101f   :  { %v2079_v57 = vpop.xlane.xlu0 %2078 }
0x1020   :  { %14968 = vrcp.f32 %v2079_v57  ;;  %v2076_v13 = vpop.xlane.xlu1 %2075 }
0x1021   :  { %14970 = vrcp.f32 %v2076_v13 }
0x1023   :  { %v2198_v60 = vpop.permute.xlu0 %2197 }
0x1024   :  { %v2200_v14 = vpop.permute.xlu1 %2199 }
0x1027   :  { %v2202_v62 = vpop.permute.xlu0 %2201 }
0x1028   :  { %v2204_v56 = vpop.permute.xlu1 %2203 }
0x102a   :  { %v14969_v2 = vpop.eup %14968 }
0x102b   :  { %v14971_v58 = vpop.eup %14970  ;;  %v2087_v30 = vmul.f32 %v14969_v2, %v14961_v26 }
0x102c   :  { %v2086_v48 = vmul.f32 %v14971_v58, %v14963_v6 }
0x102e   :  { %12558 = vmatprep.mubr.msk.f32.mxu0 %vm180_vm1, %v2086_v48 }
0x102f   :  { %12559 = vmatmul.mubr.msk.f32.gmra.mrb[34].mxu0 %vm180_vm1, %v2087_v30 }
0x1030   :  { %12569 = vmatprep.mubr.msk.f32.mxu0 %vm322_vm2, %v2198_v60 }
0x1033   :  { %12570 = vmatmul.mubr.msk.f32.vlgmr.msra.gmra.mrb[36].mxu0 %vm322_vm2, %v2200_v14 }
0x1034   :  { %12572 = vmatprep.mubr.msk.f32.mxu0 %vm322_vm2, %v2202_v62 }
0x1037   :  { %12573 = vmatmul.mubr.msk.f32.gmra.mrb[38].mxu0 %vm322_vm2, %v2204_v56 }
0x10cd   :  { %v16038_v34 = vpop.f32.mrb[32].mxu0 }
0x10ce   :  { %v16040_v6 = vpop.f32.mrb[33].mxu0 }
0x1102   :  { %v16042_v26 = vpop.f32.mrb[34].mxu0 }
0x1103   :  { %v16044_v61 = vpop.f32.mrb[35].mxu0 }
0x1106   :  { %v12571_v39 = vpop.f32.mrb[36].mxu0 }
0x1107   :  { %v2295_v15 = vpop.f32.mrb[37].mxu0  ;;  %v2317_v36 = vsel %vm180_vm1, %v12571_v39, -inf }
0x1108   :  { %2318 = vmax.xlane.f32.xlu1 %v2317_v36  ;;  %v2314_v41 = vsel %vm180_vm1, %v2295_v15, -inf }
0x1109   :  { %2315 = vmax.xlane.f32.xlu0 %v2314_v41 }
0x110a   :  { %v12574_v16 = vpop.f32.mrb[38].mxu0 }
0x110b   :  { %v2305_v43 = vpop.f32.mrb[39].mxu0  ;;  %v2323_v46 = vsel %vm180_vm1, %v12574_v16, -inf }
0x110c   :  { %v2320_v50 = vsel %vm180_vm1, %v2305_v43, -inf }
0x110d   :  { %2321 = vmax.xlane.f32.xlu0 %v2320_v50 }
0x1111   :  { %2324 = vmax.xlane.f32.xlu0 %v2323_v46 }
0x1119   :  { %14351 = vrot.lane.b32.xlu1 %v15614_v38, %s18503_s29 }
0x1195   :  { %v2319_v57 = vpop.xlane.xlu1 %2318 }
0x1196   :  { %v2327_v13 = vsub.f32 %v12571_v39, %v2319_v57  ;;  %v2316_v2 = vpop.xlane.xlu0 %2315 }
0x1197   :  { %v2326_v58 = vsub.f32 %v2295_v15, %v2316_v2  ;;  %v16057_v2 = vadd.f32 %v15711_v49, %v15602_v32 }
0x1198   :  { %v2332_v48 = vmul.f32 1.442695, %v2327_v13 }
0x1199   :  { %v2330_v60 = vmul.f32 1.442695, %v2326_v58  ;;  %v14352_v30 = vpop.permute.xlu1 %14351 }
0x119a   :  { %14972 = vpow2.f32 %v2332_v48  ;;  %v14354_v14 = vunpack.i.h.bf16 %v14352_v30  ;;  %v14353_v62 = vunpack.i.l.bf16 %v14352_v30  ;;  %v2322_v56 = vpop.xlane.xlu0 %2321 }
0x119b   :  { %14974 = vpow2.f32 %v2330_v60  ;;  %v2328_v48 = vsub.f32 %v2305_v43, %v2322_v56 }
0x119c   :  { %v13601_v36 = vpack.c.bf16 %v14354_v14, %v14353_v62  ;;  %v16078_v14 = vadd.f32 %v15719_v54, %v15602_v32 }
0x119d   :  { %v2334_v60 = vmul.f32 1.442695, %v2328_v48 }
0x119e   :  { %13602 = vmatprep.subr.bf16.mxu1 %v13601_v36  ;;  %v2325_v41 = vpop.xlane.xlu0 %2324 }
0x119f   :  { %v2329_v50 = vsub.f32 %v12574_v16, %v2325_v41  ;;  %13604 = vmatpush3.bf16.msra.mxu1 %v13601_v36  ;;  %v16061_v16 = vadd.f32 %v15715_v52, %v15602_v32  ;;  %v16074_v52 = vadd.f32 %v15717_v53, %v15602_v32 }
0x11a1   :  { %v2336_v46 = vmul.f32 1.442695, %v2329_v50  ;;  %v16065_v58 = vpack.i.bf16 %v16057_v2, %v16061_v16  ;;  %v16082_v62 = vpack.i.bf16 %v16074_v52, %v16078_v14 }
0x11a3   :  { %14976 = vpow2.f32 %v2336_v46 }
0x11a4   :  { %v14973_v38 = vpop.eup %14972  ;;  %14978 = vpow2.f32 %v2334_v60 }
0x11a5   :  { %v14975_v44 = vpop.eup %14974  ;;  %v2341_v39 = vsel %vm180_vm1, %v14973_v38, 0.0 }
0x11a6   :  { %2342 = vadd.xlane.f32.xlu0 %v2341_v39  ;;  %v2338_v15 = vsel %vm180_vm1, %v14975_v44, 0.0 }
0x11a7   :  { %2339 = vadd.xlane.f32.xlu1 %v2338_v15 }
0x11ad   :  { %v14977_v57 = vpop.eup %14976 }
0x11ae   :  { %v2347_v13 = vsel %vm180_vm1, %v14977_v57, 0.0  ;;  %v14979_v30 = vpop.eup %14978 }
0x11af   :  { %2348 = vadd.xlane.f32.xlu0 %v2347_v13  ;;  %v2344_v49 = vsel %vm180_vm1, %v14979_v30, 0.0 }
0x11b8   :  { %14361 = vrot.lane.b32.xlu1 %v16065_v58, %s15439_s9 }
0x11c5   :  { %14356 = vrot.lane.b32.xlu0 %v15628_v42, %s18503_s29 }
0x11dc   :  { %2345 = vadd.xlane.f32.xlu1 %v2344_v49 }
0x11ed   :  { %14366 = vrot.lane.b32.xlu1 %v16082_v62, %s15439_s9 }
0x1233   :  { %v2343_v43 = vpop.xlane.xlu0 %2342 }
0x1234   :  { %v2340_v42 = vpop.xlane.xlu1 %2339 }
0x1235   :  { %14980 = vrcp.f32 %v2340_v42 }
0x1236   :  { %14982 = vrcp.f32 %v2343_v43 }
0x1238   :  { %v14362_v36 = vpop.permute.xlu1 %14361 }
0x1239   :  { %v14364_v46 = vunpack.i.h.bf16 %v14362_v36  ;;  %v14363_v39 = vunpack.i.l.bf16 %v14362_v36 }
0x123b   :  { %v13609_v48 = vpack.c.bf16 %v14364_v46, %v14363_v39 }
0x123c   :  { %v2349_v56 = vpop.xlane.xlu0 %2348 }
0x123d   :  { %14984 = vrcp.f32 %v2349_v56 }
0x123f   :  { %v14981_v41 = vpop.eup %14980 }
0x1240   :  { %v14357_v53 = vpop.permute.xlu0 %14356  ;;  %v2354_v50 = vmul.f32 %v14981_v41, %v14975_v44  ;;  %v14983_v13 = vpop.eup %14982 }
0x1241   :  { %v14359_v32 = vunpack.i.h.bf16 %v14357_v53  ;;  %v14358_v54 = vunpack.i.l.bf16 %v14357_v53  ;;  %v2355_v60 = vmul.f32 %v14983_v13, %v14973_v38 }
0x1242   :  { %12583 = vmatprep.mubr.msk.f32.mxu1 %vm180_vm1, %v2354_v50 }
0x1243   :  { %v13605_v15 = vpack.c.bf16 %v14359_v32, %v14358_v54 }
0x1245   :  { %13606 = vmatprep.subr.bf16.mxu1 %v13605_v15 }
0x1246   :  { %13608 = vmatpush3.bf16.msra.mxu1 %v13605_v15 }
0x1247   :  { %13611 = vmatprep.subr.msk.bf16.mxu1 %vm15662_vm3, %v13609_v48  ;;  %v14985_v41 = vpop.eup %14984 }
0x1248   :  { %v2357_v50 = vmul.f32 %v14985_v41, %v14977_v57 }
0x1249   :  { %12584 = vmatmul.mubr.msk.f32.vlgmr.msra.gmra.mrb[36].mxu1 %vm180_vm1, %v2355_v60 }
0x124f   :  { %13614 = vmatpush3.bf16.xpose.msk.msra.mxu1 %vm15662_vm3, %v13609_v48 }
0x1269   :  { %v2346_v44 = vpop.xlane.xlu1 %2345 }
0x126a   :  { %14986 = vrcp.f32 %v2346_v44 }
0x126d   :  { %v14367_v49 = vpop.permute.xlu1 %14366 }
0x126e   :  { %v14369_v42 = vunpack.i.h.bf16 %v14367_v49  ;;  %v14368_v43 = vunpack.i.l.bf16 %v14367_v49 }
0x1270   :  { %v13615_v36 = vpack.c.bf16 %v14369_v42, %v14368_v43 }
0x1272   :  { %13617 = vmatprep.subr.msk.bf16.mxu1 %vm15662_vm3, %v13615_v36 }
0x1273   :  { %13620 = vmatpush3.bf16.xpose.msk.msra.mxu1 %vm15662_vm3, %v13615_v36 }
0x1274   :  { %v14987_v38 = vpop.eup %14986 }
0x1275   :  { %v2356_v53 = vmul.f32 %v14987_v38, %v14979_v30 }
0x1277   :  { %12586 = vmatprep.mubr.msk.f32.mxu1 %vm180_vm1, %v2356_v53 }
0x1278   :  { %12587 = vmatmul.mubr.msk.f32.gmra.mrb[38].mxu1 %vm180_vm1, %v2357_v50 }
0x1279   :  { %12597 = vmatprep.mubr.msk.f32.mxu1 %vm322_vm2, %v16061_v16 }
0x127c   :  { %12598 = vmatmul.mubr.msk.f32.vlgmr.msra.gmra.mrb[40].mxu1 %vm322_vm2, %v16057_v2 }
0x127d   :  { %12600 = vmatprep.mubr.msk.f32.mxu1 %vm322_vm2, %v16078_v14 }
0x1280   :  { %12601 = vmatmul.mubr.msk.f32.gmra.mrb[42].mxu1 %vm322_vm2, %v16074_v52 }
0x131c   :  { %v16106_v56 = vpop.f32.mrb[36].mxu1 }
0x131d   :  { %v16108_v30 = vpop.f32.mrb[37].mxu1 }
0x134b   :  { %v16110_v57 = vpop.f32.mrb[38].mxu1 }
0x134c   :  { %v16112_v46 = vpop.f32.mrb[39].mxu1 }
0x134f   :  { %v12599_v39 = vpop.f32.mrb[40].mxu1 }
0x1350   :  { %v2706_v32 = vpop.f32.mrb[41].mxu1  ;;  %v2728_v54 = vsel %vm180_vm1, %v12599_v39, -inf }
0x1351   :  { %2729 = vmax.xlane.f32.xlu1 %v2728_v54  ;;  %v2725_v15 = vsel %vm180_vm1, %v2706_v32, -inf }
0x1352   :  { %2726 = vmax.xlane.f32.xlu0 %v2725_v15 }
0x1353   :  { %v12602_v13 = vpop.f32.mrb[42].mxu1 }
0x1354   :  { %v2716_v48 = vpop.f32.mrb[43].mxu1  ;;  %v2734_v44 = vsel %vm180_vm1, %v12602_v13, -inf }
0x1355   :  { %v2731_v60 = vsel %vm180_vm1, %v2716_v48, -inf }
0x1356   :  { %2732 = vmax.xlane.f32.xlu0 %v2731_v60 }
0x135a   :  { %2735 = vmax.xlane.f32.xlu0 %v2734_v44 }
0x1362   :  { %14371 = vrot.lane.b32.xlu1 %v16065_v58, %s15441_s11 }
0x1366   :  { %14381 = vrot.lane.b32.xlu1 %v16065_v58, %s15438_s0 }
0x13de   :  { %v2730_v49 = vpop.xlane.xlu1 %2729 }
0x13df   :  { %v2738_v42 = vsub.f32 %v12599_v39, %v2730_v49  ;;  %v2727_v43 = vpop.xlane.xlu0 %2726 }
0x13e0   :  { %v2737_v36 = vsub.f32 %v2706_v32, %v2727_v43 }
0x13e1   :  { %v2743_v41 = vmul.f32 1.442695, %v2738_v42 }
0x13e2   :  { %v2741_v38 = vmul.f32 1.442695, %v2737_v36  ;;  %v14372_v53 = vpop.permute.xlu1 %14371 }
0x13e3   :  { %14988 = vpow2.f32 %v2743_v41  ;;  %v14374_v50 = vunpack.i.h.bf16 %v14372_v53  ;;  %v14373_v54 = vunpack.i.l.bf16 %v14372_v53  ;;  %v2733_v39 = vpop.xlane.xlu0 %2732 }
0x13e4   :  { %14990 = vpow2.f32 %v2741_v38  ;;  %v2739_v42 = vsub.f32 %v2716_v48, %v2733_v39 }
0x13e5   :  { %v13621_v15 = vpack.c.bf16 %v14374_v50, %v14373_v54 }
0x13e6   :  { %v2745_v36 = vmul.f32 1.442695, %v2739_v42 }
0x13e7   :  { %13622 = vmatprep.subr.bf16.mxu0 %v13621_v15  ;;  %v2736_v32 = vpop.xlane.xlu0 %2735 }
0x13e8   :  { %13624 = vmatpush3.bf16.msra.mxu0 %v13621_v15  ;;  %v2740_v49 = vsub.f32 %v12602_v13, %v2736_v32  ;;  %v14382_v13 = vpop.permute.xlu1 %14381 }
0x13e9   :  { %v14384_v54 = vunpack.i.h.bf16 %v14382_v13  ;;  %v14383_v15 = vunpack.i.l.bf16 %v14382_v13 }
0x13ea   :  { %v2747_v43 = vmul.f32 1.442695, %v2740_v49 }
0x13eb   :  { %v13629_v42 = vpack.c.bf16 %v14384_v54, %v14383_v15 }
0x13ec   :  { %14992 = vpow2.f32 %v2747_v43 }
0x13ed   :  { %v14989_v60 = vpop.eup %14988  ;;  %14994 = vpow2.f32 %v2745_v36 }
0x13ee   :  { %v14991_v44 = vpop.eup %14990  ;;  %v2752_v23 = vsel %vm180_vm1, %v14989_v60, 0.0 }
0x13ef   :  { %2753 = vadd.xlane.f32.xlu0 %v2752_v23  ;;  %v2749_v25 = vsel %vm180_vm1, %v14991_v44, 0.0 }
0x13f0   :  { %2750 = vadd.xlane.f32.xlu1 %v2749_v25 }
0x13f6   :  { %v14993_v41 = vpop.eup %14992 }
0x13f7   :  { %v14995_v38 = vpop.eup %14994  ;;  %v2758_v23 = vsel %vm180_vm1, %v14993_v41, 0.0 }
0x13f8   :  { %v2755_v25 = vsel %vm180_vm1, %v14995_v38, 0.0 }
0x1401   :  { %14386 = vrot.lane.b32.xlu1 %v16082_v62, %s15438_s0 }
0x1405   :  { %14376 = vrot.lane.b32.xlu0 %v16082_v62, %s15441_s11 }
0x1424   :  { %2759 = vadd.xlane.f32.xlu0 %v2758_v23 }
0x1425   :  { %2756 = vadd.xlane.f32.xlu1 %v2755_v25 }
0x1436   :  { %2880 = vrot.lane.b32.xlu1 %v16057_v2, %s15440_s10 }
0x143a   :  { %2884 = vrot.lane.b32.xlu1 %v16074_v52, %s15440_s10  ;;  %2878 = vrot.lane.b32.xlu0 %v16061_v16, %s15440_s10 }
0x143e   :  { %2882 = vrot.lane.b32.xlu0 %v16078_v14, %s15440_s10 }
0x147c   :  { %v2754_v48 = vpop.xlane.xlu0 %2753 }
0x147d   :  { %14996 = vrcp.f32 %v2754_v48  ;;  %v2751_v53 = vpop.xlane.xlu1 %2750 }
0x147e   :  { %14998 = vrcp.f32 %v2751_v53 }
0x1480   :  { %v14377_v50 = vpop.permute.xlu0 %14376 }
0x1481   :  { %v14379_v39 = vunpack.i.h.bf16 %v14377_v50  ;;  %v14378_v32 = vunpack.i.l.bf16 %v14377_v50  ;;  %v14387_v36 = vpop.permute.xlu1 %14386 }
0x1482   :  { %v14389_v48 = vunpack.i.h.bf16 %v14387_v36  ;;  %v14388_v21 = vunpack.i.l.bf16 %v14387_v36 }
0x1483   :  { %v13625_v49 = vpack.c.bf16 %v14379_v39, %v14378_v32 }
0x1484   :  { %v13635_v13 = vpack.c.bf16 %v14389_v48, %v14388_v21 }
0x1485   :  { %13626 = vmatprep.subr.bf16.mxu0 %v13625_v49 }
0x1486   :  { %13628 = vmatpush3.bf16.msra.mxu0 %v13625_v49 }
0x1487   :  { %v14997_v43 = vpop.eup %14996  ;;  %13631 = vmatprep.subr.msk.bf16.mxu0 %vm15662_vm3, %v13629_v42 }
0x1488   :  { %v14999_v23 = vpop.eup %14998  ;;  %v2766_v20 = vmul.f32 %v14997_v43, %v14989_v60 }
0x1489   :  { %v2765_v25 = vmul.f32 %v14999_v23, %v14991_v44 }
0x148b   :  { %12611 = vmatprep.mubr.msk.f32.mxu0 %vm180_vm1, %v2765_v25 }
0x148c   :  { %12612 = vmatmul.mubr.msk.f32.vlgmr.msra.gmra.mrb[40].mxu0 %vm180_vm1, %v2766_v20 }
0x148f   :  { %13634 = vmatpush3.bf16.xpose.msk.msra.mxu0 %vm15662_vm3, %v13629_v42 }
0x1490   :  { %13637 = vmatprep.subr.msk.bf16.mxu0 %vm15662_vm3, %v13635_v13 }
0x1497   :  { %13640 = vmatpush3.bf16.xpose.msk.msra.mxu0 %vm15662_vm3, %v13635_v13 }
0x14b1   :  { %v2760_v53 = vpop.xlane.xlu0 %2759 }
0x14b2   :  { %15000 = vrcp.f32 %v2760_v53  ;;  %v2757_v44 = vpop.xlane.xlu1 %2756 }
0x14b3   :  { %15002 = vrcp.f32 %v2757_v44 }
0x14b5   :  { %v2879_v15 = vpop.permute.xlu0 %2878 }
0x14b6   :  { %v2881_v20 = vpop.permute.xlu1 %2880 }
0x14b9   :  { %v2883_v21 = vpop.permute.xlu0 %2882 }
0x14ba   :  { %v2885_v32 = vpop.permute.xlu1 %2884 }
0x14bc   :  { %v15001_v60 = vpop.eup %15000 }
0x14bd   :  { %v15003_v50 = vpop.eup %15002  ;;  %v2768_v39 = vmul.f32 %v15001_v60, %v14993_v41 }
0x14be   :  { %v2767_v54 = vmul.f32 %v15003_v50, %v14995_v38 }
0x14c0   :  { %12614 = vmatprep.mubr.msk.f32.mxu0 %vm180_vm1, %v2767_v54 }
0x14c1   :  { %12615 = vmatmul.mubr.msk.f32.gmra.mrb[42].mxu0 %vm180_vm1, %v2768_v39 }
0x14c2   :  { %12625 = vmatprep.mubr.msk.f32.mxu0 %vm322_vm2, %v2879_v15 }
0x14c5   :  { %12626 = vmatmul.mubr.msk.f32.vlgmr.msra.gmra.mrb[44].mxu0 %vm322_vm2, %v2881_v20 }
0x14c6   :  { %12628 = vmatprep.mubr.msk.f32.mxu0 %vm322_vm2, %v2883_v21 }
0x14c9   :  { %12629 = vmatmul.mubr.msk.f32.gmra.mrb[46].mxu0 %vm322_vm2, %v2885_v32 }
0x155f   :  { %v16154_v49 = vpop.f32.mrb[40].mxu0 }
0x1560   :  { %18563 = vst [vmem:[#allocation11_spill] sm:$0xff] %v16154_v49  ;;  %v16156_v38 = vpop.f32.mrb[41].mxu0 }
0x1561   :  { %18564 = vst [vmem:[#allocation12_spill] sm:$0xff] %v16156_v38 }
0x1594   :  { %v16158_v41 = vpop.f32.mrb[42].mxu0 }
0x1595   :  { %18565 = vst [vmem:[#allocation13_spill] sm:$0xff] %v16158_v41  ;;  %v16160_v42 = vpop.f32.mrb[43].mxu0 }
0x1596   :  { %18566 = vst [vmem:[#allocation14_spill] sm:$0xff] %v16160_v42 }
0x1598   :  { %v12627_v43 = vpop.f32.mrb[44].mxu0 }
0x1599   :  { %v2976_v36 = vpop.f32.mrb[45].mxu0  ;;  %v2998_v23 = vsel %vm180_vm1, %v12627_v43, -inf }
0x159a   :  { %2999 = vmax.xlane.f32.xlu1 %v2998_v23  ;;  %v2995_v25 = vsel %vm180_vm1, %v2976_v36, -inf }
0x159b   :  { %2996 = vmax.xlane.f32.xlu0 %v2995_v25 }
0x159c   :  { %v12630_v48 = vpop.f32.mrb[46].mxu0 }
0x159d   :  { %v2986_v13 = vpop.f32.mrb[47].mxu0  ;;  %v3004_v44 = vsel %vm180_vm1, %v12630_v48, -inf }
0x159e   :  { %v3001_v53 = vsel %vm180_vm1, %v2986_v13, -inf }
0x159f   :  { %3002 = vmax.xlane.f32.xlu0 %v3001_v53 }
0x15a3   :  { %3005 = vmax.xlane.f32.xlu0 %v3004_v44 }
0x15ab   :  { %14391 = vrot.lane.b32.xlu1 %v16065_v58, %s15442_s12 }
0x15af   :  { %14401 = vrot.lane.b32.xlu1 %v16065_v58, %s15443_s13 }
0x1627   :  { %v3000_v60 = vpop.xlane.xlu1 %2999 }
0x1628   :  { %v3008_v50 = vsub.f32 %v12627_v43, %v3000_v60  ;;  %v2997_v54 = vpop.xlane.xlu0 %2996 }
0x1629   :  { %v3007_v15 = vsub.f32 %v2976_v36, %v2997_v54 }
0x162a   :  { %v3013_v39 = vmul.f32 1.442695, %v3008_v50 }
0x162b   :  { %v3011_v20 = vmul.f32 1.442695, %v3007_v15  ;;  %v14392_v21 = vpop.permute.xlu1 %14391 }
0x162c   :  { %15004 = vpow2.f32 %v3013_v39  ;;  %v14394_v32 = vunpack.i.h.bf16 %v14392_v21  ;;  %v14393_v23 = vunpack.i.l.bf16 %v14392_v21  ;;  %v3003_v43 = vpop.xlane.xlu0 %3002 }
0x162d   :  { %15006 = vpow2.f32 %v3011_v20  ;;  %v3009_v50 = vsub.f32 %v2986_v13, %v3003_v43 }
0x162e   :  { %v13641_v25 = vpack.c.bf16 %v14394_v32, %v14393_v23 }
0x162f   :  { %v3015_v15 = vmul.f32 1.442695, %v3009_v50 }
0x1630   :  { %13642 = vmatprep.subr.bf16.mxu1 %v13641_v25  ;;  %v3006_v36 = vpop.xlane.xlu0 %3005 }
0x1631   :  { %13644 = vmatpush3.bf16.msra.mxu1 %v13641_v25  ;;  %v3010_v60 = vsub.f32 %v12630_v48, %v3006_v36  ;;  %v14402_v48 = vpop.permute.xlu1 %14401 }
0x1632   :  { %v14404_v23 = vunpack.i.h.bf16 %v14402_v48  ;;  %v14403_v25 = vunpack.i.l.bf16 %v14402_v48 }
0x1633   :  { %v3017_v54 = vmul.f32 1.442695, %v3010_v60 }
0x1634   :  { %v13649_v50 = vpack.c.bf16 %v14404_v23, %v14403_v25 }
0x1635   :  { %15008 = vpow2.f32 %v3017_v54 }
0x1636   :  { %v15005_v53 = vpop.eup %15004  ;;  %15010 = vpow2.f32 %v3015_v15 }
0x1637   :  { %v15007_v44 = vpop.eup %15006  ;;  %v3022_v41 = vsel %vm180_vm1, %v15005_v53, 0.0 }
0x1638   :  { %3023 = vadd.xlane.f32.xlu0 %v3022_v41  ;;  %v3019_v42 = vsel %vm180_vm1, %v15007_v44, 0.0 }
0x1639   :  { %3020 = vadd.xlane.f32.xlu1 %v3019_v42 }
0x163f   :  { %v15009_v39 = vpop.eup %15008 }
0x1640   :  { %v15011_v20 = vpop.eup %15010  ;;  %v3028_v41 = vsel %vm180_vm1, %v15009_v39, 0.0 }
0x1641   :  { %v3025_v42 = vsel %vm180_vm1, %v15011_v20, 0.0 }
0x164a   :  { %14406 = vrot.lane.b32.xlu1 %v16082_v62, %s15443_s13 }
0x164e   :  { %14396 = vrot.lane.b32.xlu0 %v16082_v62, %s15442_s12 }
0x166d   :  { %3029 = vadd.xlane.f32.xlu0 %v3028_v41 }
0x166e   :  { %3026 = vadd.xlane.f32.xlu1 %v3025_v42 }
0x167f   :  { %3150 = vrot.lane.b32.xlu1 %v16057_v2, %s15444_s14 }
0x1683   :  { %3154 = vrot.lane.b32.xlu1 %v16074_v52, %s15444_s14  ;;  %3148 = vrot.lane.b32.xlu0 %v16061_v16, %s15444_s14 }
0x1687   :  { %3152 = vrot.lane.b32.xlu0 %v16078_v14, %s15444_s14 }
0x16c5   :  { %v3024_v13 = vpop.xlane.xlu0 %3023 }
0x16c6   :  { %15012 = vrcp.f32 %v3024_v13  ;;  %v3021_v21 = vpop.xlane.xlu1 %3020 }
0x16c7   :  { %15014 = vrcp.f32 %v3021_v21 }
0x16c9   :  { %v14397_v32 = vpop.permute.xlu0 %14396 }
0x16ca   :  { %v14399_v43 = vunpack.i.h.bf16 %v14397_v32  ;;  %v14398_v36 = vunpack.i.l.bf16 %v14397_v32  ;;  %v14407_v15 = vpop.permute.xlu1 %14406 }
0x16cb   :  { %v14409_v13 = vunpack.i.h.bf16 %v14407_v15  ;;  %v14408_v38 = vunpack.i.l.bf16 %v14407_v15 }
0x16cc   :  { %v13645_v60 = vpack.c.bf16 %v14399_v43, %v14398_v36 }
0x16cd   :  { %v13655_v48 = vpack.c.bf16 %v14409_v13, %v14408_v38 }
0x16ce   :  { %13646 = vmatprep.subr.bf16.mxu1 %v13645_v60 }
0x16cf   :  { %13648 = vmatpush3.bf16.msra.mxu1 %v13645_v60 }
0x16d0   :  { %v15013_v54 = vpop.eup %15012  ;;  %13651 = vmatprep.subr.msk.bf16.mxu1 %vm15662_vm3, %v13649_v50 }
0x16d1   :  { %v15015_v41 = vpop.eup %15014  ;;  %v3036_v49 = vmul.f32 %v15013_v54, %v15005_v53 }
0x16d2   :  { %v3035_v42 = vmul.f32 %v15015_v41, %v15007_v44 }
0x16d4   :  { %12639 = vmatprep.mubr.msk.f32.mxu1 %vm180_vm1, %v3035_v42 }
0x16d5   :  { %12640 = vmatmul.mubr.msk.f32.vlgmr.msra.gmra.mrb[44].mxu1 %vm180_vm1, %v3036_v49 }
0x16d8   :  { %13654 = vmatpush3.bf16.xpose.msk.msra.mxu1 %vm15662_vm3, %v13649_v50 }
0x16d9   :  { %13657 = vmatprep.subr.msk.bf16.mxu1 %vm15662_vm3, %v13655_v48 }
0x16e0   :  { %13660 = vmatpush3.bf16.xpose.msk.msra.mxu1 %vm15662_vm3, %v13655_v48 }
0x16fa   :  { %v3030_v21 = vpop.xlane.xlu0 %3029 }
0x16fb   :  { %15016 = vrcp.f32 %v3030_v21  ;;  %v3027_v44 = vpop.xlane.xlu1 %3026 }
0x16fc   :  { %15018 = vrcp.f32 %v3027_v44 }
0x16fe   :  { %v3149_v25 = vpop.permute.xlu0 %3148 }
0x16ff   :  { %v3151_v49 = vpop.permute.xlu1 %3150 }
0x1702   :  { %v3153_v38 = vpop.permute.xlu0 %3152 }
0x1703   :  { %v3155_v36 = vpop.permute.xlu1 %3154 }
0x1705   :  { %v15017_v53 = vpop.eup %15016 }
0x1706   :  { %v15019_v32 = vpop.eup %15018  ;;  %v3038_v43 = vmul.f32 %v15017_v53, %v15009_v39 }
0x1707   :  { %v3037_v23 = vmul.f32 %v15019_v32, %v15011_v20 }
0x1709   :  { %12642 = vmatprep.mubr.msk.f32.mxu1 %vm180_vm1, %v3037_v23 }
0x170a   :  { %12643 = vmatmul.mubr.msk.f32.gmra.mrb[46].mxu1 %vm180_vm1, %v3038_v43 }
0x170b   :  { %12653 = vmatprep.mubr.msk.f32.mxu1 %vm322_vm2, %v3149_v25 }
0x170e   :  { %12654 = vmatmul.mubr.msk.f32.vlgmr.msra.gmra.mrb[48].mxu1 %vm322_vm2, %v3151_v49 }
0x170f   :  { %12656 = vmatprep.mubr.msk.f32.mxu1 %vm322_vm2, %v3153_v38 }
0x1712   :  { %12657 = vmatmul.mubr.msk.f32.gmra.mrb[50].mxu1 %vm322_vm2, %v3155_v36 }
0x17a8   :  { %v16202_v60 = vpop.f32.mrb[44].mxu1 }
0x17a9   :  { %18567 = vst [vmem:[#allocation15_spill] sm:$0xff] %v16202_v60  ;;  %v16204_v20 = vpop.f32.mrb[45].mxu1 }
0x17aa   :  { %18568 = vst [vmem:[#allocation16_spill] sm:$0xff] %v16204_v20 }
0x17dd   :  { %v16206_v39 = vpop.f32.mrb[46].mxu1 }
0x17de   :  { %18569 = vst [vmem:[#allocation17_spill] sm:$0xff] %v16206_v39  ;;  %v16208_v50 = vpop.f32.mrb[47].mxu1 }
0x17df   :  { %18570 = vst [vmem:[#allocation18_spill] sm:$0xff] %v16208_v50 }
0x17e1   :  { %v12655_v54 = vpop.f32.mrb[48].mxu1 }
0x17e2   :  { %v3246_v15 = vpop.f32.mrb[49].mxu1  ;;  %v3268_v41 = vsel %vm180_vm1, %v12655_v54, -inf }
0x17e3   :  { %3269 = vmax.xlane.f32.xlu1 %v3268_v41  ;;  %v3265_v42 = vsel %vm180_vm1, %v3246_v15, -inf }
0x17e4   :  { %3266 = vmax.xlane.f32.xlu0 %v3265_v42 }
0x17e5   :  { %v12658_v13 = vpop.f32.mrb[50].mxu1 }
0x17e6   :  { %v3256_v48 = vpop.f32.mrb[51].mxu1  ;;  %v3274_v44 = vsel %vm180_vm1, %v12658_v13, -inf }
0x17e7   :  { %v3271_v21 = vsel %vm180_vm1, %v3256_v48, -inf }
0x17e8   :  { %3272 = vmax.xlane.f32.xlu0 %v3271_v21 }
0x17ec   :  { %3275 = vmax.xlane.f32.xlu0 %v3274_v44 }
0x17f4   :  { %14411 = vrot.lane.b32.xlu1 %v16065_v58, %s15445_s15 }
0x17f8   :  { %14421 = vrot.lane.b32.xlu1 %v16065_v58, %s15446_s16 }
0x1870   :  { %v3270_v53 = vpop.xlane.xlu1 %3269 }
0x1871   :  { %v3278_v32 = vsub.f32 %v12655_v54, %v3270_v53  ;;  %v3267_v23 = vpop.xlane.xlu0 %3266 }
0x1872   :  { %v3277_v25 = vsub.f32 %v3246_v15, %v3267_v23 }
0x1873   :  { %v3283_v43 = vmul.f32 1.442695, %v3278_v32 }
0x1874   :  { %v3281_v49 = vmul.f32 1.442695, %v3277_v25  ;;  %v14412_v38 = vpop.permute.xlu1 %14411 }
0x1875   :  { %15020 = vpow2.f32 %v3283_v43  ;;  %v14414_v36 = vunpack.i.h.bf16 %v14412_v38  ;;  %v14413_v41 = vunpack.i.l.bf16 %v14412_v38  ;;  %v3273_v54 = vpop.xlane.xlu0 %3272 }
0x1876   :  { %15022 = vpow2.f32 %v3281_v49  ;;  %v3279_v32 = vsub.f32 %v3256_v48, %v3273_v54 }
0x1877   :  { %v13661_v42 = vpack.c.bf16 %v14414_v36, %v14413_v41 }
0x1878   :  { %v3285_v25 = vmul.f32 1.442695, %v3279_v32 }
0x1879   :  { %13662 = vmatprep.subr.bf16.mxu0 %v13661_v42  ;;  %v3276_v15 = vpop.xlane.xlu0 %3275 }
0x187a   :  { %13664 = vmatpush3.bf16.msra.mxu0 %v13661_v42  ;;  %v3280_v53 = vsub.f32 %v12658_v13, %v3276_v15  ;;  %v14422_v13 = vpop.permute.xlu1 %14421 }
0x187b   :  { %v14424_v41 = vunpack.i.h.bf16 %v14422_v13  ;;  %v14423_v42 = vunpack.i.l.bf16 %v14422_v13 }
0x187c   :  { %v3287_v23 = vmul.f32 1.442695, %v3280_v53 }
0x187d   :  { %v13669_v32 = vpack.c.bf16 %v14424_v41, %v14423_v42 }
0x187e   :  { %15024 = vpow2.f32 %v3287_v23 }
0x187f   :  { %v15021_v21 = vpop.eup %15020  ;;  %15026 = vpow2.f32 %v3285_v25 }
0x1880   :  { %v15023_v44 = vpop.eup %15022  ;;  %v3292_v39 = vsel %vm180_vm1, %v15021_v21, 0.0 }
0x1881   :  { %3293 = vadd.xlane.f32.xlu0 %v3292_v39  ;;  %v3289_v50 = vsel %vm180_vm1, %v15023_v44, 0.0 }
0x1882   :  { %3290 = vadd.xlane.f32.xlu1 %v3289_v50 }
0x1888   :  { %v15025_v43 = vpop.eup %15024 }
0x1889   :  { %v15027_v49 = vpop.eup %15026  ;;  %v3298_v39 = vsel %vm180_vm1, %v15025_v43, 0.0 }
0x188a   :  { %v3295_v50 = vsel %vm180_vm1, %v15027_v49, 0.0 }
0x1893   :  { %14426 = vrot.lane.b32.xlu1 %v16082_v62, %s15446_s16 }
0x1897   :  { %14416 = vrot.lane.b32.xlu0 %v16082_v62, %s15445_s15 }
0x18b6   :  { %3299 = vadd.xlane.f32.xlu0 %v3298_v39 }
0x18b7   :  { %3296 = vadd.xlane.f32.xlu1 %v3295_v50 }
0x18c8   :  { %3420 = vrot.lane.b32.xlu1 %v16057_v2, %s15447_s17 }
0x18cc   :  { %3424 = vrot.lane.b32.xlu1 %v16074_v52, %s15447_s17  ;;  %3418 = vrot.lane.b32.xlu0 %v16061_v16, %s15447_s17 }
0x18d0   :  { %3422 = vrot.lane.b32.xlu0 %v16078_v14, %s15447_s17 }
0x190e   :  { %v3294_v48 = vpop.xlane.xlu0 %3293 }
0x190f   :  { %15028 = vrcp.f32 %v3294_v48  ;;  %v3291_v38 = vpop.xlane.xlu1 %3290 }
0x1910   :  { %15030 = vrcp.f32 %v3291_v38 }
0x1912   :  { %v14417_v36 = vpop.permute.xlu0 %14416 }
0x1913   :  { %v14419_v54 = vunpack.i.h.bf16 %v14417_v36  ;;  %v14418_v15 = vunpack.i.l.bf16 %v14417_v36  ;;  %v14427_v25 = vpop.permute.xlu1 %14426 }
0x1914   :  { %v14429_v48 = vunpack.i.h.bf16 %v14427_v25  ;;  %v14428_v20 = vunpack.i.l.bf16 %v14427_v25 }
0x1915   :  { %v13665_v53 = vpack.c.bf16 %v14419_v54, %v14418_v15 }
0x1916   :  { %v13675_v13 = vpack.c.bf16 %v14429_v48, %v14428_v20 }
0x1917   :  { %13666 = vmatprep.subr.bf16.mxu0 %v13665_v53 }
0x1918   :  { %13668 = vmatpush3.bf16.msra.mxu0 %v13665_v53 }
0x1919   :  { %v15029_v23 = vpop.eup %15028  ;;  %13671 = vmatprep.subr.msk.bf16.mxu0 %vm15662_vm3, %v13669_v32 }
0x191a   :  { %v15031_v39 = vpop.eup %15030  ;;  %v3306_v60 = vmul.f32 %v15029_v23, %v15021_v21 }
0x191b   :  { %v3305_v50 = vmul.f32 %v15031_v39, %v15023_v44 }
0x191d   :  { %12667 = vmatprep.mubr.msk.f32.mxu0 %vm180_vm1, %v3305_v50 }
0x191e   :  { %12668 = vmatmul.mubr.msk.f32.vlgmr.msra.gmra.mrb[48].mxu0 %vm180_vm1, %v3306_v60 }
0x1921   :  { %13674 = vmatpush3.bf16.xpose.msk.msra.mxu0 %vm15662_vm3, %v13669_v32 }
0x1922   :  { %13677 = vmatprep.subr.msk.bf16.mxu0 %vm15662_vm3, %v13675_v13 }
0x1929   :  { %13680 = vmatpush3.bf16.xpose.msk.msra.mxu0 %vm15662_vm3, %v13675_v13 }
0x1943   :  { %v3300_v38 = vpop.xlane.xlu0 %3299 }
0x1944   :  { %15032 = vrcp.f32 %v3300_v38  ;;  %v3297_v44 = vpop.xlane.xlu1 %3296 }
0x1945   :  { %15034 = vrcp.f32 %v3297_v44 }
0x1947   :  { %v3419_v42 = vpop.permute.xlu0 %3418 }
0x1948   :  { %v3421_v60 = vpop.permute.xlu1 %3420 }
0x194b   :  { %v3423_v20 = vpop.permute.xlu0 %3422 }
0x194c   :  { %v3425_v15 = vpop.permute.xlu1 %3424 }
0x194e   :  { %v15033_v21 = vpop.eup %15032 }
0x194f   :  { %v15035_v36 = vpop.eup %15034  ;;  %v3308_v54 = vmul.f32 %v15033_v21, %v15025_v43 }
0x1950   :  { %v3307_v41 = vmul.f32 %v15035_v36, %v15027_v49 }
0x1952   :  { %12670 = vmatprep.mubr.msk.f32.mxu0 %vm180_vm1, %v3307_v41 }
0x1953   :  { %12671 = vmatmul.mubr.msk.f32.gmra.mrb[50].mxu0 %vm180_vm1, %v3308_v54 }
0x1954   :  { %12681 = vmatprep.mubr.msk.f32.mxu0 %vm322_vm2, %v3419_v42 }
0x1957   :  { %12682 = vmatmul.mubr.msk.f32.vlgmr.msra.gmra.mrb[52].mxu0 %vm322_vm2, %v3421_v60 }
0x1958   :  { %12684 = vmatprep.mubr.msk.f32.mxu0 %vm322_vm2, %v3423_v20 }
0x195b   :  { %12685 = vmatmul.mubr.msk.f32.gmra.mrb[54].mxu0 %vm322_vm2, %v3425_v15 }
0x19f1   :  { %v16250_v53 = vpop.f32.mrb[48].mxu0 }
0x19f2   :  { %18571 = vst [vmem:[#allocation19_spill] sm:$0xff] %v16250_v53  ;;  %v16252_v49 = vpop.f32.mrb[49].mxu0 }
0x19f3   :  { %18572 = vst [vmem:[#allocation20_spill] sm:$0xff] %v16252_v49 }
0x1a26   :  { %v16254_v43 = vpop.f32.mrb[50].mxu0 }
0x1a27   :  { %18573 = vst [vmem:[#allocation21_spill] sm:$0xff] %v16254_v43  ;;  %v16256_v32 = vpop.f32.mrb[51].mxu0 }
0x1a28   :  { %18574 = vst [vmem:[#allocation22_spill] sm:$0xff] %v16256_v32 }
0x1a2a   :  { %v12683_v23 = vpop.f32.mrb[52].mxu0 }
0x1a2b   :  { %v3516_v25 = vpop.f32.mrb[53].mxu0  ;;  %v3538_v39 = vsel %vm180_vm1, %v12683_v23, -inf }
0x1a2c   :  { %3539 = vmax.xlane.f32.xlu1 %v3538_v39  ;;  %v3535_v50 = vsel %vm180_vm1, %v3516_v25, -inf }
0x1a2d   :  { %3536 = vmax.xlane.f32.xlu0 %v3535_v50 }
0x1a2e   :  { %v12686_v48 = vpop.f32.mrb[54].mxu0 }
0x1a2f   :  { %v3526_v13 = vpop.f32.mrb[55].mxu0  ;;  %v3544_v44 = vsel %vm180_vm1, %v12686_v48, -inf }
0x1a30   :  { %v3541_v38 = vsel %vm180_vm1, %v3526_v13, -inf }
0x1a31   :  { %3542 = vmax.xlane.f32.xlu0 %v3541_v38 }
0x1a35   :  { %3545 = vmax.xlane.f32.xlu0 %v3544_v44 }
0x1a3d   :  { %14431 = vrot.lane.b32.xlu1 %v16065_v58, %s18525_s18 }
0x1a41   :  { %14441 = vrot.lane.b32.xlu1 %v16065_v58, %s18523_s19 }
0x1ab9   :  { %v3540_v21 = vpop.xlane.xlu1 %3539 }
0x1aba   :  { %v3548_v36 = vsub.f32 %v12683_v23, %v3540_v21  ;;  %v3537_v41 = vpop.xlane.xlu0 %3536 }
0x1abb   :  { %v3547_v42 = vsub.f32 %v3516_v25, %v3537_v41 }
0x1abc   :  { %v3553_v54 = vmul.f32 1.442695, %v3548_v36 }
0x1abd   :  { %v3551_v60 = vmul.f32 1.442695, %v3547_v42  ;;  %v14432_v20 = vpop.permute.xlu1 %14431 }
0x1abe   :  { %15036 = vpow2.f32 %v3553_v54  ;;  %v14434_v15 = vunpack.i.h.bf16 %v14432_v20  ;;  %v14433_v39 = vunpack.i.l.bf16 %v14432_v20  ;;  %v3543_v23 = vpop.xlane.xlu0 %3542 }
0x1abf   :  { %15038 = vpow2.f32 %v3551_v60  ;;  %v3549_v36 = vsub.f32 %v3526_v13, %v3543_v23 }
0x1ac0   :  { %v13681_v50 = vpack.c.bf16 %v14434_v15, %v14433_v39 }
0x1ac1   :  { %v3555_v42 = vmul.f32 1.442695, %v3549_v36 }
0x1ac2   :  { %13682 = vmatprep.subr.bf16.mxu1 %v13681_v50  ;;  %v3546_v25 = vpop.xlane.xlu0 %3545 }
0x1ac3   :  { %13684 = vmatpush3.bf16.msra.mxu1 %v13681_v50  ;;  %v3550_v21 = vsub.f32 %v12686_v48, %v3546_v25  ;;  %v14442_v48 = vpop.permute.xlu1 %14441 }
0x1ac4   :  { %v14444_v39 = vunpack.i.h.bf16 %v14442_v48  ;;  %v14443_v50 = vunpack.i.l.bf16 %v14442_v48 }
0x1ac5   :  { %v3557_v41 = vmul.f32 1.442695, %v3550_v21 }
0x1ac6   :  { %v13689_v36 = vpack.c.bf16 %v14444_v39, %v14443_v50 }
0x1ac7   :  { %15040 = vpow2.f32 %v3557_v41 }
0x1ac8   :  { %v15037_v38 = vpop.eup %15036  ;;  %15042 = vpow2.f32 %v3555_v42 }
0x1ac9   :  { %v15039_v44 = vpop.eup %15038  ;;  %v3562_v43 = vsel %vm180_vm1, %v15037_v38, 0.0 }
0x1aca   :  { %3563 = vadd.xlane.f32.xlu0 %v3562_v43  ;;  %v3559_v32 = vsel %vm180_vm1, %v15039_v44, 0.0 }
0x1acb   :  { %3560 = vadd.xlane.f32.xlu1 %v3559_v32 }
0x1ad1   :  { %v15041_v54 = vpop.eup %15040 }
0x1ad2   :  { %v15043_v60 = vpop.eup %15042  ;;  %v3568_v43 = vsel %vm180_vm1, %v15041_v54, 0.0 }
0x1ad3   :  { %v3565_v32 = vsel %vm180_vm1, %v15043_v60, 0.0 }
0x1adc   :  { %14446 = vrot.lane.b32.xlu1 %v16082_v62, %s18523_s19  ;;  %s18636_s19 = smov 44  }
0x1ae0   :  { %14436 = vrot.lane.b32.xlu0 %v16082_v62, %s18525_s18  ;;  %s18635_s18 = smov 108  }
0x1aff   :  { %3569 = vadd.xlane.f32.xlu0 %v3568_v43 }
0x1b00   :  { %3566 = vadd.xlane.f32.xlu1 %v3565_v32 }
0x1b11   :  { %3690 = vrot.lane.b32.xlu1 %v16057_v2, %s18521_s20 }
0x1b15   :  { %3694 = vrot.lane.b32.xlu1 %v16074_v52, %s18521_s20  ;;  %3688 = vrot.lane.b32.xlu0 %v16061_v16, %s18521_s20 }
0x1b19   :  { %3692 = vrot.lane.b32.xlu0 %v16078_v14, %s18521_s20  ;;  %s18640_s20 = smov 68  }
0x1b57   :  { %v3564_v13 = vpop.xlane.xlu0 %3563 }
0x1b58   :  { %15044 = vrcp.f32 %v3564_v13  ;;  %v3561_v20 = vpop.xlane.xlu1 %3560 }
0x1b59   :  { %15046 = vrcp.f32 %v3561_v20 }
0x1b5b   :  { %v14437_v15 = vpop.permute.xlu0 %14436 }
0x1b5c   :  { %v14439_v23 = vunpack.i.h.bf16 %v14437_v15  ;;  %v14438_v25 = vunpack.i.l.bf16 %v14437_v15  ;;  %v14447_v42 = vpop.permute.xlu1 %14446 }
0x1b5d   :  { %v14449_v13 = vunpack.i.h.bf16 %v14447_v42  ;;  %v14448_v49 = vunpack.i.l.bf16 %v14447_v42 }
0x1b5e   :  { %v13685_v21 = vpack.c.bf16 %v14439_v23, %v14438_v25 }
0x1b5f   :  { %v13695_v48 = vpack.c.bf16 %v14449_v13, %v14448_v49 }
0x1b60   :  { %13686 = vmatprep.subr.bf16.mxu1 %v13685_v21 }
0x1b61   :  { %13688 = vmatpush3.bf16.msra.mxu1 %v13685_v21 }
0x1b62   :  { %v15045_v41 = vpop.eup %15044  ;;  %13691 = vmatprep.subr.msk.bf16.mxu1 %vm15662_vm3, %v13689_v36 }
0x1b63   :  { %v15047_v43 = vpop.eup %15046  ;;  %v3576_v53 = vmul.f32 %v15045_v41, %v15037_v38 }
0x1b64   :  { %v3575_v32 = vmul.f32 %v15047_v43, %v15039_v44 }
0x1b66   :  { %12695 = vmatprep.mubr.msk.f32.mxu1 %vm180_vm1, %v3575_v32 }
0x1b67   :  { %12696 = vmatmul.mubr.msk.f32.vlgmr.msra.gmra.mrb[52].mxu1 %vm180_vm1, %v3576_v53 }
0x1b6a   :  { %13694 = vmatpush3.bf16.xpose.msk.msra.mxu1 %vm15662_vm3, %v13689_v36 }
0x1b6b   :  { %13697 = vmatprep.subr.msk.bf16.mxu1 %vm15662_vm3, %v13695_v48 }
0x1b72   :  { %13700 = vmatpush3.bf16.xpose.msk.msra.mxu1 %vm15662_vm3, %v13695_v48 }
0x1b8c   :  { %v3570_v20 = vpop.xlane.xlu0 %3569 }
0x1b8d   :  { %15048 = vrcp.f32 %v3570_v20  ;;  %v3567_v44 = vpop.xlane.xlu1 %3566 }
0x1b8e   :  { %15050 = vrcp.f32 %v3567_v44 }
0x1b90   :  { %v3689_v50 = vpop.permute.xlu0 %3688 }
0x1b91   :  { %v3691_v53 = vpop.permute.xlu1 %3690 }
0x1b94   :  { %v3693_v49 = vpop.permute.xlu0 %3692 }
0x1b95   :  { %v3695_v25 = vpop.permute.xlu1 %3694 }
0x1b97   :  { %v15049_v38 = vpop.eup %15048 }
0x1b98   :  { %v15051_v15 = vpop.eup %15050  ;;  %v3578_v23 = vmul.f32 %v15049_v38, %v15041_v54 }
0x1b99   :  { %v3577_v39 = vmul.f32 %v15051_v15, %v15043_v60 }
0x1b9b   :  { %12698 = vmatprep.mubr.msk.f32.mxu1 %vm180_vm1, %v3577_v39 }
0x1b9c   :  { %12699 = vmatmul.mubr.msk.f32.gmra.mrb[54].mxu1 %vm180_vm1, %v3578_v23 }
0x1b9d   :  { %12709 = vmatprep.mubr.msk.f32.mxu1 %vm322_vm2, %v3689_v50 }
0x1ba0   :  { %12710 = vmatmul.mubr.msk.f32.vlgmr.msra.gmra.mrb[56].mxu1 %vm322_vm2, %v3691_v53 }
0x1ba1   :  { %12712 = vmatprep.mubr.msk.f32.mxu1 %vm322_vm2, %v3693_v49 }
0x1ba4   :  { %12713 = vmatmul.mubr.msk.f32.gmra.mrb[58].mxu1 %vm322_vm2, %v3695_v25 }
0x1c3a   :  { %v16298_v21 = vpop.f32.mrb[52].mxu1 }
0x1c3b   :  { %18575 = vst [vmem:[#allocation23_spill] sm:$0xff] %v16298_v21  ;;  %v16300_v60 = vpop.f32.mrb[53].mxu1 }
0x1c3c   :  { %18576 = vst [vmem:[#allocation24_spill] sm:$0xff] %v16300_v60 }
0x1c6f   :  { %v16302_v54 = vpop.f32.mrb[54].mxu1 }
0x1c70   :  { %18577 = vst [vmem:[#allocation25_spill] sm:$0xff] %v16302_v54  ;;  %v16304_v36 = vpop.f32.mrb[55].mxu1 }
0x1c71   :  { %18578 = vst [vmem:[#allocation26_spill] sm:$0xff] %v16304_v36 }
0x1c73   :  { %v12711_v41 = vpop.f32.mrb[56].mxu1 }
0x1c74   :  { %v3786_v42 = vpop.f32.mrb[57].mxu1  ;;  %v3808_v43 = vsel %vm180_vm1, %v12711_v41, -inf }
0x1c75   :  { %3809 = vmax.xlane.f32.xlu1 %v3808_v43  ;;  %v3805_v32 = vsel %vm180_vm1, %v3786_v42, -inf }
0x1c76   :  { %3806 = vmax.xlane.f32.xlu0 %v3805_v32 }
0x1c77   :  { %v12714_v13 = vpop.f32.mrb[58].mxu1 }
0x1c78   :  { %v3796_v48 = vpop.f32.mrb[59].mxu1  ;;  %v3814_v44 = vsel %vm180_vm1, %v12714_v13, -inf }
0x1c79   :  { %v3811_v20 = vsel %vm180_vm1, %v3796_v48, -inf }
0x1c7a   :  { %3812 = vmax.xlane.f32.xlu0 %v3811_v20 }
0x1c7e   :  { %3815 = vmax.xlane.f32.xlu0 %v3814_v44 }
0x1c86   :  { %14451 = vrot.lane.b32.xlu1 %v16065_v58, %s18519_s21 }
0x1c8a   :  { %14461 = vrot.lane.b32.xlu1 %v16065_v58, %s18517_s22 }
0x1d02   :  { %v3810_v38 = vpop.xlane.xlu1 %3809 }
0x1d03   :  { %v3818_v15 = vsub.f32 %v12711_v41, %v3810_v38  ;;  %v3807_v39 = vpop.xlane.xlu0 %3806 }
0x1d04   :  { %v3817_v50 = vsub.f32 %v3786_v42, %v3807_v39 }
0x1d05   :  { %v3823_v23 = vmul.f32 1.442695, %v3818_v15 }
0x1d06   :  { %v3821_v53 = vmul.f32 1.442695, %v3817_v50  ;;  %v14452_v49 = vpop.permute.xlu1 %14451 }
0x1d07   :  { %15052 = vpow2.f32 %v3823_v23  ;;  %v14454_v25 = vunpack.i.h.bf16 %v14452_v49  ;;  %v14453_v43 = vunpack.i.l.bf16 %v14452_v49  ;;  %v3813_v41 = vpop.xlane.xlu0 %3812 }
0x1d08   :  { %15054 = vpow2.f32 %v3821_v53  ;;  %v3819_v15 = vsub.f32 %v3796_v48, %v3813_v41 }
0x1d09   :  { %v13701_v32 = vpack.c.bf16 %v14454_v25, %v14453_v43 }
0x1d0a   :  { %v3825_v50 = vmul.f32 1.442695, %v3819_v15 }
0x1d0b   :  { %13702 = vmatprep.subr.bf16.mxu0 %v13701_v32  ;;  %v3816_v42 = vpop.xlane.xlu0 %3815 }
0x1d0c   :  { %13704 = vmatpush3.bf16.msra.mxu0 %v13701_v32  ;;  %v3820_v38 = vsub.f32 %v12714_v13, %v3816_v42  ;;  %v14462_v13 = vpop.permute.xlu1 %14461 }
0x1d0d   :  { %v14464_v43 = vunpack.i.h.bf16 %v14462_v13  ;;  %v14463_v32 = vunpack.i.l.bf16 %v14462_v13 }
0x1d0e   :  { %v3827_v39 = vmul.f32 1.442695, %v3820_v38 }
0x1d0f   :  { %v13709_v15 = vpack.c.bf16 %v14464_v43, %v14463_v32 }
0x1d10   :  { %15056 = vpow2.f32 %v3827_v39 }
0x1d11   :  { %v15053_v20 = vpop.eup %15052  ;;  %15058 = vpow2.f32 %v3825_v50 }
0x1d12   :  { %v15055_v44 = vpop.eup %15054  ;;  %v3832_v54 = vsel %vm180_vm1, %v15053_v20, 0.0 }
0x1d13   :  { %3833 = vadd.xlane.f32.xlu0 %v3832_v54  ;;  %v3829_v36 = vsel %vm180_vm1, %v15055_v44, 0.0 }
0x1d14   :  { %3830 = vadd.xlane.f32.xlu1 %v3829_v36 }
0x1d1a   :  { %v15057_v23 = vpop.eup %15056 }
0x1d1b   :  { %v15059_v53 = vpop.eup %15058  ;;  %v3838_v54 = vsel %vm180_vm1, %v15057_v23, 0.0 }
0x1d1c   :  { %v3835_v36 = vsel %vm180_vm1, %v15059_v53, 0.0 }
0x1d25   :  { %14466 = vrot.lane.b32.xlu1 %v16082_v62, %s18517_s22  ;;  %s18631_s22 = smov 80  }
0x1d29   :  { %14456 = vrot.lane.b32.xlu0 %v16082_v62, %s18519_s21  ;;  %s18630_s21 = smov 52  }
0x1d48   :  { %3839 = vadd.xlane.f32.xlu0 %v3838_v54 }
0x1d49   :  { %3836 = vadd.xlane.f32.xlu1 %v3835_v36 }
0x1d5a   :  { %3960 = vrot.lane.b32.xlu1 %v16057_v2, %s18515_s23 }
0x1d5e   :  { %3964 = vrot.lane.b32.xlu1 %v16074_v52, %s18515_s23  ;;  %3958 = vrot.lane.b32.xlu0 %v16061_v16, %s18515_s23 }
0x1d62   :  { %3962 = vrot.lane.b32.xlu0 %v16078_v14, %s18515_s23  ;;  %s18632_s23 = smov 112  }
0x1da0   :  { %v3834_v48 = vpop.xlane.xlu0 %3833 }
0x1da1   :  { %15060 = vrcp.f32 %v3834_v48  ;;  %v3831_v49 = vpop.xlane.xlu1 %3830 }
0x1da2   :  { %15062 = vrcp.f32 %v3831_v49 }
0x1da4   :  { %v14457_v25 = vpop.permute.xlu0 %14456 }
0x1da5   :  { %v14459_v41 = vunpack.i.h.bf16 %v14457_v25  ;;  %v14458_v42 = vunpack.i.l.bf16 %v14457_v25  ;;  %v14467_v50 = vpop.permute.xlu1 %14466 }
0x1da6   :  { %v14469_v48 = vunpack.i.h.bf16 %v14467_v50  ;;  %v14468_v21 = vunpack.i.l.bf16 %v14467_v50 }
0x1da7   :  { %v13705_v38 = vpack.c.bf16 %v14459_v41, %v14458_v42 }
0x1da8   :  { %v13715_v13 = vpack.c.bf16 %v14469_v48, %v14468_v21 }
0x1da9   :  { %13706 = vmatprep.subr.bf16.mxu0 %v13705_v38 }
0x1daa   :  { %13708 = vmatpush3.bf16.msra.mxu0 %v13705_v38 }
0x1dab   :  { %v15061_v39 = vpop.eup %15060  ;;  %13711 = vmatprep.subr.msk.bf16.mxu0 %vm15662_vm3, %v13709_v15 }
0x1dac   :  { %v15063_v54 = vpop.eup %15062  ;;  %v3846_v60 = vmul.f32 %v15061_v39, %v15053_v20 }
0x1dad   :  { %v3845_v36 = vmul.f32 %v15063_v54, %v15055_v44 }
0x1daf   :  { %12723 = vmatprep.mubr.msk.f32.mxu0 %vm180_vm1, %v3845_v36 }
0x1db0   :  { %12724 = vmatmul.mubr.msk.f32.vlgmr.msra.gmra.mrb[56].mxu0 %vm180_vm1, %v3846_v60 }
0x1db3   :  { %13714 = vmatpush3.bf16.xpose.msk.msra.mxu0 %vm15662_vm3, %v13709_v15 }
0x1db4   :  { %13717 = vmatprep.subr.msk.bf16.mxu0 %vm15662_vm3, %v13715_v13 }
0x1dbb   :  { %13720 = vmatpush3.bf16.xpose.msk.msra.mxu0 %vm15662_vm3, %v13715_v13 }
0x1dd5   :  { %v3840_v49 = vpop.xlane.xlu0 %3839 }
0x1dd6   :  { %15064 = vrcp.f32 %v3840_v49  ;;  %v3837_v44 = vpop.xlane.xlu1 %3836 }
0x1dd7   :  { %15066 = vrcp.f32 %v3837_v44 }
0x1dd9   :  { %v3959_v32 = vpop.permute.xlu0 %3958 }
0x1dda   :  { %v3961_v21 = vpop.permute.xlu1 %3960 }
0x1ddd   :  { %v3963_v60 = vpop.permute.xlu0 %3962 }
0x1dde   :  { %v3965_v42 = vpop.permute.xlu1 %3964 }
0x1de0   :  { %v15065_v20 = vpop.eup %15064 }
0x1de1   :  { %v15067_v25 = vpop.eup %15066  ;;  %v3848_v41 = vmul.f32 %v15065_v20, %v15057_v23 }
0x1de2   :  { %v3847_v43 = vmul.f32 %v15067_v25, %v15059_v53 }
0x1de4   :  { %12726 = vmatprep.mubr.msk.f32.mxu0 %vm180_vm1, %v3847_v43 }
0x1de5   :  { %12727 = vmatmul.mubr.msk.f32.gmra.mrb[58].mxu0 %vm180_vm1, %v3848_v41 }
0x1de6   :  { %12737 = vmatprep.mubr.msk.f32.mxu0 %vm322_vm2, %v3959_v32 }
0x1de9   :  { %12738 = vmatmul.mubr.msk.f32.vlgmr.msra.gmra.mrb[60].mxu0 %vm322_vm2, %v3961_v21 }
0x1dea   :  { %12740 = vmatprep.mubr.msk.f32.mxu0 %vm322_vm2, %v3963_v60 }
0x1ded   :  { %12741 = vmatmul.mubr.msk.f32.gmra.mrb[62].mxu0 %vm322_vm2, %v3965_v42 }
0x1e83   :  { %v16346_v38 = vpop.f32.mrb[56].mxu0 }
0x1e84   :  { %18579 = vst [vmem:[#allocation27_spill] sm:$0xff] %v16346_v38  ;;  %v16348_v53 = vpop.f32.mrb[57].mxu0 }
0x1e85   :  { %18580 = vst [vmem:[#allocation28_spill] sm:$0xff] %v16348_v53 }
0x1eb8   :  { %v16350_v23 = vpop.f32.mrb[58].mxu0 }
0x1eb9   :  { %18581 = vst [vmem:[#allocation29_spill] sm:$0xff] %v16350_v23  ;;  %v16352_v15 = vpop.f32.mrb[59].mxu0 }
0x1eba   :  { %18582 = vst [vmem:[#allocation30_spill] sm:$0xff] %v16352_v15 }
0x1ebc   :  { %v12739_v39 = vpop.f32.mrb[60].mxu0 }
0x1ebd   :  { %v4056_v50 = vpop.f32.mrb[61].mxu0  ;;  %v4078_v54 = vsel %vm180_vm1, %v12739_v39, -inf }
0x1ebe   :  { %4079 = vmax.xlane.f32.xlu1 %v4078_v54  ;;  %v4075_v36 = vsel %vm180_vm1, %v4056_v50, -inf }
0x1ebf   :  { %4076 = vmax.xlane.f32.xlu0 %v4075_v36 }
0x1ec0   :  { %v12742_v48 = vpop.f32.mrb[62].mxu0 }
0x1ec1   :  { %v4066_v13 = vpop.f32.mrb[63].mxu0  ;;  %v4084_v44 = vsel %vm180_vm1, %v12742_v48, -inf }
0x1ec2   :  { %v4081_v49 = vsel %vm180_vm1, %v4066_v13, -inf }
0x1ec3   :  { %4082 = vmax.xlane.f32.xlu0 %v4081_v49 }
0x1ec7   :  { %4085 = vmax.xlane.f32.xlu0 %v4084_v44 }
0x1ecf   :  { %14471 = vrot.lane.b32.xlu1 %v16065_v58, %s18513_s24 }
0x1ed3   :  { %14481 = vrot.lane.b32.xlu1 %v16065_v58, %s18509_s25 }
0x1f4b   :  { %v4080_v20 = vpop.xlane.xlu1 %4079 }
0x1f4c   :  { %v4088_v25 = vsub.f32 %v12739_v39, %v4080_v20  ;;  %v4077_v43 = vpop.xlane.xlu0 %4076 }
0x1f4d   :  { %v4087_v32 = vsub.f32 %v4056_v50, %v4077_v43 }
0x1f4e   :  { %v4093_v41 = vmul.f32 1.442695, %v4088_v25 }
0x1f4f   :  { %v4091_v21 = vmul.f32 1.442695, %v4087_v32  ;;  %v14472_v60 = vpop.permute.xlu1 %14471 }
0x1f50   :  { %15068 = vpow2.f32 %v4093_v41  ;;  %v14474_v42 = vunpack.i.h.bf16 %v14472_v60  ;;  %v14473_v54 = vunpack.i.l.bf16 %v14472_v60  ;;  %v4083_v39 = vpop.xlane.xlu0 %4082 }
0x1f51   :  { %15070 = vpow2.f32 %v4091_v21  ;;  %v4089_v25 = vsub.f32 %v4066_v13, %v4083_v39 }
0x1f52   :  { %v13721_v36 = vpack.c.bf16 %v14474_v42, %v14473_v54 }
0x1f53   :  { %v4095_v32 = vmul.f32 1.442695, %v4089_v25 }
0x1f54   :  { %13722 = vmatprep.subr.bf16.mxu1 %v13721_v36  ;;  %v4086_v50 = vpop.xlane.xlu0 %4085 }
0x1f55   :  { %13724 = vmatpush3.bf16.msra.mxu1 %v13721_v36  ;;  %v4090_v20 = vsub.f32 %v12742_v48, %v4086_v50  ;;  %v14482_v48 = vpop.permute.xlu1 %14481 }
0x1f56   :  { %v14484_v54 = vunpack.i.h.bf16 %v14482_v48  ;;  %v14483_v36 = vunpack.i.l.bf16 %v14482_v48 }
0x1f57   :  { %v4097_v43 = vmul.f32 1.442695, %v4090_v20 }
0x1f58   :  { %v13729_v25 = vpack.c.bf16 %v14484_v54, %v14483_v36 }
0x1f59   :  { %15072 = vpow2.f32 %v4097_v43 }
0x1f5a   :  { %v15069_v49 = vpop.eup %15068  ;;  %15074 = vpow2.f32 %v4095_v32 }
0x1f5b   :  { %v15071_v44 = vpop.eup %15070  ;;  %v4102_v23 = vsel %vm180_vm1, %v15069_v49, 0.0 }
0x1f5c   :  { %4103 = vadd.xlane.f32.xlu0 %v4102_v23  ;;  %v4099_v15 = vsel %vm180_vm1, %v15071_v44, 0.0 }
0x1f5d   :  { %4100 = vadd.xlane.f32.xlu1 %v4099_v15 }
0x1f63   :  { %v15073_v41 = vpop.eup %15072 }
0x1f64   :  { %v15075_v21 = vpop.eup %15074  ;;  %v4108_v23 = vsel %vm180_vm1, %v15073_v41, 0.0 }
0x1f65   :  { %v4105_v15 = vsel %vm180_vm1, %v15075_v21, 0.0 }
0x1f6e   :  { %14486 = vrot.lane.b32.xlu1 %v16082_v62, %s18509_s25  ;;  %s18529_s25 = smov 28  }
0x1f72   :  { %14476 = vrot.lane.b32.xlu0 %v16082_v62, %s18513_s24  ;;  %s18633_s24 = smov 48  }
0x1f91   :  { %4109 = vadd.xlane.f32.xlu0 %v4108_v23 }
0x1f92   :  { %4106 = vadd.xlane.f32.xlu1 %v4105_v15 }
0x1fa3   :  { %4230 = vrot.lane.b32.xlu1 %v16057_v2, %s18507_s26 }
0x1fa7   :  { %4234 = vrot.lane.b32.xlu1 %v16074_v52, %s18507_s26  ;;  %4228 = vrot.lane.b32.xlu0 %v16061_v16, %s18507_s26 }
0x1fab   :  { %4232 = vrot.lane.b32.xlu0 %v16078_v14, %s18507_s26  ;;  %s18527_s26 = smov 24  }
0x1fe9   :  { %v4104_v13 = vpop.xlane.xlu0 %4103 }
0x1fea   :  { %15076 = vrcp.f32 %v4104_v13  ;;  %v4101_v60 = vpop.xlane.xlu1 %4100 }
0x1feb   :  { %15078 = vrcp.f32 %v4101_v60 }
0x1fed   :  { %v14477_v42 = vpop.permute.xlu0 %14476 }
0x1fee   :  { %v14479_v39 = vunpack.i.h.bf16 %v14477_v42  ;;  %v14478_v50 = vunpack.i.l.bf16 %v14477_v42  ;;  %v14487_v32 = vpop.permute.xlu1 %14486 }
0x1fef   :  { %v14489_v13 = vunpack.i.h.bf16 %v14487_v32  ;;  %v14488_v53 = vunpack.i.l.bf16 %v14487_v32 }
0x1ff0   :  { %v13725_v20 = vpack.c.bf16 %v14479_v39, %v14478_v50 }
0x1ff1   :  { %v13735_v48 = vpack.c.bf16 %v14489_v13, %v14488_v53 }
0x1ff2   :  { %13726 = vmatprep.subr.bf16.mxu1 %v13725_v20 }
0x1ff3   :  { %13728 = vmatpush3.bf16.msra.mxu1 %v13725_v20 }
0x1ff4   :  { %v15077_v43 = vpop.eup %15076  ;;  %13731 = vmatprep.subr.msk.bf16.mxu1 %vm15662_vm3, %v13729_v25 }
0x1ff5   :  { %v15079_v23 = vpop.eup %15078  ;;  %v4116_v38 = vmul.f32 %v15077_v43, %v15069_v49 }
0x1ff6   :  { %v4115_v15 = vmul.f32 %v15079_v23, %v15071_v44 }
0x1ff8   :  { %12751 = vmatprep.mubr.msk.f32.mxu1 %vm180_vm1, %v4115_v15 }
0x1ff9   :  { %12752 = vmatmul.mubr.msk.f32.vlgmr.msra.gmra.mrb[60].mxu1 %vm180_vm1, %v4116_v38 }
0x1ffc   :  { %13734 = vmatpush3.bf16.xpose.msk.msra.mxu1 %vm15662_vm3, %v13729_v25 }
0x1ffd   :  { %13737 = vmatprep.subr.msk.bf16.mxu1 %vm15662_vm3, %v13735_v48 }
0x2004   :  { %13740 = vmatpush3.bf16.xpose.msk.msra.mxu1 %vm15662_vm3, %v13735_v48 }
0x201e   :  { %v4110_v60 = vpop.xlane.xlu0 %4109 }
0x201f   :  { %15080 = vrcp.f32 %v4110_v60  ;;  %v4107_v44 = vpop.xlane.xlu1 %4106 }
0x2020   :  { %15082 = vrcp.f32 %v4107_v44 }
0x2022   :  { %v4229_v36 = vpop.permute.xlu0 %4228 }
0x2023   :  { %v4231_v38 = vpop.permute.xlu1 %4230 }
0x2026   :  { %v4233_v53 = vpop.permute.xlu0 %4232 }
0x2027   :  { %v4235_v50 = vpop.permute.xlu1 %4234 }
0x2029   :  { %v15081_v49 = vpop.eup %15080 }
0x202a   :  { %v15083_v42 = vpop.eup %15082  ;;  %v4118_v39 = vmul.f32 %v15081_v49, %v15073_v41 }
0x202b   :  { %v4117_v54 = vmul.f32 %v15083_v42, %v15075_v21 }
0x202d   :  { %12754 = vmatprep.mubr.msk.f32.mxu1 %vm180_vm1, %v4117_v54 }
0x202e   :  { %12755 = vmatmul.mubr.msk.f32.gmra.mrb[62].mxu1 %vm180_vm1, %v4118_v39 }
0x202f   :  { %12765 = vmatprep.mubr.msk.f32.mxu1 %vm322_vm2, %v4229_v36 }
0x2032   :  { %12766 = vmatmul.mubr.msk.f32.vlgmr.msra.gmra.mrb[64].mxu1 %vm322_vm2, %v4231_v38 }
0x2033   :  { %12768 = vmatprep.mubr.msk.f32.mxu1 %vm322_vm2, %v4233_v53 }
0x2036   :  { %12769 = vmatmul.mubr.msk.f32.gmra.mrb[66].mxu1 %vm322_vm2, %v4235_v50 }
0x20cc   :  { %v16394_v20 = vpop.f32.mrb[60].mxu1 }
0x20cd   :  { %v16396_v21 = vpop.f32.mrb[61].mxu1 }
0x2101   :  { %v16398_v41 = vpop.f32.mrb[62].mxu1 }
0x2102   :  { %18583 = vst [vmem:[#allocation31_spill] sm:$0xff] %v16398_v41  ;;  %v16400_v25 = vpop.f32.mrb[63].mxu1 }
0x2103   :  { %18584 = vst [vmem:[#allocation32_spill] sm:$0xff] %v16400_v25 }
0x2105   :  { %v12767_v43 = vpop.f32.mrb[64].mxu1 }
0x2106   :  { %v4326_v32 = vpop.f32.mrb[65].mxu1  ;;  %v4348_v23 = vsel %vm180_vm1, %v12767_v43, -inf }
0x2107   :  { %4349 = vmax.xlane.f32.xlu1 %v4348_v23  ;;  %v4345_v15 = vsel %vm180_vm1, %v4326_v32, -inf }
0x2108   :  { %4346 = vmax.xlane.f32.xlu0 %v4345_v15 }
0x2109   :  { %v12770_v13 = vpop.f32.mrb[66].mxu1 }
0x210a   :  { %v4336_v48 = vpop.f32.mrb[67].mxu1  ;;  %v4354_v44 = vsel %vm180_vm1, %v12770_v13, -inf }
0x210b   :  { %v4351_v60 = vsel %vm180_vm1, %v4336_v48, -inf }
0x210c   :  { %4352 = vmax.xlane.f32.xlu0 %v4351_v60 }
0x2110   :  { %4355 = vmax.xlane.f32.xlu0 %v4354_v44 }
0x2118   :  { %14491 = vrot.lane.b32.xlu1 %v16065_v58, %s18501_s1 }
0x211c   :  { %14501 = vrot.lane.b32.xlu1 %v16065_v58, %s18499_s27 }
0x2120   :  { %14506 = vrot.lane.b32.xlu1 %v16082_v62, %s18499_s27  ;;  %s15463_s27 = smov 8  }
0x2194   :  { %v4350_v49 = vpop.xlane.xlu1 %4349 }
0x2195   :  { %v4358_v42 = vsub.f32 %v12767_v43, %v4350_v49  ;;  %v4347_v54 = vpop.xlane.xlu0 %4346 }
0x2196   :  { %v4357_v36 = vsub.f32 %v4326_v32, %v4347_v54 }
0x2197   :  { %v4363_v39 = vmul.f32 1.442695, %v4358_v42 }
0x2198   :  { %v4361_v38 = vmul.f32 1.442695, %v4357_v36  ;;  %v14492_v53 = vpop.permute.xlu1 %14491 }
0x2199   :  { %15084 = vpow2.f32 %v4363_v39  ;;  %v14494_v50 = vunpack.i.h.bf16 %v14492_v53  ;;  %v14493_v23 = vunpack.i.l.bf16 %v14492_v53  ;;  %v4353_v43 = vpop.xlane.xlu0 %4352 }
0x219a   :  { %15086 = vpow2.f32 %v4361_v38  ;;  %v4359_v42 = vsub.f32 %v4336_v48, %v4353_v43 }
0x219b   :  { %v13741_v15 = vpack.c.bf16 %v14494_v50, %v14493_v23 }
0x219c   :  { %v4365_v36 = vmul.f32 1.442695, %v4359_v42 }
0x219d   :  { %13742 = vmatprep.subr.bf16.mxu0 %v13741_v15  ;;  %v4356_v32 = vpop.xlane.xlu0 %4355 }
0x219e   :  { %13744 = vmatpush3.bf16.msra.mxu0 %v13741_v15  ;;  %v4360_v49 = vsub.f32 %v12770_v13, %v4356_v32  ;;  %v18585_v13 = vpack.i.bf16 %v15527_v5, %v15522_v4  ;;  %v14502_v4 = vpop.permute.xlu1 %14501 }
0x21a0   :  { %v4367_v54 = vmul.f32 1.442695, %v4360_v49 }
0x21a2   :  { %15088 = vpow2.f32 %v4367_v54  ;;  %v14507_v5 = vpop.permute.xlu1 %14506 }
0x21a3   :  { %v15085_v60 = vpop.eup %15084  ;;  %15090 = vpow2.f32 %v4365_v36  ;;  %v14509_v53 = vunpack.i.h.bf16 %v14507_v5  ;;  %v14508_v50 = vunpack.i.l.bf16 %v14507_v5 }
0x21a4   :  { %v15087_v44 = vpop.eup %15086  ;;  %v4372_v25 = vsel %vm180_vm1, %v15085_v60, 0.0 }
0x21a5   :  { %4373 = vadd.xlane.f32.xlu0 %v4372_v25  ;;  %v4369_v41 = vsel %vm180_vm1, %v15087_v44, 0.0  ;;  %v13755_v15 = vpack.c.bf16 %v14509_v53, %v14508_v50 }
0x21a6   :  { %4370 = vadd.xlane.f32.xlu1 %v4369_v41 }
0x21ac   :  { %v16418_v39 = vpop.eup %15088 }
0x21ad   :  { %v16420_v25 = vpop.eup %15090  ;;  %v4378_v41 = vsel %vm180_vm1, %v16418_v39, 0.0 }
0x21b7   :  { %4500 = vrot.lane.b32.xlu1 %v16057_v2, %s18505_s28  ;;  %v4375_v2 = vsel %vm180_vm1, %v16420_v25, 0.0 }
0x21bb   :  { %14496 = vrot.lane.b32.xlu0 %v16082_v62, %s18501_s1  ;;  %s15464_s1 = smov 12  }
0x21da   :  { %4379 = vadd.xlane.f32.xlu0 %v4378_v41 }
0x21db   :  { %4376 = vadd.xlane.f32.xlu1 %v4375_v2 }
0x21ec   :  { %4504 = vrot.lane.b32.xlu1 %v16074_v52, %s18505_s28  ;;  %v14504_v52 = vunpack.i.h.bf16 %v14502_v4 }
0x21f0   :  { %14511 = vrot.lane.b32.xlu1 %v16065_v58, %s18503_s29  ;;  %4498 = vrot.lane.b32.xlu0 %v16061_v16, %s18505_s28 }
0x21f4   :  { %14521 = vrot.lane.b32.xlu1 %v18585_v13, %s18511_s30  ;;  %4502 = vrot.lane.b32.xlu0 %v16078_v14, %s18505_s28  ;;  %v14503_v14 = vunpack.i.l.bf16 %v14502_v4  ;;  %s18541_s28 = smov 20  }
0x21f8   :  { %2471 = vrot.lane.b32.xlu1 %v15800_v27, %s15462_s8  ;;  %14516 = vrot.lane.b32.xlu0 %v16082_v62, %s18503_s29  ;;  %s18543_s29 = smov 16  }
0x21fc   :  { %2487 = vrot.lane.b32.xlu1 %v15848_v37, %s15463_s27  ;;  %2473 = vrot.lane.b32.xlu0 %v15798_v24, %s15462_s8  ;;  %v13749_v24 = vpack.c.bf16 %v14504_v52, %v14503_v14 }
0x2200   :  { %2503 = vrot.lane.b32.xlu1 %v15896_v17, %s15464_s1  ;;  %2489 = vrot.lane.b32.xlu0 %v15846_v8, %s15463_s27 }
0x2232   :  { %v4374_v27 = vpop.xlane.xlu0 %4373 }
0x2233   :  { %15092 = vrcp.f32 %v4374_v27  ;;  %v4371_v16 = vpop.xlane.xlu1 %4370 }
0x2234   :  { %15094 = vrcp.f32 %v4371_v16 }
0x2236   :  { %v14497_v58 = vpop.permute.xlu0 %14496 }
0x2237   :  { %v14499_v37 = vunpack.i.h.bf16 %v14497_v58  ;;  %v14498_v62 = vunpack.i.l.bf16 %v14497_v58  ;;  %v4501_v43 = vpop.permute.xlu1 %4500 }
0x2239   :  { %v13745_v48 = vpack.c.bf16 %v14499_v37, %v14498_v62 }
0x223b   :  { %13746 = vmatprep.subr.bf16.mxu0 %v13745_v48 }
0x223c   :  { %13748 = vmatpush3.bf16.msra.mxu0 %v13745_v48 }
0x223d   :  { %v15093_v38 = vpop.eup %15092  ;;  %13751 = vmatprep.subr.msk.bf16.mxu0 %vm15662_vm3, %v13749_v24 }
0x223e   :  { %v15095_v8 = vpop.eup %15094  ;;  %v4386_v23 = vmul.f32 %v15093_v38, %v15085_v60 }
0x223f   :  { %v4385_v17 = vmul.f32 %v15095_v8, %v15087_v44 }
0x2241   :  { %12779 = vmatprep.mubr.msk.f32.mxu0 %vm180_vm1, %v4385_v17 }
0x2242   :  { %12780 = vmatmul.mubr.msk.f32.vlgmr.msra.gmra.mrb[64].mxu0 %vm180_vm1, %v4386_v23 }
0x2245   :  { %13754 = vmatpush3.bf16.xpose.msk.msra.mxu0 %vm15662_vm3, %v13749_v24 }
0x2246   :  { %13757 = vmatprep.subr.msk.bf16.mxu0 %vm15662_vm3, %v13755_v15 }
0x224d   :  { %13760 = vmatpush3.bf16.xpose.msk.msra.mxu0 %vm15662_vm3, %v13755_v15 }
0x2267   :  { %v4380_v32 = vpop.xlane.xlu0 %4379 }
0x2268   :  { %15096 = vrcp.f32 %v4380_v32  ;;  %v4377_v44 = vpop.xlane.xlu1 %4376 }
0x2269   :  { %15098 = vrcp.f32 %v4377_v44 }
0x226b   :  { %v4499_v60 = vpop.permute.xlu0 %4498 }
0x226c   :  { %v4505_v49 = vpop.permute.xlu1 %4504 }
0x226f   :  { %v4503_v42 = vpop.permute.xlu0 %4502 }
0x2270   :  { %v14512_v54 = vpop.permute.xlu1 %14511 }
0x2271   :  { %v14514_v36 = vunpack.i.h.bf16 %v14512_v54  ;;  %v14513_v41 = vunpack.i.l.bf16 %v14512_v54 }
0x2272   :  { %v15097_v2 = vpop.eup %15096 }
0x2273   :  { %v15099_v13 = vpop.eup %15098  ;;  %v14517_v4 = vpop.permute.xlu0 %14516  ;;  %v13761_v5 = vpack.c.bf16 %v14514_v36, %v14513_v41  ;;  %v4388_v52 = vmul.f32 %v15097_v2, %v16418_v39 }
0x2274   :  { %v14519_v27 = vunpack.i.h.bf16 %v14517_v4  ;;  %v14518_v16 = vunpack.i.l.bf16 %v14517_v4  ;;  %v4387_v58 = vmul.f32 %v15099_v13, %v16420_v25  ;;  %v14522_v25 = vpop.permute.xlu1 %14521 }
0x2275   :  { %13762 = vmatprep.subr.bf16.mxu1 %v13761_v5  ;;  %v14524_v37 = vunpack.i.h.bf16 %v14522_v25  ;;  %v14523_v62 = vunpack.i.l.bf16 %v14522_v25 }
0x2276   :  { %12782 = vmatprep.mubr.msk.f32.mxu0 %vm180_vm1, %v4387_v58  ;;  %13764 = vmatpush3.bf16.msra.mxu1 %v13761_v5  ;;  %v13765_v14 = vpack.c.bf16 %v14519_v27, %v14518_v16 }
0x2277   :  { %12783 = vmatmul.mubr.msk.f32.gmra.mrb[66].mxu0 %vm180_vm1, %v4388_v52  ;;  %v16468_v39 = vpack.c.bf16 %v14524_v37, %v14523_v62 }
0x2278   :  { %12793 = vmatprep.mubr.msk.f32.mxu0 %vm322_vm2, %v4499_v60  ;;  %13766 = vmatprep.subr.bf16.mxu1 %v13765_v14  ;;  %v18586_v60 = vpack.i.bf16 %v15553_v12, %v15548_v11  ;;  %v16521_v11 = vpop.permute.xlu1 %2471 }
0x227a   :  { %13768 = vmatpush3.bf16.msra.mxu1 %v13765_v14 }
0x227b   :  { %12794 = vmatmul.mubr.msk.f32.vlgmr.msra.gmra.mrb[68].mxu0 %vm322_vm2, %v4501_v43  ;;  %13770 = vmatprep.subr.bf16.mxu1 %v16468_v39 }
0x227c   :  { %12796 = vmatprep.mubr.msk.f32.mxu0 %vm322_vm2, %v4503_v42  ;;  %v16523_v12 = vpop.permute.xlu1 %2487 }
0x227f   :  { %12797 = vmatmul.mubr.msk.f32.gmra.mrb[70].mxu0 %vm322_vm2, %v4505_v49 }
0x2315   :  { %v16471_v48 = vpop.f32.mrb[64].mxu0 }
0x2316   :  { %v16473_v24 = vpop.f32.mrb[65].mxu0 }
0x234a   :  { %v16475_v38 = vpop.f32.mrb[66].mxu0 }
0x234b   :  { %v16477_v8 = vpop.f32.mrb[67].mxu0 }
0x234e   :  { %v12795_v17 = vpop.f32.mrb[68].mxu0 }
0x234f   :  { %v4596_v53 = vpop.f32.mrb[69].mxu0  ;;  %v4618_v50 = vsel %vm180_vm1, %v12795_v17, -inf }
0x2350   :  { %4619 = vmax.xlane.f32.xlu1 %v4618_v50  ;;  %v4615_v23 = vsel %vm180_vm1, %v4596_v53, -inf }
0x2351   :  { %4616 = vmax.xlane.f32.xlu0 %v4615_v23 }
0x2352   :  { %v12798_v15 = vpop.f32.mrb[70].mxu0 }
0x2353   :  { %v4606_v43 = vpop.f32.mrb[71].mxu0  ;;  %v4624_v32 = vsel %vm180_vm1, %v12798_v15, -inf }
0x2354   :  { %v4621_v44 = vsel %vm180_vm1, %v4606_v43, -inf }
0x2355   :  { %4625 = vmax.xlane.f32.xlu0 %v4624_v32 }
0x2359   :  { %4622 = vmax.xlane.f32.xlu0 %v4621_v44 }
0x2361   :  { %2505 = vrot.lane.b32.xlu1 %v15894_v45, %s15464_s1 }
0x2365   :  { %2521 = vrot.lane.b32.xlu1 %v15942_v59, %s18543_s29 }
0x2369   :  { %2537 = vrot.lane.b32.xlu1 %v15990_v10, %s18541_s28 }
0x236d   :  { %2553 = vrot.lane.b32.xlu1 %v16038_v34, %s18527_s26 }
0x236f   :  { %14526 = vrot.lane.b32.xlu0 %v18586_v60, %s18511_s30  ;;  %s18634_s30 = smov 76  }
0x2371   :  { %2569 = vrot.lane.b32.xlu1 %v16106_v56, %s18529_s25 }
0x2373   :  { %2519 = vrot.lane.b32.xlu0 %v15944_v18, %s18543_s29 }
0x2375   :  { %2477 = vrot.lane.b32.xlu1 %v15802_v28, %s15462_s8  ;;  %v16525_v28 = vpop.permute.xlu0 %2473 }
0x2377   :  { %2535 = vrot.lane.b32.xlu0 %v15992_v47, %s18541_s28 }
0x2379   :  { %2493 = vrot.lane.b32.xlu1 %v15850_v33, %s15463_s27  ;;  %v16527_v33 = vpop.permute.xlu1 %2503  ;;  %v16529_v45 = vpop.permute.xlu0 %2489 }
0x237b   :  { %2551 = vrot.lane.b32.xlu0 %v16040_v6, %s18527_s26 }
0x237d   :  { %2509 = vrot.lane.b32.xlu1 %v15898_v1, %s15464_s1 }
0x237f   :  { %2567 = vrot.lane.b32.xlu0 %v16108_v30, %s18529_s25 }
0x2381   :  { %2525 = vrot.lane.b32.xlu1 %v15946_v35, %s18543_s29 }
0x2383   :  { %2475 = vrot.lane.b32.xlu0 %v15804_v31, %s15462_s8 }
0x2387   :  { %2491 = vrot.lane.b32.xlu0 %v15852_v7, %s15463_s27 }
0x238b   :  { %2507 = vrot.lane.b32.xlu0 %v15900_v9, %s15464_s1 }
0x238f   :  { %2523 = vrot.lane.b32.xlu0 %v15948_v51, %s18543_s29 }
0x23dd   :  { %v4620_v31 = vpop.xlane.xlu1 %4619 }
0x23de   :  { %v4628_v1 = vsub.f32 %v12795_v17, %v4620_v31  ;;  %v4617_v59 = vpop.xlane.xlu0 %4616 }
0x23df   :  { %v4627_v7 = vsub.f32 %v4596_v53, %v4617_v59 }
0x23e0   :  { %v4633_v18 = vmul.f32 1.442695, %v4628_v1 }
0x23e1   :  { %v4631_v35 = vmul.f32 1.442695, %v4627_v7 }
0x23e2   :  { %15100 = vpow2.f32 %v4633_v18  ;;  %v4626_v9 = vpop.xlane.xlu0 %4625 }
0x23e3   :  { %15102 = vpow2.f32 %v4631_v35  ;;  %v4630_v51 = vsub.f32 %v12798_v15, %v4626_v9  ;;  %v2579_v35 = vsel %vm322_vm2, %v15792_v3, %v16521_v11 }
0x23e5   :  { %v4637_v10 = vmul.f32 1.442695, %v4630_v51  ;;  %v2584_v51 = vsel %vm2583_vm4, %v2579_v35, %v16523_v12 }
0x23e6   :  { %v4623_v42 = vpop.xlane.xlu0 %4622 }
0x23e7   :  { %15104 = vpow2.f32 %v4637_v10  ;;  %v4629_v54 = vsub.f32 %v4606_v43, %v4623_v42 }
0x23e9   :  { %v4635_v36 = vmul.f32 1.442695, %v4629_v54 }
0x23eb   :  { %15106 = vpow2.f32 %v4635_v36 }
0x23ec   :  { %v15101_v47 = vpop.eup %15100 }
0x23ed   :  { %v15103_v34 = vpop.eup %15102  ;;  %v4642_v6 = vsel %vm180_vm1, %v15101_v47, 0.0 }
0x23ee   :  { %4643 = vadd.xlane.f32.xlu0 %v4642_v6  ;;  %v4639_v56 = vsel %vm180_vm1, %v15103_v34, 0.0 }
0x23ef   :  { %4640 = vadd.xlane.f32.xlu1 %v4639_v56 }
0x23f1   :  { %v16533_v30 = vpop.eup %15104 }
0x23f2   :  { %v4648_v49 = vsel %vm180_vm1, %v16533_v30, 0.0 }
0x23f3   :  { %4649 = vadd.xlane.f32.xlu0 %v4648_v49 }
0x23f5   :  { %v15107_v41 = vpop.eup %15106 }
0x23f6   :  { %v4645_v2 = vsel %vm180_vm1, %v15107_v41, 0.0 }
0x2400   :  { %2541 = vrot.lane.b32.xlu1 %v15994_v40, %s18541_s28  ;;  %v14527_v40 = vpop.permute.xlu0 %14526 }
0x2401   :  { %v14529_v43 = vunpack.i.h.bf16 %v14527_v40  ;;  %v14528_v32 = vunpack.i.l.bf16 %v14527_v40 }
0x2403   :  { %v13773_v31 = vpack.c.bf16 %v14529_v43, %v14528_v32  ;;  %v18587_v43 = vld [vmem:[#allocation3_spill] sm:$0xff] }
0x2404   :  { %v2520_v13 = vpop.permute.xlu0 %2519 }
0x2408   :  { %v2536_v4 = vpop.permute.xlu0 %2535 }
0x2409   :  { %2539 = vrot.lane.b32.xlu0 %v15996_v63, %s18541_s28  ;;  %v2506_v63 = vpop.permute.xlu1 %2505 }
0x240d   :  { %2555 = vrot.lane.b32.xlu0 %v16044_v61, %s18527_s26  ;;  %v2522_v61 = vpop.permute.xlu1 %2521 }
0x2411   :  { %2571 = vrot.lane.b32.xlu0 %v16112_v46, %s18529_s25  ;;  %v16550_v5 = vpop.permute.xlu1 %2537  ;;  %v2552_v46 = vpop.permute.xlu0 %2551 }
0x2415   :  { %v16552_v27 = vpop.permute.xlu1 %2553  ;;  %v2568_v16 = vpop.permute.xlu0 %2567 }
0x2419   :  { %v16554_v58 = vpop.permute.xlu1 %2569  ;;  %v2476_v52 = vpop.permute.xlu0 %2475 }
0x241a   :  { %v2581_v12 = vsel %vm322_vm2, %v15796_v22, %v2476_v52 }
0x241d   :  { %v2478_v14 = vpop.permute.xlu1 %2477  ;;  %v2492_v25 = vpop.permute.xlu0 %2491 }
0x2421   :  { %v2508_v37 = vpop.permute.xlu0 %2507 }
0x2424   :  { %4646 = vadd.xlane.f32.xlu1 %v4645_v2 }
0x2435   :  { %2557 = vrot.lane.b32.xlu1 %v16042_v26, %s18527_s26  ;;  %v2494_v26 = vpop.permute.xlu1 %2493 }
0x2439   :  { %2573 = vrot.lane.b32.xlu1 %v16110_v57, %s18529_s25  ;;  %v2510_v62 = vpop.permute.xlu1 %2509  ;;  %v2524_v57 = vpop.permute.xlu0 %2523 }
0x243d   :  { %v2526_v17 = vpop.permute.xlu1 %2525 }
0x247b   :  { %v4644_v53 = vpop.xlane.xlu0 %4643 }
0x247c   :  { %15108 = vrcp.f32 %v4644_v53  ;;  %v4641_v50 = vpop.xlane.xlu1 %4640 }
0x247d   :  { %15110 = vrcp.f32 %v4641_v50 }
0x2480   :  { %v2542_v1 = vpop.permute.xlu1 %2541  ;;  %v4650_v59 = vpop.xlane.xlu0 %4649 }
0x2481   :  { %15112 = vrcp.f32 %v4650_v59 }
0x2484   :  { %v2540_v18 = vpop.permute.xlu0 %2539 }
0x2486   :  { %v15109_v23 = vpop.eup %15108 }
0x2487   :  { %v15111_v15 = vpop.eup %15110  ;;  %v4656_v60 = vmul.f32 %v15109_v23, %v15101_v47  ;;  %v2580_v47 = vsel %vm322_vm2, %v15790_v19, %v16525_v28 }
0x2488   :  { %v4655_v44 = vmul.f32 %v15111_v15, %v15103_v34  ;;  %v2556_v10 = vpop.permute.xlu0 %2555  ;;  %v2589_v34 = vsel %vm2588_vm5, %v2584_v51, %v16527_v33  ;;  %v2585_v6 = vsel %vm2583_vm4, %v2580_v47, %v16529_v45  ;;  %v2586_v33 = vsel %vm2583_vm4, %v2581_v12, %v2492_v25 }
0x2489   :  { %v2593_v56 = vsel %vm41_vm0, %v2589_v34, %v2520_v13  ;;  %v2590_v19 = vsel %vm2588_vm5, %v2585_v6, %v2506_v63  ;;  %v2591_v36 = vsel %vm2588_vm5, %v2586_v33, %v2508_v37 }
0x248a   :  { %12807 = vmatprep.mubr.msk.f32.mxu1 %vm180_vm1, %v4655_v44  ;;  %v2598_v11 = vsel %vm2597_vm6, %v2593_v56, %v2536_v4  ;;  %v2594_v45 = vsel %vm41_vm0, %v2590_v19, %v2522_v61  ;;  %v18588_v44 = vld [vmem:[#allocation2_spill] sm:$0xff] }
0x248b   :  { %12808 = vmatmul.mubr.msk.f32.vlgmr.msra.gmra.mrb[68].mxu1 %vm180_vm1, %v4656_v60  ;;  %v15113_v9 = vpop.eup %15112  ;;  %v2603_v28 = vsel %vm2602_vm7, %v2598_v11, %v2552_v46  ;;  %v2599_v22 = vsel %vm2597_vm6, %v2594_v45, %v16550_v5 }
0x248c   :  { %13772 = vmatpush3.bf16.msra.mxu1 %v16468_v39  ;;  %v4658_v42 = vmul.f32 %v15113_v9, %v16533_v30  ;;  %v2608_v54 = vsel %vm2607_vm8, %v2603_v28, %v2568_v16  ;;  %v2582_v30 = vsel %vm322_vm2, %v15794_v0, %v2478_v14  ;;  %v2572_v2 = vpop.permute.xlu0 %2571  ;;  %v2604_v40 = vsel %vm2602_vm7, %v2599_v22, %v16552_v27  ;;  %v18589_v9 = vld [vmem:[#allocation5_spill] sm:$0xff] }
0x248d   :  { %13774 = vmatprep.subr.bf16.mxu1 %v13773_v31  ;;  %v2587_v63 = vsel %vm2583_vm4, %v2582_v30, %v2494_v26  ;;  %v2609_v61 = vsel %vm2607_vm8, %v2604_v40, %v16554_v58  ;;  %v18537_v26 = vsub.s32 1, %v15594_v29 }
0x248e   :  { %v2592_v4 = vsel %vm2588_vm5, %v2587_v63, %v2510_v62 }
0x248f   :  { %v2596_v0 = vsel %vm41_vm0, %v2592_v4, %v2526_v17  ;;  %v18592_v4 = vld [vmem:[#allocation20_spill] sm:$0xff] }
0x2490   :  { %13776 = vmatpush3.bf16.msra.mxu1 %v13773_v31  ;;  %v2601_v27 = vsel %vm2597_vm6, %v2596_v0, %v2542_v1  ;;  %v18594_v0 = vld [vmem:[#allocation15_spill] sm:$0xff] }
0x24b1   :  { %v4647_v7 = vpop.xlane.xlu1 %4646 }
0x24b2   :  { %15114 = vrcp.f32 %v4647_v7 }
0x24b5   :  { %v2558_v49 = vpop.permute.xlu1 %2557 }
0x24b6   :  { %v2606_v52 = vsel %vm2602_vm7, %v2601_v27, %v2558_v49  ;;  %v5196_v27 = vld [vmem:[%s18486_s3 + $0x10] sm:$0xff] }
0x24b9   :  { %v2574_v16 = vpop.permute.xlu1 %2573 }
0x24ba   :  { %v2611_v14 = vsel %vm2607_vm8, %v2606_v52, %v2574_v16  ;;  %v5195_v16 = vld [vmem:[%s18486_s3 + $0x8] sm:$0xff] }
0x24bc   :  { %v15115_v39 = vpop.eup %15114 }
0x24bd   :  { %v4657_v3 = vmul.f32 %v15115_v39, %v15107_v41  ;;  %v2595_v41 = vsel %vm41_vm0, %v2591_v36, %v2524_v57  ;;  %v16618_v57 = vld [vmem:[%s18485_s5] sm:$0xff] }
0x24be   :  { %v2600_v13 = vsel %vm2597_vm6, %v2595_v41, %v2540_v18  ;;  %v16623_v17 = vrot.slane %v16618_v57, %v18537_v26 }
0x24bf   :  { %12810 = vmatprep.mubr.msk.f32.mxu1 %vm180_vm1, %v4657_v3  ;;  %v2605_v5 = vsel %vm2602_vm7, %v2600_v13, %v2556_v10  ;;  %v18590_v10 = vld [vmem:[#allocation4_spill] sm:$0xff] }
0x24c0   :  { %12811 = vmatmul.mubr.msk.f32.gmra.mrb[70].mxu1 %vm180_vm1, %v4658_v42  ;;  %v2610_v46 = vsel %vm2607_vm8, %v2605_v5, %v2572_v2  ;;  %v18593_v5 = vld [vmem:[#allocation19_spill] sm:$0xff] }
0x24c1   :  { %12821 = vmatprep.mubr.msk.f32.mxu1 %vm180_vm1, %v2608_v54 }
0x24c4   :  { %12822 = vmatmul.mubr.msk.f32.vlgmr.msra.gmra.mrb[72].mxu1 %vm180_vm1, %v2609_v61  ;;  %v18591_v61 = vld [vmem:[#allocation16_spill] sm:$0xff] }
0x24c5   :  { %12824 = vmatprep.mubr.msk.f32.mxu1 %vm180_vm1, %v2610_v46  ;;  %v5194_v46 = vld [vmem:[%s18486_s3] sm:$0xff] }
0x24c6   :  { %v13777_v52 = vpack.c.bf16 %v5195_v16, %v5194_v46 }
0x24c8   :  { %12825 = vmatmul.mubr.msk.f32.gmra.mrb[74].mxu1 %vm180_vm1, %v2611_v14  ;;  %v5197_v14 = vld [vmem:[%s18486_s3 + $0x18] sm:$0xff]  ;;  %13778 = vmatprep.subr.bf16.mxu0 %v13777_v52 }
0x24c9   :  { %13780 = vmatpush3.bf16.msra.mxu0 %v13777_v52 }
0x255e   :  { %v16606_v58 = vpop.f32.mrb[68].mxu1 }
0x255f   :  { %v16608_v25 = vpop.f32.mrb[69].mxu1 }
0x2593   :  { %v16611_v37 = vpop.f32.mrb[70].mxu1 }
0x2594   :  { %v16613_v62 = vpop.f32.mrb[71].mxu1 }
0x2597   :  { %v12823_v53 = vpop.f32.mrb[72].mxu1 }
0x2598   :  { %v5024_v50 = vadd.f32 %v12823_v53, %v16623_v17  ;;  %v5018_v23 = vpop.f32.mrb[73].mxu1  ;;  %v18595_v53 = vld [vmem:[#allocation23_spill] sm:$0xff] }
0x2599   :  { %v5019_v15 = vadd.f32 %v5018_v23, %v16623_v17  ;;  %v18596_v23 = vld [vmem:[#allocation24_spill] sm:$0xff] }
0x259a   :  { %v5058_v32 = vadd.f32 %v5024_v50, %v18587_v43  ;;  %v13781_v50 = vpack.c.bf16 %v5197_v14, %v5196_v27  ;;  %v18598_v43 = vld [vmem:[#allocation28_spill] sm:$0xff] }
0x259b   :  { %v5057_v60 = vadd.f32 %v5019_v15, %v18588_v44  ;;  %v12826_v31 = vpop.f32.mrb[74].mxu1  ;;  %v18597_v15 = vld [vmem:[#allocation18_spill] sm:$0xff] }
0x259c   :  { %v5028_v1 = vpop.f32.mrb[75].mxu1  ;;  %v5068_v59 = vsel %vm180_vm1, %v5058_v32, 0.0  ;;  %v5034_v7 = vadd.f32 %v12826_v31, %v16623_v17  ;;  %13782 = vmatprep.subr.bf16.mxu0 %v13781_v50  ;;  %v18600_v44 = vld [vmem:[#allocation22_spill] sm:$0xff] }
0x259d   :  { %v5029_v18 = vadd.f32 %v5028_v1, %v16623_v17  ;;  %5069 = vadd.xlane.f32.xlu1 %v5068_v59  ;;  %v5065_v35 = vsel %vm180_vm1, %v5057_v60, 0.0  ;;  %13784 = vmatpush3.bf16.msra.mxu0 %v13781_v50  ;;  %v18602_v31 = vld [vmem:[#allocation26_spill] sm:$0xff]  ;;  %v18607_v59 = vld [vmem:[#allocation31_spill] sm:$0xff] }
0x259e   :  { %5066 = vadd.xlane.f32.xlu0 %v5065_v35  ;;  %v5060_v39 = vadd.f32 %v5034_v7, %v18590_v10  ;;  %v18604_v1 = vld [vmem:[#allocation30_spill] sm:$0xff] }
0x259f   :  { %v5059_v51 = vadd.f32 %v5029_v18, %v18589_v9  ;;  %v5344_v18 = vld [vmem:[%s18487_s4 + $0x28] sm:$0xff] }
0x25a0   :  { %v5074_v34 = vsel %vm180_vm1, %v5060_v39, 0.0 }
0x25a1   :  { %v5071_v47 = vsel %vm180_vm1, %v5059_v51, 0.0 }
0x25a2   :  { %5072 = vadd.xlane.f32.xlu0 %v5071_v47 }
0x25a6   :  { %5075 = vadd.xlane.f32.xlu0 %v5074_v34 }
0x262a   :  { %v5070_v6 = vpop.xlane.xlu1 %5069 }
0x262b   :  { %v5091_v56 = vmul.f32 0.03125, %v5070_v6  ;;  %v5067_v3 = vpop.xlane.xlu0 %5066 }
0x262c   :  { %v5090_v11 = vmul.f32 0.03125, %v5067_v3 }
0x262d   :  { %v16637_v12 = vsub.f32 %v5058_v32, %v5091_v56  ;;  %v18599_v32 = vld [vmem:[#allocation27_spill] sm:$0xff] }
0x262e   :  { %v16639_v49 = vsub.f32 %v5057_v60, %v5090_v11  ;;  %v18601_v60 = vld [vmem:[#allocation17_spill] sm:$0xff] }
0x262f   :  { %v5073_v42 = vpop.xlane.xlu0 %5072  ;;  %v5107_v19 = vmul.f32 %v16637_v12, %v16637_v12 }
0x2630   :  { %v5092_v28 = vmul.f32 0.03125, %v5073_v42  ;;  %v5106_v33 = vmul.f32 %v16639_v49, %v16639_v49 }
0x2631   :  { %v5117_v45 = vsel %vm180_vm1, %v5107_v19, 0.0  ;;  %v18536_v19 = vsub.s32 4, %v15594_v29 }
0x2632   :  { %v16646_v54 = vsub.f32 %v5059_v51, %v5092_v28  ;;  %5118 = vadd.xlane.f32.xlu0 %v5117_v45  ;;  %v5114_v36 = vsel %vm180_vm1, %v5106_v33, 0.0 }
0x2633   :  { %5115 = vadd.xlane.f32.xlu1 %v5114_v36  ;;  %v5076_v22 = vpop.xlane.xlu0 %5075 }
0x2634   :  { %v5093_v30 = vmul.f32 0.03125, %v5076_v22  ;;  %v5108_v41 = vmul.f32 %v16646_v54, %v16646_v54  ;;  %v18535_v22 = vsub.s32 5, %v15594_v29 }
0x2636   :  { %v16651_v2 = vsub.f32 %v5060_v39, %v5093_v30  ;;  %v5120_v40 = vsel %vm180_vm1, %v5108_v41, 0.0  ;;  %v16748_v30 = vrot.slane %v16618_v57, %v18536_v19 }
0x2637   :  { %5121 = vadd.xlane.f32.xlu1 %v5120_v40 }
0x2638   :  { %v5109_v63 = vmul.f32 %v16651_v2, %v16651_v2 }
0x263a   :  { %v5123_v13 = vsel %vm180_vm1, %v5109_v63, 0.0 }
0x263b   :  { %5124 = vadd.xlane.f32.xlu0 %v5123_v13 }
0x2648   :  { %4772 = vrot.lane.b32.xlu1 %v18591_v61, %s15462_s8 }
0x264c   :  { %4788 = vrot.lane.b32.xlu1 %v18592_v4, %s15463_s27 }
0x2650   :  { %4790 = vrot.lane.b32.xlu1 %v18593_v5, %s15463_s27  ;;  %v16755_v5 = vrot.slane %v16618_v57, %v18535_v22 }
0x2651   :  { %4774 = vrot.lane.b32.xlu0 %v18594_v0, %s15462_s8 }
0x2654   :  { %4806 = vrot.lane.b32.xlu1 %v18595_v53, %s15464_s1 }
0x2655   :  { %4804 = vrot.lane.b32.xlu0 %v18596_v23, %s15464_s1 }
0x2658   :  { %4776 = vrot.lane.b32.xlu1 %v18597_v15, %s15462_s8 }
0x2659   :  { %4820 = vrot.lane.b32.xlu0 %v18598_v43, %s18543_s29 }
0x265c   :  { %4836 = vrot.lane.b32.xlu1 %v16396_v21, %s18541_s28  ;;  %v18603_v21 = vld [vmem:[#allocation21_spill] sm:$0xff] }
0x265d   :  { %4822 = vrot.lane.b32.xlu0 %v18599_v32, %s18543_s29 }
0x2660   :  { %4792 = vrot.lane.b32.xlu1 %v18600_v44, %s15463_s27 }
0x2661   :  { %4778 = vrot.lane.b32.xlu0 %v18601_v60, %s15462_s8 }
0x2664   :  { %4852 = vrot.lane.b32.xlu1 %v16473_v24, %s18527_s26  ;;  %v18605_v24 = vld [vmem:[#allocation25_spill] sm:$0xff] }
0x2665   :  { %4838 = vrot.lane.b32.xlu0 %v16394_v20, %s18541_s28  ;;  %v18606_v20 = vld [vmem:[#allocation29_spill] sm:$0xff] }
0x2668   :  { %4808 = vrot.lane.b32.xlu1 %v18602_v31, %s15464_s1 }
0x2669   :  { %4794 = vrot.lane.b32.xlu0 %v18603_v21, %s15463_s27 }
0x266c   :  { %4868 = vrot.lane.b32.xlu1 %v16608_v25, %s18529_s25  ;;  %v18608_v25 = vld [vmem:[#allocation32_spill] sm:$0xff] }
0x266d   :  { %4854 = vrot.lane.b32.xlu0 %v16471_v48, %s18527_s26  ;;  %v5339_v48 = vld [vmem:[%s18487_s4] sm:$0xff] }
0x2670   :  { %4824 = vrot.lane.b32.xlu1 %v18604_v1, %s18543_s29 }
0x2671   :  { %4810 = vrot.lane.b32.xlu0 %v18605_v24, %s15464_s1 }
0x2674   :  { %4826 = vrot.lane.b32.xlu1 %v18606_v20, %s18543_s29  ;;  %s18642_s29 = smov 36  }
0x2675   :  { %4870 = vrot.lane.b32.xlu0 %v16606_v58, %s18529_s25  ;;  %v5340_v58 = vld [vmem:[%s18487_s4 + $0x8] sm:$0xff] }
0x2676   :  { %v13785_v7 = vpack.c.bf16 %v5340_v58, %v5339_v48 }
0x2678   :  { %4842 = vrot.lane.b32.xlu1 %v18607_v59, %s18541_s28  ;;  %13786 = vmatprep.subr.bf16.mxu1 %v13785_v7  ;;  %v18609_v59 = vld [vmem:[#allocation12_spill] sm:$0xff] }
0x2679   :  { %4840 = vrot.lane.b32.xlu0 %v18608_v25, %s18541_s28  ;;  %13788 = vmatpush3.bf16.msra.mxu1 %v13785_v7  ;;  %s18641_s28 = smov 100  }
0x267c   :  { %4858 = vrot.lane.b32.xlu1 %v16475_v38, %s18527_s26  ;;  %v5341_v38 = vld [vmem:[%s18487_s4 + $0x10] sm:$0xff] }
0x267d   :  { %4856 = vrot.lane.b32.xlu0 %v16477_v8, %s18527_s26  ;;  %v5342_v8 = vld [vmem:[%s18487_s4 + $0x18] sm:$0xff]  ;;  %s18638_s26 = smov 104  }
0x2680   :  { %4874 = vrot.lane.b32.xlu1 %v16611_v37, %s18529_s25  ;;  %v13789_v37 = vpack.c.bf16 %v5342_v8, %v5341_v38  ;;  %v18610_v8 = vld [vmem:[#allocation11_spill] sm:$0xff] }
0x2681   :  { %4872 = vrot.lane.b32.xlu0 %v16613_v62, %s18529_s25  ;;  %v5343_v62 = vld [vmem:[%s18487_s4 + $0x20] sm:$0xff]  ;;  %s18637_s25 = smov 72  }
0x2682   :  { %13790 = vmatprep.subr.bf16.mxu1 %v13789_v37  ;;  %v13793_v35 = vpack.c.bf16 %v5344_v18, %v5343_v62 }
0x2683   :  { %13792 = vmatpush3.bf16.msra.mxu1 %v13789_v37 }
0x2684   :  { %13794 = vmatprep.subr.bf16.mxu1 %v13793_v35 }
0x2687   :  { %13796 = vmatpush3.bf16.msra.mxu1 %v13793_v35 }
0x26bf   :  { %v5119_v9 = vpop.xlane.xlu0 %5118 }
0x26c0   :  { %v5139_v51 = vmul.f32 0.03125, %v5119_v9  ;;  %v5116_v10 = vpop.xlane.xlu1 %5115 }
0x26c1   :  { %v5138_v39 = vmul.f32 0.03125, %v5116_v10 }
0x26c2   :  { %v5147_v47 = vadd.f32 1e-05, %v5139_v51 }
0x26c3   :  { %v5146_v34 = vadd.f32 1e-05, %v5138_v39 }
0x26c4   :  { %15116 = vrsqrt.f32 %v5147_v47  ;;  %v5122_v6 = vpop.xlane.xlu1 %5121 }
0x26c5   :  { %15118 = vrsqrt.f32 %v5146_v34  ;;  %v5140_v56 = vmul.f32 0.03125, %v5122_v6 }
0x26c7   :  { %v5148_v3 = vadd.f32 1e-05, %v5140_v56 }
0x26c8   :  { %v4773_v11 = vpop.permute.xlu1 %4772  ;;  %v5125_v42 = vpop.xlane.xlu0 %5124 }
0x26c9   :  { %15120 = vrsqrt.f32 %v5148_v3  ;;  %v5141_v28 = vmul.f32 0.03125, %v5125_v42 }
0x26cb   :  { %v5149_v33 = vadd.f32 1e-05, %v5141_v28 }
0x26cc   :  { %v4789_v45 = vpop.permute.xlu1 %4788  ;;  %v4775_v36 = vpop.permute.xlu0 %4774 }
0x26cd   :  { %15122 = vrsqrt.f32 %v5149_v33  ;;  %v4881_v37 = vsel %vm322_vm2, %v18610_v8, %v4775_v36  ;;  %v18611_v33 = vld [vmem:[#allocation14_spill] sm:$0xff] }
0x26ce   :  { %v15117_v41 = vpop.eup %15116 }
0x26cf   :  { %v15119_v40 = vpop.eup %15118  ;;  %v5163_v63 = vmul.f32 %v15117_v41, %v16637_v12 }
0x26d0   :  { %v4791_v13 = vpop.permute.xlu1 %4790  ;;  %v4805_v61 = vpop.permute.xlu0 %4804  ;;  %v5162_v4 = vmul.f32 %v15119_v40, %v16639_v49 }
0x26d1   :  { %v5175_v0 = vmul.f32 %v16748_v30, %v5163_v63  ;;  %v4885_v18 = vsel %vm2583_vm4, %v4881_v37, %v4791_v13 }
0x26d2   :  { %v5174_v46 = vmul.f32 %v16748_v30, %v5162_v4 }
0x26d3   :  { %v15121_v16 = vpop.eup %15120  ;;  %v16764_v53 = vadd.f32 %v16755_v5, %v5175_v0 }
0x26d4   :  { %v4807_v27 = vpop.permute.xlu1 %4806  ;;  %v4821_v52 = vpop.permute.xlu0 %4820  ;;  %v16760_v14 = vadd.f32 %v16755_v5, %v5174_v46  ;;  %v5164_v12 = vmul.f32 %v15121_v16, %v16646_v54 }
0x26d5   :  { %v4889_v10 = vsel %vm2588_vm5, %v4885_v18, %v4807_v27 }
0x26d6   :  { %12841 = vmatprep.mubr.msk.f32.mxu0 %vm180_vm1, %v16760_v14  ;;  %v5176_v49 = vmul.f32 %v16748_v30, %v5164_v12 }
0x26d7   :  { %v15123_v50 = vpop.eup %15122  ;;  %12842 = vmatmul.mubr.msk.f32.vlgmr.msra.gmra.mrb[72].mxu0 %vm180_vm1, %v16764_v53 }
0x26d8   :  { %v4777_v23 = vpop.permute.xlu1 %4776  ;;  %v4823_v15 = vpop.permute.xlu0 %4822  ;;  %v16772_v43 = vadd.f32 %v16755_v5, %v5176_v49  ;;  %v5165_v32 = vmul.f32 %v15123_v50, %v16651_v2  ;;  %v4880_v2 = vsel %vm322_vm2, %v18609_v59, %v4773_v11 }
0x26d9   :  { %v4884_v25 = vsel %vm2583_vm4, %v4880_v2, %v4789_v45  ;;  %v4893_v47 = vsel %vm41_vm0, %v4889_v10, %v4823_v15  ;;  %v4882_v45 = vsel %vm322_vm2, %v18611_v33, %v4777_v23 }
0x26da   :  { %12844 = vmatprep.mubr.msk.f32.mxu0 %vm180_vm1, %v16772_v43  ;;  %v5177_v54 = vmul.f32 %v16748_v30, %v5165_v32  ;;  %v4888_v38 = vsel %vm2588_vm5, %v4884_v25, %v4805_v61  ;;  %v18612_v61 = vld [vmem:[#allocation13_spill] sm:$0xff] }
0x26db   :  { %v4892_v7 = vsel %vm41_vm0, %v4888_v38, %v4821_v52 }
0x26dc   :  { %v4837_v44 = vpop.permute.xlu1 %4836  ;;  %v4779_v60 = vpop.permute.xlu0 %4778  ;;  %v16779_v31 = vadd.f32 %v16755_v5, %v5177_v54 }
0x26dd   :  { %v4896_v62 = vsel %vm2597_vm6, %v4892_v7, %v4837_v44  ;;  %v4883_v4 = vsel %vm322_vm2, %v18612_v61, %v4779_v60  ;;  %v5345_v44 = vld [vmem:[%s18487_s4 + $0x30] sm:$0xff]  ;;  %v5346_v60 = vld [vmem:[%s18487_s4 + $0x38] sm:$0xff]  ;;  %v18533_v61 = vsub.s32 3, %v15594_v29 }
0x26de   :  { %12845 = vmatmul.mubr.msk.f32.gmra.mrb[74].mxu0 %vm180_vm1, %v16779_v31 }
0x26e0   :  { %v4793_v21 = vpop.permute.xlu1 %4792  ;;  %v4839_v1 = vpop.permute.xlu0 %4838 }
0x26e1   :  { %v4897_v34 = vsel %vm2597_vm6, %v4893_v47, %v4839_v1  ;;  %v4886_v36 = vsel %vm2583_vm4, %v4882_v45, %v4793_v21  ;;  %v13797_v21 = vpack.c.bf16 %v5346_v60, %v5345_v44  ;;  %v18534_v1 = vsub.s32 2, %v15594_v29  ;;  %v18615_v45 = vld [vmem:[#allocation10_spill] sm:$0xff] }
0x26e3   :  { %13798 = vmatprep.subr.bf16.mxu1 %v13797_v21 }
0x26e4   :  { %v4853_v24 = vpop.permute.xlu1 %4852  ;;  %v4795_v20 = vpop.permute.xlu0 %4794  ;;  %13800 = vmatpush3.bf16.msra.mxu1 %v13797_v21 }
0x26e5   :  { %v4900_v35 = vsel %vm2602_vm7, %v4896_v62, %v4853_v24  ;;  %v4887_v46 = vsel %vm2583_vm4, %v4883_v4, %v4795_v20  ;;  %v16829_v24 = vrot.slane %v16618_v57, %v18534_v1 }
0x26e8   :  { %v4809_v48 = vpop.permute.xlu1 %4808  ;;  %v4855_v58 = vpop.permute.xlu0 %4854 }
0x26e9   :  { %v4901_v6 = vsel %vm2602_vm7, %v4897_v34, %v4855_v58  ;;  %v4890_v63 = vsel %vm2588_vm5, %v4886_v36, %v4809_v48  ;;  %v18614_v34 = vld [vmem:[#allocation8_spill] sm:$0xff] }
0x26ec   :  { %v4869_v9 = vpop.permute.xlu1 %4868  ;;  %v4811_v51 = vpop.permute.xlu0 %4810 }
0x26ed   :  { %v4904_v39 = vsel %vm2607_vm8, %v4900_v35, %v4869_v9  ;;  %v4891_v12 = vsel %vm2588_vm5, %v4887_v46, %v4811_v51 }
0x26ee   :  { %12827 = vmatprep.mubr.msk.f32.mxu1 %vm180_vm1, %v4904_v39  ;;  %v18613_v39 = vld [vmem:[#allocation7_spill] sm:$0xff] }
0x26f0   :  { %v4825_v56 = vpop.permute.xlu1 %4824  ;;  %v4871_v3 = vpop.permute.xlu0 %4870 }
0x26f1   :  { %v4905_v11 = vsel %vm2607_vm8, %v4901_v6, %v4871_v3  ;;  %v4894_v13 = vsel %vm41_vm0, %v4890_v63, %v4825_v56 }
0x26f2   :  { %12828 = vmatmul.mubr.msk.f32.gmra.mrb[76].mxu1 %vm180_vm1, %v4905_v11 }
0x26f4   :  { %v4827_v42 = vpop.permute.xlu1 %4826  ;;  %v4841_v28 = vpop.permute.xlu0 %4840 }
0x26f5   :  { %v4898_v0 = vsel %vm2597_vm6, %v4894_v13, %v4841_v28  ;;  %v4895_v50 = vsel %vm41_vm0, %v4891_v12, %v4827_v42 }
0x26f8   :  { %v4843_v41 = vpop.permute.xlu1 %4842  ;;  %v4857_v40 = vpop.permute.xlu0 %4856 }
0x26f9   :  { %v4902_v16 = vsel %vm2602_vm7, %v4898_v0, %v4857_v40  ;;  %v4899_v23 = vsel %vm2597_vm6, %v4895_v50, %v4843_v41  ;;  %v18616_v41 = vld [vmem:[#allocation9_spill] sm:$0xff]  ;;  %v16855_v0 = vrot.slane %v16618_v57, %v18533_v61 }
0x26fc   :  { %v4859_v27 = vpop.permute.xlu1 %4858  ;;  %v4873_v52 = vpop.permute.xlu0 %4872 }
0x26fd   :  { %v4906_v49 = vsel %vm2607_vm8, %v4902_v16, %v4873_v52  ;;  %v4903_v15 = vsel %vm2602_vm7, %v4899_v23, %v4859_v27 }
0x26fe   :  { %12830 = vmatprep.mubr.msk.f32.mxu1 %vm180_vm1, %v4906_v49 }
0x2700   :  { %v4875_v32 = vpop.permute.xlu1 %4874 }
0x2701   :  { %v4907_v54 = vsel %vm2607_vm8, %v4903_v15, %v4875_v32 }
0x2702   :  { %12831 = vmatmul.mubr.msk.f32.gmra.mrb[78].mxu1 %vm180_vm1, %v4907_v54 }
0x27aa   :  { %v12843_v20 = vpop.f32.mrb[72].mxu0 }
0x27ab   :  { %v5298_v59 = vadd.f32 %v12843_v20, %v16829_v24  ;;  %v5292_v2 = vpop.f32.mrb[73].mxu0 }
0x27ac   :  { %v5293_v25 = vadd.f32 %v5292_v2, %v16829_v24 }
0x27ad   :  { %v5332_v58 = vmax.f32 %v5298_v59, 0.0 }
0x27ae   :  { %v5331_v48 = vmax.f32 %v5293_v25, 0.0 }
0x27b0   :  { %12869 = vmatprep.mubr.msk.f32.mxu1 %vm5351_vm9, %v5331_v48 }
0x27b1   :  { %v12846_v38 = vpop.f32.mrb[74].mxu0  ;;  %12870 = vmatmul.mubr.msk.f32.vlgmr.msra.gmra.mrb[80].mxu1 %vm5351_vm9, %v5332_v58 }
0x27b2   :  { %v5308_v7 = vadd.f32 %v12846_v38, %v16829_v24  ;;  %v5302_v8 = vpop.f32.mrb[75].mxu0 }
0x27b3   :  { %v5303_v37 = vadd.f32 %v5302_v8, %v16829_v24 }
0x27b4   :  { %v5334_v18 = vmax.f32 %v5308_v7, 0.0 }
0x27b5   :  { %v5333_v62 = vmax.f32 %v5303_v37, 0.0 }
0x27b7   :  { %12872 = vmatprep.mubr.msk.f32.mxu1 %vm5351_vm9, %v5333_v62 }
0x27b8   :  { %12873 = vmatmul.mubr.msk.f32.gmra.mrb[82].mxu1 %vm5351_vm9, %v5334_v18 }
0x27c5   :  { %v12829_v35 = vpop.f32.mrb[76].mxu1 }
0x27c6   :  { %v5044_v9 = vadd.f32 %v12829_v35, %v16623_v17  ;;  %v5038_v51 = vpop.f32.mrb[77].mxu1 }
0x27c7   :  { %v5039_v10 = vadd.f32 %v5038_v51, %v16623_v17 }
0x27c8   :  { %v5062_v47 = vadd.f32 %v5044_v9, %v18613_v39 }
0x27c9   :  { %v5061_v6 = vadd.f32 %v5039_v10, %v18614_v34 }
0x27ca   :  { %v5080_v56 = vsel %vm180_vm1, %v5062_v47, 0.0 }
0x27cb   :  { %5081 = vadd.xlane.f32.xlu1 %v5080_v56  ;;  %v5077_v3 = vsel %vm180_vm1, %v5061_v6, 0.0 }
0x27cc   :  { %5078 = vadd.xlane.f32.xlu0 %v5077_v3 }
0x27d5   :  { %v12832_v11 = vpop.f32.mrb[78].mxu1 }
0x27d6   :  { %v5048_v42 = vpop.f32.mrb[79].mxu1  ;;  %v5054_v28 = vadd.f32 %v12832_v11, %v16623_v17 }
0x27d7   :  { %v5049_v33 = vadd.f32 %v5048_v42, %v16623_v17 }
0x27d8   :  { %v5064_v40 = vadd.f32 %v5054_v28, %v18616_v41 }
0x27d9   :  { %v5063_v36 = vadd.f32 %v5049_v33, %v18615_v45 }
0x27da   :  { %v5086_v13 = vsel %vm180_vm1, %v5064_v40, 0.0 }
0x27db   :  { %v5083_v63 = vsel %vm180_vm1, %v5063_v36, 0.0 }
0x27dc   :  { %5084 = vadd.xlane.f32.xlu0 %v5083_v63 }
0x27e0   :  { %5087 = vadd.xlane.f32.xlu0 %v5086_v13 }
0x2858   :  { %v5082_v16 = vpop.xlane.xlu1 %5081 }
0x2859   :  { %v5079_v4 = vpop.xlane.xlu0 %5078  ;;  %v5095_v50 = vmul.f32 0.03125, %v5082_v16 }
0x285a   :  { %v5094_v15 = vmul.f32 0.03125, %v5079_v4 }
0x285b   :  { %v16863_v21 = vsub.f32 %v5062_v47, %v5095_v50 }
0x285c   :  { %v16866_v25 = vsub.f32 %v5061_v6, %v5094_v15 }
0x285d   :  { %v5111_v8 = vmul.f32 %v16863_v21, %v16863_v21 }
0x285e   :  { %v5110_v18 = vmul.f32 %v16866_v25, %v16866_v25 }
0x2860   :  { %v5126_v35 = vsel %vm180_vm1, %v5110_v18, 0.0 }
0x2869   :  { %v5085_v46 = vpop.xlane.xlu0 %5084 }
0x286d   :  { %v5088_v32 = vpop.xlane.xlu0 %5087 }
0x286e   :  { %v5097_v20 = vmul.f32 0.03125, %v5088_v32 }
0x2870   :  { %v16871_v38 = vsub.f32 %v5064_v40, %v5097_v20 }
0x2884   :  { %v12871_v17 = vpop.f32.mrb[80].mxu1 }
0x2885   :  { %v5448_v27 = vadd.f32 %v12871_v17, %v16855_v0  ;;  %v5442_v52 = vpop.f32.mrb[81].mxu1 }
0x2886   :  { %v5443_v12 = vadd.f32 %v5442_v52, %v16855_v0 }
0x2887   :  { %v5482_v49 = vadd.f32 %v5448_v27, %v16764_v53  ;;  %v5096_v53 = vmul.f32 0.03125, %v5085_v46 }
0x2888   :  { %v5481_v23 = vadd.f32 %v5443_v12, %v16760_v14 }
0x2889   :  { %v5492_v54 = vsel %vm180_vm1, %v5482_v49, 0.0  ;;  %v16876_v37 = vsub.f32 %v5063_v36, %v5096_v53 }
0x288a   :  { %5493 = vadd.xlane.f32.xlu0 %v5492_v54  ;;  %v5489_v44 = vsel %vm180_vm1, %v5481_v23, 0.0 }
0x288b   :  { %v12874_v60 = vpop.f32.mrb[82].mxu1  ;;  %5490 = vadd.xlane.f32.xlu1 %v5489_v44  ;;  %v5112_v9 = vmul.f32 %v16876_v37, %v16876_v37 }
0x288c   :  { %v5458_v59 = vadd.f32 %v12874_v60, %v16855_v0  ;;  %v5452_v2 = vpop.f32.mrb[83].mxu1 }
0x288d   :  { %v5453_v14 = vadd.f32 %v5452_v2, %v16855_v0  ;;  %v5132_v10 = vsel %vm180_vm1, %v5112_v9, 0.0 }
0x288e   :  { %v5484_v48 = vadd.f32 %v5458_v59, %v16779_v31  ;;  %v5129_v31 = vsel %vm180_vm1, %v5111_v8, 0.0 }
0x288f   :  { %v5483_v58 = vadd.f32 %v5453_v14, %v16772_v43  ;;  %v5113_v43 = vmul.f32 %v16871_v38, %v16871_v38 }
0x2890   :  { %v5498_v7 = vsel %vm180_vm1, %v5484_v48, 0.0 }
0x2891   :  { %5499 = vadd.xlane.f32.xlu0 %v5498_v7  ;;  %v5495_v62 = vsel %vm180_vm1, %v5483_v58, 0.0  ;;  %v5135_v51 = vsel %vm180_vm1, %v5113_v43, 0.0 }
0x2892   :  { %5496 = vadd.xlane.f32.xlu1 %v5495_v62 }
0x2895   :  { %5130 = vadd.xlane.f32.xlu0 %v5129_v31 }
0x2896   :  { %5127 = vadd.xlane.f32.xlu1 %v5126_v35 }
0x2899   :  { %5136 = vadd.xlane.f32.xlu0 %v5135_v51 }
0x289a   :  { %5133 = vadd.xlane.f32.xlu1 %v5132_v10  ;;  %v16959_v10 = vld [vmem:[%s18484_s2 + $0x38] sm:$0xff] }
0x2917   :  { %v5494_v39 = vpop.xlane.xlu0 %5493 }
0x2918   :  { %v5514_v47 = vmul.f32 0.03125, %v5494_v39  ;;  %v5491_v34 = vpop.xlane.xlu1 %5490 }
0x2919   :  { %v5513_v6 = vmul.f32 0.03125, %v5491_v34 }
0x291a   :  { %v16889_v56 = vsub.f32 %v5482_v49, %v5514_v47 }
0x291b   :  { %v16891_v3 = vsub.f32 %v5481_v23, %v5513_v6 }
0x291c   :  { %v5530_v11 = vmul.f32 %v16889_v56, %v16889_v56 }
0x291d   :  { %v5529_v42 = vmul.f32 %v16891_v3, %v16891_v3 }
0x291e   :  { %v5500_v28 = vpop.xlane.xlu0 %5499  ;;  %v5540_v33 = vsel %vm180_vm1, %v5530_v11, 0.0 }
0x291f   :  { %v5516_v45 = vmul.f32 0.03125, %v5500_v28  ;;  %v5497_v36 = vpop.xlane.xlu1 %5496  ;;  %5541 = vadd.xlane.f32.xlu0 %v5540_v33  ;;  %v5537_v41 = vsel %vm180_vm1, %v5529_v42, 0.0 }
0x2920   :  { %v5515_v40 = vmul.f32 0.03125, %v5497_v36  ;;  %5538 = vadd.xlane.f32.xlu1 %v5537_v41 }
0x2921   :  { %v16899_v63 = vsub.f32 %v5484_v48, %v5516_v45 }
0x2922   :  { %v16901_v13 = vsub.f32 %v5483_v58, %v5515_v40  ;;  %v5131_v4 = vpop.xlane.xlu0 %5130 }
0x2923   :  { %v5143_v46 = vmul.f32 0.03125, %v5131_v4  ;;  %v5128_v17 = vpop.xlane.xlu1 %5127  ;;  %v5532_v16 = vmul.f32 %v16899_v63, %v16899_v63  ;;  %v18532_v4 = vsub.s32 6, %v15594_v29 }
0x2924   :  { %v5142_v27 = vmul.f32 0.03125, %v5128_v17  ;;  %v5531_v52 = vmul.f32 %v16901_v13, %v16901_v13 }
0x2925   :  { %v5151_v12 = vadd.f32 1e-05, %v5143_v46  ;;  %v5546_v49 = vsel %vm180_vm1, %v5532_v16, 0.0  ;;  %v18531_v16 = vsub.s32 7, %v15594_v29 }
0x2926   :  { %v5150_v50 = vadd.f32 1e-05, %v5142_v27  ;;  %5547 = vadd.xlane.f32.xlu0 %v5546_v49  ;;  %v5137_v23 = vpop.xlane.xlu0 %5136  ;;  %v5543_v15 = vsel %vm180_vm1, %v5531_v52, 0.0  ;;  %v16970_v27 = vrot.slane %v16618_v57, %v18532_v4 }
0x2927   :  { %15124 = vrsqrt.f32 %v5151_v12  ;;  %v5145_v32 = vmul.f32 0.03125, %v5137_v23  ;;  %5544 = vadd.xlane.f32.xlu1 %v5543_v15  ;;  %v5134_v54 = vpop.xlane.xlu1 %5133  ;;  %v16977_v23 = vrot.slane %v16618_v57, %v18531_v16 }
0x2928   :  { %15126 = vrsqrt.f32 %v5150_v50  ;;  %v5144_v44 = vmul.f32 0.03125, %v5134_v54 }
0x2929   :  { %v5153_v60 = vadd.f32 1e-05, %v5145_v32 }
0x292a   :  { %v5152_v20 = vadd.f32 1e-05, %v5144_v44 }
0x292b   :  { %15128 = vrsqrt.f32 %v5153_v60 }
0x292c   :  { %15130 = vrsqrt.f32 %v5152_v20 }
0x2931   :  { %v15125_v59 = vpop.eup %15124 }
0x2932   :  { %v15127_v2 = vpop.eup %15126  ;;  %v5167_v53 = vmul.f32 %v15125_v59, %v16863_v21 }
0x2933   :  { %v5166_v14 = vmul.f32 %v15127_v2, %v16866_v25 }
0x2934   :  { %v5179_v48 = vmul.f32 %v16748_v30, %v5167_v53 }
0x2935   :  { %v15129_v58 = vpop.eup %15128  ;;  %v5178_v7 = vmul.f32 %v16748_v30, %v5166_v14 }
0x2936   :  { %v15131_v8 = vpop.eup %15130  ;;  %v5169_v62 = vmul.f32 %v15129_v58, %v16871_v38  ;;  %v16919_v43 = vadd.f32 %v16755_v5, %v5179_v48 }
0x2937   :  { %v16915_v18 = vadd.f32 %v16755_v5, %v5178_v7  ;;  %v5168_v31 = vmul.f32 %v15131_v8, %v16876_v37  ;;  %v16940_v37 = vld [vmem:[%s18484_s2 + $0x20] sm:$0xff] }
0x2938   :  { %v5181_v21 = vmul.f32 %v16748_v30, %v5169_v62 }
0x2939   :  { %12847 = vmatprep.mubr.msk.f32.mxu0 %vm180_vm1, %v16915_v18  ;;  %v5180_v25 = vmul.f32 %v16748_v30, %v5168_v31  ;;  %v16945_v30 = vld [vmem:[%s18484_s2 + $0x28] sm:$0xff] }
0x293a   :  { %12848 = vmatmul.mubr.msk.f32.gmra.mrb[76].mxu0 %vm180_vm1, %v16919_v43  ;;  %v16931_v35 = vadd.f32 %v16755_v5, %v5181_v21  ;;  %v13801_v51 = vpack.c.bf16 %v16945_v30, %v16940_v37 }
0x293b   :  { %v16928_v38 = vadd.f32 %v16755_v5, %v5180_v25  ;;  %v16950_v5 = vld [vmem:[%s18484_s2 + $0x30] sm:$0xff]  ;;  %s18639_s2 = smov 40  }
0x293c   :  { %v13805_v47 = vpack.c.bf16 %v16959_v10, %v16950_v5  ;;  %13802 = vmatprep.subr.bf16.mxu0 %v13801_v51 }
0x293d   :  { %12850 = vmatprep.mubr.msk.f32.mxu0 %vm180_vm1, %v16928_v38  ;;  %13804 = vmatpush3.bf16.msra.mxu0 %v13801_v51 }
0x293e   :  { %12851 = vmatmul.mubr.msk.f32.gmra.mrb[78].mxu0 %vm180_vm1, %v16931_v35  ;;  %13806 = vmatprep.subr.bf16.mxu0 %v13805_v47 }
0x2941   :  { %13808 = vmatpush3.bf16.msra.mxu0 %v13805_v47  ;;  %v11445_v47 = vld [vmem:[%s18485_s5 + $0x8] sm:$0xff] }
0x29ac   :  { %v5542_v34 = vpop.xlane.xlu0 %5541 }
0x29ad   :  { %v5562_v6 = vmul.f32 0.03125, %v5542_v34  ;;  %v5539_v11 = vpop.xlane.xlu1 %5538  ;;  %v18621_v34 = vsub.s32 0, %v15594_v29 }
0x29ae   :  { %v5561_v42 = vmul.f32 0.03125, %v5539_v11 }
0x29af   :  { %v5570_v28 = vadd.f32 1e-05, %v5562_v6  ;;  %v17018_v6 = vrot.slane %v11445_v47, %v18621_v34 }
0x29b0   :  { %v5569_v33 = vadd.f32 1e-05, %v5561_v42 }
0x29b1   :  { %15132 = vrsqrt.f32 %v5570_v28 }
0x29b2   :  { %15134 = vrsqrt.f32 %v5569_v33 }
0x29b3   :  { %v5548_v45 = vpop.xlane.xlu0 %5547 }
0x29b4   :  { %v5564_v36 = vmul.f32 0.03125, %v5548_v45  ;;  %v5545_v41 = vpop.xlane.xlu1 %5544 }
0x29b5   :  { %v5563_v40 = vmul.f32 0.03125, %v5545_v41 }
0x29b6   :  { %v5572_v46 = vadd.f32 1e-05, %v5564_v36 }
0x29b7   :  { %v5571_v17 = vadd.f32 1e-05, %v5563_v40 }
0x29b8   :  { %15136 = vrsqrt.f32 %v5572_v46 }
0x29b9   :  { %15138 = vrsqrt.f32 %v5571_v17 }
0x29bb   :  { %v15133_v52 = vpop.eup %15132 }
0x29bc   :  { %v15135_v12 = vpop.eup %15134  ;;  %v5586_v49 = vmul.f32 %v15133_v52, %v16889_v56 }
0x29bd   :  { %v5585_v50 = vmul.f32 %v15135_v12, %v16891_v3 }
0x29be   :  { %v5598_v15 = vmul.f32 %v16970_v27, %v5586_v49 }
0x29bf   :  { %v5597_v32 = vmul.f32 %v16970_v27, %v5585_v50 }
0x29c0   :  { %v16985_v60 = vadd.f32 %v16977_v23, %v5598_v15 }
0x29c1   :  { %v16982_v54 = vadd.f32 %v16977_v23, %v5597_v32 }
0x29c2   :  { %v15137_v44 = vpop.eup %15136  ;;  %18618 = vst [vmem:[#allocation2_spill] sm:$0xff] %v16985_v60 }
0x29c3   :  { %18617 = vst [vmem:[#allocation3_spill] sm:$0xff] %v16982_v54  ;;  %v15139_v20 = vpop.eup %15138  ;;  %12889 = vmatprep.mubr.msk.f32.mxu0 %vm180_vm1, %v16982_v54  ;;  %v5588_v56 = vmul.f32 %v15137_v44, %v16899_v63 }
0x29c4   :  { %12890 = vmatmul.mubr.msk.f32.vlgmr.msra.gmra.mrb[80].mxu0 %vm180_vm1, %v16985_v60  ;;  %v5587_v57 = vmul.f32 %v15139_v20, %v16901_v13 }
0x29c5   :  { %v5600_v3 = vmul.f32 %v16970_v27, %v5588_v56 }
0x29c6   :  { %v5599_v59 = vmul.f32 %v16970_v27, %v5587_v57 }
0x29c7   :  { %v16999_v53 = vadd.f32 %v16977_v23, %v5600_v3 }
0x29c8   :  { %v16996_v2 = vadd.f32 %v16977_v23, %v5599_v59 }
0x29c9   :  { %18620 = vst [vmem:[#allocation4_spill] sm:$0xff] %v16999_v53 }
0x29ca   :  { %18619 = vst [vmem:[#allocation5_spill] sm:$0xff] %v16996_v2  ;;  %12892 = vmatprep.mubr.msk.f32.mxu0 %vm180_vm1, %v16996_v2 }
0x29cb   :  { %12893 = vmatmul.mubr.msk.f32.gmra.mrb[82].mxu0 %vm180_vm1, %v16999_v53 }
0x2a0d   :  { %v12849_v63 = vpop.f32.mrb[76].mxu0 }
0x2a0e   :  { %v5318_v14 = vadd.f32 %v12849_v63, %v16829_v24  ;;  %v5312_v13 = vpop.f32.mrb[77].mxu0 }
0x2a0f   :  { %v5313_v48 = vadd.f32 %v5312_v13, %v16829_v24 }
0x2a10   :  { %v5336_v8 = vmax.f32 %v5318_v14, 0.0 }
0x2a11   :  { %v5335_v58 = vmax.f32 %v5313_v48, 0.0  ;;  %v12852_v7 = vpop.f32.mrb[78].mxu0 }
0x2a12   :  { %v5328_v62 = vadd.f32 %v12852_v7, %v16829_v24  ;;  %v5322_v31 = vpop.f32.mrb[79].mxu0 }
0x2a13   :  { %v5323_v21 = vadd.f32 %v5322_v31, %v16829_v24  ;;  %12875 = vmatprep.mubr.msk.f32.mxu1 %vm5351_vm9, %v5335_v58 }
0x2a14   :  { %12876 = vmatmul.mubr.msk.f32.gmra.mrb[84].mxu1 %vm5351_vm9, %v5336_v8  ;;  %v5338_v51 = vmax.f32 %v5328_v62, 0.0 }
0x2a15   :  { %v5337_v25 = vmax.f32 %v5323_v21, 0.0 }
0x2a17   :  { %12878 = vmatprep.mubr.msk.f32.mxu1 %vm5351_vm9, %v5337_v25 }
0x2a18   :  { %12879 = vmatmul.mubr.msk.f32.gmra.mrb[86].mxu1 %vm5351_vm9, %v5338_v51 }
0x2a97   :  { %v12891_v11 = vpop.f32.mrb[80].mxu0 }
0x2a98   :  { %v17021_v24 = vadd.f32 %v12891_v11, %v17018_v6  ;;  %v5718_v42 = vpop.f32.mrb[81].mxu0 }
0x2a99   :  { %v17024_v28 = vadd.f32 %v5718_v42, %v17018_v6 }
0x2a9b   :  { %12909 = vmatprep.mubr.msk.f32.mxu1 %vm322_vm2, %v17024_v28  ;;  %v17030_v33 = vpack.i.bf16 %v17021_v24, %v17024_v28 }
0x2a9d   :  { %14531 = vrot.lane.b32.xlu1 %v17030_v33, %s15439_s9 }
0x2a9e   :  { %v12894_v45 = vpop.f32.mrb[82].mxu0 }
0x2a9f   :  { %v17035_v36 = vadd.f32 %v12894_v45, %v17018_v6  ;;  %v5728_v41 = vpop.f32.mrb[83].mxu0 }
0x2aa0   :  { %v17038_v40 = vadd.f32 %v5728_v41, %v17018_v6 }
0x2aa1   :  { %14541 = vrot.lane.b32.xlu1 %v17030_v33, %s15438_s0 }
0x2aa2   :  { %v17044_v46 = vpack.i.bf16 %v17035_v36, %v17038_v40 }
0x2aa4   :  { %14536 = vrot.lane.b32.xlu0 %v17044_v46, %s15439_s9 }
0x2aa5   :  { %14546 = vrot.lane.b32.xlu1 %v17044_v46, %s15438_s0 }
0x2aa8   :  { %6023 = vrot.lane.b32.xlu0 %v17024_v28, %s15440_s10 }
0x2aa9   :  { %6025 = vrot.lane.b32.xlu1 %v17021_v24, %s15440_s10 }
0x2aac   :  { %6027 = vrot.lane.b32.xlu0 %v17038_v40, %s15440_s10 }
0x2aad   :  { %6029 = vrot.lane.b32.xlu1 %v17035_v36, %s15440_s10 }
0x2ae7   :  { %v12877_v17 = vpop.f32.mrb[84].mxu1 }
0x2ae8   :  { %v5468_v52 = vadd.f32 %v12877_v17, %v16855_v0  ;;  %v5462_v12 = vpop.f32.mrb[85].mxu1 }
0x2ae9   :  { %v5463_v49 = vadd.f32 %v5462_v12, %v16855_v0 }
0x2aea   :  { %v5486_v50 = vadd.f32 %v5468_v52, %v16919_v43 }
0x2aeb   :  { %v5485_v15 = vadd.f32 %v5463_v49, %v16915_v18  ;;  %v12880_v32 = vpop.f32.mrb[86].mxu1 }
0x2aec   :  { %v5472_v44 = vpop.f32.mrb[87].mxu1  ;;  %v5504_v20 = vsel %vm180_vm1, %v5486_v50, 0.0  ;;  %v5478_v56 = vadd.f32 %v12880_v32, %v16855_v0 }
0x2aed   :  { %v5473_v57 = vadd.f32 %v5472_v44, %v16855_v0  ;;  %5505 = vadd.xlane.f32.xlu1 %v5504_v20  ;;  %v5501_v3 = vsel %vm180_vm1, %v5485_v15, 0.0 }
0x2aee   :  { %5502 = vadd.xlane.f32.xlu0 %v5501_v3  ;;  %v5488_v63 = vadd.f32 %v5478_v56, %v16931_v35 }
0x2aef   :  { %v5487_v59 = vadd.f32 %v5473_v57, %v16928_v38 }
0x2af0   :  { %v5510_v18 = vsel %vm180_vm1, %v5488_v63, 0.0 }
0x2af1   :  { %v5507_v43 = vsel %vm180_vm1, %v5487_v59, 0.0 }
0x2af2   :  { %5508 = vadd.xlane.f32.xlu0 %v5507_v43 }
0x2af6   :  { %5511 = vadd.xlane.f32.xlu0 %v5510_v18 }
0x2b0f   :  { %v14532_v14 = vpop.permute.xlu1 %14531 }
0x2b10   :  { %v14534_v13 = vunpack.i.h.bf16 %v14532_v14  ;;  %v14533_v48 = vunpack.i.l.bf16 %v14532_v14 }
0x2b12   :  { %v13809_v58 = vpack.c.bf16 %v14534_v13, %v14533_v48 }
0x2b13   :  { %v14542_v0 = vpop.permute.xlu1 %14541 }
0x2b14   :  { %13811 = vmatprep.subr.msk.bf16.mxu1 %vm15662_vm3, %v13809_v58  ;;  %v14544_v8 = vunpack.i.h.bf16 %v14542_v0  ;;  %v14543_v62 = vunpack.i.l.bf16 %v14542_v0 }
0x2b15   :  { %13814 = vmatpush3.bf16.xpose.msk.msra.mxu1 %vm15662_vm3, %v13809_v58 }
0x2b16   :  { %v14537_v38 = vpop.permute.xlu0 %14536  ;;  %v13829_v21 = vpack.c.bf16 %v14544_v8, %v14543_v62 }
0x2b17   :  { %v14539_v7 = vunpack.i.h.bf16 %v14537_v38  ;;  %v14538_v35 = vunpack.i.l.bf16 %v14537_v38  ;;  %v14547_v25 = vpop.permute.xlu1 %14546 }
0x2b18   :  { %v14549_v51 = vunpack.i.h.bf16 %v14547_v25  ;;  %v14548_v47 = vunpack.i.l.bf16 %v14547_v25 }
0x2b19   :  { %v13815_v31 = vpack.c.bf16 %v14539_v7, %v14538_v35 }
0x2b1a   :  { %v13835_v34 = vpack.c.bf16 %v14549_v51, %v14548_v47  ;;  %v6024_v11 = vpop.permute.xlu0 %6023 }
0x2b1b   :  { %13817 = vmatprep.subr.msk.bf16.mxu1 %vm15662_vm3, %v13815_v31  ;;  %v6026_v42 = vpop.permute.xlu1 %6025 }
0x2b1d   :  { %13820 = vmatpush3.bf16.xpose.msk.msra.mxu1 %vm15662_vm3, %v13815_v31 }
0x2b1e   :  { %13831 = vmatprep.subr.msk.bf16.mxu1 %vm15662_vm3, %v13829_v21  ;;  %v6028_v45 = vpop.permute.xlu0 %6027 }
0x2b1f   :  { %v6030_v41 = vpop.permute.xlu1 %6029 }
0x2b24   :  { %12910 = vmatmul.mubr.msk.f32.vlgmr.msra.gmra.mrb[88].mxu1 %vm322_vm2, %v17021_v24 }
0x2b25   :  { %12912 = vmatprep.mubr.msk.f32.mxu1 %vm322_vm2, %v17038_v40  ;;  %13834 = vmatpush3.bf16.xpose.msk.msra.mxu1 %vm15662_vm3, %v13829_v21 }
0x2b26   :  { %13837 = vmatprep.subr.msk.bf16.mxu1 %vm15662_vm3, %v13835_v34 }
0x2b28   :  { %12913 = vmatmul.mubr.msk.f32.gmra.mrb[90].mxu1 %vm322_vm2, %v17035_v36 }
0x2b29   :  { %12937 = vmatprep.mubr.msk.f32.mxu1 %vm322_vm2, %v6024_v11 }
0x2b2d   :  { %13840 = vmatpush3.bf16.xpose.msk.msra.mxu1 %vm15662_vm3, %v13835_v34 }
0x2b34   :  { %12938 = vmatmul.mubr.msk.f32.vlgmr.msra.gmra.mrb[92].mxu1 %vm322_vm2, %v6026_v42 }
0x2b35   :  { %12940 = vmatprep.mubr.msk.f32.mxu1 %vm322_vm2, %v6028_v45 }
0x2b38   :  { %12941 = vmatmul.mubr.msk.f32.gmra.mrb[94].mxu1 %vm322_vm2, %v6030_v41 }
0x2b7a   :  { %v5506_v17 = vpop.xlane.xlu1 %5505 }
0x2b7b   :  { %v5518_v52 = vmul.f32 0.03125, %v5506_v17  ;;  %v5503_v12 = vpop.xlane.xlu0 %5502 }
0x2b7c   :  { %v5517_v49 = vmul.f32 0.03125, %v5503_v12 }
0x2b7d   :  { %v17096_v32 = vsub.f32 %v5486_v50, %v5518_v52 }
0x2b7e   :  { %v17098_v44 = vsub.f32 %v5485_v15, %v5517_v49 }
0x2b7f   :  { %v5509_v20 = vpop.xlane.xlu0 %5508  ;;  %v5534_v56 = vmul.f32 %v17096_v32, %v17096_v32 }
0x2b80   :  { %v5519_v57 = vmul.f32 0.03125, %v5509_v20  ;;  %v5533_v3 = vmul.f32 %v17098_v44, %v17098_v44 }
0x2b81   :  { %v5552_v43 = vsel %vm180_vm1, %v5534_v56, 0.0 }
0x2b82   :  { %v17105_v18 = vsub.f32 %v5487_v59, %v5519_v57  ;;  %5553 = vadd.xlane.f32.xlu0 %v5552_v43  ;;  %v5549_v14 = vsel %vm180_vm1, %v5533_v3, 0.0 }
0x2b83   :  { %5550 = vadd.xlane.f32.xlu1 %v5549_v14  ;;  %v5512_v50 = vpop.xlane.xlu0 %5511 }
0x2b84   :  { %v5520_v13 = vmul.f32 0.03125, %v5512_v50  ;;  %v5535_v15 = vmul.f32 %v17105_v18, %v17105_v18 }
0x2b86   :  { %v17110_v48 = vsub.f32 %v5488_v63, %v5520_v13  ;;  %v5555_v58 = vsel %vm180_vm1, %v5535_v15, 0.0 }
0x2b87   :  { %5556 = vadd.xlane.f32.xlu1 %v5555_v58 }
0x2b88   :  { %v5536_v0 = vmul.f32 %v17110_v48, %v17110_v48 }
0x2b8a   :  { %v5558_v59 = vsel %vm180_vm1, %v5536_v0, 0.0 }
0x2b8b   :  { %5559 = vadd.xlane.f32.xlu0 %v5558_v59 }
0x2b98   :  { %14551 = vrot.lane.b32.xlu1 %v17030_v33, %s15441_s11 }
0x2bf7   :  { %v17118_v38 = vpop.f32.mrb[88].mxu1 }
0x2bf8   :  { %v17120_v7 = vpop.f32.mrb[89].mxu1  ;;  %v5873_v63 = vsel %vm180_vm1, %v17118_v38, -inf }
0x2bf9   :  { %5874 = vmax.xlane.f32.xlu0 %v5873_v63  ;;  %v5870_v35 = vsel %vm180_vm1, %v17120_v7, -inf }
0x2bfa   :  { %5871 = vmax.xlane.f32.xlu1 %v5870_v35 }
0x2bfb   :  { %v17126_v8 = vpop.f32.mrb[90].mxu1 }
0x2bfc   :  { %v17128_v62 = vpop.f32.mrb[91].mxu1  ;;  %v5879_v31 = vsel %vm180_vm1, %v17126_v8, -inf }
0x2bfd   :  { %5880 = vmax.xlane.f32.xlu0 %v5879_v31  ;;  %v5876_v21 = vsel %vm180_vm1, %v17128_v62, -inf }
0x2bfe   :  { %5877 = vmax.xlane.f32.xlu1 %v5876_v21 }
0x2c07   :  { %v17134_v25 = vpop.f32.mrb[92].mxu1 }
0x2c08   :  { %v17136_v51 = vpop.f32.mrb[93].mxu1  ;;  %v6143_v47 = vsel %vm180_vm1, %v17134_v25, -inf }
0x2c09   :  { %6144 = vmax.xlane.f32.xlu0 %v6143_v47  ;;  %v6140_v34 = vsel %vm180_vm1, %v17136_v51, -inf }
0x2c0a   :  { %6141 = vmax.xlane.f32.xlu1 %v6140_v34 }
0x2c0b   :  { %v17142_v11 = vpop.f32.mrb[94].mxu1 }
0x2c0c   :  { %v17144_v42 = vpop.f32.mrb[95].mxu1  ;;  %v6149_v45 = vsel %vm180_vm1, %v17142_v11, -inf }
0x2c0d   :  { %6150 = vmax.xlane.f32.xlu0 %v6149_v45 }
0x2c0f   :  { %v5554_v41 = vpop.xlane.xlu0 %5553 }
0x2c10   :  { %v5566_v17 = vmul.f32 0.03125, %v5554_v41  ;;  %v5551_v52 = vpop.xlane.xlu1 %5550 }
0x2c11   :  { %v5565_v12 = vmul.f32 0.03125, %v5551_v52 }
0x2c12   :  { %v5574_v49 = vadd.f32 1e-05, %v5566_v17 }
0x2c13   :  { %v5573_v20 = vadd.f32 1e-05, %v5565_v12 }
0x2c14   :  { %15140 = vrsqrt.f32 %v5574_v49  ;;  %v5557_v56 = vpop.xlane.xlu1 %5556 }
0x2c15   :  { %15142 = vrsqrt.f32 %v5573_v20  ;;  %v5567_v57 = vmul.f32 0.03125, %v5557_v56  ;;  %v6146_v20 = vsel %vm180_vm1, %v17144_v42, -inf }
0x2c17   :  { %v5575_v3 = vadd.f32 1e-05, %v5567_v57 }
0x2c18   :  { %v14552_v43 = vpop.permute.xlu1 %14551  ;;  %v5560_v14 = vpop.xlane.xlu0 %5559 }
0x2c19   :  { %15144 = vrsqrt.f32 %v5575_v3  ;;  %v14554_v50 = vunpack.i.h.bf16 %v14552_v43  ;;  %v14553_v13 = vunpack.i.l.bf16 %v14552_v43  ;;  %v5568_v15 = vmul.f32 0.03125, %v5560_v14 }
0x2c1b   :  { %v5576_v58 = vadd.f32 1e-05, %v5568_v15  ;;  %14561 = vrot.lane.b32.xlu1 %v17030_v33, %s15442_s12  ;;  %v13821_v0 = vpack.c.bf16 %v14554_v50, %v14553_v13 }
0x2c1d   :  { %15146 = vrsqrt.f32 %v5576_v58  ;;  %13822 = vmatprep.subr.bf16.mxu0 %v13821_v0 }
0x2c1e   :  { %v15141_v59 = vpop.eup %15140  ;;  %13824 = vmatpush3.bf16.msra.mxu0 %v13821_v0 }
0x2c1f   :  { %v15143_v63 = vpop.eup %15142  ;;  %v5590_v35 = vmul.f32 %v15141_v59, %v17096_v32 }
0x2c20   :  { %v5589_v31 = vmul.f32 %v15143_v63, %v17098_v44 }
0x2c21   :  { %v5602_v21 = vmul.f32 %v16970_v27, %v5590_v35 }
0x2c22   :  { %v5601_v47 = vmul.f32 %v16970_v27, %v5589_v31 }
0x2c23   :  { %v15145_v34 = vpop.eup %15144  ;;  %14556 = vrot.lane.b32.xlu0 %v17044_v46, %s15441_s11  ;;  %v17161_v17 = vadd.f32 %v16977_v23, %v5602_v21 }
0x2c24   :  { %v17157_v45 = vadd.f32 %v16977_v23, %v5601_v47  ;;  %v5591_v41 = vmul.f32 %v15145_v34, %v17105_v18 }
0x2c25   :  { %18623 = vst [vmem:[#allocation20_spill] sm:$0xff] %v17161_v17 }
0x2c26   :  { %18622 = vst [vmem:[#allocation16_spill] sm:$0xff] %v17157_v45  ;;  %12895 = vmatprep.mubr.msk.f32.mxu0 %vm180_vm1, %v17157_v45  ;;  %v5603_v32 = vmul.f32 %v16970_v27, %v5591_v41 }
0x2c27   :  { %v15147_v44 = vpop.eup %15146  ;;  %12896 = vmatmul.mubr.msk.f32.gmra.mrb[84].mxu0 %vm180_vm1, %v17161_v17 }
0x2c28   :  { %v17169_v52 = vadd.f32 %v16977_v23, %v5603_v32  ;;  %v5592_v12 = vmul.f32 %v15147_v44, %v17110_v48 }
0x2c2a   :  { %18624 = vst [vmem:[#allocation19_spill] sm:$0xff] %v17169_v52  ;;  %12898 = vmatprep.mubr.msk.f32.mxu0 %vm180_vm1, %v17169_v52  ;;  %v5604_v18 = vmul.f32 %v16970_v27, %v5592_v12 }
0x2c2c   :  { %v17176_v49 = vadd.f32 %v16977_v23, %v5604_v18 }
0x2c2e   :  { %18625 = vst [vmem:[#allocation15_spill] sm:$0xff] %v17176_v49  ;;  %12899 = vmatmul.mubr.msk.f32.gmra.mrb[86].mxu0 %vm180_vm1, %v17176_v49 }
0x2c3f   :  { %6147 = vmax.xlane.f32.xlu1 %v6146_v20 }
0x2c86   :  { %v5875_v56 = vpop.xlane.xlu0 %5874 }
0x2c87   :  { %v5883_v57 = vsub.f32 %v17118_v38, %v5875_v56  ;;  %v5872_v3 = vpop.xlane.xlu1 %5871 }
0x2c88   :  { %v5882_v48 = vsub.f32 %v17120_v7, %v5872_v3 }
0x2c89   :  { %v5888_v43 = vmul.f32 1.442695, %v5883_v57 }
0x2c8a   :  { %v5886_v14 = vmul.f32 1.442695, %v5882_v48  ;;  %v5881_v50 = vpop.xlane.xlu0 %5880 }
0x2c8b   :  { %15148 = vpow2.f32 %v5888_v43  ;;  %v5885_v27 = vsub.f32 %v17126_v8, %v5881_v50  ;;  %v5878_v23 = vpop.xlane.xlu1 %5877 }
0x2c8c   :  { %15150 = vpow2.f32 %v5886_v14  ;;  %v5884_v13 = vsub.f32 %v17128_v62, %v5878_v23 }
0x2c8d   :  { %v5892_v15 = vmul.f32 1.442695, %v5885_v27 }
0x2c8e   :  { %v5890_v58 = vmul.f32 1.442695, %v5884_v13 }
0x2c8f   :  { %15152 = vpow2.f32 %v5892_v15 }
0x2c90   :  { %15154 = vpow2.f32 %v5890_v58 }
0x2c95   :  { %v17186_v0 = vpop.eup %15148 }
0x2c96   :  { %v17188_v38 = vpop.eup %15150  ;;  %v6145_v59 = vpop.xlane.xlu0 %6144  ;;  %v5897_v7 = vsel %vm180_vm1, %v17186_v0, 0.0 }
0x2c97   :  { %v6153_v63 = vsub.f32 %v17134_v25, %v6145_v59  ;;  %5898 = vadd.xlane.f32.xlu0 %v5897_v7  ;;  %v6142_v8 = vpop.xlane.xlu1 %6141  ;;  %v5894_v35 = vsel %vm180_vm1, %v17188_v38, 0.0 }
0x2c98   :  { %5895 = vadd.xlane.f32.xlu1 %v5894_v35  ;;  %v6152_v43 = vsub.f32 %v17136_v51, %v6142_v8 }
0x2c99   :  { %v17195_v62 = vpop.eup %15152  ;;  %v6158_v31 = vmul.f32 1.442695, %v6153_v63 }
0x2c9a   :  { %v17197_v21 = vpop.eup %15154  ;;  %v6151_v47 = vpop.xlane.xlu0 %6150  ;;  %v5903_v34 = vsel %vm180_vm1, %v17195_v62, 0.0  ;;  %v6156_v14 = vmul.f32 1.442695, %v6152_v43 }
0x2c9b   :  { %15156 = vpow2.f32 %v6158_v31  ;;  %5904 = vadd.xlane.f32.xlu0 %v5903_v34  ;;  %v5900_v25 = vsel %vm180_vm1, %v17197_v21, 0.0  ;;  %v14562_v41 = vpop.permute.xlu1 %14561  ;;  %v6155_v50 = vsub.f32 %v17142_v11, %v6151_v47 }
0x2c9c   :  { %5901 = vadd.xlane.f32.xlu1 %v5900_v25  ;;  %v14564_v44 = vunpack.i.h.bf16 %v14562_v41  ;;  %v14563_v12 = vunpack.i.l.bf16 %v14562_v41  ;;  %15158 = vpow2.f32 %v6156_v14 }
0x2c9d   :  { %v6162_v27 = vmul.f32 1.442695, %v6155_v50 }
0x2c9e   :  { %v14557_v32 = vpop.permute.xlu0 %14556  ;;  %v13841_v57 = vpack.c.bf16 %v14564_v44, %v14563_v12 }
0x2c9f   :  { %v14559_v18 = vunpack.i.h.bf16 %v14557_v32  ;;  %v14558_v20 = vunpack.i.l.bf16 %v14557_v32  ;;  %15160 = vpow2.f32 %v6162_v27 }
0x2ca1   :  { %v13825_v56 = vpack.c.bf16 %v14559_v18, %v14558_v20 }
0x2ca3   :  { %13826 = vmatprep.subr.bf16.mxu0 %v13825_v56 }
0x2ca4   :  { %13828 = vmatpush3.bf16.msra.mxu0 %v13825_v56 }
0x2ca5   :  { %v17203_v3 = vpop.eup %15156  ;;  %13842 = vmatprep.subr.bf16.mxu0 %v13841_v57 }
0x2ca6   :  { %v6167_v48 = vsel %vm180_vm1, %v17203_v3, 0.0  ;;  %v17213_v23 = vpop.eup %15158 }
0x2ca7   :  { %6168 = vadd.xlane.f32.xlu0 %v6167_v48  ;;  %v6164_v13 = vsel %vm180_vm1, %v17213_v23, 0.0 }
0x2ca9   :  { %v17217_v15 = vpop.eup %15160 }
0x2caa   :  { %v6173_v51 = vsel %vm180_vm1, %v17217_v15, 0.0 }
0x2cad   :  { %14571 = vrot.lane.b32.xlu1 %v17030_v33, %s15443_s13 }
0x2cbd   :  { %14566 = vrot.lane.b32.xlu0 %v17044_v46, %s15442_s12 }
0x2ccc   :  { %v6148_v58 = vpop.xlane.xlu1 %6147 }
0x2ccd   :  { %v6154_v11 = vsub.f32 %v17144_v42, %v6148_v58 }
0x2ccf   :  { %v6160_v59 = vmul.f32 1.442695, %v6154_v11 }
0x2cd1   :  { %6165 = vadd.xlane.f32.xlu1 %v6164_v13  ;;  %15162 = vpow2.f32 %v6160_v59 }
0x2cdb   :  { %v15163_v35 = vpop.eup %15162 }
0x2cdc   :  { %6174 = vadd.xlane.f32.xlu0 %v6173_v51  ;;  %v6170_v47 = vsel %vm180_vm1, %v15163_v35, 0.0 }
0x2ce2   :  { %14576 = vrot.lane.b32.xlu1 %v17044_v46, %s15443_s13 }
0x2cf2   :  { %6293 = vrot.lane.b32.xlu0 %v17024_v28, %s15444_s14 }
0x2cf6   :  { %6297 = vrot.lane.b32.xlu0 %v17038_v40, %s15444_s14 }
0x2cfa   :  { %v17228_v7 = vpop.f32.mrb[84].mxu0 }
0x2cfb   :  { %v17230_v63 = vpop.f32.mrb[85].mxu0 }
0x2d01   :  { %v17232_v8 = vpop.f32.mrb[86].mxu0 }
0x2d02   :  { %v17234_v31 = vpop.f32.mrb[87].mxu0 }
0x2d06   :  { %6171 = vadd.xlane.f32.xlu1 %v6170_v47 }
0x2d17   :  { %6295 = vrot.lane.b32.xlu1 %v17021_v24, %s15444_s14 }
0x2d1b   :  { %6299 = vrot.lane.b32.xlu1 %v17035_v36, %s15444_s14 }
0x2d24   :  { %v5899_v42 = vpop.xlane.xlu0 %5898 }
0x2d25   :  { %15164 = vrcp.f32 %v5899_v42  ;;  %v5896_v34 = vpop.xlane.xlu1 %5895 }
0x2d26   :  { %15166 = vrcp.f32 %v5896_v34 }
0x2d28   :  { %v5905_v25 = vpop.xlane.xlu0 %5904 }
0x2d29   :  { %15168 = vrcp.f32 %v5905_v25  ;;  %v5902_v41 = vpop.xlane.xlu1 %5901 }
0x2d2a   :  { %15170 = vrcp.f32 %v5902_v41 }
0x2d2d   :  { %v14572_v14 = vpop.permute.xlu1 %14571 }
0x2d2f   :  { %v15165_v32 = vpop.eup %15164 }
0x2d30   :  { %v15167_v44 = vpop.eup %15166  ;;  %v5911_v18 = vmul.f32 %v15165_v32, %v17186_v0  ;;  %v14573_v0 = vunpack.i.l.bf16 %v14572_v14 }
0x2d31   :  { %v5910_v12 = vmul.f32 %v15167_v44, %v17188_v38  ;;  %v14574_v38 = vunpack.i.h.bf16 %v14572_v14 }
0x2d33   :  { %v15169_v20 = vpop.eup %15168  ;;  %12923 = vmatprep.mubr.msk.f32.mxu0 %vm180_vm1, %v5910_v12  ;;  %v13849_v11 = vpack.c.bf16 %v14574_v38, %v14573_v0 }
0x2d34   :  { %v15171_v56 = vpop.eup %15170  ;;  %v6169_v48 = vpop.xlane.xlu0 %6168  ;;  %12924 = vmatmul.mubr.msk.f32.vlgmr.msra.gmra.mrb[88].mxu0 %vm180_vm1, %v5911_v18  ;;  %v5913_v50 = vmul.f32 %v15169_v20, %v17195_v62 }
0x2d35   :  { %13844 = vmatpush3.bf16.msra.mxu0 %v13841_v57  ;;  %v5912_v43 = vmul.f32 %v15171_v56, %v17197_v21  ;;  %15172 = vrcp.f32 %v6169_v48 }
0x2d37   :  { %12926 = vmatprep.mubr.msk.f32.mxu0 %vm180_vm1, %v5912_v43 }
0x2d38   :  { %v14567_v27 = vpop.permute.xlu0 %14566  ;;  %12927 = vmatmul.mubr.msk.f32.gmra.mrb[90].mxu0 %vm180_vm1, %v5913_v50 }
0x2d39   :  { %v14569_v13 = vunpack.i.h.bf16 %v14567_v27  ;;  %v14568_v51 = vunpack.i.l.bf16 %v14567_v27 }
0x2d3b   :  { %v13845_v58 = vpack.c.bf16 %v14569_v13, %v14568_v51 }
0x2d3d   :  { %13846 = vmatprep.subr.bf16.mxu0 %v13845_v58 }
0x2d3e   :  { %13848 = vmatpush3.bf16.msra.mxu0 %v13845_v58 }
0x2d3f   :  { %13851 = vmatprep.subr.msk.bf16.mxu0 %vm15662_vm3, %v13849_v11  ;;  %v15173_v57 = vpop.eup %15172 }
0x2d40   :  { %v6181_v25 = vmul.f32 %v15173_v57, %v17203_v3 }
0x2d5e   :  { %v6166_v21 = vpop.xlane.xlu1 %6165 }
0x2d5f   :  { %15174 = vrcp.f32 %v6166_v21 }
0x2d62   :  { %v14577_v62 = vpop.permute.xlu1 %14576 }
0x2d63   :  { %v14579_v47 = vunpack.i.h.bf16 %v14577_v62  ;;  %v14578_v42 = vunpack.i.l.bf16 %v14577_v62 }
0x2d65   :  { %v13855_v41 = vpack.c.bf16 %v14579_v47, %v14578_v42 }
0x2d69   :  { %v15175_v59 = vpop.eup %15174  ;;  %v6175_v32 = vpop.xlane.xlu0 %6174 }
0x2d6a   :  { %v6180_v34 = vmul.f32 %v15175_v59, %v17213_v23  ;;  %15176 = vrcp.f32 %v6175_v32 }
0x2d6c   :  { %12951 = vmatprep.mubr.msk.f32.mxu0 %vm180_vm1, %v6180_v34 }
0x2d6d   :  { %12952 = vmatmul.mubr.msk.f32.vlgmr.msra.gmra.mrb[92].mxu0 %vm180_vm1, %v6181_v25  ;;  %v6294_v18 = vpop.permute.xlu0 %6293 }
0x2d6e   :  { %13854 = vmatpush3.bf16.xpose.msk.msra.mxu0 %vm15662_vm3, %v13849_v11 }
0x2d6f   :  { %13857 = vmatprep.subr.msk.bf16.mxu0 %vm15662_vm3, %v13855_v41 }
0x2d71   :  { %v6298_v48 = vpop.permute.xlu0 %6297 }
0x2d74   :  { %v15177_v23 = vpop.eup %15176 }
0x2d75   :  { %v6183_v20 = vmul.f32 %v15177_v23, %v17217_v15 }
0x2d76   :  { %13860 = vmatpush3.bf16.xpose.msk.msra.mxu0 %vm15662_vm3, %v13855_v41 }
0x2d93   :  { %v6172_v44 = vpop.xlane.xlu1 %6171 }
0x2d94   :  { %15178 = vrcp.f32 %v6172_v44 }
0x2d97   :  { %v6296_v56 = vpop.permute.xlu1 %6295 }
0x2d9b   :  { %v6300_v43 = vpop.permute.xlu1 %6299 }
0x2d9e   :  { %v15179_v3 = vpop.eup %15178 }
0x2d9f   :  { %v6182_v12 = vmul.f32 %v15179_v3, %v15163_v35 }
0x2da1   :  { %12954 = vmatprep.mubr.msk.f32.mxu0 %vm180_vm1, %v6182_v12 }
0x2da2   :  { %12955 = vmatmul.mubr.msk.f32.gmra.mrb[94].mxu0 %vm180_vm1, %v6183_v20 }
0x2da3   :  { %12965 = vmatprep.mubr.msk.f32.mxu0 %vm322_vm2, %v6294_v18 }
0x2da6   :  { %12966 = vmatmul.mubr.msk.f32.vlgmr.msra.gmra.mrb[96].mxu0 %vm322_vm2, %v6296_v56 }
0x2da7   :  { %12968 = vmatprep.mubr.msk.f32.mxu0 %vm322_vm2, %v6298_v48 }
0x2daa   :  { %12969 = vmatmul.mubr.msk.f32.gmra.mrb[98].mxu0 %vm322_vm2, %v6300_v43 }
0x2e07   :  { %v17268_v14 = vpop.f32.mrb[88].mxu0 }
0x2e08   :  { %18626 = vst [vmem:[#allocation23_spill] sm:$0xff] %v17268_v14  ;;  %v17270_v35 = vpop.f32.mrb[89].mxu0 }
0x2e09   :  { %18627 = vst [vmem:[#allocation24_spill] sm:$0xff] %v17270_v35 }
0x2e0b   :  { %v17272_v15 = vpop.f32.mrb[90].mxu0 }
0x2e0c   :  { %18628 = vst [vmem:[#allocation18_spill] sm:$0xff] %v17272_v15  ;;  %v17274_v50 = vpop.f32.mrb[91].mxu0 }
0x2e0d   :  { %18629 = vst [vmem:[#allocation28_spill] sm:$0xff] %v17274_v50 }
0x2e40   :  { %v17276_v27 = vpop.f32.mrb[92].mxu0 }
0x2e41   :  { %v17278_v38 = vpop.f32.mrb[93].mxu0 }
0x2e75   :  { %v17280_v0 = vpop.f32.mrb[94].mxu0 }
0x2e76   :  { %v17282_v13 = vpop.f32.mrb[95].mxu0 }
0x2e79   :  { %v12967_v51 = vpop.f32.mrb[96].mxu0 }
0x2e7a   :  { %v6391_v58 = vpop.f32.mrb[97].mxu0  ;;  %v6413_v11 = vsel %vm180_vm1, %v12967_v51, -inf }
0x2e7b   :  { %6414 = vmax.xlane.f32.xlu1 %v6413_v11  ;;  %v6410_v21 = vsel %vm180_vm1, %v6391_v58, -inf }
0x2e7c   :  { %6411 = vmax.xlane.f32.xlu0 %v6410_v21 }
0x2e7d   :  { %v12970_v62 = vpop.f32.mrb[98].mxu0 }
0x2e7e   :  { %v6401_v57 = vpop.f32.mrb[99].mxu0  ;;  %v6419_v47 = vsel %vm180_vm1, %v12970_v62, -inf }
0x2e7f   :  { %v6416_v59 = vsel %vm180_vm1, %v6401_v57, -inf }
0x2e80   :  { %6417 = vmax.xlane.f32.xlu0 %v6416_v59 }
0x2e84   :  { %6420 = vmax.xlane.f32.xlu0 %v6419_v47 }
0x2e8c   :  { %14581 = vrot.lane.b32.xlu1 %v17030_v33, %s15445_s15 }
0x2e90   :  { %14591 = vrot.lane.b32.xlu1 %v17030_v33, %s15446_s16 }
0x2f08   :  { %v6415_v42 = vpop.xlane.xlu1 %6414 }
0x2f09   :  { %v6423_v34 = vsub.f32 %v12967_v51, %v6415_v42  ;;  %v6412_v25 = vpop.xlane.xlu0 %6411 }
0x2f0a   :  { %v6422_v41 = vsub.f32 %v6391_v58, %v6412_v25 }
0x2f0b   :  { %v6428_v32 = vmul.f32 1.442695, %v6423_v34 }
0x2f0c   :  { %v6426_v44 = vmul.f32 1.442695, %v6422_v41  ;;  %v14582_v23 = vpop.permute.xlu1 %14581 }
0x2f0d   :  { %15180 = vpow2.f32 %v6428_v32  ;;  %v14584_v3 = vunpack.i.h.bf16 %v14582_v23  ;;  %v14583_v12 = vunpack.i.l.bf16 %v14582_v23  ;;  %v6418_v51 = vpop.xlane.xlu0 %6417 }
0x2f0e   :  { %15182 = vpow2.f32 %v6426_v44  ;;  %v6424_v21 = vsub.f32 %v6401_v57, %v6418_v51 }
0x2f0f   :  { %v13861_v18 = vpack.c.bf16 %v14584_v3, %v14583_v12 }
0x2f10   :  { %v6430_v47 = vmul.f32 1.442695, %v6424_v21 }
0x2f11   :  { %13862 = vmatprep.subr.bf16.mxu1 %v13861_v18  ;;  %v6421_v58 = vpop.xlane.xlu0 %6420 }
0x2f12   :  { %13864 = vmatpush3.bf16.msra.mxu1 %v13861_v18  ;;  %v6425_v11 = vsub.f32 %v12970_v62, %v6421_v58  ;;  %v14592_v62 = vpop.permute.xlu1 %14591 }
0x2f13   :  { %v14594_v23 = vunpack.i.h.bf16 %v14592_v62  ;;  %v14593_v3 = vunpack.i.l.bf16 %v14592_v62 }
0x2f14   :  { %v6432_v59 = vmul.f32 1.442695, %v6425_v11 }
0x2f16   :  { %15184 = vpow2.f32 %v6432_v59 }
0x2f17   :  { %v15181_v20 = vpop.eup %15180  ;;  %15186 = vpow2.f32 %v6430_v47 }
0x2f18   :  { %v15183_v56 = vpop.eup %15182  ;;  %v6437_v48 = vsel %vm180_vm1, %v15181_v20, 0.0 }
0x2f19   :  { %6438 = vadd.xlane.f32.xlu0 %v6437_v48  ;;  %v6434_v43 = vsel %vm180_vm1, %v15183_v56, 0.0 }
0x2f1a   :  { %6435 = vadd.xlane.f32.xlu1 %v6434_v43  ;;  %v13869_v43 = vpack.c.bf16 %v14594_v23, %v14593_v3 }
0x2f20   :  { %v15185_v42 = vpop.eup %15184 }
0x2f21   :  { %v15187_v34 = vpop.eup %15186  ;;  %v6443_v25 = vsel %vm180_vm1, %v15185_v42, 0.0 }
0x2f22   :  { %v6440_v41 = vsel %vm180_vm1, %v15187_v34, 0.0 }
0x2f2b   :  { %14596 = vrot.lane.b32.xlu1 %v17044_v46, %s15446_s16 }
0x2f2f   :  { %14586 = vrot.lane.b32.xlu0 %v17044_v46, %s15445_s15 }
0x2f4e   :  { %6444 = vadd.xlane.f32.xlu0 %v6443_v25 }
0x2f4f   :  { %6441 = vadd.xlane.f32.xlu1 %v6440_v41 }
0x2f60   :  { %6565 = vrot.lane.b32.xlu1 %v17021_v24, %s15447_s17 }
0x2f64   :  { %6569 = vrot.lane.b32.xlu1 %v17035_v36, %s15447_s17  ;;  %6563 = vrot.lane.b32.xlu0 %v17024_v28, %s15447_s17 }
0x2f68   :  { %6567 = vrot.lane.b32.xlu0 %v17038_v40, %s15447_s17 }
0x2fa6   :  { %v6439_v57 = vpop.xlane.xlu0 %6438 }
0x2fa7   :  { %15188 = vrcp.f32 %v6439_v57  ;;  %v6436_v32 = vpop.xlane.xlu1 %6435 }
0x2fa8   :  { %15190 = vrcp.f32 %v6436_v32 }
0x2faa   :  { %v14587_v44 = vpop.permute.xlu0 %14586 }
0x2fab   :  { %v14589_v12 = vunpack.i.h.bf16 %v14587_v44  ;;  %v14588_v18 = vunpack.i.l.bf16 %v14587_v44  ;;  %v14597_v58 = vpop.permute.xlu1 %14596 }
0x2fac   :  { %v14599_v47 = vunpack.i.h.bf16 %v14597_v58  ;;  %v14598_v25 = vunpack.i.l.bf16 %v14597_v58 }
0x2fad   :  { %v13865_v48 = vpack.c.bf16 %v14589_v12, %v14588_v18 }
0x2fae   :  { %v13875_v41 = vpack.c.bf16 %v14599_v47, %v14598_v25 }
0x2faf   :  { %13866 = vmatprep.subr.bf16.mxu1 %v13865_v48 }
0x2fb0   :  { %13868 = vmatpush3.bf16.msra.mxu1 %v13865_v48 }
0x2fb1   :  { %v15189_v51 = vpop.eup %15188  ;;  %13871 = vmatprep.subr.msk.bf16.mxu1 %vm15662_vm3, %v13869_v43 }
0x2fb2   :  { %v15191_v11 = vpop.eup %15190  ;;  %v6451_v59 = vmul.f32 %v15189_v51, %v15181_v20 }
0x2fb3   :  { %v6450_v21 = vmul.f32 %v15191_v11, %v15183_v56 }
0x2fb5   :  { %12979 = vmatprep.mubr.msk.f32.mxu1 %vm180_vm1, %v6450_v21 }
0x2fb6   :  { %12980 = vmatmul.mubr.msk.f32.vlgmr.msra.gmra.mrb[96].mxu1 %vm180_vm1, %v6451_v59 }
0x2fb9   :  { %13874 = vmatpush3.bf16.xpose.msk.msra.mxu1 %vm15662_vm3, %v13869_v43 }
0x2fba   :  { %13877 = vmatprep.subr.msk.bf16.mxu1 %vm15662_vm3, %v13875_v41 }
0x2fc1   :  { %13880 = vmatpush3.bf16.xpose.msk.msra.mxu1 %vm15662_vm3, %v13875_v41 }
0x2fdb   :  { %v6445_v62 = vpop.xlane.xlu0 %6444 }
0x2fdc   :  { %15192 = vrcp.f32 %v6445_v62  ;;  %v6442_v56 = vpop.xlane.xlu1 %6441 }
0x2fdd   :  { %15194 = vrcp.f32 %v6442_v56 }
0x2fdf   :  { %v6564_v44 = vpop.permute.xlu0 %6563 }
0x2fe0   :  { %v6566_v3 = vpop.permute.xlu1 %6565 }
0x2fe3   :  { %v6568_v12 = vpop.permute.xlu0 %6567 }
0x2fe4   :  { %v6570_v18 = vpop.permute.xlu1 %6569 }
0x2fe6   :  { %v15193_v20 = vpop.eup %15192 }
0x2fe7   :  { %v15195_v57 = vpop.eup %15194  ;;  %v6453_v23 = vmul.f32 %v15193_v20, %v15185_v42 }
0x2fe8   :  { %v6452_v32 = vmul.f32 %v15195_v57, %v15187_v34 }
0x2fea   :  { %12982 = vmatprep.mubr.msk.f32.mxu1 %vm180_vm1, %v6452_v32 }
0x2feb   :  { %12983 = vmatmul.mubr.msk.f32.gmra.mrb[98].mxu1 %vm180_vm1, %v6453_v23 }
0x2fec   :  { %12993 = vmatprep.mubr.msk.f32.mxu1 %vm322_vm2, %v6564_v44 }
0x2fef   :  { %12994 = vmatmul.mubr.msk.f32.vlgmr.msra.gmra.mrb[100].mxu1 %vm322_vm2, %v6566_v3 }
0x2ff0   :  { %12996 = vmatprep.mubr.msk.f32.mxu1 %vm322_vm2, %v6568_v12 }
0x2ff3   :  { %12997 = vmatmul.mubr.msk.f32.gmra.mrb[102].mxu1 %vm322_vm2, %v6570_v18 }
0x3089   :  { %v17324_v48 = vpop.f32.mrb[96].mxu1 }
0x308a   :  { %v17326_v34 = vpop.f32.mrb[97].mxu1 }
0x30be   :  { %v17328_v42 = vpop.f32.mrb[98].mxu1 }
0x30bf   :  { %v17330_v43 = vpop.f32.mrb[99].mxu1 }
0x30c2   :  { %v12995_v51 = vpop.f32.mrb[100].mxu1 }
0x30c3   :  { %v6661_v58 = vpop.f32.mrb[101].mxu1  ;;  %v6683_v11 = vsel %vm180_vm1, %v12995_v51, -inf }
0x30c4   :  { %6684 = vmax.xlane.f32.xlu1 %v6683_v11  ;;  %v6680_v21 = vsel %vm180_vm1, %v6661_v58, -inf }
0x30c5   :  { %6681 = vmax.xlane.f32.xlu0 %v6680_v21 }
0x30c6   :  { %v12998_v59 = vpop.f32.mrb[102].mxu1 }
0x30c7   :  { %v6671_v47 = vpop.f32.mrb[103].mxu1  ;;  %v6689_v41 = vsel %vm180_vm1, %v12998_v59, -inf }
0x30c8   :  { %v6686_v25 = vsel %vm180_vm1, %v6671_v47, -inf }
0x30c9   :  { %6687 = vmax.xlane.f32.xlu0 %v6686_v25 }
0x30cd   :  { %6690 = vmax.xlane.f32.xlu0 %v6689_v41 }
0x30d5   :  { %14601 = vrot.lane.b32.xlu1 %v17030_v33, %s18630_s21 }
0x30d9   :  { %14611 = vrot.lane.b32.xlu1 %v17030_v33, %s18631_s22 }
0x3151   :  { %v6685_v62 = vpop.xlane.xlu1 %6684 }
0x3152   :  { %v6693_v56 = vsub.f32 %v12995_v51, %v6685_v62  ;;  %v6682_v20 = vpop.xlane.xlu0 %6681 }
0x3153   :  { %v6692_v57 = vsub.f32 %v6661_v58, %v6682_v20 }
0x3154   :  { %v6698_v32 = vmul.f32 1.442695, %v6693_v56 }
0x3155   :  { %v6696_v44 = vmul.f32 1.442695, %v6692_v57  ;;  %v14602_v23 = vpop.permute.xlu1 %14601 }
0x3156   :  { %15196 = vpow2.f32 %v6698_v32  ;;  %v14604_v3 = vunpack.i.h.bf16 %v14602_v23  ;;  %v14603_v12 = vunpack.i.l.bf16 %v14602_v23  ;;  %v6688_v51 = vpop.xlane.xlu0 %6687 }
0x3157   :  { %15198 = vpow2.f32 %v6696_v44  ;;  %v6694_v56 = vsub.f32 %v6671_v47, %v6688_v51 }
0x3158   :  { %v13881_v18 = vpack.c.bf16 %v14604_v3, %v14603_v12 }
0x3159   :  { %v6700_v57 = vmul.f32 1.442695, %v6694_v56 }
0x315a   :  { %13882 = vmatprep.subr.bf16.mxu0 %v13881_v18  ;;  %v6691_v58 = vpop.xlane.xlu0 %6690 }
0x315b   :  { %13884 = vmatpush3.bf16.msra.mxu0 %v13881_v18  ;;  %v6695_v62 = vsub.f32 %v12998_v59, %v6691_v58  ;;  %v14612_v59 = vpop.permute.xlu1 %14611 }
0x315d   :  { %v6702_v20 = vmul.f32 1.442695, %v6695_v62 }
0x315f   :  { %15200 = vpow2.f32 %v6702_v20 }
0x3160   :  { %v15197_v11 = vpop.eup %15196  ;;  %15202 = vpow2.f32 %v6700_v57 }
0x3161   :  { %v15199_v21 = vpop.eup %15198  ;;  %v6707_v25 = vsel %vm180_vm1, %v15197_v11, 0.0 }
0x3162   :  { %6708 = vadd.xlane.f32.xlu0 %v6707_v25  ;;  %v6704_v41 = vsel %vm180_vm1, %v15199_v21, 0.0  ;;  %v14614_v25 = vunpack.i.h.bf16 %v14612_v59 }
0x3163   :  { %6705 = vadd.xlane.f32.xlu1 %v6704_v41  ;;  %v14613_v41 = vunpack.i.l.bf16 %v14612_v59 }
0x3165   :  { %v13889_v56 = vpack.c.bf16 %v14614_v25, %v14613_v41 }
0x3169   :  { %v15201_v32 = vpop.eup %15200 }
0x316a   :  { %v15203_v44 = vpop.eup %15202  ;;  %v6713_v23 = vsel %vm180_vm1, %v15201_v32, 0.0 }
0x316b   :  { %v6710_v3 = vsel %vm180_vm1, %v15203_v44, 0.0 }
0x3174   :  { %14616 = vrot.lane.b32.xlu1 %v17044_v46, %s18631_s22 }
0x3178   :  { %14606 = vrot.lane.b32.xlu0 %v17044_v46, %s18630_s21 }
0x3197   :  { %6714 = vadd.xlane.f32.xlu0 %v6713_v23 }
0x3198   :  { %6711 = vadd.xlane.f32.xlu1 %v6710_v3 }
0x31a9   :  { %6835 = vrot.lane.b32.xlu1 %v17021_v24, %s18632_s23 }
0x31ad   :  { %6839 = vrot.lane.b32.xlu1 %v17035_v36, %s18632_s23  ;;  %6833 = vrot.lane.b32.xlu0 %v17024_v28, %s18632_s23 }
0x31b1   :  { %6837 = vrot.lane.b32.xlu0 %v17038_v40, %s18632_s23 }
0x31ef   :  { %v6709_v47 = vpop.xlane.xlu0 %6708 }
0x31f0   :  { %15204 = vrcp.f32 %v6709_v47  ;;  %v6706_v12 = vpop.xlane.xlu1 %6705 }
0x31f1   :  { %15206 = vrcp.f32 %v6706_v12 }
0x31f3   :  { %v14607_v18 = vpop.permute.xlu0 %14606 }
0x31f4   :  { %v14609_v51 = vunpack.i.h.bf16 %v14607_v18  ;;  %v14608_v58 = vunpack.i.l.bf16 %v14607_v18  ;;  %v14617_v57 = vpop.permute.xlu1 %14616 }
0x31f5   :  { %v14619_v47 = vunpack.i.h.bf16 %v14617_v57  ;;  %v14618_v4 = vunpack.i.l.bf16 %v14617_v57 }
0x31f6   :  { %v13885_v62 = vpack.c.bf16 %v14609_v51, %v14608_v58 }
0x31f7   :  { %v13895_v59 = vpack.c.bf16 %v14619_v47, %v14618_v4 }
0x31f8   :  { %13886 = vmatprep.subr.bf16.mxu0 %v13885_v62 }
0x31f9   :  { %13888 = vmatpush3.bf16.msra.mxu0 %v13885_v62 }
0x31fa   :  { %v15205_v20 = vpop.eup %15204  ;;  %13891 = vmatprep.subr.msk.bf16.mxu0 %vm15662_vm3, %v13889_v56 }
0x31fb   :  { %v15207_v23 = vpop.eup %15206  ;;  %v6721_v16 = vmul.f32 %v15205_v20, %v15197_v11 }
0x31fc   :  { %v6720_v3 = vmul.f32 %v15207_v23, %v15199_v21 }
0x31fe   :  { %13007 = vmatprep.mubr.msk.f32.mxu0 %vm180_vm1, %v6720_v3 }
0x31ff   :  { %13008 = vmatmul.mubr.msk.f32.vlgmr.msra.gmra.mrb[100].mxu0 %vm180_vm1, %v6721_v16 }
0x3202   :  { %13894 = vmatpush3.bf16.xpose.msk.msra.mxu0 %vm15662_vm3, %v13889_v56 }
0x3203   :  { %13897 = vmatprep.subr.msk.bf16.mxu0 %vm15662_vm3, %v13895_v59 }
0x320a   :  { %13900 = vmatpush3.bf16.xpose.msk.msra.mxu0 %vm15662_vm3, %v13895_v59 }
0x3224   :  { %v6715_v12 = vpop.xlane.xlu0 %6714 }
0x3225   :  { %15208 = vrcp.f32 %v6715_v12  ;;  %v6712_v21 = vpop.xlane.xlu1 %6711 }
0x3226   :  { %15210 = vrcp.f32 %v6712_v21 }
0x3228   :  { %v6834_v41 = vpop.permute.xlu0 %6833 }
0x3229   :  { %v6836_v4 = vpop.permute.xlu1 %6835 }
0x322c   :  { %v6838_v16 = vpop.permute.xlu0 %6837 }
0x322d   :  { %v6840_v58 = vpop.permute.xlu1 %6839 }
0x322f   :  { %v15209_v11 = vpop.eup %15208 }
0x3230   :  { %v15211_v18 = vpop.eup %15210  ;;  %v6723_v51 = vmul.f32 %v15209_v11, %v15201_v32 }
0x3231   :  { %v6722_v25 = vmul.f32 %v15211_v18, %v15203_v44 }
0x3233   :  { %13010 = vmatprep.mubr.msk.f32.mxu0 %vm180_vm1, %v6722_v25 }
0x3234   :  { %13011 = vmatmul.mubr.msk.f32.gmra.mrb[102].mxu0 %vm180_vm1, %v6723_v51 }
0x3235   :  { %13021 = vmatprep.mubr.msk.f32.mxu0 %vm322_vm2, %v6834_v41 }
0x3238   :  { %13022 = vmatmul.mubr.msk.f32.vlgmr.msra.gmra.mrb[104].mxu0 %vm322_vm2, %v6836_v4 }
0x3239   :  { %13024 = vmatprep.mubr.msk.f32.mxu0 %vm322_vm2, %v6838_v16 }
0x323c   :  { %13025 = vmatmul.mubr.msk.f32.gmra.mrb[106].mxu0 %vm322_vm2, %v6840_v58 }
0x32d2   :  { %v17372_v62 = vpop.f32.mrb[100].mxu0 }
0x32d3   :  { %v17374_v44 = vpop.f32.mrb[101].mxu0 }
0x3307   :  { %v17376_v32 = vpop.f32.mrb[102].mxu0 }
0x3308   :  { %v17378_v56 = vpop.f32.mrb[103].mxu0 }
0x330b   :  { %v13023_v20 = vpop.f32.mrb[104].mxu0 }
0x330c   :  { %v6931_v57 = vpop.f32.mrb[105].mxu0  ;;  %v6953_v23 = vsel %vm180_vm1, %v13023_v20, -inf }
0x330d   :  { %6954 = vmax.xlane.f32.xlu1 %v6953_v23  ;;  %v6950_v3 = vsel %vm180_vm1, %v6931_v57, -inf }
0x330e   :  { %6951 = vmax.xlane.f32.xlu0 %v6950_v3 }
0x330f   :  { %v13026_v47 = vpop.f32.mrb[106].mxu0 }
0x3310   :  { %v6941_v59 = vpop.f32.mrb[107].mxu0  ;;  %v6959_v21 = vsel %vm180_vm1, %v13026_v47, -inf }
0x3311   :  { %v6956_v12 = vsel %vm180_vm1, %v6941_v59, -inf }
0x3312   :  { %6957 = vmax.xlane.f32.xlu0 %v6956_v12 }
0x3316   :  { %6960 = vmax.xlane.f32.xlu0 %v6959_v21 }
0x331e   :  { %14621 = vrot.lane.b32.xlu1 %v17030_v33, %s18633_s24 }
0x3322   :  { %14631 = vrot.lane.b32.xlu1 %v17030_v33, %s18634_s30 }
0x339a   :  { %v6955_v11 = vpop.xlane.xlu1 %6954 }
0x339b   :  { %v6963_v18 = vsub.f32 %v13023_v20, %v6955_v11  ;;  %v6952_v25 = vpop.xlane.xlu0 %6951 }
0x339c   :  { %v6962_v41 = vsub.f32 %v6931_v57, %v6952_v25 }
0x339d   :  { %v6968_v51 = vmul.f32 1.442695, %v6963_v18 }
0x339e   :  { %v6966_v4 = vmul.f32 1.442695, %v6962_v41  ;;  %v14622_v16 = vpop.permute.xlu1 %14621 }
0x339f   :  { %15212 = vpow2.f32 %v6968_v51  ;;  %v14624_v58 = vunpack.i.h.bf16 %v14622_v16  ;;  %v14623_v23 = vunpack.i.l.bf16 %v14622_v16  ;;  %v6958_v20 = vpop.xlane.xlu0 %6957 }
0x33a0   :  { %15214 = vpow2.f32 %v6966_v4  ;;  %v6964_v18 = vsub.f32 %v6941_v59, %v6958_v20 }
0x33a1   :  { %v13901_v3 = vpack.c.bf16 %v14624_v58, %v14623_v23 }
0x33a2   :  { %v6970_v41 = vmul.f32 1.442695, %v6964_v18 }
0x33a3   :  { %13902 = vmatprep.subr.bf16.mxu1 %v13901_v3  ;;  %v6961_v57 = vpop.xlane.xlu0 %6960 }
0x33a4   :  { %13904 = vmatpush3.bf16.msra.mxu1 %v13901_v3  ;;  %v6965_v11 = vsub.f32 %v13026_v47, %v6961_v57  ;;  %v14632_v47 = vpop.permute.xlu1 %14631 }
0x33a5   :  { %v14634_v23 = vunpack.i.h.bf16 %v14632_v47  ;;  %v14633_v3 = vunpack.i.l.bf16 %v14632_v47 }
0x33a6   :  { %v6972_v25 = vmul.f32 1.442695, %v6965_v11 }
0x33a7   :  { %v13909_v18 = vpack.c.bf16 %v14634_v23, %v14633_v3 }
0x33a8   :  { %15216 = vpow2.f32 %v6972_v25 }
0x33a9   :  { %v15213_v12 = vpop.eup %15212  ;;  %15218 = vpow2.f32 %v6970_v41 }
0x33aa   :  { %v15215_v21 = vpop.eup %15214  ;;  %v6977_v61 = vsel %vm180_vm1, %v15213_v12, 0.0 }
0x33ab   :  { %6978 = vadd.xlane.f32.xlu0 %v6977_v61  ;;  %v6974_v1 = vsel %vm180_vm1, %v15215_v21, 0.0 }
0x33ac   :  { %6975 = vadd.xlane.f32.xlu1 %v6974_v1 }
0x33b2   :  { %v15217_v51 = vpop.eup %15216 }
0x33b3   :  { %v15219_v4 = vpop.eup %15218  ;;  %v6983_v61 = vsel %vm180_vm1, %v15217_v51, 0.0 }
0x33b4   :  { %v6980_v1 = vsel %vm180_vm1, %v15219_v4, 0.0 }
0x33bd   :  { %14636 = vrot.lane.b32.xlu1 %v17044_v46, %s18634_s30 }
0x33c1   :  { %14626 = vrot.lane.b32.xlu0 %v17044_v46, %s18633_s24 }
0x33e0   :  { %6984 = vadd.xlane.f32.xlu0 %v6983_v61 }
0x33e1   :  { %6981 = vadd.xlane.f32.xlu1 %v6980_v1 }
0x33f2   :  { %7105 = vrot.lane.b32.xlu1 %v17021_v24, %s18635_s18 }
0x33f6   :  { %7109 = vrot.lane.b32.xlu1 %v17035_v36, %s18635_s18  ;;  %7103 = vrot.lane.b32.xlu0 %v17024_v28, %s18635_s18 }
0x33fa   :  { %7107 = vrot.lane.b32.xlu0 %v17038_v40, %s18635_s18 }
0x3438   :  { %v6979_v59 = vpop.xlane.xlu0 %6978 }
0x3439   :  { %15220 = vrcp.f32 %v6979_v59  ;;  %v6976_v16 = vpop.xlane.xlu1 %6975 }
0x343a   :  { %15222 = vrcp.f32 %v6976_v16 }
0x343c   :  { %v14627_v58 = vpop.permute.xlu0 %14626 }
0x343d   :  { %v14629_v20 = vunpack.i.h.bf16 %v14627_v58  ;;  %v14628_v57 = vunpack.i.l.bf16 %v14627_v58  ;;  %v14637_v41 = vpop.permute.xlu1 %14636 }
0x343e   :  { %v14639_v59 = vunpack.i.h.bf16 %v14637_v41  ;;  %v14638_v19 = vunpack.i.l.bf16 %v14637_v41 }
0x343f   :  { %v13905_v11 = vpack.c.bf16 %v14629_v20, %v14628_v57 }
0x3440   :  { %v13915_v47 = vpack.c.bf16 %v14639_v59, %v14638_v19 }
0x3441   :  { %13906 = vmatprep.subr.bf16.mxu1 %v13905_v11 }
0x3442   :  { %13908 = vmatpush3.bf16.msra.mxu1 %v13905_v11 }
0x3443   :  { %v15221_v25 = vpop.eup %15220  ;;  %13911 = vmatprep.subr.msk.bf16.mxu1 %vm15662_vm3, %v13909_v18 }
0x3444   :  { %v15223_v61 = vpop.eup %15222  ;;  %v6991_v22 = vmul.f32 %v15221_v25, %v15213_v12 }
0x3445   :  { %v6990_v1 = vmul.f32 %v15223_v61, %v15215_v21 }
0x3447   :  { %13035 = vmatprep.mubr.msk.f32.mxu1 %vm180_vm1, %v6990_v1 }
0x3448   :  { %13036 = vmatmul.mubr.msk.f32.vlgmr.msra.gmra.mrb[104].mxu1 %vm180_vm1, %v6991_v22 }
0x344b   :  { %13914 = vmatpush3.bf16.xpose.msk.msra.mxu1 %vm15662_vm3, %v13909_v18 }
0x344c   :  { %13917 = vmatprep.subr.msk.bf16.mxu1 %vm15662_vm3, %v13915_v47 }
0x3453   :  { %13920 = vmatpush3.bf16.xpose.msk.msra.mxu1 %vm15662_vm3, %v13915_v47 }
0x346d   :  { %v6985_v16 = vpop.xlane.xlu0 %6984 }
0x346e   :  { %15224 = vrcp.f32 %v6985_v16  ;;  %v6982_v21 = vpop.xlane.xlu1 %6981 }
0x346f   :  { %15226 = vrcp.f32 %v6982_v21 }
0x3471   :  { %v7104_v3 = vpop.permute.xlu0 %7103 }
0x3472   :  { %v7106_v19 = vpop.permute.xlu1 %7105 }
0x3475   :  { %v7108_v22 = vpop.permute.xlu0 %7107 }
0x3476   :  { %v7110_v57 = vpop.permute.xlu1 %7109 }
0x3478   :  { %v15225_v12 = vpop.eup %15224 }
0x3479   :  { %v15227_v58 = vpop.eup %15226  ;;  %v6993_v20 = vmul.f32 %v15225_v12, %v15217_v51 }
0x347a   :  { %v6992_v23 = vmul.f32 %v15227_v58, %v15219_v4 }
0x347c   :  { %13038 = vmatprep.mubr.msk.f32.mxu1 %vm180_vm1, %v6992_v23 }
0x347d   :  { %13039 = vmatmul.mubr.msk.f32.gmra.mrb[106].mxu1 %vm180_vm1, %v6993_v20 }
0x347e   :  { %13049 = vmatprep.mubr.msk.f32.mxu1 %vm322_vm2, %v7104_v3 }
0x3481   :  { %13050 = vmatmul.mubr.msk.f32.vlgmr.msra.gmra.mrb[108].mxu1 %vm322_vm2, %v7106_v19 }
0x3482   :  { %13052 = vmatprep.mubr.msk.f32.mxu1 %vm322_vm2, %v7108_v22 }
0x3485   :  { %13053 = vmatmul.mubr.msk.f32.gmra.mrb[110].mxu1 %vm322_vm2, %v7110_v57 }
0x351b   :  { %v17420_v11 = vpop.f32.mrb[104].mxu1 }
0x351c   :  { %v17422_v4 = vpop.f32.mrb[105].mxu1 }
0x3550   :  { %v17424_v51 = vpop.f32.mrb[106].mxu1 }
0x3551   :  { %v17426_v18 = vpop.f32.mrb[107].mxu1 }
0x3554   :  { %v13051_v25 = vpop.f32.mrb[108].mxu1 }
0x3555   :  { %v7201_v41 = vpop.f32.mrb[109].mxu1  ;;  %v7223_v61 = vsel %vm180_vm1, %v13051_v25, -inf }
0x3556   :  { %7224 = vmax.xlane.f32.xlu1 %v7223_v61  ;;  %v7220_v1 = vsel %vm180_vm1, %v7201_v41, -inf }
0x3557   :  { %7221 = vmax.xlane.f32.xlu0 %v7220_v1 }
0x3558   :  { %v13054_v59 = vpop.f32.mrb[110].mxu1 }
0x3559   :  { %v7211_v47 = vpop.f32.mrb[111].mxu1  ;;  %v7229_v21 = vsel %vm180_vm1, %v13054_v59, -inf }
0x355a   :  { %v7226_v16 = vsel %vm180_vm1, %v7211_v47, -inf }
0x355b   :  { %7227 = vmax.xlane.f32.xlu0 %v7226_v16 }
0x355f   :  { %7230 = vmax.xlane.f32.xlu0 %v7229_v21 }
0x3567   :  { %14641 = vrot.lane.b32.xlu1 %v17030_v33, %s18636_s19 }
0x356b   :  { %14651 = vrot.lane.b32.xlu1 %v17030_v33, %s18637_s25 }
0x35e3   :  { %v7225_v12 = vpop.xlane.xlu1 %7224 }
0x35e4   :  { %v7233_v58 = vsub.f32 %v13051_v25, %v7225_v12  ;;  %v7222_v23 = vpop.xlane.xlu0 %7221 }
0x35e5   :  { %v7232_v3 = vsub.f32 %v7201_v41, %v7222_v23 }
0x35e6   :  { %v7238_v20 = vmul.f32 1.442695, %v7233_v58 }
0x35e7   :  { %v7236_v19 = vmul.f32 1.442695, %v7232_v3  ;;  %v14642_v22 = vpop.permute.xlu1 %14641 }
0x35e8   :  { %15228 = vpow2.f32 %v7238_v20  ;;  %v14644_v57 = vunpack.i.h.bf16 %v14642_v22  ;;  %v14643_v61 = vunpack.i.l.bf16 %v14642_v22  ;;  %v7228_v25 = vpop.xlane.xlu0 %7227 }
0x35e9   :  { %15230 = vpow2.f32 %v7236_v19  ;;  %v7234_v58 = vsub.f32 %v7211_v47, %v7228_v25 }
0x35ea   :  { %v13921_v1 = vpack.c.bf16 %v14644_v57, %v14643_v61 }
0x35eb   :  { %v7240_v3 = vmul.f32 1.442695, %v7234_v58 }
0x35ec   :  { %13922 = vmatprep.subr.bf16.mxu0 %v13921_v1  ;;  %v7231_v41 = vpop.xlane.xlu0 %7230 }
0x35ed   :  { %13924 = vmatpush3.bf16.msra.mxu0 %v13921_v1  ;;  %v7235_v12 = vsub.f32 %v13054_v59, %v7231_v41  ;;  %v14652_v59 = vpop.permute.xlu1 %14651 }
0x35ee   :  { %v14654_v61 = vunpack.i.h.bf16 %v14652_v59  ;;  %v14653_v1 = vunpack.i.l.bf16 %v14652_v59 }
0x35ef   :  { %v7242_v23 = vmul.f32 1.442695, %v7235_v12 }
0x35f0   :  { %v13929_v58 = vpack.c.bf16 %v14654_v61, %v14653_v1 }
0x35f1   :  { %15232 = vpow2.f32 %v7242_v23 }
0x35f2   :  { %v15229_v16 = vpop.eup %15228  ;;  %15234 = vpow2.f32 %v7240_v3 }
0x35f3   :  { %v15231_v21 = vpop.eup %15230  ;;  %v7247_v26 = vsel %vm180_vm1, %v15229_v16, 0.0 }
0x35f4   :  { %7248 = vadd.xlane.f32.xlu0 %v7247_v26  ;;  %v7244_v39 = vsel %vm180_vm1, %v15231_v21, 0.0 }
0x35f5   :  { %7245 = vadd.xlane.f32.xlu1 %v7244_v39 }
0x35fb   :  { %v15233_v20 = vpop.eup %15232 }
0x35fc   :  { %v15235_v19 = vpop.eup %15234  ;;  %v7253_v26 = vsel %vm180_vm1, %v15233_v20, 0.0 }
0x35fd   :  { %v7250_v39 = vsel %vm180_vm1, %v15235_v19, 0.0 }
0x3606   :  { %14656 = vrot.lane.b32.xlu1 %v17044_v46, %s18637_s25 }
0x360a   :  { %14646 = vrot.lane.b32.xlu0 %v17044_v46, %s18636_s19 }
0x3629   :  { %7254 = vadd.xlane.f32.xlu0 %v7253_v26 }
0x362a   :  { %7251 = vadd.xlane.f32.xlu1 %v7250_v39 }
0x363b   :  { %7375 = vrot.lane.b32.xlu1 %v17021_v24, %s18638_s26 }
0x363f   :  { %7379 = vrot.lane.b32.xlu1 %v17035_v36, %s18638_s26  ;;  %7373 = vrot.lane.b32.xlu0 %v17024_v28, %s18638_s26 }
0x3643   :  { %7377 = vrot.lane.b32.xlu0 %v17038_v40, %s18638_s26 }
0x3681   :  { %v7249_v47 = vpop.xlane.xlu0 %7248 }
0x3682   :  { %15236 = vrcp.f32 %v7249_v47  ;;  %v7246_v22 = vpop.xlane.xlu1 %7245 }
0x3683   :  { %15238 = vrcp.f32 %v7246_v22 }
0x3685   :  { %v14647_v57 = vpop.permute.xlu0 %14646 }
0x3686   :  { %v14649_v25 = vunpack.i.h.bf16 %v14647_v57  ;;  %v14648_v41 = vunpack.i.l.bf16 %v14647_v57  ;;  %v14657_v3 = vpop.permute.xlu1 %14656 }
0x3687   :  { %v14659_v47 = vunpack.i.h.bf16 %v14657_v3  ;;  %v14658_v52 = vunpack.i.l.bf16 %v14657_v3 }
0x3688   :  { %v13925_v12 = vpack.c.bf16 %v14649_v25, %v14648_v41 }
0x3689   :  { %v13935_v59 = vpack.c.bf16 %v14659_v47, %v14658_v52 }
0x368a   :  { %13926 = vmatprep.subr.bf16.mxu0 %v13925_v12 }
0x368b   :  { %13928 = vmatpush3.bf16.msra.mxu0 %v13925_v12 }
0x368c   :  { %v15237_v23 = vpop.eup %15236  ;;  %13931 = vmatprep.subr.msk.bf16.mxu0 %vm15662_vm3, %v13929_v58 }
0x368d   :  { %v15239_v26 = vpop.eup %15238  ;;  %v7261_v9 = vmul.f32 %v15237_v23, %v15229_v16 }
0x368e   :  { %v7260_v39 = vmul.f32 %v15239_v26, %v15231_v21 }
0x3690   :  { %13063 = vmatprep.mubr.msk.f32.mxu0 %vm180_vm1, %v7260_v39 }
0x3691   :  { %13064 = vmatmul.mubr.msk.f32.vlgmr.msra.gmra.mrb[108].mxu0 %vm180_vm1, %v7261_v9 }
0x3694   :  { %13934 = vmatpush3.bf16.xpose.msk.msra.mxu0 %vm15662_vm3, %v13929_v58 }
0x3695   :  { %13937 = vmatprep.subr.msk.bf16.mxu0 %vm15662_vm3, %v13935_v59 }
0x369c   :  { %13940 = vmatpush3.bf16.xpose.msk.msra.mxu0 %vm15662_vm3, %v13935_v59 }
0x36b6   :  { %v7255_v22 = vpop.xlane.xlu0 %7254 }
0x36b7   :  { %15240 = vrcp.f32 %v7255_v22  ;;  %v7252_v21 = vpop.xlane.xlu1 %7251 }
0x36b8   :  { %15242 = vrcp.f32 %v7252_v21 }
0x36ba   :  { %v7374_v1 = vpop.permute.xlu0 %7373 }
0x36bb   :  { %v7376_v9 = vpop.permute.xlu1 %7375 }
0x36be   :  { %v7378_v52 = vpop.permute.xlu0 %7377 }
0x36bf   :  { %v7380_v41 = vpop.permute.xlu1 %7379 }
0x36c1   :  { %v15241_v16 = vpop.eup %15240 }
0x36c2   :  { %v15243_v57 = vpop.eup %15242  ;;  %v7263_v25 = vmul.f32 %v15241_v16, %v15233_v20 }
0x36c3   :  { %v7262_v61 = vmul.f32 %v15243_v57, %v15235_v19 }
0x36c5   :  { %13066 = vmatprep.mubr.msk.f32.mxu0 %vm180_vm1, %v7262_v61 }
0x36c6   :  { %13067 = vmatmul.mubr.msk.f32.gmra.mrb[110].mxu0 %vm180_vm1, %v7263_v25 }
0x36c7   :  { %13077 = vmatprep.mubr.msk.f32.mxu0 %vm322_vm2, %v7374_v1 }
0x36ca   :  { %13078 = vmatmul.mubr.msk.f32.vlgmr.msra.gmra.mrb[112].mxu0 %vm322_vm2, %v7376_v9 }
0x36cb   :  { %13080 = vmatprep.mubr.msk.f32.mxu0 %vm322_vm2, %v7378_v52 }
0x36ce   :  { %13081 = vmatmul.mubr.msk.f32.gmra.mrb[114].mxu0 %vm322_vm2, %v7380_v41 }
0x3764   :  { %v17468_v12 = vpop.f32.mrb[108].mxu0 }
0x3765   :  { %v17470_v19 = vpop.f32.mrb[109].mxu0 }
0x3799   :  { %v17472_v20 = vpop.f32.mrb[110].mxu0 }
0x379a   :  { %v17474_v58 = vpop.f32.mrb[111].mxu0 }
0x379d   :  { %v13079_v23 = vpop.f32.mrb[112].mxu0 }
0x379e   :  { %v7471_v3 = vpop.f32.mrb[113].mxu0  ;;  %v7493_v26 = vsel %vm180_vm1, %v13079_v23, -inf }
0x379f   :  { %7494 = vmax.xlane.f32.xlu1 %v7493_v26  ;;  %v7490_v39 = vsel %vm180_vm1, %v7471_v3, -inf }
0x37a0   :  { %7491 = vmax.xlane.f32.xlu0 %v7490_v39 }
0x37a1   :  { %v13082_v47 = vpop.f32.mrb[114].mxu0 }
0x37a2   :  { %v7481_v59 = vpop.f32.mrb[115].mxu0  ;;  %v7499_v21 = vsel %vm180_vm1, %v13082_v47, -inf }
0x37a3   :  { %v7496_v22 = vsel %vm180_vm1, %v7481_v59, -inf }
0x37a4   :  { %7497 = vmax.xlane.f32.xlu0 %v7496_v22 }
0x37a8   :  { %7500 = vmax.xlane.f32.xlu0 %v7499_v21 }
0x37b0   :  { %14661 = vrot.lane.b32.xlu1 %v17030_v33, %s18639_s2 }
0x37b4   :  { %14671 = vrot.lane.b32.xlu1 %v17030_v33, %s18640_s20 }
0x382c   :  { %v7495_v16 = vpop.xlane.xlu1 %7494 }
0x382d   :  { %v7503_v57 = vsub.f32 %v13079_v23, %v7495_v16  ;;  %v7492_v61 = vpop.xlane.xlu0 %7491 }
0x382e   :  { %v7502_v1 = vsub.f32 %v7471_v3, %v7492_v61 }
0x382f   :  { %v7508_v25 = vmul.f32 1.442695, %v7503_v57 }
0x3830   :  { %v7506_v9 = vmul.f32 1.442695, %v7502_v1  ;;  %v14662_v52 = vpop.permute.xlu1 %14661 }
0x3831   :  { %15244 = vpow2.f32 %v7508_v25  ;;  %v14664_v41 = vunpack.i.h.bf16 %v14662_v52  ;;  %v14663_v26 = vunpack.i.l.bf16 %v14662_v52  ;;  %v7498_v23 = vpop.xlane.xlu0 %7497 }
0x3832   :  { %15246 = vpow2.f32 %v7506_v9  ;;  %v7504_v57 = vsub.f32 %v7481_v59, %v7498_v23 }
0x3833   :  { %v13941_v39 = vpack.c.bf16 %v14664_v41, %v14663_v26 }
0x3834   :  { %v7510_v1 = vmul.f32 1.442695, %v7504_v57 }
0x3835   :  { %13942 = vmatprep.subr.bf16.mxu1 %v13941_v39  ;;  %v7501_v3 = vpop.xlane.xlu0 %7500 }
0x3836   :  { %13944 = vmatpush3.bf16.msra.mxu1 %v13941_v39  ;;  %v7505_v16 = vsub.f32 %v13082_v47, %v7501_v3  ;;  %v14672_v47 = vpop.permute.xlu1 %14671 }
0x3837   :  { %v14674_v26 = vunpack.i.h.bf16 %v14672_v47  ;;  %v14673_v39 = vunpack.i.l.bf16 %v14672_v47 }
0x3838   :  { %v7512_v61 = vmul.f32 1.442695, %v7505_v16 }
0x3839   :  { %v13949_v16 = vpack.c.bf16 %v14674_v26, %v14673_v39 }
0x383a   :  { %15248 = vpow2.f32 %v7512_v61 }
0x383b   :  { %v15245_v22 = vpop.eup %15244  ;;  %15250 = vpow2.f32 %v7510_v1 }
0x383c   :  { %v15247_v21 = vpop.eup %15246  ;;  %v7517_v49 = vsel %vm180_vm1, %v15245_v22, 0.0 }
0x383d   :  { %7518 = vadd.xlane.f32.xlu0 %v7517_v49  ;;  %v7514_v45 = vsel %vm180_vm1, %v15247_v21, 0.0 }
0x383e   :  { %7515 = vadd.xlane.f32.xlu1 %v7514_v45 }
0x3844   :  { %v15249_v25 = vpop.eup %15248 }
0x3845   :  { %v15251_v9 = vpop.eup %15250  ;;  %v7523_v49 = vsel %vm180_vm1, %v15249_v25, 0.0 }
0x3846   :  { %v7520_v45 = vsel %vm180_vm1, %v15251_v9, 0.0 }
0x384f   :  { %14676 = vrot.lane.b32.xlu1 %v17044_v46, %s18640_s20 }
0x3853   :  { %14666 = vrot.lane.b32.xlu0 %v17044_v46, %s18639_s2 }
0x3872   :  { %7524 = vadd.xlane.f32.xlu0 %v7523_v49 }
0x3873   :  { %7521 = vadd.xlane.f32.xlu1 %v7520_v45 }
0x3884   :  { %7645 = vrot.lane.b32.xlu1 %v17021_v24, %s18641_s28 }
0x3888   :  { %7649 = vrot.lane.b32.xlu1 %v17035_v36, %s18641_s28  ;;  %7643 = vrot.lane.b32.xlu0 %v17024_v28, %s18641_s28 }
0x388c   :  { %7647 = vrot.lane.b32.xlu0 %v17038_v40, %s18641_s28 }
0x38ca   :  { %v7519_v59 = vpop.xlane.xlu0 %7518 }
0x38cb   :  { %15252 = vrcp.f32 %v7519_v59  ;;  %v7516_v52 = vpop.xlane.xlu1 %7515 }
0x38cc   :  { %15254 = vrcp.f32 %v7516_v52 }
0x38ce   :  { %v14667_v41 = vpop.permute.xlu0 %14666 }
0x38cf   :  { %v14669_v23 = vunpack.i.h.bf16 %v14667_v41  ;;  %v14668_v3 = vunpack.i.l.bf16 %v14667_v41  ;;  %v14677_v57 = vpop.permute.xlu1 %14676 }
0x38d0   :  { %v14679_v1 = vunpack.i.h.bf16 %v14677_v57  ;;  %v14678_v49 = vunpack.i.l.bf16 %v14677_v57 }
0x38d1   :  { %v13945_v24 = vpack.c.bf16 %v14669_v23, %v14668_v3 }
0x38d2   :  { %v13955_v45 = vpack.c.bf16 %v14679_v1, %v14678_v49 }
0x38d3   :  { %13946 = vmatprep.subr.bf16.mxu1 %v13945_v24 }
0x38d4   :  { %13948 = vmatpush3.bf16.msra.mxu1 %v13945_v24 }
0x38d5   :  { %v15253_v36 = vpop.eup %15252  ;;  %13951 = vmatprep.subr.msk.bf16.mxu1 %vm15662_vm3, %v13949_v16 }
0x38d6   :  { %v15255_v28 = vpop.eup %15254  ;;  %v7531_v61 = vmul.f32 %v15253_v36, %v15245_v22 }
0x38d7   :  { %v7530_v40 = vmul.f32 %v15255_v28, %v15247_v21 }
0x38d9   :  { %13091 = vmatprep.mubr.msk.f32.mxu1 %vm180_vm1, %v7530_v40 }
0x38da   :  { %13092 = vmatmul.mubr.msk.f32.vlgmr.msra.gmra.mrb[112].mxu1 %vm180_vm1, %v7531_v61 }
0x38dd   :  { %13954 = vmatpush3.bf16.xpose.msk.msra.mxu1 %vm15662_vm3, %v13949_v16 }
0x38de   :  { %13957 = vmatprep.subr.msk.bf16.mxu1 %vm15662_vm3, %v13955_v45 }
0x38e5   :  { %13960 = vmatpush3.bf16.xpose.msk.msra.mxu1 %vm15662_vm3, %v13955_v45 }
0x38ff   :  { %v7525_v47 = vpop.xlane.xlu0 %7524 }
0x3900   :  { %15256 = vrcp.f32 %v7525_v47  ;;  %v7522_v21 = vpop.xlane.xlu1 %7521 }
0x3901   :  { %15258 = vrcp.f32 %v7522_v21 }
0x3903   :  { %v7644_v41 = vpop.permute.xlu0 %7643 }
0x3904   :  { %v7646_v39 = vpop.permute.xlu1 %7645 }
0x3907   :  { %v7648_v23 = vpop.permute.xlu0 %7647 }
0x3908   :  { %v7650_v3 = vpop.permute.xlu1 %7649 }
0x390a   :  { %v15257_v22 = vpop.eup %15256 }
0x390b   :  { %v15259_v59 = vpop.eup %15258  ;;  %v7533_v26 = vmul.f32 %v15257_v22, %v15249_v25 }
0x390c   :  { %v7532_v52 = vmul.f32 %v15259_v59, %v15251_v9 }
0x390e   :  { %13094 = vmatprep.mubr.msk.f32.mxu1 %vm180_vm1, %v7532_v52 }
0x390f   :  { %13095 = vmatmul.mubr.msk.f32.gmra.mrb[114].mxu1 %vm180_vm1, %v7533_v26 }
0x3910   :  { %13105 = vmatprep.mubr.msk.f32.mxu1 %vm322_vm2, %v7644_v41 }
0x3913   :  { %13106 = vmatmul.mubr.msk.f32.vlgmr.msra.gmra.mrb[116].mxu1 %vm322_vm2, %v7646_v39 }
0x3914   :  { %13108 = vmatprep.mubr.msk.f32.mxu1 %vm322_vm2, %v7648_v23 }
0x3917   :  { %13109 = vmatmul.mubr.msk.f32.gmra.mrb[118].mxu1 %vm322_vm2, %v7650_v3 }
0x39ad   :  { %v17516_v24 = vpop.f32.mrb[112].mxu1 }
0x39ae   :  { %v17518_v9 = vpop.f32.mrb[113].mxu1 }
0x39e2   :  { %v17520_v25 = vpop.f32.mrb[114].mxu1 }
0x39e3   :  { %v17522_v16 = vpop.f32.mrb[115].mxu1 }
0x39e6   :  { %v13107_v36 = vpop.f32.mrb[116].mxu1 }
0x39e7   :  { %v7741_v57 = vpop.f32.mrb[117].mxu1  ;;  %v7763_v28 = vsel %vm180_vm1, %v13107_v36, -inf }
0x39e8   :  { %7764 = vmax.xlane.f32.xlu1 %v7763_v28  ;;  %v7760_v40 = vsel %vm180_vm1, %v7741_v57, -inf }
0x39e9   :  { %7761 = vmax.xlane.f32.xlu0 %v7760_v40 }
0x39ea   :  { %v13110_v61 = vpop.f32.mrb[118].mxu1 }
0x39eb   :  { %v7751_v1 = vpop.f32.mrb[119].mxu1  ;;  %v7769_v45 = vsel %vm180_vm1, %v13110_v61, -inf }
0x39ec   :  { %v7766_v49 = vsel %vm180_vm1, %v7751_v1, -inf }
0x39ed   :  { %7767 = vmax.xlane.f32.xlu0 %v7766_v49 }
0x39f1   :  { %7770 = vmax.xlane.f32.xlu0 %v7769_v45 }
0x39f9   :  { %14681 = vrot.lane.b32.xlu1 %v17030_v33, %s18642_s29 }
0x3a75   :  { %v7765_v47 = vpop.xlane.xlu1 %7764 }
0x3a76   :  { %v7773_v21 = vsub.f32 %v13107_v36, %v7765_v47  ;;  %v7762_v22 = vpop.xlane.xlu0 %7761 }
0x3a77   :  { %v7772_v59 = vsub.f32 %v7741_v57, %v7762_v22  ;;  %v17535_v22 = vadd.f32 %v17228_v7, %v17018_v6 }
0x3a78   :  { %v7778_v52 = vmul.f32 1.442695, %v7773_v21 }
0x3a79   :  { %v7776_v41 = vmul.f32 1.442695, %v7772_v59  ;;  %v14682_v26 = vpop.permute.xlu1 %14681 }
0x3a7a   :  { %15260 = vpow2.f32 %v7778_v52  ;;  %v14684_v39 = vunpack.i.h.bf16 %v14682_v26  ;;  %v14683_v23 = vunpack.i.l.bf16 %v14682_v26  ;;  %v7768_v3 = vpop.xlane.xlu0 %7767 }
0x3a7b   :  { %15262 = vpow2.f32 %v7776_v41  ;;  %v7774_v52 = vsub.f32 %v7751_v1, %v7768_v3 }
0x3a7c   :  { %v13961_v28 = vpack.c.bf16 %v14684_v39, %v14683_v23  ;;  %v17556_v39 = vadd.f32 %v17234_v31, %v17018_v6 }
0x3a7d   :  { %v7780_v41 = vmul.f32 1.442695, %v7774_v52 }
0x3a7e   :  { %13962 = vmatprep.subr.bf16.mxu0 %v13961_v28  ;;  %v7771_v40 = vpop.xlane.xlu0 %7770 }
0x3a7f   :  { %v7775_v49 = vsub.f32 %v13110_v61, %v7771_v40  ;;  %13964 = vmatpush3.bf16.msra.mxu0 %v13961_v28  ;;  %v17539_v61 = vadd.f32 %v17230_v63, %v17018_v6  ;;  %v17552_v63 = vadd.f32 %v17232_v8, %v17018_v6 }
0x3a81   :  { %v7782_v45 = vmul.f32 1.442695, %v7775_v49  ;;  %v17543_v59 = vpack.i.bf16 %v17535_v22, %v17539_v61  ;;  %v17560_v23 = vpack.i.bf16 %v17552_v63, %v17556_v39 }
0x3a83   :  { %15264 = vpow2.f32 %v7782_v45 }
0x3a84   :  { %v15261_v33 = vpop.eup %15260  ;;  %15266 = vpow2.f32 %v7780_v41 }
0x3a85   :  { %v15263_v17 = vpop.eup %15262  ;;  %v7787_v36 = vsel %vm180_vm1, %v15261_v33, 0.0 }
0x3a86   :  { %7788 = vadd.xlane.f32.xlu0 %v7787_v36  ;;  %v7784_v57 = vsel %vm180_vm1, %v15263_v17, 0.0 }
0x3a87   :  { %7785 = vadd.xlane.f32.xlu1 %v7784_v57 }
0x3a8d   :  { %v15265_v47 = vpop.eup %15264 }
0x3a8e   :  { %v7793_v21 = vsel %vm180_vm1, %v15265_v47, 0.0  ;;  %v15267_v26 = vpop.eup %15266 }
0x3a8f   :  { %7794 = vadd.xlane.f32.xlu0 %v7793_v21  ;;  %v7790_v7 = vsel %vm180_vm1, %v15267_v26, 0.0 }
0x3a98   :  { %14691 = vrot.lane.b32.xlu1 %v17543_v59, %s15439_s9 }
0x3aa5   :  { %14686 = vrot.lane.b32.xlu0 %v17044_v46, %s18642_s29 }
0x3abc   :  { %7791 = vadd.xlane.f32.xlu1 %v7790_v7 }
0x3acd   :  { %14696 = vrot.lane.b32.xlu1 %v17560_v23, %s15439_s9  ;;  %s18663_s9 = smov 16  }
0x3b13   :  { %v7789_v1 = vpop.xlane.xlu0 %7788 }
0x3b14   :  { %v7786_v46 = vpop.xlane.xlu1 %7785 }
0x3b15   :  { %15268 = vrcp.f32 %v7786_v46 }
0x3b16   :  { %15270 = vrcp.f32 %v7789_v1 }
0x3b18   :  { %v14692_v28 = vpop.permute.xlu1 %14691 }
0x3b19   :  { %v14694_v45 = vunpack.i.h.bf16 %v14692_v28  ;;  %v14693_v36 = vunpack.i.l.bf16 %v14692_v28 }
0x3b1b   :  { %v13969_v52 = vpack.c.bf16 %v14694_v45, %v14693_v36 }
0x3b1c   :  { %v7795_v3 = vpop.xlane.xlu0 %7794 }
0x3b1d   :  { %15272 = vrcp.f32 %v7795_v3 }
0x3b1f   :  { %v15269_v40 = vpop.eup %15268 }
0x3b20   :  { %v14687_v8 = vpop.permute.xlu0 %14686  ;;  %v7800_v49 = vmul.f32 %v15269_v40, %v15263_v17  ;;  %v15271_v21 = vpop.eup %15270 }
0x3b21   :  { %v14689_v6 = vunpack.i.h.bf16 %v14687_v8  ;;  %v14688_v31 = vunpack.i.l.bf16 %v14687_v8  ;;  %v7801_v41 = vmul.f32 %v15271_v21, %v15261_v33 }
0x3b22   :  { %13119 = vmatprep.mubr.msk.f32.mxu0 %vm180_vm1, %v7800_v49 }
0x3b23   :  { %v13965_v57 = vpack.c.bf16 %v14689_v6, %v14688_v31 }
0x3b25   :  { %13966 = vmatprep.subr.bf16.mxu0 %v13965_v57 }
0x3b26   :  { %13968 = vmatpush3.bf16.msra.mxu0 %v13965_v57 }
0x3b27   :  { %13971 = vmatprep.subr.msk.bf16.mxu0 %vm15662_vm3, %v13969_v52  ;;  %v15273_v40 = vpop.eup %15272 }
0x3b28   :  { %v7803_v49 = vmul.f32 %v15273_v40, %v15265_v47 }
0x3b29   :  { %13120 = vmatmul.mubr.msk.f32.vlgmr.msra.gmra.mrb[116].mxu0 %vm180_vm1, %v7801_v41 }
0x3b2f   :  { %13974 = vmatpush3.bf16.xpose.msk.msra.mxu0 %vm15662_vm3, %v13969_v52 }
0x3b49   :  { %v7792_v17 = vpop.xlane.xlu1 %7791 }
0x3b4a   :  { %15274 = vrcp.f32 %v7792_v17 }
0x3b4d   :  { %v14697_v7 = vpop.permute.xlu1 %14696 }
0x3b4e   :  { %v14699_v46 = vunpack.i.h.bf16 %v14697_v7  ;;  %v14698_v1 = vunpack.i.l.bf16 %v14697_v7 }
0x3b50   :  { %v13975_v28 = vpack.c.bf16 %v14699_v46, %v14698_v1 }
0x3b52   :  { %13977 = vmatprep.subr.msk.bf16.mxu0 %vm15662_vm3, %v13975_v28 }
0x3b53   :  { %13980 = vmatpush3.bf16.xpose.msk.msra.mxu0 %vm15662_vm3, %v13975_v28 }
0x3b54   :  { %v15275_v33 = vpop.eup %15274 }
0x3b55   :  { %v7802_v8 = vmul.f32 %v15275_v33, %v15267_v26 }
0x3b57   :  { %13122 = vmatprep.mubr.msk.f32.mxu0 %vm180_vm1, %v7802_v8 }
0x3b58   :  { %13123 = vmatmul.mubr.msk.f32.gmra.mrb[118].mxu0 %vm180_vm1, %v7803_v49 }
0x3b59   :  { %13133 = vmatprep.mubr.msk.f32.mxu0 %vm322_vm2, %v17539_v61 }
0x3b5c   :  { %13134 = vmatmul.mubr.msk.f32.vlgmr.msra.gmra.mrb[120].mxu0 %vm322_vm2, %v17535_v22 }
0x3b5d   :  { %13136 = vmatprep.mubr.msk.f32.mxu0 %vm322_vm2, %v17556_v39 }
0x3b60   :  { %13137 = vmatmul.mubr.msk.f32.gmra.mrb[122].mxu0 %vm322_vm2, %v17552_v63 }
0x3bfc   :  { %v17584_v3 = vpop.f32.mrb[116].mxu0 }
0x3bfd   :  { %v17586_v26 = vpop.f32.mrb[117].mxu0 }
0x3c2b   :  { %v17588_v47 = vpop.f32.mrb[118].mxu0 }
0x3c2c   :  { %18643 = vst [vmem:[#allocation27_spill] sm:$0xff] %v17588_v47  ;;  %v17590_v45 = vpop.f32.mrb[119].mxu0 }
0x3c2f   :  { %v13135_v36 = vpop.f32.mrb[120].mxu0 }
0x3c30   :  { %v8147_v6 = vpop.f32.mrb[121].mxu0  ;;  %v8169_v31 = vsel %vm180_vm1, %v13135_v36, -inf }
0x3c31   :  { %8170 = vmax.xlane.f32.xlu1 %v8169_v31  ;;  %v8166_v57 = vsel %vm180_vm1, %v8147_v6, -inf }
0x3c32   :  { %8167 = vmax.xlane.f32.xlu0 %v8166_v57 }
0x3c33   :  { %v13138_v21 = vpop.f32.mrb[122].mxu0 }
0x3c34   :  { %v8157_v52 = vpop.f32.mrb[123].mxu0  ;;  %v8175_v17 = vsel %vm180_vm1, %v13138_v21, -inf }
0x3c35   :  { %v8172_v41 = vsel %vm180_vm1, %v8157_v52, -inf }
0x3c36   :  { %8173 = vmax.xlane.f32.xlu0 %v8172_v41 }
0x3c3a   :  { %8176 = vmax.xlane.f32.xlu0 %v8175_v17 }
0x3c42   :  { %14701 = vrot.lane.b32.xlu1 %v17543_v59, %s15441_s11 }
0x3c46   :  { %14711 = vrot.lane.b32.xlu1 %v17543_v59, %s15438_s0 }
0x3cbe   :  { %v8171_v7 = vpop.xlane.xlu1 %8170 }
0x3cbf   :  { %v8179_v46 = vsub.f32 %v13135_v36, %v8171_v7  ;;  %v8168_v1 = vpop.xlane.xlu0 %8167 }
0x3cc0   :  { %v8178_v28 = vsub.f32 %v8147_v6, %v8168_v1 }
0x3cc1   :  { %v8184_v40 = vmul.f32 1.442695, %v8179_v46 }
0x3cc2   :  { %v8182_v33 = vmul.f32 1.442695, %v8178_v28  ;;  %v14702_v8 = vpop.permute.xlu1 %14701 }
0x3cc3   :  { %15276 = vpow2.f32 %v8184_v40  ;;  %v14704_v49 = vunpack.i.h.bf16 %v14702_v8  ;;  %v14703_v31 = vunpack.i.l.bf16 %v14702_v8  ;;  %v8174_v36 = vpop.xlane.xlu0 %8173 }
0x3cc4   :  { %15278 = vpow2.f32 %v8182_v33  ;;  %v8180_v46 = vsub.f32 %v8157_v52, %v8174_v36 }
0x3cc5   :  { %v13981_v57 = vpack.c.bf16 %v14704_v49, %v14703_v31 }
0x3cc6   :  { %v8186_v28 = vmul.f32 1.442695, %v8180_v46 }
0x3cc7   :  { %13982 = vmatprep.subr.bf16.mxu1 %v13981_v57  ;;  %v8177_v6 = vpop.xlane.xlu0 %8176 }
0x3cc8   :  { %13984 = vmatpush3.bf16.msra.mxu1 %v13981_v57  ;;  %v8181_v7 = vsub.f32 %v13138_v21, %v8177_v6  ;;  %v14712_v21 = vpop.permute.xlu1 %14711 }
0x3cc9   :  { %v14714_v31 = vunpack.i.h.bf16 %v14712_v21  ;;  %v14713_v57 = vunpack.i.l.bf16 %v14712_v21 }
0x3cca   :  { %v8188_v1 = vmul.f32 1.442695, %v8181_v7 }
0x3ccb   :  { %v13989_v46 = vpack.c.bf16 %v14714_v31, %v14713_v57 }
0x3ccc   :  { %15280 = vpow2.f32 %v8188_v1 }
0x3ccd   :  { %v15277_v41 = vpop.eup %15276  ;;  %15282 = vpow2.f32 %v8186_v28 }
0x3cce   :  { %v15279_v17 = vpop.eup %15278  ;;  %v8193_v53 = vsel %vm180_vm1, %v15277_v41, 0.0 }
0x3ccf   :  { %8194 = vadd.xlane.f32.xlu0 %v8193_v53  ;;  %v8190_v2 = vsel %vm180_vm1, %v15279_v17, 0.0 }
0x3cd0   :  { %8191 = vadd.xlane.f32.xlu1 %v8190_v2 }
0x3cd6   :  { %v15281_v40 = vpop.eup %15280 }
0x3cd7   :  { %v15283_v33 = vpop.eup %15282  ;;  %v8199_v53 = vsel %vm180_vm1, %v15281_v40, 0.0 }
0x3cd8   :  { %v8196_v2 = vsel %vm180_vm1, %v15283_v33, 0.0 }
0x3ce1   :  { %14716 = vrot.lane.b32.xlu1 %v17560_v23, %s15438_s0  ;;  %s18660_s0 = smov 32  }
0x3ce5   :  { %14706 = vrot.lane.b32.xlu0 %v17560_v23, %s15441_s11  ;;  %s18665_s11 = smov 24  }
0x3d04   :  { %8200 = vadd.xlane.f32.xlu0 %v8199_v53 }
0x3d05   :  { %8197 = vadd.xlane.f32.xlu1 %v8196_v2 }
0x3d16   :  { %8321 = vrot.lane.b32.xlu1 %v17535_v22, %s15440_s10 }
0x3d1a   :  { %8325 = vrot.lane.b32.xlu1 %v17552_v63, %s15440_s10  ;;  %8319 = vrot.lane.b32.xlu0 %v17539_v61, %s15440_s10 }
0x3d1e   :  { %8323 = vrot.lane.b32.xlu0 %v17556_v39, %s15440_s10  ;;  %s18664_s10 = smov 20  }
0x3d5c   :  { %v8195_v52 = vpop.xlane.xlu0 %8194 }
0x3d5d   :  { %15284 = vrcp.f32 %v8195_v52  ;;  %v8192_v8 = vpop.xlane.xlu1 %8191 }
0x3d5e   :  { %15286 = vrcp.f32 %v8192_v8 }
0x3d60   :  { %v14707_v49 = vpop.permute.xlu0 %14706 }
0x3d61   :  { %v14709_v36 = vunpack.i.h.bf16 %v14707_v49  ;;  %v14708_v6 = vunpack.i.l.bf16 %v14707_v49  ;;  %v14717_v28 = vpop.permute.xlu1 %14716 }
0x3d62   :  { %v14719_v52 = vunpack.i.h.bf16 %v14717_v28  ;;  %v14718_v60 = vunpack.i.l.bf16 %v14717_v28 }
0x3d63   :  { %v13985_v7 = vpack.c.bf16 %v14709_v36, %v14708_v6 }
0x3d64   :  { %v13995_v21 = vpack.c.bf16 %v14719_v52, %v14718_v60 }
0x3d65   :  { %13986 = vmatprep.subr.bf16.mxu1 %v13985_v7 }
0x3d66   :  { %13988 = vmatpush3.bf16.msra.mxu1 %v13985_v7 }
0x3d67   :  { %v15285_v1 = vpop.eup %15284  ;;  %13991 = vmatprep.subr.msk.bf16.mxu1 %vm15662_vm3, %v13989_v46 }
0x3d68   :  { %v15287_v53 = vpop.eup %15286  ;;  %v8207_v54 = vmul.f32 %v15285_v1, %v15277_v41 }
0x3d69   :  { %v8206_v2 = vmul.f32 %v15287_v53, %v15279_v17 }
0x3d6b   :  { %13147 = vmatprep.mubr.msk.f32.mxu1 %vm180_vm1, %v8206_v2 }
0x3d6c   :  { %13148 = vmatmul.mubr.msk.f32.vlgmr.msra.gmra.mrb[120].mxu1 %vm180_vm1, %v8207_v54 }
0x3d6f   :  { %13994 = vmatpush3.bf16.xpose.msk.msra.mxu1 %vm15662_vm3, %v13989_v46 }
0x3d70   :  { %13997 = vmatprep.subr.msk.bf16.mxu1 %vm15662_vm3, %v13995_v21 }
0x3d77   :  { %14000 = vmatpush3.bf16.xpose.msk.msra.mxu1 %vm15662_vm3, %v13995_v21 }
0x3d91   :  { %v8201_v8 = vpop.xlane.xlu0 %8200 }
0x3d92   :  { %15288 = vrcp.f32 %v8201_v8  ;;  %v8198_v17 = vpop.xlane.xlu1 %8197 }
0x3d93   :  { %15290 = vrcp.f32 %v8198_v17 }
0x3d95   :  { %v8320_v57 = vpop.permute.xlu0 %8319 }
0x3d96   :  { %v8322_v54 = vpop.permute.xlu1 %8321 }
0x3d99   :  { %v8324_v60 = vpop.permute.xlu0 %8323 }
0x3d9a   :  { %v8326_v6 = vpop.permute.xlu1 %8325 }
0x3d9c   :  { %v15289_v41 = vpop.eup %15288 }
0x3d9d   :  { %v15291_v49 = vpop.eup %15290  ;;  %v8209_v36 = vmul.f32 %v15289_v41, %v15281_v40 }
0x3d9e   :  { %v8208_v31 = vmul.f32 %v15291_v49, %v15283_v33 }
0x3da0   :  { %13150 = vmatprep.mubr.msk.f32.mxu1 %vm180_vm1, %v8208_v31 }
0x3da1   :  { %13151 = vmatmul.mubr.msk.f32.gmra.mrb[122].mxu1 %vm180_vm1, %v8209_v36 }
0x3da2   :  { %13161 = vmatprep.mubr.msk.f32.mxu1 %vm322_vm2, %v8320_v57 }
0x3da5   :  { %13162 = vmatmul.mubr.msk.f32.vlgmr.msra.gmra.mrb[124].mxu1 %vm322_vm2, %v8322_v54 }
0x3da6   :  { %13164 = vmatprep.mubr.msk.f32.mxu1 %vm322_vm2, %v8324_v60 }
0x3da9   :  { %13165 = vmatmul.mubr.msk.f32.gmra.mrb[126].mxu1 %vm322_vm2, %v8326_v6 }
0x3e3f   :  { %v17632_v7 = vpop.f32.mrb[120].mxu1 }
0x3e40   :  { %18644 = vst [vmem:[#allocation22_spill] sm:$0xff] %v17632_v7  ;;  %v17634_v33 = vpop.f32.mrb[121].mxu1 }
0x3e41   :  { %18645 = vst [vmem:[#allocation17_spill] sm:$0xff] %v17634_v33 }
0x3e74   :  { %v17636_v40 = vpop.f32.mrb[122].mxu1 }
0x3e75   :  { %18646 = vst [vmem:[#allocation26_spill] sm:$0xff] %v17636_v40  ;;  %v17638_v46 = vpop.f32.mrb[123].mxu1 }
0x3e76   :  { %18647 = vst [vmem:[#allocation21_spill] sm:$0xff] %v17638_v46 }
0x3e78   :  { %v13163_v1 = vpop.f32.mrb[124].mxu1 }
0x3e79   :  { %v8417_v28 = vpop.f32.mrb[125].mxu1  ;;  %v8439_v53 = vsel %vm180_vm1, %v13163_v1, -inf }
0x3e7a   :  { %8440 = vmax.xlane.f32.xlu1 %v8439_v53  ;;  %v8436_v2 = vsel %vm180_vm1, %v8417_v28, -inf }
0x3e7b   :  { %8437 = vmax.xlane.f32.xlu0 %v8436_v2 }
0x3e7c   :  { %v13166_v52 = vpop.f32.mrb[126].mxu1 }
0x3e7d   :  { %v8427_v21 = vpop.f32.mrb[127].mxu1  ;;  %v8445_v17 = vsel %vm180_vm1, %v13166_v52, -inf }
0x3e7e   :  { %v8442_v8 = vsel %vm180_vm1, %v8427_v21, -inf }
0x3e7f   :  { %8443 = vmax.xlane.f32.xlu0 %v8442_v8 }
0x3e83   :  { %8446 = vmax.xlane.f32.xlu0 %v8445_v17 }
0x3e8b   :  { %14721 = vrot.lane.b32.xlu1 %v17543_v59, %s15442_s12 }
0x3e8f   :  { %14731 = vrot.lane.b32.xlu1 %v17543_v59, %s15443_s13 }
0x3f07   :  { %v8441_v41 = vpop.xlane.xlu1 %8440 }
0x3f08   :  { %v8449_v49 = vsub.f32 %v13163_v1, %v8441_v41  ;;  %v8438_v31 = vpop.xlane.xlu0 %8437 }
0x3f09   :  { %v8448_v57 = vsub.f32 %v8417_v28, %v8438_v31 }
0x3f0a   :  { %v8454_v36 = vmul.f32 1.442695, %v8449_v49 }
0x3f0b   :  { %v8452_v54 = vmul.f32 1.442695, %v8448_v57  ;;  %v14722_v60 = vpop.permute.xlu1 %14721 }
0x3f0c   :  { %15292 = vpow2.f32 %v8454_v36  ;;  %v14724_v6 = vunpack.i.h.bf16 %v14722_v60  ;;  %v14723_v53 = vunpack.i.l.bf16 %v14722_v60  ;;  %v8444_v1 = vpop.xlane.xlu0 %8443 }
0x3f0d   :  { %15294 = vpow2.f32 %v8452_v54  ;;  %v8450_v49 = vsub.f32 %v8427_v21, %v8444_v1 }
0x3f0e   :  { %v14001_v2 = vpack.c.bf16 %v14724_v6, %v14723_v53 }
0x3f0f   :  { %v8456_v57 = vmul.f32 1.442695, %v8450_v49 }
0x3f10   :  { %14002 = vmatprep.subr.bf16.mxu0 %v14001_v2  ;;  %v8447_v28 = vpop.xlane.xlu0 %8446 }
0x3f11   :  { %14004 = vmatpush3.bf16.msra.mxu0 %v14001_v2  ;;  %v8451_v41 = vsub.f32 %v13166_v52, %v8447_v28  ;;  %v14732_v52 = vpop.permute.xlu1 %14731 }
0x3f12   :  { %v14734_v53 = vunpack.i.h.bf16 %v14732_v52  ;;  %v14733_v2 = vunpack.i.l.bf16 %v14732_v52 }
0x3f13   :  { %v8458_v31 = vmul.f32 1.442695, %v8451_v41 }
0x3f14   :  { %v14009_v49 = vpack.c.bf16 %v14734_v53, %v14733_v2 }
0x3f15   :  { %15296 = vpow2.f32 %v8458_v31 }
0x3f16   :  { %v15293_v8 = vpop.eup %15292  ;;  %15298 = vpow2.f32 %v8456_v57 }
0x3f17   :  { %v15295_v17 = vpop.eup %15294  ;;  %v8463_v40 = vsel %vm180_vm1, %v15293_v8, 0.0 }
0x3f18   :  { %8464 = vadd.xlane.f32.xlu0 %v8463_v40  ;;  %v8460_v46 = vsel %vm180_vm1, %v15295_v17, 0.0 }
0x3f19   :  { %8461 = vadd.xlane.f32.xlu1 %v8460_v46 }
0x3f1f   :  { %v15297_v36 = vpop.eup %15296 }
0x3f20   :  { %v15299_v54 = vpop.eup %15298  ;;  %v8469_v40 = vsel %vm180_vm1, %v15297_v36, 0.0 }
0x3f21   :  { %v8466_v46 = vsel %vm180_vm1, %v15299_v54, 0.0 }
0x3f2a   :  { %14736 = vrot.lane.b32.xlu1 %v17560_v23, %s15443_s13 }
0x3f2e   :  { %14726 = vrot.lane.b32.xlu0 %v17560_v23, %s15442_s12  ;;  %s18666_s12 = smov 28  }
0x3f4d   :  { %8470 = vadd.xlane.f32.xlu0 %v8469_v40 }
0x3f4e   :  { %8467 = vadd.xlane.f32.xlu1 %v8466_v46 }
0x3f5f   :  { %8591 = vrot.lane.b32.xlu1 %v17535_v22, %s15444_s14 }
0x3f63   :  { %8595 = vrot.lane.b32.xlu1 %v17552_v63, %s15444_s14  ;;  %8589 = vrot.lane.b32.xlu0 %v17539_v61, %s15444_s14 }
0x3f67   :  { %8593 = vrot.lane.b32.xlu0 %v17556_v39, %s15444_s14 }
0x3fa5   :  { %v8465_v21 = vpop.xlane.xlu0 %8464 }
0x3fa6   :  { %15300 = vrcp.f32 %v8465_v21  ;;  %v8462_v60 = vpop.xlane.xlu1 %8461 }
0x3fa7   :  { %15302 = vrcp.f32 %v8462_v60 }
0x3fa9   :  { %v14727_v6 = vpop.permute.xlu0 %14726 }
0x3faa   :  { %v14729_v1 = vunpack.i.h.bf16 %v14727_v6  ;;  %v14728_v28 = vunpack.i.l.bf16 %v14727_v6  ;;  %v14737_v57 = vpop.permute.xlu1 %14736 }
0x3fab   :  { %v14739_v21 = vunpack.i.h.bf16 %v14737_v57  ;;  %v14738_v15 = vunpack.i.l.bf16 %v14737_v57 }
0x3fac   :  { %v14005_v41 = vpack.c.bf16 %v14729_v1, %v14728_v28 }
0x3fad   :  { %v14015_v52 = vpack.c.bf16 %v14739_v21, %v14738_v15 }
0x3fae   :  { %14006 = vmatprep.subr.bf16.mxu0 %v14005_v41 }
0x3faf   :  { %14008 = vmatpush3.bf16.msra.mxu0 %v14005_v41 }
0x3fb0   :  { %v15301_v31 = vpop.eup %15300  ;;  %14011 = vmatprep.subr.msk.bf16.mxu0 %vm15662_vm3, %v14009_v49 }
0x3fb1   :  { %v15303_v40 = vpop.eup %15302  ;;  %v8477_v29 = vmul.f32 %v15301_v31, %v15293_v8 }
0x3fb2   :  { %v8476_v46 = vmul.f32 %v15303_v40, %v15295_v17 }
0x3fb4   :  { %13175 = vmatprep.mubr.msk.f32.mxu0 %vm180_vm1, %v8476_v46 }
0x3fb5   :  { %13176 = vmatmul.mubr.msk.f32.vlgmr.msra.gmra.mrb[124].mxu0 %vm180_vm1, %v8477_v29 }
0x3fb8   :  { %14014 = vmatpush3.bf16.xpose.msk.msra.mxu0 %vm15662_vm3, %v14009_v49 }
0x3fb9   :  { %14017 = vmatprep.subr.msk.bf16.mxu0 %vm15662_vm3, %v14015_v52 }
0x3fc0   :  { %14020 = vmatpush3.bf16.xpose.msk.msra.mxu0 %vm15662_vm3, %v14015_v52 }
0x3fda   :  { %v8471_v60 = vpop.xlane.xlu0 %8470 }
0x3fdb   :  { %15304 = vrcp.f32 %v8471_v60  ;;  %v8468_v17 = vpop.xlane.xlu1 %8467 }
0x3fdc   :  { %15306 = vrcp.f32 %v8468_v17 }
0x3fde   :  { %v8590_v2 = vpop.permute.xlu0 %8589 }
0x3fdf   :  { %v8592_v29 = vpop.permute.xlu1 %8591 }
0x3fe2   :  { %v8594_v15 = vpop.permute.xlu0 %8593 }
0x3fe3   :  { %v8596_v28 = vpop.permute.xlu1 %8595 }
0x3fe5   :  { %v15305_v8 = vpop.eup %15304 }
0x3fe6   :  { %v15307_v6 = vpop.eup %15306  ;;  %v8479_v1 = vmul.f32 %v15305_v8, %v15297_v36 }
0x3fe7   :  { %v8478_v53 = vmul.f32 %v15307_v6, %v15299_v54 }
0x3fe9   :  { %13178 = vmatprep.mubr.msk.f32.mxu0 %vm180_vm1, %v8478_v53 }
0x3fea   :  { %13179 = vmatmul.mubr.msk.f32.gmra.mrb[126].mxu0 %vm180_vm1, %v8479_v1 }
0x3feb   :  { %13189 = vmatprep.mubr.msk.f32.mxu0 %vm322_vm2, %v8590_v2 }
0x3fee   :  { %13190 = vmatmul.mubr.msk.f32.vlgmr.msra.gmra.mrb[128].mxu0 %vm322_vm2, %v8592_v29 }
0x3fef   :  { %13192 = vmatprep.mubr.msk.f32.mxu0 %vm322_vm2, %v8594_v15 }
0x3ff2   :  { %13193 = vmatmul.mubr.msk.f32.gmra.mrb[130].mxu0 %vm322_vm2, %v8596_v28 }
0x4088   :  { %v17680_v41 = vpop.f32.mrb[124].mxu0 }
0x4089   :  { %v17682_v54 = vpop.f32.mrb[125].mxu0 }
0x40bd   :  { %v17684_v36 = vpop.f32.mrb[126].mxu0 }
0x40be   :  { %18648 = vst [vmem:[#allocation30_spill] sm:$0xff] %v17684_v36  ;;  %v17686_v49 = vpop.f32.mrb[127].mxu0 }
0x40bf   :  { %18649 = vst [vmem:[#allocation25_spill] sm:$0xff] %v17686_v49 }
0x40c1   :  { %v13191_v31 = vpop.f32.mrb[128].mxu0 }
0x40c2   :  { %v8687_v57 = vpop.f32.mrb[129].mxu0  ;;  %v8709_v40 = vsel %vm180_vm1, %v13191_v31, -inf }
0x40c3   :  { %8710 = vmax.xlane.f32.xlu1 %v8709_v40  ;;  %v8706_v46 = vsel %vm180_vm1, %v8687_v57, -inf }
0x40c4   :  { %8707 = vmax.xlane.f32.xlu0 %v8706_v46 }
0x40c5   :  { %v13194_v21 = vpop.f32.mrb[130].mxu0 }
0x40c6   :  { %v8697_v52 = vpop.f32.mrb[131].mxu0  ;;  %v8715_v17 = vsel %vm180_vm1, %v13194_v21, -inf }
0x40c7   :  { %v8712_v60 = vsel %vm180_vm1, %v8697_v52, -inf }
0x40c8   :  { %8713 = vmax.xlane.f32.xlu0 %v8712_v60 }
0x40cc   :  { %8716 = vmax.xlane.f32.xlu0 %v8715_v17 }
0x40d4   :  { %14741 = vrot.lane.b32.xlu1 %v17543_v59, %s15445_s15 }
0x40d8   :  { %14751 = vrot.lane.b32.xlu1 %v17543_v59, %s15446_s16 }
0x4150   :  { %v8711_v8 = vpop.xlane.xlu1 %8710 }
0x4151   :  { %v8719_v6 = vsub.f32 %v13191_v31, %v8711_v8  ;;  %v8708_v53 = vpop.xlane.xlu0 %8707 }
0x4152   :  { %v8718_v2 = vsub.f32 %v8687_v57, %v8708_v53 }
0x4153   :  { %v8724_v1 = vmul.f32 1.442695, %v8719_v6 }
0x4154   :  { %v8722_v29 = vmul.f32 1.442695, %v8718_v2  ;;  %v14742_v15 = vpop.permute.xlu1 %14741 }
0x4155   :  { %15308 = vpow2.f32 %v8724_v1  ;;  %v14744_v28 = vunpack.i.h.bf16 %v14742_v15  ;;  %v14743_v40 = vunpack.i.l.bf16 %v14742_v15  ;;  %v8714_v31 = vpop.xlane.xlu0 %8713 }
0x4156   :  { %15310 = vpow2.f32 %v8722_v29  ;;  %v8720_v6 = vsub.f32 %v8697_v52, %v8714_v31 }
0x4157   :  { %v14021_v46 = vpack.c.bf16 %v14744_v28, %v14743_v40 }
0x4158   :  { %v8726_v2 = vmul.f32 1.442695, %v8720_v6 }
0x4159   :  { %14022 = vmatprep.subr.bf16.mxu1 %v14021_v46  ;;  %v8717_v57 = vpop.xlane.xlu0 %8716 }
0x415a   :  { %14024 = vmatpush3.bf16.msra.mxu1 %v14021_v46  ;;  %v8721_v8 = vsub.f32 %v13194_v21, %v8717_v57  ;;  %v14752_v21 = vpop.permute.xlu1 %14751 }
0x415b   :  { %v14754_v40 = vunpack.i.h.bf16 %v14752_v21  ;;  %v14753_v46 = vunpack.i.l.bf16 %v14752_v21 }
0x415c   :  { %v8728_v53 = vmul.f32 1.442695, %v8721_v8 }
0x415d   :  { %v14029_v6 = vpack.c.bf16 %v14754_v40, %v14753_v46 }
0x415e   :  { %15312 = vpow2.f32 %v8728_v53 }
0x415f   :  { %v15309_v60 = vpop.eup %15308  ;;  %15314 = vpow2.f32 %v8726_v2 }
0x4160   :  { %v15311_v17 = vpop.eup %15310  ;;  %v8733_v50 = vsel %vm180_vm1, %v15309_v60, 0.0 }
0x4161   :  { %8734 = vadd.xlane.f32.xlu0 %v8733_v50  ;;  %v8730_v7 = vsel %vm180_vm1, %v15311_v17, 0.0 }
0x4162   :  { %8731 = vadd.xlane.f32.xlu1 %v8730_v7 }
0x4168   :  { %v15313_v1 = vpop.eup %15312 }
0x4169   :  { %v15315_v29 = vpop.eup %15314  ;;  %v8739_v50 = vsel %vm180_vm1, %v15313_v1, 0.0 }
0x416a   :  { %v8736_v7 = vsel %vm180_vm1, %v15315_v29, 0.0 }
0x4173   :  { %14756 = vrot.lane.b32.xlu1 %v17560_v23, %s15446_s16 }
0x4177   :  { %14746 = vrot.lane.b32.xlu0 %v17560_v23, %s15445_s15 }
0x4196   :  { %8740 = vadd.xlane.f32.xlu0 %v8739_v50 }
0x4197   :  { %8737 = vadd.xlane.f32.xlu1 %v8736_v7 }
0x41a8   :  { %8861 = vrot.lane.b32.xlu1 %v17535_v22, %s15447_s17 }
0x41ac   :  { %8865 = vrot.lane.b32.xlu1 %v17552_v63, %s15447_s17  ;;  %8859 = vrot.lane.b32.xlu0 %v17539_v61, %s15447_s17 }
0x41b0   :  { %8863 = vrot.lane.b32.xlu0 %v17556_v39, %s15447_s17 }
0x41ee   :  { %v8735_v52 = vpop.xlane.xlu0 %8734 }
0x41ef   :  { %15316 = vrcp.f32 %v8735_v52  ;;  %v8732_v15 = vpop.xlane.xlu1 %8731 }
0x41f0   :  { %15318 = vrcp.f32 %v8732_v15 }
0x41f2   :  { %v14747_v28 = vpop.permute.xlu0 %14746 }
0x41f3   :  { %v14749_v31 = vunpack.i.h.bf16 %v14747_v28  ;;  %v14748_v57 = vunpack.i.l.bf16 %v14747_v28  ;;  %v14757_v2 = vpop.permute.xlu1 %14756 }
0x41f4   :  { %v14759_v52 = vunpack.i.h.bf16 %v14757_v2  ;;  %v14758_v14 = vunpack.i.l.bf16 %v14757_v2 }
0x41f5   :  { %v14025_v8 = vpack.c.bf16 %v14749_v31, %v14748_v57 }
0x41f6   :  { %v14035_v21 = vpack.c.bf16 %v14759_v52, %v14758_v14 }
0x41f7   :  { %14026 = vmatprep.subr.bf16.mxu1 %v14025_v8 }
0x41f8   :  { %14028 = vmatpush3.bf16.msra.mxu1 %v14025_v8 }
0x41f9   :  { %v15317_v53 = vpop.eup %15316  ;;  %14031 = vmatprep.subr.msk.bf16.mxu1 %vm15662_vm3, %v14029_v6 }
0x41fa   :  { %v15319_v50 = vpop.eup %15318  ;;  %v8747_v33 = vmul.f32 %v15317_v53, %v15309_v60 }
0x41fb   :  { %v8746_v7 = vmul.f32 %v15319_v50, %v15311_v17 }
0x41fd   :  { %13203 = vmatprep.mubr.msk.f32.mxu1 %vm180_vm1, %v8746_v7 }
0x41fe   :  { %13204 = vmatmul.mubr.msk.f32.vlgmr.msra.gmra.mrb[128].mxu1 %vm180_vm1, %v8747_v33 }
0x4201   :  { %14034 = vmatpush3.bf16.xpose.msk.msra.mxu1 %vm15662_vm3, %v14029_v6 }
0x4202   :  { %14037 = vmatprep.subr.msk.bf16.mxu1 %vm15662_vm3, %v14035_v21 }
0x4209   :  { %14040 = vmatpush3.bf16.xpose.msk.msra.mxu1 %vm15662_vm3, %v14035_v21 }
0x4223   :  { %v8741_v15 = vpop.xlane.xlu0 %8740 }
0x4224   :  { %15320 = vrcp.f32 %v8741_v15  ;;  %v8738_v17 = vpop.xlane.xlu1 %8737 }
0x4225   :  { %15322 = vrcp.f32 %v8738_v17 }
0x4227   :  { %v8860_v46 = vpop.permute.xlu0 %8859 }
0x4228   :  { %v8862_v14 = vpop.permute.xlu1 %8861 }
0x422b   :  { %v8864_v33 = vpop.permute.xlu0 %8863 }
0x422c   :  { %v8866_v57 = vpop.permute.xlu1 %8865 }
0x422e   :  { %v15321_v60 = vpop.eup %15320 }
0x422f   :  { %v15323_v28 = vpop.eup %15322  ;;  %v8749_v31 = vmul.f32 %v15321_v60, %v15313_v1 }
0x4230   :  { %v8748_v40 = vmul.f32 %v15323_v28, %v15315_v29 }
0x4232   :  { %13206 = vmatprep.mubr.msk.f32.mxu1 %vm180_vm1, %v8748_v40 }
0x4233   :  { %13207 = vmatmul.mubr.msk.f32.gmra.mrb[130].mxu1 %vm180_vm1, %v8749_v31 }
0x4234   :  { %13217 = vmatprep.mubr.msk.f32.mxu1 %vm322_vm2, %v8860_v46 }
0x4237   :  { %13218 = vmatmul.mubr.msk.f32.vlgmr.msra.gmra.mrb[132].mxu1 %vm322_vm2, %v8862_v14 }
0x4238   :  { %13220 = vmatprep.mubr.msk.f32.mxu1 %vm322_vm2, %v8864_v33 }
0x423b   :  { %13221 = vmatmul.mubr.msk.f32.gmra.mrb[134].mxu1 %vm322_vm2, %v8866_v57 }
0x42d1   :  { %v17728_v8 = vpop.f32.mrb[128].mxu1 }
0x42d2   :  { %v17730_v29 = vpop.f32.mrb[129].mxu1 }
0x4306   :  { %v17732_v1 = vpop.f32.mrb[130].mxu1 }
0x4307   :  { %18650 = vst [vmem:[#allocation29_spill] sm:$0xff] %v17732_v1  ;;  %v17734_v6 = vpop.f32.mrb[131].mxu1 }
0x4308   :  { %18651 = vst [vmem:[#allocation31_spill] sm:$0xff] %v17734_v6 }
0x430a   :  { %v13219_v53 = vpop.f32.mrb[132].mxu1 }
0x430b   :  { %v8957_v2 = vpop.f32.mrb[133].mxu1  ;;  %v8979_v50 = vsel %vm180_vm1, %v13219_v53, -inf }
0x430c   :  { %8980 = vmax.xlane.f32.xlu1 %v8979_v50  ;;  %v8976_v7 = vsel %vm180_vm1, %v8957_v2, -inf }
0x430d   :  { %8977 = vmax.xlane.f32.xlu0 %v8976_v7 }
0x430e   :  { %v13222_v52 = vpop.f32.mrb[134].mxu1 }
0x430f   :  { %v8967_v21 = vpop.f32.mrb[135].mxu1  ;;  %v8985_v17 = vsel %vm180_vm1, %v13222_v52, -inf }
0x4310   :  { %v8982_v15 = vsel %vm180_vm1, %v8967_v21, -inf }
0x4311   :  { %8983 = vmax.xlane.f32.xlu0 %v8982_v15 }
0x4315   :  { %8986 = vmax.xlane.f32.xlu0 %v8985_v17 }
0x431d   :  { %14761 = vrot.lane.b32.xlu1 %v17543_v59, %s18630_s21 }
0x4321   :  { %14771 = vrot.lane.b32.xlu1 %v17543_v59, %s18631_s22 }
0x4399   :  { %v8981_v60 = vpop.xlane.xlu1 %8980 }
0x439a   :  { %v8989_v28 = vsub.f32 %v13219_v53, %v8981_v60  ;;  %v8978_v40 = vpop.xlane.xlu0 %8977 }
0x439b   :  { %v8988_v46 = vsub.f32 %v8957_v2, %v8978_v40 }
0x439c   :  { %v8994_v31 = vmul.f32 1.442695, %v8989_v28 }
0x439d   :  { %v8992_v14 = vmul.f32 1.442695, %v8988_v46  ;;  %v14762_v33 = vpop.permute.xlu1 %14761 }
0x439e   :  { %15324 = vpow2.f32 %v8994_v31  ;;  %v14764_v57 = vunpack.i.h.bf16 %v14762_v33  ;;  %v14763_v50 = vunpack.i.l.bf16 %v14762_v33  ;;  %v8984_v53 = vpop.xlane.xlu0 %8983 }
0x439f   :  { %15326 = vpow2.f32 %v8992_v14  ;;  %v8990_v28 = vsub.f32 %v8967_v21, %v8984_v53 }
0x43a0   :  { %v14041_v7 = vpack.c.bf16 %v14764_v57, %v14763_v50 }
0x43a1   :  { %v8996_v46 = vmul.f32 1.442695, %v8990_v28 }
0x43a2   :  { %14042 = vmatprep.subr.bf16.mxu0 %v14041_v7  ;;  %v8987_v2 = vpop.xlane.xlu0 %8986 }
0x43a3   :  { %14044 = vmatpush3.bf16.msra.mxu0 %v14041_v7  ;;  %v8991_v60 = vsub.f32 %v13222_v52, %v8987_v2  ;;  %v14772_v52 = vpop.permute.xlu1 %14771 }
0x43a4   :  { %v14774_v50 = vunpack.i.h.bf16 %v14772_v52  ;;  %v14773_v7 = vunpack.i.l.bf16 %v14772_v52 }
0x43a5   :  { %v8998_v40 = vmul.f32 1.442695, %v8991_v60 }
0x43a6   :  { %v14049_v28 = vpack.c.bf16 %v14774_v50, %v14773_v7 }
0x43a7   :  { %15328 = vpow2.f32 %v8998_v40 }
0x43a8   :  { %v15325_v15 = vpop.eup %15324  ;;  %15330 = vpow2.f32 %v8996_v46 }
0x43a9   :  { %v15327_v17 = vpop.eup %15326  ;;  %v9003_v35 = vsel %vm180_vm1, %v15325_v15, 0.0 }
0x43aa   :  { %9004 = vadd.xlane.f32.xlu0 %v9003_v35  ;;  %v9000_v1 = vsel %vm180_vm1, %v15327_v17, 0.0 }
0x43ab   :  { %9001 = vadd.xlane.f32.xlu1 %v9000_v1 }
0x43b1   :  { %v15329_v31 = vpop.eup %15328 }
0x43b2   :  { %v15331_v14 = vpop.eup %15330  ;;  %v9009_v35 = vsel %vm180_vm1, %v15329_v31, 0.0 }
0x43b3   :  { %v9006_v1 = vsel %vm180_vm1, %v15331_v14, 0.0 }
0x43bc   :  { %14776 = vrot.lane.b32.xlu1 %v17560_v23, %s18631_s22 }
0x43c0   :  { %14766 = vrot.lane.b32.xlu0 %v17560_v23, %s18630_s21 }
0x43df   :  { %9010 = vadd.xlane.f32.xlu0 %v9009_v35 }
0x43e0   :  { %9007 = vadd.xlane.f32.xlu1 %v9006_v1 }
0x43f1   :  { %9131 = vrot.lane.b32.xlu1 %v17535_v22, %s18632_s23 }
0x43f5   :  { %9135 = vrot.lane.b32.xlu1 %v17552_v63, %s18632_s23  ;;  %9129 = vrot.lane.b32.xlu0 %v17539_v61, %s18632_s23 }
0x43f9   :  { %9133 = vrot.lane.b32.xlu0 %v17556_v39, %s18632_s23 }
0x4437   :  { %v9005_v21 = vpop.xlane.xlu0 %9004 }
0x4438   :  { %15332 = vrcp.f32 %v9005_v21  ;;  %v9002_v33 = vpop.xlane.xlu1 %9001 }
0x4439   :  { %15334 = vrcp.f32 %v9002_v33 }
0x443b   :  { %v14767_v57 = vpop.permute.xlu0 %14766 }
0x443c   :  { %v14769_v53 = vunpack.i.h.bf16 %v14767_v57  ;;  %v14768_v2 = vunpack.i.l.bf16 %v14767_v57  ;;  %v14777_v46 = vpop.permute.xlu1 %14776 }
0x443d   :  { %v14779_v21 = vunpack.i.h.bf16 %v14777_v46  ;;  %v14778_v6 = vunpack.i.l.bf16 %v14777_v46 }
0x443e   :  { %v14045_v60 = vpack.c.bf16 %v14769_v53, %v14768_v2 }
0x443f   :  { %v14055_v52 = vpack.c.bf16 %v14779_v21, %v14778_v6 }
0x4440   :  { %14046 = vmatprep.subr.bf16.mxu0 %v14045_v60 }
0x4441   :  { %14048 = vmatpush3.bf16.msra.mxu0 %v14045_v60 }
0x4442   :  { %v15333_v40 = vpop.eup %15332  ;;  %14051 = vmatprep.subr.msk.bf16.mxu0 %vm15662_vm3, %v14049_v28 }
0x4443   :  { %v15335_v35 = vpop.eup %15334  ;;  %v9017_v36 = vmul.f32 %v15333_v40, %v15325_v15 }
0x4444   :  { %v9016_v1 = vmul.f32 %v15335_v35, %v15327_v17 }
0x4446   :  { %13231 = vmatprep.mubr.msk.f32.mxu0 %vm180_vm1, %v9016_v1 }
0x4447   :  { %13232 = vmatmul.mubr.msk.f32.vlgmr.msra.gmra.mrb[132].mxu0 %vm180_vm1, %v9017_v36 }
0x444a   :  { %14054 = vmatpush3.bf16.xpose.msk.msra.mxu0 %vm15662_vm3, %v14049_v28 }
0x444b   :  { %14057 = vmatprep.subr.msk.bf16.mxu0 %vm15662_vm3, %v14055_v52 }
0x4452   :  { %14060 = vmatpush3.bf16.xpose.msk.msra.mxu0 %vm15662_vm3, %v14055_v52 }
0x446c   :  { %v9011_v33 = vpop.xlane.xlu0 %9010 }
0x446d   :  { %15336 = vrcp.f32 %v9011_v33  ;;  %v9008_v17 = vpop.xlane.xlu1 %9007 }
0x446e   :  { %15338 = vrcp.f32 %v9008_v17 }
0x4470   :  { %v9130_v7 = vpop.permute.xlu0 %9129 }
0x4471   :  { %v9132_v36 = vpop.permute.xlu1 %9131 }
0x4474   :  { %v9134_v6 = vpop.permute.xlu0 %9133 }
0x4475   :  { %v9136_v2 = vpop.permute.xlu1 %9135 }
0x4477   :  { %v15337_v15 = vpop.eup %15336 }
0x4478   :  { %v15339_v57 = vpop.eup %15338  ;;  %v9019_v53 = vmul.f32 %v15337_v15, %v15329_v31 }
0x4479   :  { %v9018_v50 = vmul.f32 %v15339_v57, %v15331_v14 }
0x447b   :  { %13234 = vmatprep.mubr.msk.f32.mxu0 %vm180_vm1, %v9018_v50 }
0x447c   :  { %13235 = vmatmul.mubr.msk.f32.gmra.mrb[134].mxu0 %vm180_vm1, %v9019_v53 }
0x447d   :  { %13245 = vmatprep.mubr.msk.f32.mxu0 %vm322_vm2, %v9130_v7 }
0x4480   :  { %13246 = vmatmul.mubr.msk.f32.vlgmr.msra.gmra.mrb[136].mxu0 %vm322_vm2, %v9132_v36 }
0x4481   :  { %13248 = vmatprep.mubr.msk.f32.mxu0 %vm322_vm2, %v9134_v6 }
0x4484   :  { %13249 = vmatmul.mubr.msk.f32.gmra.mrb[138].mxu0 %vm322_vm2, %v9136_v2 }
0x451a   :  { %v17776_v60 = vpop.f32.mrb[132].mxu0 }
0x451b   :  { %v17778_v14 = vpop.f32.mrb[133].mxu0 }
0x454f   :  { %v17780_v31 = vpop.f32.mrb[134].mxu0 }
0x4550   :  { %18652 = vst [vmem:[#allocation32_spill] sm:$0xff] %v17780_v31  ;;  %v17782_v28 = vpop.f32.mrb[135].mxu0 }
0x4551   :  { %18653 = vst [vmem:[#allocation12_spill] sm:$0xff] %v17782_v28 }
0x4553   :  { %v13247_v40 = vpop.f32.mrb[136].mxu0 }
0x4554   :  { %v9227_v46 = vpop.f32.mrb[137].mxu0  ;;  %v9249_v35 = vsel %vm180_vm1, %v13247_v40, -inf }
0x4555   :  { %9250 = vmax.xlane.f32.xlu1 %v9249_v35  ;;  %v9246_v1 = vsel %vm180_vm1, %v9227_v46, -inf }
0x4556   :  { %9247 = vmax.xlane.f32.xlu0 %v9246_v1 }
0x4557   :  { %v13250_v21 = vpop.f32.mrb[138].mxu0 }
0x4558   :  { %v9237_v52 = vpop.f32.mrb[139].mxu0  ;;  %v9255_v17 = vsel %vm180_vm1, %v13250_v21, -inf }
0x4559   :  { %v9252_v33 = vsel %vm180_vm1, %v9237_v52, -inf }
0x455a   :  { %9253 = vmax.xlane.f32.xlu0 %v9252_v33 }
0x455e   :  { %9256 = vmax.xlane.f32.xlu0 %v9255_v17 }
0x4566   :  { %14781 = vrot.lane.b32.xlu1 %v17543_v59, %s18633_s24 }
0x456a   :  { %14791 = vrot.lane.b32.xlu1 %v17543_v59, %s18634_s30 }
0x45e2   :  { %v9251_v15 = vpop.xlane.xlu1 %9250 }
0x45e3   :  { %v9259_v57 = vsub.f32 %v13247_v40, %v9251_v15  ;;  %v9248_v50 = vpop.xlane.xlu0 %9247 }
0x45e4   :  { %v9258_v7 = vsub.f32 %v9227_v46, %v9248_v50 }
0x45e5   :  { %v9264_v53 = vmul.f32 1.442695, %v9259_v57 }
0x45e6   :  { %v9262_v36 = vmul.f32 1.442695, %v9258_v7  ;;  %v14782_v6 = vpop.permute.xlu1 %14781 }
0x45e7   :  { %15340 = vpow2.f32 %v9264_v53  ;;  %v14784_v2 = vunpack.i.h.bf16 %v14782_v6  ;;  %v14783_v35 = vunpack.i.l.bf16 %v14782_v6  ;;  %v9254_v40 = vpop.xlane.xlu0 %9253 }
0x45e8   :  { %15342 = vpow2.f32 %v9262_v36  ;;  %v9260_v57 = vsub.f32 %v9237_v52, %v9254_v40 }
0x45e9   :  { %v14061_v1 = vpack.c.bf16 %v14784_v2, %v14783_v35 }
0x45ea   :  { %v9266_v7 = vmul.f32 1.442695, %v9260_v57 }
0x45eb   :  { %14062 = vmatprep.subr.bf16.mxu1 %v14061_v1  ;;  %v9257_v46 = vpop.xlane.xlu0 %9256 }
0x45ec   :  { %14064 = vmatpush3.bf16.msra.mxu1 %v14061_v1  ;;  %v9261_v15 = vsub.f32 %v13250_v21, %v9257_v46  ;;  %v14792_v21 = vpop.permute.xlu1 %14791 }
0x45ed   :  { %v14794_v35 = vunpack.i.h.bf16 %v14792_v21  ;;  %v14793_v1 = vunpack.i.l.bf16 %v14792_v21 }
0x45ee   :  { %v9268_v50 = vmul.f32 1.442695, %v9261_v15 }
0x45ef   :  { %v14069_v57 = vpack.c.bf16 %v14794_v35, %v14793_v1 }
0x45f0   :  { %15344 = vpow2.f32 %v9268_v50 }
0x45f1   :  { %v15341_v33 = vpop.eup %15340  ;;  %15346 = vpow2.f32 %v9266_v7 }
0x45f2   :  { %v15343_v17 = vpop.eup %15342  ;;  %v9273_v31 = vsel %vm180_vm1, %v15341_v33, 0.0 }
0x45f3   :  { %9274 = vadd.xlane.f32.xlu0 %v9273_v31  ;;  %v9270_v28 = vsel %vm180_vm1, %v15343_v17, 0.0 }
0x45f4   :  { %9271 = vadd.xlane.f32.xlu1 %v9270_v28 }
0x45fa   :  { %v15345_v53 = vpop.eup %15344 }
0x45fb   :  { %v15347_v36 = vpop.eup %15346  ;;  %v9279_v31 = vsel %vm180_vm1, %v15345_v53, 0.0 }
0x45fc   :  { %v9276_v28 = vsel %vm180_vm1, %v15347_v36, 0.0 }
0x4605   :  { %14796 = vrot.lane.b32.xlu1 %v17560_v23, %s18634_s30 }
0x4609   :  { %14786 = vrot.lane.b32.xlu0 %v17560_v23, %s18633_s24 }
0x4628   :  { %9280 = vadd.xlane.f32.xlu0 %v9279_v31 }
0x4629   :  { %9277 = vadd.xlane.f32.xlu1 %v9276_v28 }
0x463a   :  { %9401 = vrot.lane.b32.xlu1 %v17535_v22, %s18635_s18 }
0x463e   :  { %9405 = vrot.lane.b32.xlu1 %v17552_v63, %s18635_s18  ;;  %9399 = vrot.lane.b32.xlu0 %v17539_v61, %s18635_s18 }
0x4642   :  { %9403 = vrot.lane.b32.xlu0 %v17556_v39, %s18635_s18 }
0x4680   :  { %v9275_v52 = vpop.xlane.xlu0 %9274 }
0x4681   :  { %15348 = vrcp.f32 %v9275_v52  ;;  %v9272_v6 = vpop.xlane.xlu1 %9271 }
0x4682   :  { %15350 = vrcp.f32 %v9272_v6 }
0x4684   :  { %v14787_v2 = vpop.permute.xlu0 %14786 }
0x4685   :  { %v14789_v40 = vunpack.i.h.bf16 %v14787_v2  ;;  %v14788_v46 = vunpack.i.l.bf16 %v14787_v2  ;;  %v14797_v7 = vpop.permute.xlu1 %14796 }
0x4686   :  { %v14799_v52 = vunpack.i.h.bf16 %v14797_v7  ;;  %v14798_v47 = vunpack.i.l.bf16 %v14797_v7 }
0x4687   :  { %v14065_v15 = vpack.c.bf16 %v14789_v40, %v14788_v46 }
0x4688   :  { %v14075_v21 = vpack.c.bf16 %v14799_v52, %v14798_v47 }
0x4689   :  { %14066 = vmatprep.subr.bf16.mxu1 %v14065_v15 }
0x468a   :  { %14068 = vmatpush3.bf16.msra.mxu1 %v14065_v15 }
0x468b   :  { %v15349_v50 = vpop.eup %15348  ;;  %14071 = vmatprep.subr.msk.bf16.mxu1 %vm15662_vm3, %v14069_v57 }
0x468c   :  { %v15351_v31 = vpop.eup %15350  ;;  %v9287_v49 = vmul.f32 %v15349_v50, %v15341_v33 }
0x468d   :  { %v9286_v28 = vmul.f32 %v15351_v31, %v15343_v17 }
0x468f   :  { %13259 = vmatprep.mubr.msk.f32.mxu1 %vm180_vm1, %v9286_v28 }
0x4690   :  { %13260 = vmatmul.mubr.msk.f32.vlgmr.msra.gmra.mrb[136].mxu1 %vm180_vm1, %v9287_v49 }
0x4693   :  { %14074 = vmatpush3.bf16.xpose.msk.msra.mxu1 %vm15662_vm3, %v14069_v57 }
0x4694   :  { %14077 = vmatprep.subr.msk.bf16.mxu1 %vm15662_vm3, %v14075_v21 }
0x469b   :  { %14080 = vmatpush3.bf16.xpose.msk.msra.mxu1 %vm15662_vm3, %v14075_v21 }
0x46b5   :  { %v9281_v6 = vpop.xlane.xlu0 %9280 }
0x46b6   :  { %15352 = vrcp.f32 %v9281_v6  ;;  %v9278_v17 = vpop.xlane.xlu1 %9277 }
0x46b7   :  { %15354 = vrcp.f32 %v9278_v17 }
0x46b9   :  { %v9400_v1 = vpop.permute.xlu0 %9399 }
0x46ba   :  { %v9402_v47 = vpop.permute.xlu1 %9401 }
0x46bd   :  { %v9404_v49 = vpop.permute.xlu0 %9403 }
0x46be   :  { %v9406_v46 = vpop.permute.xlu1 %9405 }
0x46c0   :  { %v15353_v33 = vpop.eup %15352 }
0x46c1   :  { %v15355_v2 = vpop.eup %15354  ;;  %v9289_v40 = vmul.f32 %v15353_v33, %v15345_v53 }
0x46c2   :  { %v9288_v35 = vmul.f32 %v15355_v2, %v15347_v36 }
0x46c4   :  { %13262 = vmatprep.mubr.msk.f32.mxu1 %vm180_vm1, %v9288_v35 }
0x46c5   :  { %13263 = vmatmul.mubr.msk.f32.gmra.mrb[138].mxu1 %vm180_vm1, %v9289_v40 }
0x46c6   :  { %13273 = vmatprep.mubr.msk.f32.mxu1 %vm322_vm2, %v9400_v1 }
0x46c9   :  { %13274 = vmatmul.mubr.msk.f32.vlgmr.msra.gmra.mrb[140].mxu1 %vm322_vm2, %v9402_v47 }
0x46ca   :  { %13276 = vmatprep.mubr.msk.f32.mxu1 %vm322_vm2, %v9404_v49 }
0x46cd   :  { %13277 = vmatmul.mubr.msk.f32.gmra.mrb[142].mxu1 %vm322_vm2, %v9406_v46 }
0x4763   :  { %v17824_v15 = vpop.f32.mrb[136].mxu1 }
0x4764   :  { %18654 = vst [vmem:[#allocation11_spill] sm:$0xff] %v17824_v15  ;;  %v17826_v36 = vpop.f32.mrb[137].mxu1 }
0x4765   :  { %18655 = vst [vmem:[#allocation14_spill] sm:$0xff] %v17826_v36 }
0x4798   :  { %v17828_v53 = vpop.f32.mrb[138].mxu1 }
0x4799   :  { %18656 = vst [vmem:[#allocation13_spill] sm:$0xff] %v17828_v53  ;;  %v17830_v57 = vpop.f32.mrb[139].mxu1 }
0x479a   :  { %18657 = vst [vmem:[#allocation7_spill] sm:$0xff] %v17830_v57 }
0x479c   :  { %v13275_v50 = vpop.f32.mrb[140].mxu1 }
0x479d   :  { %v9497_v7 = vpop.f32.mrb[141].mxu1  ;;  %v9519_v31 = vsel %vm180_vm1, %v13275_v50, -inf }
0x479e   :  { %9520 = vmax.xlane.f32.xlu1 %v9519_v31  ;;  %v9516_v28 = vsel %vm180_vm1, %v9497_v7, -inf }
0x479f   :  { %9517 = vmax.xlane.f32.xlu0 %v9516_v28 }
0x47a0   :  { %v13278_v52 = vpop.f32.mrb[142].mxu1 }
0x47a1   :  { %v9507_v21 = vpop.f32.mrb[143].mxu1  ;;  %v9525_v17 = vsel %vm180_vm1, %v13278_v52, -inf }
0x47a2   :  { %v9522_v6 = vsel %vm180_vm1, %v9507_v21, -inf }
0x47a3   :  { %9523 = vmax.xlane.f32.xlu0 %v9522_v6 }
0x47a7   :  { %9526 = vmax.xlane.f32.xlu0 %v9525_v17 }
0x47af   :  { %14801 = vrot.lane.b32.xlu1 %v17543_v59, %s18636_s19 }
0x47b3   :  { %14811 = vrot.lane.b32.xlu1 %v17543_v59, %s18637_s25 }
0x482b   :  { %v9521_v33 = vpop.xlane.xlu1 %9520 }
0x482c   :  { %v9529_v2 = vsub.f32 %v13275_v50, %v9521_v33  ;;  %v9518_v35 = vpop.xlane.xlu0 %9517 }
0x482d   :  { %v9528_v1 = vsub.f32 %v9497_v7, %v9518_v35 }
0x482e   :  { %v9534_v40 = vmul.f32 1.442695, %v9529_v2 }
0x482f   :  { %v9532_v47 = vmul.f32 1.442695, %v9528_v1  ;;  %v14802_v49 = vpop.permute.xlu1 %14801 }
0x4830   :  { %15356 = vpow2.f32 %v9534_v40  ;;  %v14804_v46 = vunpack.i.h.bf16 %v14802_v49  ;;  %v14803_v31 = vunpack.i.l.bf16 %v14802_v49  ;;  %v9524_v50 = vpop.xlane.xlu0 %9523 }
0x4831   :  { %15358 = vpow2.f32 %v9532_v47  ;;  %v9530_v2 = vsub.f32 %v9507_v21, %v9524_v50 }
0x4832   :  { %v14081_v28 = vpack.c.bf16 %v14804_v46, %v14803_v31 }
0x4833   :  { %v9536_v1 = vmul.f32 1.442695, %v9530_v2 }
0x4834   :  { %14082 = vmatprep.subr.bf16.mxu0 %v14081_v28  ;;  %v9527_v7 = vpop.xlane.xlu0 %9526 }
0x4835   :  { %14084 = vmatpush3.bf16.msra.mxu0 %v14081_v28  ;;  %v9531_v33 = vsub.f32 %v13278_v52, %v9527_v7  ;;  %v14812_v52 = vpop.permute.xlu1 %14811 }
0x4836   :  { %v14814_v31 = vunpack.i.h.bf16 %v14812_v52  ;;  %v14813_v28 = vunpack.i.l.bf16 %v14812_v52 }
0x4837   :  { %v9538_v35 = vmul.f32 1.442695, %v9531_v33 }
0x4838   :  { %v14089_v2 = vpack.c.bf16 %v14814_v31, %v14813_v28 }
0x4839   :  { %15360 = vpow2.f32 %v9538_v35 }
0x483a   :  { %v15357_v6 = vpop.eup %15356  ;;  %15362 = vpow2.f32 %v9536_v1 }
0x483b   :  { %v15359_v17 = vpop.eup %15358  ;;  %v9543_v53 = vsel %vm180_vm1, %v15357_v6, 0.0 }
0x483c   :  { %9544 = vadd.xlane.f32.xlu0 %v9543_v53  ;;  %v9540_v57 = vsel %vm180_vm1, %v15359_v17, 0.0 }
0x483d   :  { %9541 = vadd.xlane.f32.xlu1 %v9540_v57 }
0x4843   :  { %v15361_v40 = vpop.eup %15360 }
0x4844   :  { %v15363_v47 = vpop.eup %15362  ;;  %v9549_v53 = vsel %vm180_vm1, %v15361_v40, 0.0 }
0x4845   :  { %v9546_v57 = vsel %vm180_vm1, %v15363_v47, 0.0 }
0x484e   :  { %14816 = vrot.lane.b32.xlu1 %v17560_v23, %s18637_s25 }
0x4852   :  { %14806 = vrot.lane.b32.xlu0 %v17560_v23, %s18636_s19 }
0x4871   :  { %9550 = vadd.xlane.f32.xlu0 %v9549_v53 }
0x4872   :  { %9547 = vadd.xlane.f32.xlu1 %v9546_v57 }
0x4883   :  { %9671 = vrot.lane.b32.xlu1 %v17535_v22, %s18638_s26 }
0x4887   :  { %9675 = vrot.lane.b32.xlu1 %v17552_v63, %s18638_s26  ;;  %9669 = vrot.lane.b32.xlu0 %v17539_v61, %s18638_s26 }
0x488b   :  { %9673 = vrot.lane.b32.xlu0 %v17556_v39, %s18638_s26 }
0x48c9   :  { %v9545_v21 = vpop.xlane.xlu0 %9544 }
0x48ca   :  { %15364 = vrcp.f32 %v9545_v21  ;;  %v9542_v49 = vpop.xlane.xlu1 %9541 }
0x48cb   :  { %15366 = vrcp.f32 %v9542_v49 }
0x48cd   :  { %v14807_v46 = vpop.permute.xlu0 %14806 }
0x48ce   :  { %v14809_v50 = vunpack.i.h.bf16 %v14807_v46  ;;  %v14808_v7 = vunpack.i.l.bf16 %v14807_v46  ;;  %v14817_v1 = vpop.permute.xlu1 %14816 }
0x48cf   :  { %v14819_v21 = vunpack.i.h.bf16 %v14817_v1  ;;  %v14818_v36 = vunpack.i.l.bf16 %v14817_v1 }
0x48d0   :  { %v14085_v33 = vpack.c.bf16 %v14809_v50, %v14808_v7 }
0x48d1   :  { %v14095_v52 = vpack.c.bf16 %v14819_v21, %v14818_v36 }
0x48d2   :  { %14086 = vmatprep.subr.bf16.mxu0 %v14085_v33 }
0x48d3   :  { %14088 = vmatpush3.bf16.msra.mxu0 %v14085_v33 }
0x48d4   :  { %v15365_v35 = vpop.eup %15364  ;;  %14091 = vmatprep.subr.msk.bf16.mxu0 %vm15662_vm3, %v14089_v2 }
0x48d5   :  { %v15367_v53 = vpop.eup %15366  ;;  %v9557_v15 = vmul.f32 %v15365_v35, %v15357_v6 }
0x48d6   :  { %v9556_v57 = vmul.f32 %v15367_v53, %v15359_v17 }
0x48d8   :  { %13287 = vmatprep.mubr.msk.f32.mxu0 %vm180_vm1, %v9556_v57 }
0x48d9   :  { %13288 = vmatmul.mubr.msk.f32.vlgmr.msra.gmra.mrb[140].mxu0 %vm180_vm1, %v9557_v15 }
0x48dc   :  { %14094 = vmatpush3.bf16.xpose.msk.msra.mxu0 %vm15662_vm3, %v14089_v2 }
0x48dd   :  { %14097 = vmatprep.subr.msk.bf16.mxu0 %vm15662_vm3, %v14095_v52 }
0x48e4   :  { %14100 = vmatpush3.bf16.xpose.msk.msra.mxu0 %vm15662_vm3, %v14095_v52 }
0x48fe   :  { %v9551_v49 = vpop.xlane.xlu0 %9550 }
0x48ff   :  { %15368 = vrcp.f32 %v9551_v49  ;;  %v9548_v17 = vpop.xlane.xlu1 %9547 }
0x4900   :  { %15370 = vrcp.f32 %v9548_v17 }
0x4902   :  { %v9670_v28 = vpop.permute.xlu0 %9669 }
0x4903   :  { %v9672_v15 = vpop.permute.xlu1 %9671 }
0x4906   :  { %v9674_v36 = vpop.permute.xlu0 %9673 }
0x4907   :  { %v9676_v7 = vpop.permute.xlu1 %9675 }
0x4909   :  { %v15369_v6 = vpop.eup %15368 }
0x490a   :  { %v15371_v46 = vpop.eup %15370  ;;  %v9559_v50 = vmul.f32 %v15369_v6, %v15361_v40 }
0x490b   :  { %v9558_v31 = vmul.f32 %v15371_v46, %v15363_v47 }
0x490d   :  { %13290 = vmatprep.mubr.msk.f32.mxu0 %vm180_vm1, %v9558_v31 }
0x490e   :  { %13291 = vmatmul.mubr.msk.f32.gmra.mrb[142].mxu0 %vm180_vm1, %v9559_v50 }
0x490f   :  { %13301 = vmatprep.mubr.msk.f32.mxu0 %vm322_vm2, %v9670_v28 }
0x4912   :  { %13302 = vmatmul.mubr.msk.f32.vlgmr.msra.gmra.mrb[144].mxu0 %vm322_vm2, %v9672_v15 }
0x4913   :  { %13304 = vmatprep.mubr.msk.f32.mxu0 %vm322_vm2, %v9674_v36 }
0x4916   :  { %13305 = vmatmul.mubr.msk.f32.gmra.mrb[146].mxu0 %vm322_vm2, %v9676_v7 }
0x49ac   :  { %v17872_v33 = vpop.f32.mrb[140].mxu0 }
0x49ad   :  { %v17874_v47 = vpop.f32.mrb[141].mxu0 }
0x49e1   :  { %v17876_v40 = vpop.f32.mrb[142].mxu0 }
0x49e2   :  { %18658 = vst [vmem:[#allocation8_spill] sm:$0xff] %v17876_v40  ;;  %v17878_v2 = vpop.f32.mrb[143].mxu0 }
0x49e3   :  { %18659 = vst [vmem:[#allocation10_spill] sm:$0xff] %v17878_v2 }
0x49e5   :  { %v13303_v35 = vpop.f32.mrb[144].mxu0 }
0x49e6   :  { %v9767_v1 = vpop.f32.mrb[145].mxu0  ;;  %v9789_v53 = vsel %vm180_vm1, %v13303_v35, -inf }
0x49e7   :  { %9790 = vmax.xlane.f32.xlu1 %v9789_v53  ;;  %v9786_v57 = vsel %vm180_vm1, %v9767_v1, -inf }
0x49e8   :  { %9787 = vmax.xlane.f32.xlu0 %v9786_v57 }
0x49e9   :  { %v13306_v21 = vpop.f32.mrb[146].mxu0 }
0x49ea   :  { %v9777_v52 = vpop.f32.mrb[147].mxu0  ;;  %v9795_v17 = vsel %vm180_vm1, %v13306_v21, -inf }
0x49eb   :  { %v9792_v49 = vsel %vm180_vm1, %v9777_v52, -inf }
0x49ec   :  { %9793 = vmax.xlane.f32.xlu0 %v9792_v49 }
0x49f0   :  { %9796 = vmax.xlane.f32.xlu0 %v9795_v17 }
0x49f8   :  { %14821 = vrot.lane.b32.xlu1 %v17543_v59, %s18639_s2 }
0x49fc   :  { %14831 = vrot.lane.b32.xlu1 %v17543_v59, %s18640_s20 }
0x4a00   :  { %14836 = vrot.lane.b32.xlu1 %v17560_v23, %s18640_s20 }
0x4a74   :  { %v9791_v6 = vpop.xlane.xlu1 %9790 }
0x4a75   :  { %v9799_v46 = vsub.f32 %v13303_v35, %v9791_v6  ;;  %v9788_v31 = vpop.xlane.xlu0 %9787 }
0x4a76   :  { %v9798_v28 = vsub.f32 %v9767_v1, %v9788_v31 }
0x4a77   :  { %v9804_v50 = vmul.f32 1.442695, %v9799_v46 }
0x4a78   :  { %v9802_v15 = vmul.f32 1.442695, %v9798_v28  ;;  %v14822_v36 = vpop.permute.xlu1 %14821 }
0x4a79   :  { %15372 = vpow2.f32 %v9804_v50  ;;  %v14824_v7 = vunpack.i.h.bf16 %v14822_v36  ;;  %v14823_v53 = vunpack.i.l.bf16 %v14822_v36  ;;  %v9794_v35 = vpop.xlane.xlu0 %9793 }
0x4a7a   :  { %15374 = vpow2.f32 %v9802_v15  ;;  %v9800_v46 = vsub.f32 %v9777_v52, %v9794_v35 }
0x4a7b   :  { %v14101_v57 = vpack.c.bf16 %v14824_v7, %v14823_v53 }
0x4a7c   :  { %v9806_v28 = vmul.f32 1.442695, %v9800_v46 }
0x4a7d   :  { %14102 = vmatprep.subr.bf16.mxu1 %v14101_v57  ;;  %v9797_v1 = vpop.xlane.xlu0 %9796 }
0x4a7e   :  { %14104 = vmatpush3.bf16.msra.mxu1 %v14101_v57  ;;  %v9801_v6 = vsub.f32 %v13306_v21, %v9797_v1 }
0x4a80   :  { %v9808_v31 = vmul.f32 1.442695, %v9801_v6 }
0x4a82   :  { %15376 = vpow2.f32 %v9808_v31 }
0x4a83   :  { %v15373_v49 = vpop.eup %15372  ;;  %15378 = vpow2.f32 %v9806_v28 }
0x4a84   :  { %v15375_v17 = vpop.eup %15374  ;;  %v9813_v2 = vsel %vm180_vm1, %v15373_v49, 0.0 }
0x4a85   :  { %9814 = vadd.xlane.f32.xlu0 %v9813_v2  ;;  %v9810_v40 = vsel %vm180_vm1, %v15375_v17, 0.0 }
0x4a86   :  { %9811 = vadd.xlane.f32.xlu1 %v9810_v40 }
0x4a8c   :  { %v15377_v50 = vpop.eup %15376 }
0x4a8d   :  { %v15379_v15 = vpop.eup %15378  ;;  %v9819_v2 = vsel %vm180_vm1, %v15377_v50, 0.0 }
0x4a8e   :  { %v9816_v40 = vsel %vm180_vm1, %v15379_v15, 0.0 }
0x4a97   :  { %9941 = vrot.lane.b32.xlu1 %v17535_v22, %s18641_s28  ;;  %v14832_v22 = vpop.permute.xlu1 %14831 }
0x4a98   :  { %v14834_v53 = vunpack.i.h.bf16 %v14832_v22  ;;  %v14833_v57 = vunpack.i.l.bf16 %v14832_v22 }
0x4a9a   :  { %v14109_v46 = vpack.c.bf16 %v14834_v53, %v14833_v57 }
0x4a9b   :  { %14826 = vrot.lane.b32.xlu0 %v17560_v23, %s18639_s2  ;;  %v14837_v21 = vpop.permute.xlu1 %14836 }
0x4a9c   :  { %v14839_v31 = vunpack.i.h.bf16 %v14837_v21  ;;  %v14838_v28 = vunpack.i.l.bf16 %v14837_v21 }
0x4aba   :  { %9820 = vadd.xlane.f32.xlu0 %v9819_v2 }
0x4abb   :  { %9817 = vadd.xlane.f32.xlu1 %v9816_v40  ;;  %v14115_v40 = vpack.c.bf16 %v14839_v31, %v14838_v28 }
0x4acc   :  { %9945 = vrot.lane.b32.xlu1 %v17552_v63, %s18641_s28 }
0x4ad0   :  { %9939 = vrot.lane.b32.xlu0 %v17539_v61, %s18641_s28 }
0x4ad4   :  { %9943 = vrot.lane.b32.xlu0 %v17556_v39, %s18641_s28 }
0x4b12   :  { %v9815_v52 = vpop.xlane.xlu0 %9814 }
0x4b13   :  { %15380 = vrcp.f32 %v9815_v52  ;;  %v9812_v36 = vpop.xlane.xlu1 %9811 }
0x4b14   :  { %15382 = vrcp.f32 %v9812_v36 }
0x4b16   :  { %v14827_v7 = vpop.permute.xlu0 %14826 }
0x4b17   :  { %v14829_v35 = vunpack.i.h.bf16 %v14827_v7  ;;  %v14828_v1 = vunpack.i.l.bf16 %v14827_v7  ;;  %v9942_v22 = vpop.permute.xlu1 %9941 }
0x4b19   :  { %v14105_v6 = vpack.c.bf16 %v14829_v35, %v14828_v1 }
0x4b1b   :  { %14106 = vmatprep.subr.bf16.mxu1 %v14105_v6 }
0x4b1c   :  { %14108 = vmatpush3.bf16.msra.mxu1 %v14105_v6 }
0x4b1d   :  { %v15381_v63 = vpop.eup %15380  ;;  %14111 = vmatprep.subr.msk.bf16.mxu1 %vm15662_vm3, %v14109_v46 }
0x4b1e   :  { %v15383_v61 = vpop.eup %15382  ;;  %v9827_v2 = vmul.f32 %v15381_v63, %v15373_v49 }
0x4b1f   :  { %v9826_v39 = vmul.f32 %v15383_v61, %v15375_v17 }
0x4b21   :  { %13315 = vmatprep.mubr.msk.f32.mxu1 %vm180_vm1, %v9826_v39 }
0x4b22   :  { %13316 = vmatmul.mubr.msk.f32.vlgmr.msra.gmra.mrb[144].mxu1 %vm180_vm1, %v9827_v2 }
0x4b25   :  { %14114 = vmatpush3.bf16.xpose.msk.msra.mxu1 %vm15662_vm3, %v14109_v46 }
0x4b26   :  { %14117 = vmatprep.subr.msk.bf16.mxu1 %vm15662_vm3, %v14115_v40 }
0x4b2d   :  { %14120 = vmatpush3.bf16.xpose.msk.msra.mxu1 %vm15662_vm3, %v14115_v40 }
0x4b47   :  { %v9821_v52 = vpop.xlane.xlu0 %9820 }
0x4b48   :  { %15384 = vrcp.f32 %v9821_v52  ;;  %v9818_v17 = vpop.xlane.xlu1 %9817 }
0x4b49   :  { %15386 = vrcp.f32 %v9818_v17 }
0x4b4b   :  { %v9940_v7 = vpop.permute.xlu0 %9939 }
0x4b4c   :  { %v9946_v55 = vpop.permute.xlu1 %9945 }
0x4b4f   :  { %v9944_v57 = vpop.permute.xlu0 %9943 }
0x4b52   :  { %v15385_v49 = vpop.eup %15384 }
0x4b53   :  { %v15387_v21 = vpop.eup %15386  ;;  %v9829_v53 = vmul.f32 %v15385_v49, %v15377_v50 }
0x4b54   :  { %v9828_v36 = vmul.f32 %v15387_v21, %v15379_v15 }
0x4b56   :  { %13318 = vmatprep.mubr.msk.f32.mxu1 %vm180_vm1, %v9828_v36 }
0x4b57   :  { %13319 = vmatmul.mubr.msk.f32.gmra.mrb[146].mxu1 %vm180_vm1, %v9829_v53 }
0x4b58   :  { %13329 = vmatprep.mubr.msk.f32.mxu1 %vm322_vm2, %v9940_v7 }
0x4b5b   :  { %13330 = vmatmul.mubr.msk.f32.vlgmr.msra.gmra.mrb[148].mxu1 %vm322_vm2, %v9942_v22 }
0x4b5c   :  { %13332 = vmatprep.mubr.msk.f32.mxu1 %vm322_vm2, %v9944_v57 }
0x4b5f   :  { %13333 = vmatmul.mubr.msk.f32.gmra.mrb[150].mxu1 %vm322_vm2, %v9946_v55 }
0x4bf5   :  { %v17920_v35 = vpop.f32.mrb[144].mxu1 }
0x4bf6   :  { %v17922_v1 = vpop.f32.mrb[145].mxu1 }
0x4c2a   :  { %v17924_v15 = vpop.f32.mrb[146].mxu1 }
0x4c2b   :  { %v17926_v50 = vpop.f32.mrb[147].mxu1 }
0x4c2e   :  { %v13331_v6 = vpop.f32.mrb[148].mxu1 }
0x4c2f   :  { %v10037_v46 = vpop.f32.mrb[149].mxu1  ;;  %v10059_v63 = vsel %vm180_vm1, %v13331_v6, -inf }
0x4c30   :  { %10060 = vmax.xlane.f32.xlu1 %v10059_v63  ;;  %v10056_v61 = vsel %vm180_vm1, %v10037_v46, -inf }
0x4c31   :  { %10057 = vmax.xlane.f32.xlu0 %v10056_v61 }
0x4c32   :  { %v13334_v39 = vpop.f32.mrb[150].mxu1 }
0x4c33   :  { %v10047_v31 = vpop.f32.mrb[151].mxu1  ;;  %v10065_v2 = vsel %vm180_vm1, %v13334_v39, -inf }
0x4c34   :  { %v10062_v28 = vsel %vm180_vm1, %v10047_v31, -inf }
0x4c35   :  { %10063 = vmax.xlane.f32.xlu0 %v10062_v28 }
0x4c39   :  { %10066 = vmax.xlane.f32.xlu0 %v10065_v2 }
0x4cbd   :  { %v10061_v40 = vpop.xlane.xlu1 %10060 }
0x4cbe   :  { %v10069_v22 = vsub.f32 %v13331_v6, %v10061_v40  ;;  %v10058_v52 = vpop.xlane.xlu0 %10057 }
0x4cbf   :  { %v10068_v17 = vsub.f32 %v10037_v46, %v10058_v52 }
0x4cc0   :  { %v10074_v49 = vmul.f32 1.442695, %v10069_v22  ;;  %v18661_v22 = vpack.i.bf16 %v16945_v30, %v16940_v37  ;;  %v18662_v37 = vpack.i.bf16 %v16959_v10, %v16950_v5  ;;  %v18667_v30 = vld [vmem:[#allocation27_spill] sm:$0xff]  ;;  %v18668_v5 = vld [vmem:[#allocation25_spill] sm:$0xff]  ;;  %v18669_v10 = vld [vmem:[#allocation14_spill] sm:$0xff] }
0x4cc1   :  { %v10072_v21 = vmul.f32 1.442695, %v10068_v17 }
0x4cc2   :  { %15388 = vpow2.f32 %v10074_v49  ;;  %v10064_v36 = vpop.xlane.xlu0 %10063 }
0x4cc3   :  { %15390 = vpow2.f32 %v10072_v21  ;;  %v10070_v7 = vsub.f32 %v10047_v31, %v10064_v36 }
0x4cc5   :  { %v10076_v53 = vmul.f32 1.442695, %v10070_v7 }
0x4cc6   :  { %v10067_v57 = vpop.xlane.xlu0 %10066 }
0x4cc7   :  { %15392 = vpow2.f32 %v10076_v53  ;;  %v10071_v55 = vsub.f32 %v13334_v39, %v10067_v57 }
0x4cc9   :  { %v10078_v63 = vmul.f32 1.442695, %v10071_v55 }
0x4ccb   :  { %15394 = vpow2.f32 %v10078_v63 }
0x4ccc   :  { %v17932_v61 = vpop.eup %15388 }
0x4ccd   :  { %v17934_v28 = vpop.eup %15390  ;;  %v10083_v6 = vsel %vm180_vm1, %v17932_v61, 0.0 }
0x4cce   :  { %10084 = vadd.xlane.f32.xlu0 %v10083_v6  ;;  %v10080_v46 = vsel %vm180_vm1, %v17934_v28, 0.0 }
0x4ccf   :  { %10081 = vadd.xlane.f32.xlu1 %v10080_v46  ;;  %v18680_v46 = vld [vmem:[#allocation24_spill] sm:$0xff] }
0x4cd1   :  { %v17940_v2 = vpop.eup %15392 }
0x4cd2   :  { %v10086_v31 = vsel %vm180_vm1, %v17940_v2, 0.0 }
0x4cd3   :  { %10087 = vadd.xlane.f32.xlu1 %v10086_v31 }
0x4cd5   :  { %v17944_v39 = vpop.eup %15394 }
0x4cd6   :  { %v10089_v40 = vsel %vm180_vm1, %v17944_v39, 0.0 }
0x4cd7   :  { %10090 = vadd.xlane.f32.xlu0 %v10089_v40 }
0x4ce4   :  { %14841 = vrot.lane.b32.xlu1 %v17543_v59, %s18642_s29 }
0x4ce8   :  { %14851 = vrot.lane.b32.xlu1 %v18661_v22, %s18660_s0 }
0x4cec   :  { %7917 = vrot.lane.b32.xlu1 %v17278_v38, %s15462_s8  ;;  %v18671_v38 = vld [vmem:[#allocation31_spill] sm:$0xff] }
0x4ced   :  { %14846 = vrot.lane.b32.xlu0 %v17560_v23, %s18642_s29 }
0x4cf0   :  { %7933 = vrot.lane.b32.xlu1 %v17326_v34, %s15463_s27  ;;  %v18675_v34 = vld [vmem:[#allocation7_spill] sm:$0xff] }
0x4cf1   :  { %7919 = vrot.lane.b32.xlu0 %v17276_v27, %s15462_s8  ;;  %v18670_v27 = vld [vmem:[#allocation11_spill] sm:$0xff] }
0x4cf4   :  { %7949 = vrot.lane.b32.xlu1 %v17374_v44, %s15464_s1  ;;  %v18679_v44 = vld [vmem:[#allocation10_spill] sm:$0xff] }
0x4cf5   :  { %7935 = vrot.lane.b32.xlu0 %v17324_v48, %s15463_s27  ;;  %v18674_v48 = vld [vmem:[#allocation29_spill] sm:$0xff] }
0x4cf8   :  { %7951 = vrot.lane.b32.xlu1 %v17372_v62, %s15464_s1  ;;  %v18678_v62 = vld [vmem:[#allocation8_spill] sm:$0xff] }
0x4cf9   :  { %14856 = vrot.lane.b32.xlu0 %v18662_v37, %s18660_s0 }
0x4cfc   :  { %7921 = vrot.lane.b32.xlu1 %v17282_v13, %s15462_s8  ;;  %v18673_v13 = vld [vmem:[#allocation12_spill] sm:$0xff] }
0x4cfd   :  { %7965 = vrot.lane.b32.xlu0 %v17422_v4, %s18663_s9 }
0x4d00   :  { %7981 = vrot.lane.b32.xlu1 %v17470_v19, %s18664_s10 }
0x4d01   :  { %7967 = vrot.lane.b32.xlu0 %v17420_v11, %s18663_s9 }
0x4d04   :  { %7937 = vrot.lane.b32.xlu1 %v17330_v43, %s15463_s27  ;;  %v18677_v43 = vld [vmem:[#allocation32_spill] sm:$0xff] }
0x4d05   :  { %7923 = vrot.lane.b32.xlu0 %v17280_v0, %s15462_s8  ;;  %v18672_v0 = vld [vmem:[#allocation30_spill] sm:$0xff] }
0x4d08   :  { %7997 = vrot.lane.b32.xlu1 %v17518_v9, %s18665_s11 }
0x4d09   :  { %7983 = vrot.lane.b32.xlu0 %v17468_v12, %s18664_s10 }
0x4d0c   :  { %7953 = vrot.lane.b32.xlu1 %v17378_v56, %s15464_s1 }
0x4d0d   :  { %7939 = vrot.lane.b32.xlu0 %v17328_v42, %s15463_s27  ;;  %v18676_v42 = vld [vmem:[#allocation13_spill] sm:$0xff] }
0x4d10   :  { %8013 = vrot.lane.b32.xlu1 %v17586_v26, %s18666_s12 }
0x4d11   :  { %7999 = vrot.lane.b32.xlu0 %v17516_v24, %s18665_s11 }
0x4d14   :  { %7969 = vrot.lane.b32.xlu1 %v17426_v18, %s18663_s9 }
0x4d15   :  { %7955 = vrot.lane.b32.xlu0 %v17376_v32, %s15464_s1 }
0x4d18   :  { %7971 = vrot.lane.b32.xlu1 %v17424_v51, %s18663_s9 }
0x4d19   :  { %8015 = vrot.lane.b32.xlu0 %v17584_v3, %s18666_s12 }
0x4d1c   :  { %10213 = vrot.lane.b32.xlu1 %v17682_v54, %s15462_s8 }
0x4d1d   :  { %7985 = vrot.lane.b32.xlu0 %v17474_v58, %s18664_s10 }
0x4d20   :  { %8001 = vrot.lane.b32.xlu1 %v17522_v16, %s18665_s11 }
0x4d21   :  { %7987 = vrot.lane.b32.xlu0 %v17472_v20, %s18664_s10 }
0x4d24   :  { %10229 = vrot.lane.b32.xlu1 %v17730_v29, %s15463_s27 }
0x4d25   :  { %10215 = vrot.lane.b32.xlu0 %v17680_v41, %s15462_s8 }
0x4d28   :  { %8017 = vrot.lane.b32.xlu1 %v17590_v45, %s18666_s12 }
0x4d29   :  { %8003 = vrot.lane.b32.xlu0 %v17520_v25, %s18665_s11 }
0x4d2c   :  { %10245 = vrot.lane.b32.xlu1 %v17778_v14, %s15464_s1 }
0x4d2d   :  { %10231 = vrot.lane.b32.xlu0 %v17728_v8, %s15463_s27 }
0x4d30   :  { %10247 = vrot.lane.b32.xlu1 %v17776_v60, %s15464_s1 }
0x4d31   :  { %8019 = vrot.lane.b32.xlu0 %v18667_v30, %s18666_s12  ;;  %v18681_v30 = vld [vmem:[#allocation23_spill] sm:$0xff] }
0x4d34   :  { %10217 = vrot.lane.b32.xlu1 %v18668_v5, %s15462_s8 }
0x4d35   :  { %10261 = vrot.lane.b32.xlu0 %v18669_v10, %s18663_s9 }
0x4d38   :  { %10277 = vrot.lane.b32.xlu1 %v17874_v47, %s18664_s10 }
0x4d39   :  { %10263 = vrot.lane.b32.xlu0 %v18670_v27, %s18663_s9 }
0x4d3c   :  { %10233 = vrot.lane.b32.xlu1 %v18671_v38, %s15463_s27 }
0x4d3d   :  { %10219 = vrot.lane.b32.xlu0 %v18672_v0, %s15462_s8 }
0x4d40   :  { %10293 = vrot.lane.b32.xlu1 %v17922_v1, %s18665_s11 }
0x4d41   :  { %10279 = vrot.lane.b32.xlu0 %v17872_v33, %s18664_s10 }
0x4d44   :  { %10249 = vrot.lane.b32.xlu1 %v18673_v13, %s15464_s1 }
0x4d45   :  { %10235 = vrot.lane.b32.xlu0 %v18674_v48, %s15463_s27 }
0x4d48   :  { %10265 = vrot.lane.b32.xlu1 %v18675_v34, %s18663_s9 }
0x4d49   :  { %10295 = vrot.lane.b32.xlu0 %v17920_v35, %s18665_s11 }
0x4d4c   :  { %10267 = vrot.lane.b32.xlu1 %v18676_v42, %s18663_s9 }
0x4d4d   :  { %10251 = vrot.lane.b32.xlu0 %v18677_v43, %s15464_s1 }
0x4d50   :  { %10283 = vrot.lane.b32.xlu1 %v18678_v62, %s18664_s10 }
0x4d51   :  { %10281 = vrot.lane.b32.xlu0 %v18679_v44, %s18664_s10 }
0x4d55   :  { %10297 = vrot.lane.b32.xlu0 %v17926_v50, %s18665_s11 }
0x4d5b   :  { %v10085_v56 = vpop.xlane.xlu0 %10084 }
0x4d5c   :  { %v10082_v32 = vpop.xlane.xlu1 %10081 }
0x4d5d   :  { %15396 = vrcp.f32 %v10082_v32 }
0x4d5e   :  { %15398 = vrcp.f32 %v10085_v56 }
0x4d60   :  { %v10088_v11 = vpop.xlane.xlu1 %10087 }
0x4d61   :  { %15400 = vrcp.f32 %v10088_v11 }
0x4d64   :  { %v14842_v4 = vpop.permute.xlu1 %14841  ;;  %v10091_v51 = vpop.xlane.xlu0 %10090 }
0x4d65   :  { %v14844_v18 = vunpack.i.h.bf16 %v14842_v4  ;;  %v14843_v12 = vunpack.i.l.bf16 %v14842_v4  ;;  %15402 = vrcp.f32 %v10091_v51 }
0x4d67   :  { %v15397_v19 = vpop.eup %15396  ;;  %v14121_v20 = vpack.c.bf16 %v14844_v18, %v14843_v12  ;;  %v18682_v12 = vld [vmem:[#allocation17_spill] sm:$0xff] }
0x4d68   :  { %v14852_v58 = vpop.permute.xlu1 %14851  ;;  %v14847_v24 = vpop.permute.xlu0 %14846  ;;  %v10096_v9 = vmul.f32 %v15397_v19, %v17934_v28 }
0x4d69   :  { %v14854_v25 = vunpack.i.h.bf16 %v14852_v58  ;;  %v14853_v16 = vunpack.i.l.bf16 %v14852_v58  ;;  %v14849_v59 = vunpack.i.h.bf16 %v14847_v24  ;;  %v14848_v23 = vunpack.i.l.bf16 %v14847_v24  ;;  %14122 = vmatprep.subr.bf16.mxu0 %v14121_v20  ;;  %v15399_v45 = vpop.eup %15398  ;;  %v18683_v24 = vld [vmem:[#allocation22_spill] sm:$0xff] }
0x4d6a   :  { %14124 = vmatpush3.bf16.msra.mxu0 %v14121_v20  ;;  %13343 = vmatprep.mubr.msk.f32.mxu0 %vm180_vm1, %v10096_v9  ;;  %v10097_v29 = vmul.f32 %v15399_v45, %v17932_v61 }
0x4d6b   :  { %v14129_v3 = vpack.c.bf16 %v14854_v25, %v14853_v16  ;;  %v14125_v26 = vpack.c.bf16 %v14849_v59, %v14848_v23  ;;  %v15401_v8 = vpop.eup %15400  ;;  %v18684_v25 = vld [vmem:[#allocation28_spill] sm:$0xff] }
0x4d6c   :  { %v7918_v41 = vpop.permute.xlu1 %7917  ;;  %v7920_v54 = vpop.permute.xlu0 %7919  ;;  %v10098_v47 = vmul.f32 %v15401_v8, %v17940_v2 }
0x4d6d   :  { %14126 = vmatprep.subr.bf16.mxu0 %v14125_v26  ;;  %v8025_v2 = vsel %vm322_vm2, %v18680_v46, %v7918_v41  ;;  %v8026_v5 = vsel %vm322_vm2, %v18681_v30, %v7920_v54  ;;  %v18685_v54 = vld [vmem:[#allocation18_spill] sm:$0xff] }
0x4d6e   :  { %14128 = vmatpush3.bf16.msra.mxu0 %v14125_v26 }
0x4d6f   :  { %14130 = vmatprep.subr.bf16.mxu0 %v14129_v3  ;;  %v15403_v60 = vpop.eup %15402 }
0x4d70   :  { %v7934_v14 = vpop.permute.xlu1 %7933  ;;  %v7936_v33 = vpop.permute.xlu0 %7935  ;;  %v10099_v35 = vmul.f32 %v15403_v60, %v17944_v39 }
0x4d71   :  { %13344 = vmatmul.mubr.msk.f32.vlgmr.msra.gmra.mrb[148].mxu0 %vm180_vm1, %v10097_v29  ;;  %v8029_v31 = vsel %vm2583_vm4, %v8025_v2, %v7934_v14  ;;  %v8030_v27 = vsel %vm2583_vm4, %v8026_v5, %v7936_v33 }
0x4d72   :  { %13346 = vmatprep.mubr.msk.f32.mxu0 %vm180_vm1, %v10098_v47  ;;  %14132 = vmatpush3.bf16.msra.mxu0 %v14129_v3 }
0x4d74   :  { %v7950_v1 = vpop.permute.xlu1 %7949  ;;  %v14857_v50 = vpop.permute.xlu0 %14856 }
0x4d75   :  { %v14859_v52 = vunpack.i.h.bf16 %v14857_v50  ;;  %v14858_v17 = vunpack.i.l.bf16 %v14857_v50  ;;  %13347 = vmatmul.mubr.msk.f32.gmra.mrb[150].mxu0 %vm180_vm1, %v10099_v35  ;;  %v8033_v22 = vsel %vm2588_vm5, %v8029_v31, %v7950_v1 }
0x4d77   :  { %v14133_v49 = vpack.c.bf16 %v14859_v52, %v14858_v17 }
0x4d78   :  { %v7952_v21 = vpop.permute.xlu1 %7951  ;;  %v7966_v36 = vpop.permute.xlu0 %7965 }
0x4d79   :  { %14134 = vmatprep.subr.bf16.mxu0 %v14133_v49  ;;  %v8037_v37 = vsel %vm41_vm0, %v8033_v22, %v7966_v36  ;;  %v8034_v48 = vsel %vm2588_vm5, %v8030_v27, %v7952_v21  ;;  %v18689_v22 = vld [vmem:[#allocation3_spill] sm:$0xff] }
0x4d7a   :  { %14136 = vmatpush3.bf16.msra.mxu0 %v14133_v49 }
0x4d7c   :  { %v7922_v7 = vpop.permute.xlu1 %7921  ;;  %v7968_v53 = vpop.permute.xlu0 %7967 }
0x4d7d   :  { %v8038_v42 = vsel %vm41_vm0, %v8034_v48, %v7968_v53  ;;  %v8027_v16 = vsel %vm322_vm2, %v18684_v25, %v7922_v7 }
0x4d80   :  { %v7982_v57 = vpop.permute.xlu1 %7981  ;;  %v7924_v55 = vpop.permute.xlu0 %7923 }
0x4d81   :  { %v8041_v10 = vsel %vm2597_vm6, %v8037_v37, %v7982_v57  ;;  %v8028_v8 = vsel %vm322_vm2, %v18685_v54, %v7924_v55 }
0x4d84   :  { %v7938_v63 = vpop.permute.xlu1 %7937  ;;  %v7984_v61 = vpop.permute.xlu0 %7983 }
0x4d85   :  { %v8042_v43 = vsel %vm2597_vm6, %v8038_v42, %v7984_v61  ;;  %v8031_v59 = vsel %vm2583_vm4, %v8027_v16, %v7938_v63  ;;  %v18123_v63 = vld [vmem:[%s18485_s5 + $0x8] sm:$0xff]  ;;  %v18686_v61 = vld [vmem:[#allocation6_spill] sm:$0xff]  ;;  %v18690_v42 = vld [vmem:[#allocation5_spill] sm:$0xff] }
0x4d88   :  { %v7998_v28 = vpop.permute.xlu1 %7997  ;;  %v7940_v6 = vpop.permute.xlu0 %7939 }
0x4d89   :  { %v8045_v38 = vsel %vm2602_vm7, %v8041_v10, %v7998_v28  ;;  %v8032_v60 = vsel %vm2583_vm4, %v8028_v8, %v7940_v6  ;;  %v18687_v28 = vsub.s32 1, %v18686_v61 }
0x4d8b   :  { %v18128_v6 = vrot.slane %v18123_v63, %v18687_v28 }
0x4d8c   :  { %v7954_v39 = vpop.permute.xlu1 %7953  ;;  %v8000_v40 = vpop.permute.xlu0 %7999 }
0x4d8d   :  { %v8046_v62 = vsel %vm2602_vm7, %v8042_v43, %v8000_v40  ;;  %v8035_v26 = vsel %vm2588_vm5, %v8031_v59, %v7954_v39  ;;  %v18688_v39 = vld [vmem:[#allocation2_spill] sm:$0xff] }
0x4d90   :  { %v8014_v0 = vpop.permute.xlu1 %8013  ;;  %v7956_v13 = vpop.permute.xlu0 %7955 }
0x4d91   :  { %v8049_v34 = vsel %vm2607_vm8, %v8045_v38, %v8014_v0  ;;  %v8036_v35 = vsel %vm2588_vm5, %v8032_v60, %v7956_v13 }
0x4d92   :  { %13357 = vmatprep.mubr.msk.f32.mxu0 %vm180_vm1, %v8049_v34 }
0x4d94   :  { %v7970_v44 = vpop.permute.xlu1 %7969  ;;  %v8016_v32 = vpop.permute.xlu0 %8015 }
0x4d95   :  { %v8050_v56 = vsel %vm2607_vm8, %v8046_v62, %v8016_v32  ;;  %v8039_v41 = vsel %vm41_vm0, %v8035_v26, %v7970_v44  ;;  %v18691_v62 = vld [vmem:[#allocation4_spill] sm:$0xff] }
0x4d96   :  { %13358 = vmatmul.mubr.msk.f32.vlgmr.msra.gmra.mrb[152].mxu0 %vm180_vm1, %v8050_v56 }
0x4d98   :  { %v7972_v11 = vpop.permute.xlu1 %7971  ;;  %v7986_v4 = vpop.permute.xlu0 %7985 }
0x4d99   :  { %v8043_v29 = vsel %vm2597_vm6, %v8039_v41, %v7986_v4  ;;  %v8040_v52 = vsel %vm41_vm0, %v8036_v35, %v7972_v11 }
0x4d9c   :  { %v10214_v51 = vpop.permute.xlu1 %10213  ;;  %v7988_v18 = vpop.permute.xlu0 %7987 }
0x4d9d   :  { %v10321_v19 = vsel %vm322_vm2, %v18682_v12, %v10214_v51  ;;  %v8044_v17 = vsel %vm2597_vm6, %v8040_v52, %v7988_v18 }
0x4da0   :  { %v8002_v20 = vpop.permute.xlu1 %8001  ;;  %v10216_v58 = vpop.permute.xlu0 %10215 }
0x4da1   :  { %v10322_v9 = vsel %vm322_vm2, %v18683_v24, %v10216_v58  ;;  %v8047_v14 = vsel %vm2602_vm7, %v8043_v29, %v8002_v20  ;;  %v18692_v29 = vld [vmem:[#allocation21_spill] sm:$0xff] }
0x4da4   :  { %v10230_v23 = vpop.permute.xlu1 %10229  ;;  %v8004_v3 = vpop.permute.xlu0 %8003 }
0x4da5   :  { %v18097_v45 = vsel %vm2583_vm4, %v10321_v19, %v10230_v23  ;;  %v8048_v49 = vsel %vm2602_vm7, %v8044_v17, %v8004_v3 }
0x4da8   :  { %v8018_v33 = vpop.permute.xlu1 %8017  ;;  %v10232_v47 = vpop.permute.xlu0 %10231 }
0x4da9   :  { %v8051_v1 = vsel %vm2607_vm8, %v8047_v14, %v8018_v33  ;;  %v10326_v50 = vsel %vm2583_vm4, %v10322_v9, %v10232_v47 }
0x4daa   :  { %13360 = vmatprep.mubr.msk.f32.mxu0 %vm180_vm1, %v8051_v1 }
0x4dac   :  { %v8020_v21 = vpop.permute.xlu0 %8019  ;;  %v10246_v10 = vpop.permute.xlu1 %10245 }
0x4dad   :  { %v8052_v36 = vsel %vm2607_vm8, %v8048_v49, %v8020_v21  ;;  %v10329_v41 = vsel %vm2588_vm5, %v18097_v45, %v10246_v10 }
0x4dae   :  { %13361 = vmatmul.mubr.msk.f32.gmra.mrb[154].mxu0 %vm180_vm1, %v8052_v36 }
0x4db0   :  { %v10262_v0 = vpop.permute.xlu0 %10261  ;;  %v10248_v34 = vpop.permute.xlu1 %10247 }
0x4db1   :  { %v10330_v54 = vsel %vm2588_vm5, %v10326_v50, %v10248_v34  ;;  %v10333_v8 = vsel %vm41_vm0, %v10329_v41, %v10262_v0  ;;  %v18697_v41 = vld [vmem:[#allocation19_spill] sm:$0xff] }
0x4db4   :  { %v10264_v56 = vpop.permute.xlu0 %10263  ;;  %v10218_v11 = vpop.permute.xlu1 %10217 }
0x4db5   :  { %v10323_v60 = vsel %vm322_vm2, %v18692_v29, %v10218_v11  ;;  %v10334_v14 = vsel %vm41_vm0, %v10330_v54, %v10264_v56  ;;  %v18695_v11 = vld [vmem:[#allocation16_spill] sm:$0xff] }
0x4db8   :  { %v10220_v51 = vpop.permute.xlu0 %10219  ;;  %v10278_v18 = vpop.permute.xlu1 %10277 }
0x4db9   :  { %v10337_v33 = vsel %vm2597_vm6, %v10333_v8, %v10278_v18 }
0x4dbc   :  { %v10280_v12 = vpop.permute.xlu0 %10279  ;;  %v10234_v19 = vpop.permute.xlu1 %10233 }
0x4dbd   :  { %v10327_v35 = vsel %vm2583_vm4, %v10323_v60, %v10234_v19  ;;  %v10338_v1 = vsel %vm2597_vm6, %v10334_v14, %v10280_v12 }
0x4dc0   :  { %v10236_v20 = vpop.permute.xlu0 %10235  ;;  %v10294_v58 = vpop.permute.xlu1 %10293 }
0x4dc1   :  { %v10341_v52 = vsel %vm2602_vm7, %v10337_v33, %v10294_v58 }
0x4dc4   :  { %v10296_v24 = vpop.permute.xlu0 %10295  ;;  %v10250_v9 = vpop.permute.xlu1 %10249 }
0x4dc5   :  { %v10331_v45 = vsel %vm2588_vm5, %v10327_v35, %v10250_v9  ;;  %v10342_v50 = vsel %vm2602_vm7, %v10338_v1, %v10296_v24  ;;  %v11654_v1 = vld [vmem:[%s18486_s3 + $0x20] sm:$0xff] }
0x4dc8   :  { %v10252_v25 = vpop.permute.xlu0 %10251  ;;  %v10266_v16 = vpop.permute.xlu1 %10265 }
0x4dc9   :  { %v10335_v21 = vsel %vm41_vm0, %v10331_v45, %v10266_v16 }
0x4dcc   :  { %v10282_v59 = vpop.permute.xlu0 %10281  ;;  %v10268_v23 = vpop.permute.xlu1 %10267 }
0x4dd0   :  { %v10298_v3 = vpop.permute.xlu0 %10297  ;;  %v10284_v26 = vpop.permute.xlu1 %10283 }
0x4e44   :  { %v13345_v7 = vpop.f32.mrb[148].mxu0 }
0x4e45   :  { %10311 = vrot.lane.b32.xlu0 %v13345_v7, %s18666_s12  ;;  %v10190_v53 = vpop.f32.mrb[149].mxu0  ;;  %v18693_v7 = vld [vmem:[#allocation26_spill] sm:$0xff] }
0x4e46   :  { %10309 = vrot.lane.b32.xlu1 %v10190_v53, %s18666_s12  ;;  %v10324_v53 = vsel %vm322_vm2, %v18693_v7, %v10220_v51 }
0x4e48   :  { %v13348_v57 = vpop.f32.mrb[150].mxu0 }
0x4e49   :  { %v10200_v55 = vpop.f32.mrb[151].mxu0 }
0x4e4a   :  { %10299 = vrot.lane.b32.xlu1 %v17924_v15, %s18665_s11  ;;  %10313 = vrot.lane.b32.xlu0 %v10200_v55, %s18666_s12  ;;  %v10328_v55 = vsel %vm2583_vm4, %v10324_v53, %v10236_v20 }
0x4e4e   :  { %10315 = vrot.lane.b32.xlu1 %v13348_v57, %s18666_s12  ;;  %v10339_v57 = vsel %vm2597_vm6, %v10335_v21, %v10282_v59 }
0x4e4f   :  { %v10343_v28 = vsel %vm2602_vm7, %v10339_v57, %v10298_v3  ;;  %v18696_v3 = vld [vmem:[#allocation15_spill] sm:$0xff] }
0x4e69   :  { %v13359_v46 = vpop.f32.mrb[152].mxu0 }
0x4e6a   :  { %v10465_v2 = vadd.f32 %v13359_v46, %v18128_v6  ;;  %v10459_v31 = vpop.f32.mrb[153].mxu0 }
0x4e6b   :  { %v10460_v15 = vadd.f32 %v10459_v31, %v18128_v6  ;;  %v10332_v31 = vsel %vm2588_vm5, %v10328_v55, %v10252_v25 }
0x4e6c   :  { %v18133_v40 = vadd.f32 %v10465_v2, %v18688_v39  ;;  %v10336_v39 = vsel %vm41_vm0, %v10332_v31, %v10268_v23 }
0x4e6d   :  { %v18136_v37 = vadd.f32 %v10460_v15, %v18689_v22  ;;  %v10340_v22 = vsel %vm2597_vm6, %v10336_v39, %v10284_v26 }
0x4e6e   :  { %v10509_v5 = vsel %vm180_vm1, %v18133_v40, 0.0 }
0x4e6f   :  { %v10506_v30 = vsel %vm180_vm1, %v18136_v37, 0.0 }
0x4e70   :  { %10507 = vadd.xlane.f32.xlu0 %v10506_v30 }
0x4e72   :  { %10510 = vadd.xlane.f32.xlu1 %v10509_v5 }
0x4e81   :  { %v13362_v27 = vpop.f32.mrb[154].mxu0 }
0x4e82   :  { %v10469_v38 = vpop.f32.mrb[155].mxu0  ;;  %v10475_v13 = vadd.f32 %v13362_v27, %v18128_v6 }
0x4e83   :  { %v10470_v48 = vadd.f32 %v10469_v38, %v18128_v6 }
0x4e84   :  { %v18148_v44 = vadd.f32 %v10475_v13, %v18691_v62  ;;  %v18694_v62 = vld [vmem:[#allocation20_spill] sm:$0xff] }
0x4e85   :  { %v18145_v43 = vadd.f32 %v10470_v48, %v18690_v42 }
0x4e86   :  { %v10515_v4 = vsel %vm180_vm1, %v18148_v44, 0.0 }
0x4e87   :  { %v10512_v32 = vsel %vm180_vm1, %v18145_v43, 0.0 }
0x4e88   :  { %10513 = vadd.xlane.f32.xlu0 %v10512_v32 }
0x4e8c   :  { %10516 = vadd.xlane.f32.xlu0 %v10515_v4 }
0x4eb7   :  { %v10312_v47 = vpop.permute.xlu0 %10311 }
0x4eb8   :  { %v10310_v17 = vpop.permute.xlu1 %10309  ;;  %v10346_v36 = vsel %vm2607_vm8, %v10342_v50, %v10312_v47  ;;  %v11657_v50 = vld [vmem:[%s18486_s3 + $0x38] sm:$0xff] }
0x4eb9   :  { %v10345_v49 = vsel %vm2607_vm8, %v10341_v52, %v10310_v17  ;;  %v11655_v52 = vld [vmem:[%s18486_s3 + $0x28] sm:$0xff]  ;;  %v11656_v17 = vld [vmem:[%s18486_s3 + $0x30] sm:$0xff] }
0x4eba   :  { %13363 = vmatprep.mubr.msk.f32.mxu0 %vm180_vm1, %v10345_v49  ;;  %v14137_v45 = vpack.c.bf16 %v11655_v52, %v11654_v1  ;;  %v14141_v49 = vpack.c.bf16 %v11657_v50, %v11656_v17  ;;  %v11669_v1 = vld [vmem:[%s18487_s4 + $0x58] sm:$0xff]  ;;  %v11670_v17 = vld [vmem:[%s18487_s4 + $0x60] sm:$0xff] }
0x4ebb   :  { %13364 = vmatmul.mubr.msk.f32.gmra.mrb[156].mxu0 %vm180_vm1, %v10346_v36 }
0x4ebc   :  { %v10300_v46 = vpop.permute.xlu1 %10299  ;;  %v10314_v2 = vpop.permute.xlu0 %10313  ;;  %14138 = vmatprep.subr.bf16.mxu1 %v14137_v45 }
0x4ebd   :  { %v10347_v15 = vsel %vm2607_vm8, %v10343_v28, %v10314_v2  ;;  %v10344_v30 = vsel %vm2602_vm7, %v10340_v22, %v10300_v46  ;;  %14140 = vmatpush3.bf16.msra.mxu1 %v14137_v45  ;;  %v11671_v45 = vld [vmem:[%s18487_s4 + $0x68] sm:$0xff] }
0x4ebe   :  { %13366 = vmatprep.mubr.msk.f32.mxu0 %vm180_vm1, %v10347_v15  ;;  %14142 = vmatprep.subr.bf16.mxu1 %v14141_v49  ;;  %v14153_v50 = vpack.c.bf16 %v11671_v45, %v11670_v17 }
0x4ec0   :  { %v10316_v5 = vpop.permute.xlu1 %10315 }
0x4ec1   :  { %v10348_v10 = vsel %vm2607_vm8, %v10344_v30, %v10316_v5  ;;  %14144 = vmatpush3.bf16.msra.mxu1 %v14141_v49  ;;  %v11672_v49 = vld [vmem:[%s18487_s4 + $0x70] sm:$0xff] }
0x4ec2   :  { %13367 = vmatmul.mubr.msk.f32.gmra.mrb[158].mxu0 %vm180_vm1, %v10348_v10 }
0x4efd   :  { %v10508_v27 = vpop.xlane.xlu0 %10507 }
0x4efe   :  { %v10530_v51 = vmul.f32 0.03125, %v10508_v27 }
0x4eff   :  { %v10511_v13 = vpop.xlane.xlu1 %10510 }
0x4f00   :  { %v10531_v56 = vmul.f32 0.03125, %v10511_v13  ;;  %v18196_v16 = vsub.f32 %v18136_v37, %v10530_v51 }
0x4f02   :  { %v18192_v58 = vsub.f32 %v18133_v40, %v10531_v56 }
0x4f04   :  { %v10547_v29 = vmul.f32 %v18192_v58, %v18192_v58 }
0x4f06   :  { %v10557_v14 = vsel %vm180_vm1, %v10547_v29, 0.0 }
0x4f15   :  { %v10514_v38 = vpop.xlane.xlu0 %10513 }
0x4f16   :  { %v10532_v59 = vmul.f32 0.03125, %v10514_v38 }
0x4f18   :  { %v18208_v60 = vsub.f32 %v18145_v43, %v10532_v59 }
0x4f19   :  { %v10517_v18 = vpop.xlane.xlu0 %10516 }
0x4f1a   :  { %v10533_v24 = vmul.f32 0.03125, %v10517_v18  ;;  %v10548_v47 = vmul.f32 %v18208_v60, %v18208_v60 }
0x4f1c   :  { %v18202_v8 = vsub.f32 %v18148_v44, %v10533_v24  ;;  %v10560_v35 = vsel %vm180_vm1, %v10548_v47, 0.0  ;;  %v11667_v47 = vld [vmem:[%s18487_s4 + $0x48] sm:$0xff] }
0x4f1e   :  { %v10549_v44 = vmul.f32 %v18202_v8, %v18202_v8 }
0x4f20   :  { %v10563_v43 = vsel %vm180_vm1, %v10549_v44, 0.0 }
0x4f8e   :  { %v13365_v0 = vpop.f32.mrb[156].mxu0 }
0x4f8f   :  { %v10485_v48 = vadd.f32 %v13365_v0, %v18128_v6  ;;  %v10479_v34 = vpop.f32.mrb[157].mxu0 }
0x4f90   :  { %v10480_v42 = vadd.f32 %v10479_v34, %v18128_v6 }
0x4f91   :  { %v10503_v32 = vadd.f32 %v10485_v48, %v18694_v62 }
0x4f92   :  { %v10502_v4 = vadd.f32 %v10480_v42, %v18695_v11 }
0x4f93   :  { %v10521_v12 = vsel %vm180_vm1, %v10503_v32, 0.0 }
0x4f94   :  { %10522 = vadd.xlane.f32.xlu0 %v10521_v12  ;;  %v10518_v19 = vsel %vm180_vm1, %v10502_v4, 0.0 }
0x4f95   :  { %v13368_v20 = vpop.f32.mrb[158].mxu0  ;;  %10519 = vadd.xlane.f32.xlu1 %v10518_v19 }
0x4f96   :  { %v10495_v9 = vadd.f32 %v13368_v20, %v18128_v6  ;;  %v10489_v25 = vpop.f32.mrb[159].mxu0  ;;  %v18698_v20 = vsub.s32 4, %v18686_v61 }
0x4f97   :  { %v10490_v23 = vadd.f32 %v10489_v25, %v18128_v6  ;;  %v10546_v6 = vmul.f32 %v18196_v16, %v18196_v16 }
0x4f98   :  { %v10505_v26 = vadd.f32 %v10495_v9, %v18696_v3  ;;  %v18256_v24 = vrot.slane %v18123_v63, %v18698_v20 }
0x4f99   :  { %v10504_v54 = vadd.f32 %v10490_v23, %v18697_v41  ;;  %v10554_v33 = vsel %vm180_vm1, %v10546_v6, 0.0  ;;  %v18699_v23 = vsub.s32 5, %v18686_v61 }
0x4f9a   :  { %v10527_v40 = vsel %vm180_vm1, %v10505_v26, 0.0 }
0x4f9b   :  { %10528 = vadd.xlane.f32.xlu0 %v10527_v40  ;;  %v10524_v37 = vsel %vm180_vm1, %v10504_v54, 0.0  ;;  %v18262_v3 = vrot.slane %v18123_v63, %v18699_v23 }
0x4f9c   :  { %10525 = vadd.xlane.f32.xlu1 %v10524_v37 }
0x4f9f   :  { %10558 = vadd.xlane.f32.xlu0 %v10557_v14 }
0x4fa0   :  { %10555 = vadd.xlane.f32.xlu1 %v10554_v33 }
0x4fa3   :  { %10564 = vadd.xlane.f32.xlu0 %v10563_v43  ;;  %v11668_v43 = vld [vmem:[%s18487_s4 + $0x50] sm:$0xff] }
0x4fa4   :  { %10561 = vadd.xlane.f32.xlu1 %v10560_v35  ;;  %v14149_v52 = vpack.c.bf16 %v11669_v1, %v11668_v43 }
0x5021   :  { %v10523_v21 = vpop.xlane.xlu0 %10522 }
0x5022   :  { %v10535_v36 = vmul.f32 0.03125, %v10523_v21  ;;  %v10520_v7 = vpop.xlane.xlu1 %10519  ;;  %v11673_v21 = vld [vmem:[%s18487_s4 + $0x78] sm:$0xff] }
0x5023   :  { %v10534_v53 = vmul.f32 0.03125, %v10520_v7 }
0x5024   :  { %v18233_v57 = vsub.f32 %v10503_v32, %v10535_v36  ;;  %v14157_v36 = vpack.c.bf16 %v11673_v21, %v11672_v49 }
0x5025   :  { %v18235_v55 = vsub.f32 %v10502_v4, %v10534_v53 }
0x5026   :  { %v10551_v28 = vmul.f32 %v18233_v57, %v18233_v57 }
0x5027   :  { %v10550_v46 = vmul.f32 %v18235_v55, %v18235_v55 }
0x5028   :  { %v10529_v2 = vpop.xlane.xlu0 %10528  ;;  %v10569_v31 = vsel %vm180_vm1, %v10551_v28, 0.0 }
0x5029   :  { %v10537_v15 = vmul.f32 0.03125, %v10529_v2  ;;  %v10526_v39 = vpop.xlane.xlu1 %10525  ;;  %10570 = vadd.xlane.f32.xlu0 %v10569_v31  ;;  %v10566_v22 = vsel %vm180_vm1, %v10550_v46, 0.0 }
0x502a   :  { %v10536_v30 = vmul.f32 0.03125, %v10526_v39  ;;  %10567 = vadd.xlane.f32.xlu1 %v10566_v22 }
0x502b   :  { %v18243_v5 = vsub.f32 %v10505_v26, %v10537_v15 }
0x502c   :  { %v18245_v10 = vsub.f32 %v10504_v54, %v10536_v30  ;;  %v10559_v27 = vpop.xlane.xlu0 %10558 }
0x502d   :  { %v10579_v38 = vmul.f32 0.03125, %v10559_v27  ;;  %v10556_v0 = vpop.xlane.xlu1 %10555  ;;  %v10553_v13 = vmul.f32 %v18243_v5, %v18243_v5 }
0x502e   :  { %v10578_v48 = vmul.f32 0.03125, %v10556_v0  ;;  %v10552_v34 = vmul.f32 %v18245_v10, %v18245_v10 }
0x502f   :  { %v10587_v42 = vadd.f32 1e-05, %v10579_v38  ;;  %v10575_v62 = vsel %vm180_vm1, %v10553_v13, 0.0 }
0x5030   :  { %v10586_v32 = vadd.f32 1e-05, %v10578_v48  ;;  %10576 = vadd.xlane.f32.xlu0 %v10575_v62  ;;  %v10565_v56 = vpop.xlane.xlu0 %10564  ;;  %v10572_v11 = vsel %vm180_vm1, %v10552_v34, 0.0 }
0x5031   :  { %15404 = vrsqrt.f32 %v10587_v42  ;;  %v10581_v4 = vmul.f32 0.03125, %v10565_v56  ;;  %10573 = vadd.xlane.f32.xlu1 %v10572_v11  ;;  %v10562_v51 = vpop.xlane.xlu1 %10561 }
0x5032   :  { %15406 = vrsqrt.f32 %v10586_v32  ;;  %v10580_v18 = vmul.f32 0.03125, %v10562_v51 }
0x5033   :  { %v10589_v12 = vadd.f32 1e-05, %v10581_v4 }
0x5034   :  { %v10588_v19 = vadd.f32 1e-05, %v10580_v18 }
0x5035   :  { %15408 = vrsqrt.f32 %v10589_v12 }
0x5036   :  { %15410 = vrsqrt.f32 %v10588_v19 }
0x503b   :  { %v15405_v9 = vpop.eup %15404 }
0x503c   :  { %v15407_v25 = vpop.eup %15406  ;;  %v10603_v59 = vmul.f32 %v15405_v9, %v18192_v58 }
0x503d   :  { %v10602_v26 = vmul.f32 %v15407_v25, %v18196_v16 }
0x503e   :  { %v10615_v41 = vmul.f32 %v18256_v24, %v10603_v59 }
0x503f   :  { %v15409_v54 = vpop.eup %15408  ;;  %v10614_v40 = vmul.f32 %v18256_v24, %v10602_v26 }
0x5040   :  { %v15411_v29 = vpop.eup %15410  ;;  %v10605_v37 = vmul.f32 %v15409_v54, %v18202_v8  ;;  %v18273_v14 = vadd.f32 %v18262_v3, %v10615_v41 }
0x5041   :  { %v18269_v6 = vadd.f32 %v18262_v3, %v10614_v40  ;;  %v10604_v58 = vmul.f32 %v15411_v29, %v18208_v60  ;;  %v11666_v60 = vld [vmem:[%s18487_s4 + $0x40] sm:$0xff] }
0x5042   :  { %v10617_v44 = vmul.f32 %v18256_v24, %v10605_v37  ;;  %v14145_v35 = vpack.c.bf16 %v11667_v47, %v11666_v60 }
0x5043   :  { %13377 = vmatprep.mubr.msk.f32.mxu1 %vm180_vm1, %v18269_v6  ;;  %v10616_v16 = vmul.f32 %v18256_v24, %v10604_v58 }
0x5044   :  { %13378 = vmatmul.mubr.msk.f32.vlgmr.msra.gmra.mrb[152].mxu1 %vm180_vm1, %v18273_v14  ;;  %v18285_v33 = vadd.f32 %v18262_v3, %v10617_v44  ;;  %14146 = vmatprep.subr.bf16.mxu0 %v14145_v35 }
0x5045   :  { %v18282_v8 = vadd.f32 %v18262_v3, %v10616_v16  ;;  %14148 = vmatpush3.bf16.msra.mxu0 %v14145_v35 }
0x5046   :  { %14150 = vmatprep.subr.bf16.mxu0 %v14149_v52 }
0x5047   :  { %13380 = vmatprep.mubr.msk.f32.mxu1 %vm180_vm1, %v18282_v8 }
0x5048   :  { %13381 = vmatmul.mubr.msk.f32.gmra.mrb[154].mxu1 %vm180_vm1, %v18285_v33 }
0x5049   :  { %14152 = vmatpush3.bf16.msra.mxu0 %v14149_v52 }
0x504a   :  { %14154 = vmatprep.subr.bf16.mxu0 %v14153_v50 }
0x504d   :  { %14156 = vmatpush3.bf16.msra.mxu0 %v14153_v50  ;;  %v18701_v50 = vsub.s32 3, %v18686_v61 }
0x504e   :  { %14158 = vmatprep.subr.bf16.mxu0 %v14157_v36 }
0x504f   :  { %v10792_v49 = vrot.slane %v18123_v63, %v18701_v50 }
0x5051   :  { %14160 = vmatpush3.bf16.msra.mxu0 %v14157_v36 }
0x50b6   :  { %v10571_v7 = vpop.xlane.xlu0 %10570 }
0x50b7   :  { %v10583_v53 = vmul.f32 0.03125, %v10571_v7  ;;  %v10568_v28 = vpop.xlane.xlu1 %10567 }
0x50b8   :  { %v10582_v46 = vmul.f32 0.03125, %v10568_v28 }
0x50b9   :  { %v10591_v2 = vadd.f32 1e-05, %v10583_v53 }
0x50ba   :  { %v10590_v31 = vadd.f32 1e-05, %v10582_v46 }
0x50bb   :  { %15412 = vrsqrt.f32 %v10591_v2 }
0x50bc   :  { %15414 = vrsqrt.f32 %v10590_v31 }
0x50bd   :  { %v10577_v15 = vpop.xlane.xlu0 %10576 }
0x50be   :  { %v10585_v39 = vmul.f32 0.03125, %v10577_v15  ;;  %v10574_v22 = vpop.xlane.xlu1 %10573 }
0x50bf   :  { %v10584_v30 = vmul.f32 0.03125, %v10574_v22 }
0x50c0   :  { %v10593_v27 = vadd.f32 1e-05, %v10585_v39 }
0x50c1   :  { %v10592_v38 = vadd.f32 1e-05, %v10584_v30 }
0x50c2   :  { %15416 = vrsqrt.f32 %v10593_v27 }
0x50c3   :  { %15418 = vrsqrt.f32 %v10592_v38 }
0x50c5   :  { %v15413_v0 = vpop.eup %15412 }
0x50c6   :  { %v15415_v13 = vpop.eup %15414  ;;  %v10607_v48 = vmul.f32 %v15413_v0, %v18233_v57 }
0x50c7   :  { %v10606_v34 = vmul.f32 %v15415_v13, %v18235_v55 }
0x50c8   :  { %v10619_v42 = vmul.f32 %v18256_v24, %v10607_v48 }
0x50c9   :  { %v10618_v62 = vmul.f32 %v18256_v24, %v10606_v34 }
0x50ca   :  { %v18323_v11 = vadd.f32 %v18262_v3, %v10619_v42 }
0x50cb   :  { %v18320_v32 = vadd.f32 %v18262_v3, %v10618_v62 }
0x50cc   :  { %v15417_v56 = vpop.eup %15416 }
0x50cd   :  { %v15419_v4 = vpop.eup %15418  ;;  %13383 = vmatprep.mubr.msk.f32.mxu1 %vm180_vm1, %v18320_v32  ;;  %v10609_v51 = vmul.f32 %v15417_v56, %v18243_v5  ;;  %v18700_v5 = vsub.s32 2, %v18686_v61 }
0x50ce   :  { %13384 = vmatmul.mubr.msk.f32.gmra.mrb[156].mxu1 %vm180_vm1, %v18323_v11  ;;  %v10608_v57 = vmul.f32 %v15419_v4, %v18245_v10 }
0x50cf   :  { %v10621_v55 = vmul.f32 %v18256_v24, %v10609_v51  ;;  %v10642_v10 = vrot.slane %v18123_v63, %v18700_v5 }
0x50d0   :  { %v10620_v18 = vmul.f32 %v18256_v24, %v10608_v57 }
0x50d1   :  { %v18337_v19 = vadd.f32 %v18262_v3, %v10621_v55 }
0x50d2   :  { %v18334_v12 = vadd.f32 %v18262_v3, %v10620_v18 }
0x50d4   :  { %13386 = vmatprep.mubr.msk.f32.mxu1 %vm180_vm1, %v18334_v12 }
0x50d5   :  { %13387 = vmatmul.mubr.msk.f32.gmra.mrb[158].mxu1 %vm180_vm1, %v18337_v19 }
0x5117   :  { %v13379_v20 = vpop.f32.mrb[152].mxu1 }
0x5118   :  { %v10739_v9 = vadd.f32 %v13379_v20, %v10642_v10  ;;  %v10733_v25 = vpop.f32.mrb[153].mxu1 }
0x5119   :  { %v10734_v24 = vadd.f32 %v10733_v25, %v10642_v10 }
0x511a   :  { %v10773_v26 = vmax.f32 %v10739_v9, 0.0 }
0x511b   :  { %v10772_v59 = vmax.f32 %v10734_v24, 0.0  ;;  %v13382_v23 = vpop.f32.mrb[154].mxu1 }
0x511c   :  { %v10749_v41 = vadd.f32 %v13382_v23, %v10642_v10  ;;  %v10743_v3 = vpop.f32.mrb[155].mxu1 }
0x511d   :  { %v10744_v54 = vadd.f32 %v10743_v3, %v10642_v10  ;;  %13405 = vmatprep.mubr.msk.f32.mxu0 %vm5351_vm9, %v10772_v59 }
0x511e   :  { %13406 = vmatmul.mubr.msk.f32.vlgmr.msra.gmra.mrb[160].mxu0 %vm5351_vm9, %v10773_v26  ;;  %v10775_v29 = vmax.f32 %v10749_v41, 0.0 }
0x511f   :  { %v10774_v40 = vmax.f32 %v10744_v54, 0.0 }
0x5121   :  { %13408 = vmatprep.mubr.msk.f32.mxu0 %vm5351_vm9, %v10774_v40 }
0x5122   :  { %13409 = vmatmul.mubr.msk.f32.gmra.mrb[162].mxu0 %vm5351_vm9, %v10775_v29 }
0x51a1   :  { %v13385_v37 = vpop.f32.mrb[156].mxu1 }
0x51a2   :  { %v10759_v58 = vadd.f32 %v13385_v37, %v10642_v10  ;;  %v10753_v44 = vpop.f32.mrb[157].mxu1 }
0x51a3   :  { %v10754_v16 = vadd.f32 %v10753_v44, %v10642_v10 }
0x51a4   :  { %v10777_v47 = vmax.f32 %v10759_v58, 0.0 }
0x51a5   :  { %v10776_v60 = vmax.f32 %v10754_v16, 0.0 }
0x51a7   :  { %13411 = vmatprep.mubr.msk.f32.mxu0 %vm5351_vm9, %v10776_v60  ;;  %v11058_v60 = vld [vmem:[%s18488_s6] sm:$0xff] }
0x51a8   :  { %v13388_v43 = vpop.f32.mrb[158].mxu1  ;;  %13412 = vmatmul.mubr.msk.f32.gmra.mrb[164].mxu0 %vm5351_vm9, %v10777_v47  ;;  %v11059_v47 = vld [vmem:[%s18488_s6 + $0x8] sm:$0xff] }
0x51a9   :  { %v10769_v35 = vadd.f32 %v13388_v43, %v10642_v10  ;;  %v10763_v1 = vpop.f32.mrb[159].mxu1  ;;  %v11060_v43 = vld [vmem:[%s18488_s6 + $0x10] sm:$0xff] }
0x51aa   :  { %v10764_v52 = vadd.f32 %v10763_v1, %v10642_v10  ;;  %v11061_v1 = vld [vmem:[%s18488_s6 + $0x18] sm:$0xff] }
0x51ab   :  { %v10779_v45 = vmax.f32 %v10769_v35, 0.0  ;;  %v14161_v35 = vpack.c.bf16 %v11059_v47, %v11058_v60 }
0x51ac   :  { %v10778_v17 = vmax.f32 %v10764_v52, 0.0  ;;  %v14165_v52 = vpack.c.bf16 %v11061_v1, %v11060_v43 }
0x51ad   :  { %14162 = vmatprep.subr.bf16.mxu1 %v14161_v35 }
0x51ae   :  { %13414 = vmatprep.mubr.msk.f32.mxu0 %vm5351_vm9, %v10778_v17  ;;  %14164 = vmatpush3.bf16.msra.mxu1 %v14161_v35 }
0x51af   :  { %13415 = vmatmul.mubr.msk.f32.gmra.mrb[166].mxu0 %vm5351_vm9, %v10779_v45  ;;  %14166 = vmatprep.subr.bf16.mxu1 %v14165_v52 }
0x51b2   :  { %14168 = vmatpush3.bf16.msra.mxu1 %v14165_v52 }
0x51f1   :  { %v13407_v21 = vpop.f32.mrb[160].mxu0 }
0x51f2   :  { %v10889_v36 = vadd.f32 %v13407_v21, %v10792_v49  ;;  %v10883_v7 = vpop.f32.mrb[161].mxu0 }
0x51f3   :  { %v10884_v53 = vadd.f32 %v10883_v7, %v10792_v49 }
0x51f4   :  { %v10923_v28 = vadd.f32 %v10889_v36, %v18273_v14 }
0x51f5   :  { %v10922_v46 = vadd.f32 %v10884_v53, %v18269_v6  ;;  %v13410_v2 = vpop.f32.mrb[162].mxu0 }
0x51f6   :  { %v10899_v31 = vadd.f32 %v13410_v2, %v10792_v49  ;;  %v10893_v15 = vpop.f32.mrb[163].mxu0  ;;  %v10933_v39 = vsel %vm180_vm1, %v10923_v28, 0.0 }
0x51f7   :  { %v10894_v22 = vadd.f32 %v10893_v15, %v10792_v49  ;;  %10934 = vadd.xlane.f32.xlu0 %v10933_v39  ;;  %v10930_v30 = vsel %vm180_vm1, %v10922_v46, 0.0 }
0x51f8   :  { %v10925_v27 = vadd.f32 %v10899_v31, %v18285_v33  ;;  %10931 = vadd.xlane.f32.xlu1 %v10930_v30 }
0x51f9   :  { %v10924_v38 = vadd.f32 %v10894_v22, %v18282_v8 }
0x51fa   :  { %v10939_v0 = vsel %vm180_vm1, %v10925_v27, 0.0 }
0x51fb   :  { %10940 = vadd.xlane.f32.xlu0 %v10939_v0  ;;  %v10936_v14 = vsel %vm180_vm1, %v10924_v38, 0.0 }
0x51fc   :  { %10937 = vadd.xlane.f32.xlu1 %v10936_v14 }
0x527b   :  { %v13413_v6 = vpop.f32.mrb[164].mxu0 }
0x527c   :  { %v10909_v13 = vadd.f32 %v13413_v6, %v10792_v49  ;;  %v10903_v48 = vpop.f32.mrb[165].mxu0 }
0x527d   :  { %v10904_v34 = vadd.f32 %v10903_v48, %v10792_v49 }
0x527e   :  { %v10927_v42 = vadd.f32 %v10909_v13, %v18323_v11 }
0x527f   :  { %v10926_v62 = vadd.f32 %v10904_v34, %v18320_v32 }
0x5280   :  { %v10945_v56 = vsel %vm180_vm1, %v10927_v42, 0.0 }
0x5281   :  { %10946 = vadd.xlane.f32.xlu0 %v10945_v56  ;;  %v10942_v33 = vsel %vm180_vm1, %v10926_v62, 0.0 }
0x5282   :  { %10943 = vadd.xlane.f32.xlu1 %v10942_v33  ;;  %v13416_v8 = vpop.f32.mrb[166].mxu0 }
0x5283   :  { %v10919_v4 = vadd.f32 %v13416_v8, %v10792_v49  ;;  %v10913_v51 = vpop.f32.mrb[167].mxu0 }
0x5284   :  { %v10914_v57 = vadd.f32 %v10913_v51, %v10792_v49  ;;  %v10935_v55 = vpop.xlane.xlu0 %10934 }
0x5285   :  { %v10929_v18 = vadd.f32 %v10919_v4, %v18337_v19  ;;  %v10955_v5 = vmul.f32 0.03125, %v10935_v55  ;;  %v10932_v10 = vpop.xlane.xlu1 %10931  ;;  %v18702_v55 = vsub.s32 6, %v18686_v61 }
0x5286   :  { %v10928_v20 = vadd.f32 %v10914_v57, %v18334_v12  ;;  %v10954_v11 = vmul.f32 0.03125, %v10932_v10 }
0x5287   :  { %v18371_v9 = vsub.f32 %v10923_v28, %v10955_v5  ;;  %v10951_v32 = vsel %vm180_vm1, %v10929_v18, 0.0 }
0x5288   :  { %v18374_v25 = vsub.f32 %v10922_v46, %v10954_v11  ;;  %10952 = vadd.xlane.f32.xlu0 %v10951_v32  ;;  %v10941_v24 = vpop.xlane.xlu0 %10940  ;;  %v10948_v59 = vsel %vm180_vm1, %v10928_v20, 0.0  ;;  %v18703_v11 = vsub.s32 7, %v18686_v61 }
0x5289   :  { %v10957_v23 = vmul.f32 0.03125, %v10941_v24  ;;  %v10938_v26 = vpop.xlane.xlu1 %10937  ;;  %10949 = vadd.xlane.f32.xlu1 %v10948_v59  ;;  %v10971_v19 = vmul.f32 %v18371_v9, %v18371_v9 }
0x528a   :  { %v10956_v41 = vmul.f32 0.03125, %v10938_v26  ;;  %v10970_v12 = vmul.f32 %v18374_v25, %v18374_v25  ;;  %v11049_v32 = vrot.slane %v18123_v63, %v18703_v11 }
0x528b   :  { %v18381_v3 = vsub.f32 %v10925_v27, %v10957_v23  ;;  %v10981_v54 = vsel %vm180_vm1, %v10971_v19, 0.0 }
0x528c   :  { %v18384_v40 = vsub.f32 %v10924_v38, %v10956_v41  ;;  %10982 = vadd.xlane.f32.xlu0 %v10981_v54  ;;  %v10978_v29 = vsel %vm180_vm1, %v10970_v12, 0.0 }
0x528d   :  { %10979 = vadd.xlane.f32.xlu1 %v10978_v29  ;;  %v10973_v37 = vmul.f32 %v18381_v3, %v18381_v3 }
0x528e   :  { %v10972_v58 = vmul.f32 %v18384_v40, %v18384_v40 }
0x528f   :  { %v10987_v44 = vsel %vm180_vm1, %v10973_v37, 0.0 }
0x5290   :  { %10988 = vadd.xlane.f32.xlu0 %v10987_v44  ;;  %v10984_v16 = vsel %vm180_vm1, %v10972_v58, 0.0 }
0x5291   :  { %10985 = vadd.xlane.f32.xlu1 %v10984_v16 }
0x530e   :  { %v10947_v17 = vpop.xlane.xlu0 %10946 }
0x530f   :  { %v10959_v45 = vmul.f32 0.03125, %v10947_v17  ;;  %v10944_v50 = vpop.xlane.xlu1 %10943 }
0x5310   :  { %v10958_v49 = vmul.f32 0.03125, %v10944_v50 }
0x5311   :  { %v18405_v21 = vsub.f32 %v10927_v42, %v10959_v45 }
0x5312   :  { %v18407_v36 = vsub.f32 %v10926_v62, %v10958_v49 }
0x5313   :  { %v10975_v7 = vmul.f32 %v18405_v21, %v18405_v21 }
0x5314   :  { %v10974_v53 = vmul.f32 %v18407_v36, %v18407_v36 }
0x5315   :  { %v10953_v28 = vpop.xlane.xlu0 %10952  ;;  %v10993_v46 = vsel %vm180_vm1, %v10975_v7, 0.0 }
0x5316   :  { %v10961_v2 = vmul.f32 0.03125, %v10953_v28  ;;  %v10950_v31 = vpop.xlane.xlu1 %10949  ;;  %10994 = vadd.xlane.f32.xlu0 %v10993_v46  ;;  %v10990_v15 = vsel %vm180_vm1, %v10974_v53, 0.0 }
0x5317   :  { %v10960_v39 = vmul.f32 0.03125, %v10950_v31  ;;  %10991 = vadd.xlane.f32.xlu1 %v10990_v15 }
0x5318   :  { %v18415_v22 = vsub.f32 %v10929_v18, %v10961_v2  ;;  %v11037_v18 = vrot.slane %v18123_v63, %v18702_v55 }
0x5319   :  { %v18417_v30 = vsub.f32 %v10928_v20, %v10960_v39  ;;  %v10983_v27 = vpop.xlane.xlu0 %10982 }
0x531a   :  { %v11003_v38 = vmul.f32 0.03125, %v10983_v27  ;;  %v10980_v0 = vpop.xlane.xlu1 %10979  ;;  %v10977_v14 = vmul.f32 %v18415_v22, %v18415_v22 }
0x531b   :  { %v11002_v6 = vmul.f32 0.03125, %v10980_v0  ;;  %v10976_v13 = vmul.f32 %v18417_v30, %v18417_v30 }
0x531c   :  { %v11011_v48 = vadd.f32 1e-05, %v11003_v38  ;;  %v10999_v34 = vsel %vm180_vm1, %v10977_v14, 0.0 }
0x531d   :  { %v11010_v42 = vadd.f32 1e-05, %v11002_v6  ;;  %11000 = vadd.xlane.f32.xlu0 %v10999_v34  ;;  %v10989_v62 = vpop.xlane.xlu0 %10988  ;;  %v10996_v56 = vsel %vm180_vm1, %v10976_v13, 0.0 }
0x531e   :  { %15420 = vrsqrt.f32 %v11011_v48  ;;  %v11005_v33 = vmul.f32 0.03125, %v10989_v62  ;;  %10997 = vadd.xlane.f32.xlu1 %v10996_v56  ;;  %v10986_v8 = vpop.xlane.xlu1 %10985 }
0x531f   :  { %15422 = vrsqrt.f32 %v11010_v42  ;;  %v11004_v4 = vmul.f32 0.03125, %v10986_v8 }
0x5320   :  { %v11013_v51 = vadd.f32 1e-05, %v11005_v33 }
0x5321   :  { %v11012_v57 = vadd.f32 1e-05, %v11004_v4 }
0x5322   :  { %15424 = vrsqrt.f32 %v11013_v51 }
0x5323   :  { %15426 = vrsqrt.f32 %v11012_v57 }
0x5328   :  { %v15421_v5 = vpop.eup %15420 }
0x5329   :  { %v15423_v10 = vpop.eup %15422  ;;  %v11027_v20 = vmul.f32 %v15421_v5, %v18371_v9 }
0x532a   :  { %v11026_v24 = vmul.f32 %v15423_v10, %v18374_v25 }
0x532b   :  { %v11039_v59 = vmul.f32 %v11037_v18, %v11027_v20 }
0x532c   :  { %v15425_v23 = vpop.eup %15424  ;;  %v11038_v26 = vmul.f32 %v11037_v18, %v11026_v24 }
0x532d   :  { %v15427_v19 = vpop.eup %15426  ;;  %v11029_v41 = vmul.f32 %v15425_v23, %v18381_v3  ;;  %v11051_v29 = vadd.f32 %v11049_v32, %v11039_v59 }
0x532e   :  { %v11050_v12 = vadd.f32 %v11049_v32, %v11038_v26  ;;  %v11028_v54 = vmul.f32 %v15427_v19, %v18384_v40 }
0x532f   :  { %v11041_v37 = vmul.f32 %v11037_v18, %v11029_v41 }
0x5330   :  { %13425 = vmatprep.mubr.msk.f32.mxu1 %vm180_vm1, %v11050_v12  ;;  %v11040_v9 = vmul.f32 %v11037_v18, %v11028_v54 }
0x5331   :  { %13426 = vmatmul.mubr.msk.f32.vlgmr.msra.gmra.mrb[160].mxu1 %vm180_vm1, %v11051_v29  ;;  %v11053_v63 = vadd.f32 %v11049_v32, %v11041_v37 }
0x5332   :  { %v11052_v61 = vadd.f32 %v11049_v32, %v11040_v9 }
0x5334   :  { %13428 = vmatprep.mubr.msk.f32.mxu1 %vm180_vm1, %v11052_v61 }
0x5335   :  { %13429 = vmatmul.mubr.msk.f32.gmra.mrb[162].mxu1 %vm180_vm1, %v11053_v63 }
0x53a3   :  { %v10995_v25 = vpop.xlane.xlu0 %10994 }
0x53a4   :  { %v11007_v58 = vmul.f32 0.03125, %v10995_v25  ;;  %v10992_v44 = vpop.xlane.xlu1 %10991 }
0x53a5   :  { %v11006_v3 = vmul.f32 0.03125, %v10992_v44 }
0x53a6   :  { %v11015_v16 = vadd.f32 1e-05, %v11007_v58 }
0x53a7   :  { %v11014_v60 = vadd.f32 1e-05, %v11006_v3 }
0x53a8   :  { %15428 = vrsqrt.f32 %v11015_v16 }
0x53a9   :  { %15430 = vrsqrt.f32 %v11014_v60 }
0x53aa   :  { %v11001_v40 = vpop.xlane.xlu0 %11000 }
0x53ab   :  { %v11009_v47 = vmul.f32 0.03125, %v11001_v40  ;;  %v10998_v43 = vpop.xlane.xlu1 %10997 }
0x53ac   :  { %v11008_v35 = vmul.f32 0.03125, %v10998_v43 }
0x53ad   :  { %v11017_v1 = vadd.f32 1e-05, %v11009_v47 }
0x53ae   :  { %v11016_v52 = vadd.f32 1e-05, %v11008_v35 }
0x53af   :  { %15432 = vrsqrt.f32 %v11017_v1 }
0x53b0   :  { %15434 = vrsqrt.f32 %v11016_v52 }
0x53b2   :  { %v15429_v17 = vpop.eup %15428 }
0x53b3   :  { %v15431_v45 = vpop.eup %15430  ;;  %v11031_v50 = vmul.f32 %v15429_v17, %v18405_v21 }
0x53b4   :  { %v11030_v49 = vmul.f32 %v15431_v45, %v18407_v36  ;;  %v11682_v36 = vld [vmem:[%s18488_s6 + $0x20] ss:$0 sm:$0xff] }
0x53b5   :  { %v11043_v7 = vmul.f32 %v11037_v18, %v11031_v50 }
0x53b6   :  { %v11042_v53 = vmul.f32 %v11037_v18, %v11030_v49 }
0x53b7   :  { %v11055_v2 = vadd.f32 %v11049_v32, %v11043_v7 }
0x53b8   :  { %v11054_v28 = vadd.f32 %v11049_v32, %v11042_v53 }
0x53b9   :  { %v15433_v46 = vpop.eup %15432 }
0x53ba   :  { %v15435_v31 = vpop.eup %15434  ;;  %13431 = vmatprep.mubr.msk.f32.mxu1 %vm180_vm1, %v11054_v28  ;;  %v11033_v15 = vmul.f32 %v15433_v46, %v18415_v22 }
0x53bb   :  { %13432 = vmatmul.mubr.msk.f32.gmra.mrb[164].mxu1 %vm180_vm1, %v11055_v2  ;;  %v11032_v39 = vmul.f32 %v15435_v31, %v18417_v30 }
0x53bc   :  { %v11045_v27 = vmul.f32 %v11037_v18, %v11033_v15 }
0x53bd   :  { %v11044_v38 = vmul.f32 %v11037_v18, %v11032_v39 }
0x53be   :  { %v11057_v21 = vadd.f32 %v11049_v32, %v11045_v27 }
0x53bf   :  { %v11056_v0 = vadd.f32 %v11049_v32, %v11044_v38 }
0x53c1   :  { %13434 = vmatprep.mubr.msk.f32.mxu1 %vm180_vm1, %v11056_v0 }
0x53c2   :  { %13435 = vmatmul.mubr.msk.f32.gmra.mrb[166].mxu1 %vm180_vm1, %v11057_v21 }
0x5404   :  { %v13427_v14 = vpop.f32.mrb[160].mxu1 }
0x5405   :  { %v11163_v6 = vadd.f32 %v13427_v14, %v11682_v36  ;;  %v11157_v13 = vpop.f32.mrb[161].mxu1 }
0x5406   :  { %v11158_v22 = vadd.f32 %v11682_v36, %v11157_v13 }
0x5407   :  { %11197 = vst.msk [vmem:[%s18489_s7 + $0x8] sm:$0xff] %vm41_vm0, %v11163_v6 }
0x5408   :  { %11196 = vst.msk [vmem:[%s18489_s7] sm:$0xff] %vm41_vm0, %v11158_v22  ;;  %v13430_v30 = vpop.f32.mrb[162].mxu1 }
0x5409   :  { %v11173_v48 = vadd.f32 %v13430_v30, %v11682_v36  ;;  %v11167_v34 = vpop.f32.mrb[163].mxu1 }
0x540a   :  { %v11168_v42 = vadd.f32 %v11682_v36, %v11167_v34 }
0x540b   :  { %11199 = vst.msk [vmem:[%s18489_s7 + $0x18] sm:$0xff] %vm41_vm0, %v11173_v48 }
0x540c   :  { %11198 = vst.msk [vmem:[%s18489_s7 + $0x10] sm:$0xff] %vm41_vm0, %v11168_v42 }
0x548e   :  { %v13433_v62 = vpop.f32.mrb[164].mxu1 }
0x548f   :  { %v11183_v56 = vadd.f32 %v13433_v62, %v11682_v36  ;;  %v11177_v33 = vpop.f32.mrb[165].mxu1 }
0x5490   :  { %v11178_v8 = vadd.f32 %v11682_v36, %v11177_v33 }
0x5491   :  { %11201 = vst.msk [vmem:[%s18489_s7 + $0x28] sm:$0xff] %vm41_vm0, %v11183_v56 }
0x5492   :  { %11200 = vst.msk [vmem:[%s18489_s7 + $0x20] sm:$0xff] %vm41_vm0, %v11178_v8 }
0x5495   :  { %v13436_v4 = vpop.f32.mrb[166].mxu1 }
0x5496   :  { %v11193_v51 = vadd.f32 %v13436_v4, %v11682_v36  ;;  %v11187_v57 = vpop.f32.mrb[167].mxu1 }
0x5497   :  { %v11188_v55 = vadd.f32 %v11682_v36, %v11187_v57 }
0x5498   :  { %11203 = vst.msk [vmem:[%s18489_s7 + $0x38] sm:$0xff] %vm41_vm0, %v11193_v51 }
0x5499   :  { %11202 = vst.msk [vmem:[%s18489_s7 + $0x30] sm:$0xff] %vm41_vm0, %v11188_v55 }

</bundles_post_ra>
